<compile_context>
chip_gen: v5e
topology: v5e:2x2
jax: 0.10.0
libtpu: 0.0.40
codegen_flags: <defaults>
</compile_context>

<pallas_src>
import functools
import math

import jax
import jax.numpy as jnp
from jax.experimental import pallas as pl
from jax.experimental.pallas import tpu as pltpu

F32 = jnp.float32
BF16 = jnp.bfloat16
NEG_INF = -1e9


# ----------------------------- in-kernel helpers ----------------------------

def _mm(x, w):
    """MXU matmul: bf16 operands, f32 accumulation."""
    return jnp.dot(x.astype(BF16), w.astype(BF16), preferred_element_type=F32)


def _layernorm(x, g, b):
    x = x.astype(F32)
    mu = jnp.mean(x, axis=-1, keepdims=True)
    var = jnp.mean(jnp.square(x - mu), axis=-1, keepdims=True)
    return (x - mu) * jax.lax.rsqrt(var + 1e-5) * g + b


def _quick_gelu(x):
    # HF CLIP vision tower uses quick_gelu = x * sigmoid(1.702 x).
    return x * jax.nn.sigmoid(1.702 * x)


def _gelu_tanh(x):
    # TODO(synk): koclip's RoBERTa text tower uses exact (erf) GELU; tanh approx used.
    return jax.nn.gelu(x, approximate=True)


def _encoder_layer(x, ln1_g, ln1_b, wqkv, bqkv, wo, bo, ln2_g, ln2_b,
                   w1, b1, w2, b2, mask, *, batch, seq, heads, act):
    """One pre-LN transformer block; per-head outputs concatenated in registers."""
    D = x.shape[-1]
    hd = D // heads

    h = _layernorm(x, ln1_g, ln1_b)
    qkv = _mm(h, wqkv) + bqkv                                        # [B*T, 3D] f32

    attn_rows = []
    for b in range(batch):                                           # static unroll
        r0 = b * seq
        qkv_b = qkv[r0:r0 + seq, :]
        head_outs = []
        for hh in range(heads):
            c0 = hh * hd
            q = qkv_b[:, c0:c0 + hd]                  # scale pre-folded into wqkv
            k = qkv_b[:, D + c0:D + c0 + hd]
            v = qkv_b[:, 2 * D + c0:2 * D + c0 + hd]
            s = jax.lax.dot_general(                  # contract last axes, no k.T
                q.astype(BF16), k.astype(BF16),
                dimension_numbers=(((1,), (1,)), ((), ())),
                preferred_element_type=F32)
            if mask is not None:
                s = s + mask
            s = s - jnp.max(s, axis=-1, keepdims=True)
            p = jnp.exp(s)
            p = p * pl.reciprocal(jnp.sum(p, axis=-1, keepdims=True), approx=True)
            head_outs.append(jnp.dot(p.astype(BF16), v.astype(BF16),
                                     preferred_element_type=F32))    # [T, hd]
        attn_rows.append(jnp.concatenate(head_outs, axis=-1))        # [T, D] lane-dense
    attn = jnp.concatenate(attn_rows, axis=0)                        # [B*T, D]

    x = x + _mm(attn, wo) + bo
    h = _layernorm(x, ln2_g, ln2_b)
    h = act(_mm(h, w1) + b1)
    return x + _mm(h, w2) + b2


def _pool_project(x, lnf_g, lnf_b, w_proj, b_proj, out_ref, *, batch, seq, pool_row):
    """LN + projection on the pooled rows only; one [8, E] lane-dense store."""
    D = x.shape[-1]
    rows = [x[b * seq + pool_row:b * seq + pool_row + 1, :] for b in range(batch)]
    rows.append(jnp.zeros((8 - batch, D), F32))                      # pad to 8 sublanes
    pooled = jnp.concatenate(rows, axis=0)                           # [8, D]
    h = _layernorm(pooled, lnf_g, lnf_b)
    out_ref[...] = _mm(h, w_proj) + b_proj                           # [8, E]


# ------------------------------- tower kernels -------------------------------

def _vision_kernel(patches_ref, w_patch_ref, b_patch_ref, cls_ref, pos_ref,
                   ln1_g, ln1_b, wqkv, bqkv, wo, bo, ln2_g, ln2_b,
                   w1, b1, w2, b2,
                   lnf_g, lnf_b, w_proj, b_proj,
                   out_ref, x_sc,
                   *, batch, seq, n_patch, heads, layers):
    l = pl.program_id(0)
    D = x_sc.shape[-1]

    @pl.when(l == 0)
    def _embed():
        # patch embedding (== conv2d with kernel=stride=patch, as a matmul)
        pe = _mm(patches_ref[...], w_patch_ref[...]) + b_patch_ref[...]   # [B*N, D]
        pad = seq - n_patch - 1
        zero_pad = jnp.zeros((pad, D), F32)
        rows = []
        for b in range(batch):
            rows.append(jnp.concatenate(
                [pe[b * n_patch:(b + 1) * n_patch, :], cls_ref[...], zero_pad],
                axis=0))                                                  # [T, D]
        x0 = jnp.concatenate(rows, axis=0)                                # [B*T, D]
        pos = jnp.concatenate([pos_ref[...]] * batch, axis=0)             # [B*T, D]
        x_sc[...] = x0 + pos

    # pad-key mask built in-kernel (bidirectional over real tokens)
    col = jax.lax.broadcasted_iota(jnp.int32, (seq, seq), 1)
    mask = jnp.where(col < (n_patch + 1), 0.0, NEG_INF).astype(F32)

    lw = tuple(r[0] for r in (ln1_g, ln1_b, wqkv, bqkv, wo, bo,
                              ln2_g, ln2_b, w1, b1, w2, b2))
    x = _encoder_layer(x_sc[...], *lw, mask,
                       batch=batch, seq=seq, heads=heads, act=_quick_gelu)
    x_sc[...] = x

    @pl.when(l == layers - 1)
    def _finish():
        _pool_project(x, lnf_g[...], lnf_b[...], w_proj[...], b_proj[...],
                      out_ref, batch=batch, seq=seq, pool_row=n_patch)


def _text_kernel(x_ref,
                 ln1_g, ln1_b, wqkv, bqkv, wo, bo, ln2_g, ln2_b,
                 w1, b1, w2, b2,
                 lnf_g, lnf_b, w_proj, b_proj,
                 out_ref, x_sc,
                 *, batch, seq, heads, layers):
    l = pl.program_id(0)

    @pl.when(l == 0)
    def _seed():
        x_sc[...] = x_ref[...]

    lw = tuple(r[0] for r in (ln1_g, ln1_b, wqkv, bqkv, wo, bo,
                              ln2_g, ln2_b, w1, b1, w2, b2))
    # bidirectional attention (RoBERTa-style), no padding in this toy setup
    x = _encoder_layer(x_sc[...], *lw, None,
                       batch=batch, seq=seq, heads=heads, act=_gelu_tanh)
    x_sc[...] = x

    @pl.when(l == layers - 1)
    def _finish():
        # TODO(synk): RoBERTa pooler applies dense+tanh on the CLS token; plain
        # position-0 pooling + projection used here.
        _pool_project(x, lnf_g[...], lnf_b[...], w_proj[...], b_proj[...],
                      out_ref, batch=batch, seq=seq, pool_row=0)


# ------------------------------- BlockSpec helpers ---------------------------

def _const_spec(shape):
    n = len(shape)
    return pl.BlockSpec(tuple(shape), lambda l, _n=n: (0,) * _n)


def _layer_spec(shape):
    n = len(shape)
    return pl.BlockSpec((1,) + tuple(shape[1:]),
                        lambda l, _n=n: (l,) + (0,) * (_n - 1))


# ------------------------------- model wrappers -------------------------------

def _img_tokens(cfg):
    n_patch = (cfg["image_size"] // cfg["patch"]) ** 2
    return ((n_patch + 1 + 7) // 8) * 8                               # pad to 8-aligned


def encode_image(image, vp, cfg):
    """ViT tower -> pooled CLS -> projection (== outputs.image_embeds)."""
    B, C, H, W = image.shape
    assert B <= 8
    ps = cfg["patch"]
    nph, npw = H // ps, W // ps
    N = nph * npw
    T = _img_tokens(cfg)
    D, E = cfg["hidden"], cfg["embed_dim"]

    # patchify (glue: pure relayout, the im2col of conv2d(kernel=stride=patch))
    patches = image.reshape(B, C, nph, ps, npw, ps)
    patches = patches.transpose(0, 2, 4, 1, 3, 5).reshape(B * N, C * ps * ps)

    blocks = vp["blocks"]
    in_specs = ([_const_spec(patches.shape), _const_spec(vp["w_patch"].shape),
                 _const_spec(vp["b_patch"].shape), _const_spec(vp["cls"].shape),
                 _const_spec(vp["pos"].shape)]
                + [_layer_spec(w.shape) for w in blocks]
                + [_const_spec(vp["ln_g"].shape), _const_spec(vp["ln_b"].shape),
                   _const_spec(vp["w_proj"].shape), _const_spec(vp["b_proj"].shape)])

    kern = functools.partial(_vision_kernel, batch=B, seq=T, n_patch=N,
                             heads=cfg["heads"], layers=cfg["layers"])
    proj = pl.pallas_call(
        kern,
        grid=(cfg["layers"],),
        in_specs=in_specs,
        out_specs=pl.BlockSpec((8, E), lambda l: (0, 0)),
        out_shape=jax.ShapeDtypeStruct((8, E), F32),
        scratch_shapes=[pltpu.VMEM((B * T, D), F32)],       # residual stream
        compiler_params=pltpu.CompilerParams(
            dimension_semantics=("arbitrary",)),
    )(patches, vp["w_patch"], vp["b_patch"], vp["cls"], vp["pos"],
      *blocks, vp["ln_g"], vp["ln_b"], vp["w_proj"], vp["b_proj"])

    return proj[:B]                                                    # [B, E]


def encode_text(tokens, tp, cfg):
    """Text tower -> pooled token -> projection (== outputs.text_embeds)."""
    B, T = tokens.shape
    assert B <= 8
    D, E = cfg["hidden"], cfg["embed_dim"]

    # token-embedding gather + positional add (glue)
    x = (jnp.take(tp["tok_emb"], tokens, axis=0) + tp["pos"][None]).reshape(B * T, D)

    blocks = tp["blocks"]
    in_specs = ([_const_spec(x.shape)]
                + [_layer_spec(w.shape) for w in blocks]
                + [_const_spec(tp["ln_g"].shape), _const_spec(tp["ln_b"].shape),
                   _const_spec(tp["w_proj"].shape), _const_spec(tp["b_proj"].shape)])

    kern = functools.partial(_text_kernel, batch=B, seq=T,
                             heads=cfg["heads"], layers=cfg["layers"])
    proj = pl.pallas_call(
        kern,
        grid=(cfg["layers"],),
        in_specs=in_specs,
        out_specs=pl.BlockSpec((8, E), lambda l: (0, 0)),
        out_shape=jax.ShapeDtypeStruct((8, E), F32),
        scratch_shapes=[pltpu.VMEM((B * T, D), F32)],       # residual stream
        compiler_params=pltpu.CompilerParams(
            dimension_semantics=("arbitrary",)),
    )(x, *blocks, tp["ln_g"], tp["ln_b"], tp["w_proj"], tp["b_proj"])

    return proj[:B]                                                    # [B, E]


def koclip_forward(image, tokens, params, cfg):
    """Mirrors KoCLIPWrapper.forward -> (image_embeds, text_embeds)."""
    image_embeds = encode_image(image, params["vision"], cfg)
    text_embeds = encode_text(tokens, params["text"], cfg)
    return image_embeds, text_embeds


# ------------------------------ parameter init -------------------------------

_BLOCK_ORDER = ("ln1_g", "ln1_b", "wqkv", "bqkv", "wo", "bo",
                "ln2_g", "ln2_b", "w1", "b1", "w2", "b2")


def _block_params(key, D, mlp, heads):
    ks = jax.random.split(key, 4)
    s = 0.02
    hd = D // heads
    wqkv = s * jax.random.normal(ks[0], (D, 3 * D), F32)
    # fold 1/sqrt(head_dim) into the Q third -- no per-score scale in the kernel
    wqkv = wqkv.at[:, :D].multiply(1.0 / math.sqrt(hd))
    return {
        "ln1_g": jnp.ones((1, D), F32), "ln1_b": jnp.zeros((1, D), F32),
        "wqkv": wqkv.astype(BF16),
        "bqkv": jnp.zeros((1, 3 * D), F32),
        "wo": (s * jax.random.normal(ks[1], (D, D), F32)).astype(BF16),
        "bo": jnp.zeros((1, D), F32),
        "ln2_g": jnp.ones((1, D), F32), "ln2_b": jnp.zeros((1, D), F32),
        "w1": (s * jax.random.normal(ks[2], (D, mlp), F32)).astype(BF16),
        "b1": jnp.zeros((1, mlp), F32),
        "w2": (s * jax.random.normal(ks[3], (mlp, D), F32)).astype(BF16),
        "b2": jnp.zeros((1, D), F32),
    }


def _stack_blocks(blocks):
    """Stack per-layer params along a leading [L, ...] axis (one ref per tensor)."""
    return tuple(jnp.stack([blk[k] for blk in blocks], axis=0) for k in _BLOCK_ORDER)


def init_params(key, cfg):
    D, mlp, E = cfg["hidden"], cfg["mlp"], cfg["embed_dim"]
    C, ps, heads = cfg["channels"], cfg["patch"], cfg["heads"]
    T_img = _img_tokens(cfg)
    kv, kt = jax.random.split(key)
    kvs = jax.random.split(kv, cfg["layers"] + 4)
    kts = jax.random.split(kt, cfg["layers"] + 3)
    s = 0.02
    vision = {
        "w_patch": (s * jax.random.normal(kvs[0], (C * ps * ps, D), F32)).astype(BF16),
        "b_patch": jnp.zeros((1, D), F32),
        "cls": s * jax.random.normal(kvs[1], (1, D), F32),
        "pos": s * jax.random.normal(kvs[2], (T_img, D), F32),
        "blocks": _stack_blocks(
            [_block_params(kvs[4 + i], D, mlp, heads) for i in range(cfg["layers"])]),
        "ln_g": jnp.ones((1, D), F32), "ln_b": jnp.zeros((1, D), F32),
        "w_proj": (s * jax.random.normal(kvs[3], (D, E), F32)).astype(BF16),
        "b_proj": jnp.zeros((1, E), F32),
    }
    text = {
        "tok_emb": s * jax.random.normal(kts[0], (cfg["vocab"], D), F32),
        "pos": s * jax.random.normal(kts[1], (cfg["seq"], D), F32),
        "blocks": _stack_blocks(
            [_block_params(kts[3 + i], D, mlp, heads) for i in range(cfg["layers"])]),
        "ln_g": jnp.ones((1, D), F32), "ln_b": jnp.zeros((1, D), F32),
        "w_proj": (s * jax.random.normal(kts[2], (D, E), F32)).astype(BF16),
        "b_proj": jnp.zeros((1, E), F32),
    }
    return {"vision": vision, "text": text}


# ----------------------------------- main ------------------------------------

if __name__ == "__main__":
    cfg = dict(
        image_size=16, patch=4, channels=3,
        hidden=128, heads=4, mlp=256, layers=2,
        vocab=64, seq=8, embed_dim=128,
    )
    key = jax.random.PRNGKey(0)
    k_img, k_txt, k_par = jax.random.split(key, 3)

    image = jax.random.normal(
        k_img, (2, cfg["channels"], cfg["image_size"], cfg["image_size"]), F32)
    tokens = jax.random.randint(k_txt, (2, cfg["seq"]), 0, cfg["vocab"], jnp.int32)
    params = init_params(k_par, cfg)

    fwd = jax.jit(lambda img, tok, p: koclip_forward(img, tok, p, cfg))
    image_embeds, text_embeds = fwd(image, tokens, params)
    jax.block_until_ready((image_embeds, text_embeds))

    assert image_embeds.shape == (2, cfg["embed_dim"])
    assert text_embeds.shape == (2, cfg["embed_dim"])
    assert bool(jnp.all(jnp.isfinite(image_embeds)))
    assert bool(jnp.all(jnp.isfinite(text_embeds)))
    print("KERNEL_OK")
</pallas_src>

<mosaic_0001>
module attributes {stable_mosaic.version = 11 : i64} {
  func.func @_vision_kernel(%arg0: i32, %arg1: memref<32x48xf32, #tpu.memory_space<vmem>>, %arg2: memref<48x128xbf16, #tpu.memory_space<vmem>>, %arg3: memref<1x128xf32, #tpu.memory_space<vmem>>, %arg4: memref<1x128xf32, #tpu.memory_space<vmem>>, %arg5: memref<24x128xf32, #tpu.memory_space<vmem>>, %arg6: memref<1x1x128xf32, #tpu.memory_space<vmem>>, %arg7: memref<1x1x128xf32, #tpu.memory_space<vmem>>, %arg8: memref<1x128x384xbf16, #tpu.memory_space<vmem>>, %arg9: memref<1x1x384xf32, #tpu.memory_space<vmem>>, %arg10: memref<1x128x128xbf16, #tpu.memory_space<vmem>>, %arg11: memref<1x1x128xf32, #tpu.memory_space<vmem>>, %arg12: memref<1x1x128xf32, #tpu.memory_space<vmem>>, %arg13: memref<1x1x128xf32, #tpu.memory_space<vmem>>, %arg14: memref<1x128x256xbf16, #tpu.memory_space<vmem>>, %arg15: memref<1x1x256xf32, #tpu.memory_space<vmem>>, %arg16: memref<1x256x128xbf16, #tpu.memory_space<vmem>>, %arg17: memref<1x1x128xf32, #tpu.memory_space<vmem>>, %arg18: memref<1x128xf32, #tpu.memory_space<vmem>>, %arg19: memref<1x128xf32, #tpu.memory_space<vmem>>, %arg20: memref<128x128xbf16, #tpu.memory_space<vmem>>, %arg21: memref<1x128xf32, #tpu.memory_space<vmem>>, %arg22: memref<8x128xf32, #tpu.memory_space<vmem>>, %arg23: memref<48x128xf32, #tpu.memory_space<vmem>>) attributes {dimension_semantics = [#tpu.dimension_semantics<arbitrary>], iteration_bounds = array<i64: 2>, scalar_prefetch = 0 : i64, scratch_operands = 1 : i64, tpu.core_type = #tpu.core_type<tc>, window_params = [{pipeline_mode = #tpu.pipeline_mode<synchronous>, transform_indices = @transform_0, window_bounds = array<i64: 32, 48>}, {pipeline_mode = #tpu.pipeline_mode<synchronous>, transform_indices = @transform_1, window_bounds = array<i64: 48, 128>}, {pipeline_mode = #tpu.pipeline_mode<synchronous>, transform_indices = @transform_2, window_bounds = array<i64: 1, 128>}, {pipeline_mode = #tpu.pipeline_mode<synchronous>, transform_indices = @transform_3, window_bounds = array<i64: 1, 128>}, {pipeline_mode = #tpu.pipeline_mode<synchronous>, transform_indices = @transform_4, window_bounds = array<i64: 24, 128>}, {transform_indices = @transform_5, window_bounds = array<i64: 1, 1, 128>}, {transform_indices = @transform_6, window_bounds = array<i64: 1, 1, 128>}, {transform_indices = @transform_7, window_bounds = array<i64: 1, 128, 384>}, {transform_indices = @transform_8, window_bounds = array<i64: 1, 1, 384>}, {transform_indices = @transform_9, window_bounds = array<i64: 1, 128, 128>}, {transform_indices = @transform_10, window_bounds = array<i64: 1, 1, 128>}, {transform_indices = @transform_11, window_bounds = array<i64: 1, 1, 128>}, {transform_indices = @transform_12, window_bounds = array<i64: 1, 1, 128>}, {transform_indices = @transform_13, window_bounds = array<i64: 1, 128, 256>}, {transform_indices = @transform_14, window_bounds = array<i64: 1, 1, 256>}, {transform_indices = @transform_15, window_bounds = array<i64: 1, 256, 128>}, {transform_indices = @transform_16, window_bounds = array<i64: 1, 1, 128>}, {pipeline_mode = #tpu.pipeline_mode<synchronous>, transform_indices = @transform_17, window_bounds = array<i64: 1, 128>}, {pipeline_mode = #tpu.pipeline_mode<synchronous>, transform_indices = @transform_18, window_bounds = array<i64: 1, 128>}, {pipeline_mode = #tpu.pipeline_mode<synchronous>, transform_indices = @transform_19, window_bounds = array<i64: 128, 128>}, {pipeline_mode = #tpu.pipeline_mode<synchronous>, transform_indices = @transform_20, window_bounds = array<i64: 1, 128>}, {pipeline_mode = #tpu.pipeline_mode<synchronous>, transform_indices = @transform_21, window_bounds = array<i64: 8, 128>}]} {
    %c0_i32 = arith.constant 0 : i32
    %0 = arith.cmpi eq, %arg0, %c0_i32 : i32
    %1 = arith.extui %0 : i1 to i32
    %c0_i32_0 = arith.constant 0 : i32
    %2 = arith.cmpi ne, %1, %c0_i32_0 : i32
    scf.if %2 {
      %c0_90 = arith.constant 0 : index
      %c0_91 = arith.constant 0 : index
      %273 = vector.load %arg1[%c0_90, %c0_91] : memref<32x48xf32, #tpu.memory_space<vmem>>, vector<32x48xf32>
      %c0_92 = arith.constant 0 : index
      %c0_93 = arith.constant 0 : index
      %274 = vector.load %arg2[%c0_92, %c0_93] : memref<48x128xbf16, #tpu.memory_space<vmem>>, vector<48x128xbf16>
      %275 = arith.truncf %273 : vector<32x48xf32> to vector<32x48xbf16>
      %cst_94 = arith.constant dense<0.000000e+00> : vector<32x128xf32>
      %276 = tpu.matmul %275, %274, %cst_94 {dimension_numbers = #tpu.dot_dimension_numbers<[1], [0], [0], [1], [0, 0, 1, 1], [], []>} : vector<32x48xbf16>, vector<48x128xbf16>, vector<32x128xf32> -> vector<32x128xf32>
      %c0_95 = arith.constant 0 : index
      %c0_96 = arith.constant 0 : index
      %277 = vector.load %arg3[%c0_95, %c0_96] : memref<1x128xf32, #tpu.memory_space<vmem>>, vector<1x128xf32>
      %278 = vector.broadcast %277 : vector<1x128xf32> to vector<32x128xf32>
      %279 = arith.addf %276, %278 : vector<32x128xf32>
      %cst_97 = arith.constant 0.000000e+00 : f32
      %280 = vector.broadcast %cst_97 : f32 to vector<7x128xf32>
      %281 = vector.extract_strided_slice %279 {offsets = [0, 0], sizes = [16, 128], strides = [1, 1]} : vector<32x128xf32> to vector<16x128xf32>
      %c0_98 = arith.constant 0 : index
      %c0_99 = arith.constant 0 : index
      %282 = vector.load %arg4[%c0_98, %c0_99] : memref<1x128xf32, #tpu.memory_space<vmem>>, vector<1x128xf32>
      %283 = tpu.concatenate %281, %282, %280 in 0 : vector<16x128xf32>, vector<1x128xf32>, vector<7x128xf32> -> vector<24x128xf32>
      %284 = vector.extract_strided_slice %279 {offsets = [16, 0], sizes = [16, 128], strides = [1, 1]} : vector<32x128xf32> to vector<16x128xf32>
      %c0_100 = arith.constant 0 : index
      %c0_101 = arith.constant 0 : index
      %285 = vector.load %arg4[%c0_100, %c0_101] : memref<1x128xf32, #tpu.memory_space<vmem>>, vector<1x128xf32>
      %286 = tpu.concatenate %284, %285, %280 in 0 : vector<16x128xf32>, vector<1x128xf32>, vector<7x128xf32> -> vector<24x128xf32>
      %287 = tpu.concatenate %283, %286 in 0 : vector<24x128xf32>, vector<24x128xf32> -> vector<48x128xf32>
      %c0_102 = arith.constant 0 : index
      %c0_103 = arith.constant 0 : index
      %288 = vector.load %arg5[%c0_102, %c0_103] : memref<24x128xf32, #tpu.memory_space<vmem>>, vector<24x128xf32>
      %289 = tpu.concatenate %288, %288 in 0 : vector<24x128xf32>, vector<24x128xf32> -> vector<48x128xf32>
      %290 = arith.addf %287, %289 : vector<48x128xf32>
      %c0_104 = arith.constant 0 : index
      %c0_105 = arith.constant 0 : index
      %291 = vector.load %arg23[%c0_104, %c0_105] : memref<48x128xf32, #tpu.memory_space<vmem>>, vector<48x128xf32>
      tpu.vector_store %arg23[%c0_104, %c0_105], %290 {strides = array<i32>} : memref<48x128xf32, #tpu.memory_space<vmem>>, vector<48x128xf32>,
    } else {
    }
    %3 = tpu.iota {dimensions = array<i32: 1>} : vector<24x24xi32>
    %c17_i32 = arith.constant 17 : i32
    %4 = vector.broadcast %c17_i32 : i32 to vector<24x24xi32>
    %5 = arith.cmpi slt, %3, %4 : vector<24x24xi32>
    %cst = arith.constant 0.000000e+00 : f32
    %cst_1 = arith.constant -1.000000e+09 : f32
    %6 = vector.broadcast %cst : f32 to vector<24x24xf32>
    %7 = vector.broadcast %cst_1 : f32 to vector<24x24xf32>
    %8 = arith.select %5, %6, %7 : vector<24x24xi1>, vector<24x24xf32>
    %c0 = arith.constant 0 : index
    %c0_2 = arith.constant 0 : index
    %c0_3 = arith.constant 0 : index
    %9 = vector.load %arg6[%c0, %c0_2, %c0_3] : memref<1x1x128xf32, #tpu.memory_space<vmem>>, vector<1x1x128xf32>
    %10 = vector.shape_cast %9 : vector<1x1x128xf32> to vector<1x128xf32>
    %c0_4 = arith.constant 0 : index
    %c0_5 = arith.constant 0 : index
    %c0_6 = arith.constant 0 : index
    %11 = vector.load %arg7[%c0_4, %c0_5, %c0_6] : memref<1x1x128xf32, #tpu.memory_space<vmem>>, vector<1x1x128xf32>
    %12 = vector.shape_cast %11 : vector<1x1x128xf32> to vector<1x128xf32>
    %c0_7 = arith.constant 0 : index
    %c0_8 = arith.constant 0 : index
    %c0_9 = arith.constant 0 : index
    %13 = vector.load %arg8[%c0_7, %c0_8, %c0_9] : memref<1x128x384xbf16, #tpu.memory_space<vmem>>, vector<1x128x384xbf16>
    %14 = vector.shape_cast %13 : vector<1x128x384xbf16> to vector<128x384xbf16>
    %c0_10 = arith.constant 0 : index
    %c0_11 = arith.constant 0 : index
    %c0_12 = arith.constant 0 : index
    %15 = vector.load %arg9[%c0_10, %c0_11, %c0_12] : memref<1x1x384xf32, #tpu.memory_space<vmem>>, vector<1x1x384xf32>
    %16 = vector.shape_cast %15 : vector<1x1x384xf32> to vector<1x384xf32>
    %c0_13 = arith.constant 0 : index
    %c0_14 = arith.constant 0 : index
    %c0_15 = arith.constant 0 : index
    %17 = vector.load %arg10[%c0_13, %c0_14, %c0_15] : memref<1x128x128xbf16, #tpu.memory_space<vmem>>, vector<1x128x128xbf16>
    %18 = vector.shape_cast %17 : vector<1x128x128xbf16> to vector<128x128xbf16>
    %c0_16 = arith.constant 0 : index
    %c0_17 = arith.constant 0 : index
    %c0_18 = arith.constant 0 : index
    %19 = vector.load %arg11[%c0_16, %c0_17, %c0_18] : memref<1x1x128xf32, #tpu.memory_space<vmem>>, vector<1x1x128xf32>
    %20 = vector.shape_cast %19 : vector<1x1x128xf32> to vector<1x128xf32>
    %c0_19 = arith.constant 0 : index
    %c0_20 = arith.constant 0 : index
    %c0_21 = arith.constant 0 : index
    %21 = vector.load %arg12[%c0_19, %c0_20, %c0_21] : memref<1x1x128xf32, #tpu.memory_space<vmem>>, vector<1x1x128xf32>
    %22 = vector.shape_cast %21 : vector<1x1x128xf32> to vector<1x128xf32>
    %c0_22 = arith.constant 0 : index
    %c0_23 = arith.constant 0 : index
    %c0_24 = arith.constant 0 : index
    %23 = vector.load %arg13[%c0_22, %c0_23, %c0_24] : memref<1x1x128xf32, #tpu.memory_space<vmem>>, vector<1x1x128xf32>
    %24 = vector.shape_cast %23 : vector<1x1x128xf32> to vector<1x128xf32>
    %c0_25 = arith.constant 0 : index
    %c0_26 = arith.constant 0 : index
    %c0_27 = arith.constant 0 : index
    %25 = vector.load %arg14[%c0_25, %c0_26, %c0_27] : memref<1x128x256xbf16, #tpu.memory_space<vmem>>, vector<1x128x256xbf16>
    %26 = vector.shape_cast %25 : vector<1x128x256xbf16> to vector<128x256xbf16>
    %c0_28 = arith.constant 0 : index
    %c0_29 = arith.constant 0 : index
    %c0_30 = arith.constant 0 : index
    %27 = vector.load %arg15[%c0_28, %c0_29, %c0_30] : memref<1x1x256xf32, #tpu.memory_space<vmem>>, vector<1x1x256xf32>
    %28 = vector.shape_cast %27 : vector<1x1x256xf32> to vector<1x256xf32>
    %c0_31 = arith.constant 0 : index
    %c0_32 = arith.constant 0 : index
    %c0_33 = arith.constant 0 : index
    %29 = vector.load %arg16[%c0_31, %c0_32, %c0_33] : memref<1x256x128xbf16, #tpu.memory_space<vmem>>, vector<1x256x128xbf16>
    %30 = vector.shape_cast %29 : vector<1x256x128xbf16> to vector<256x128xbf16>
    %c0_34 = arith.constant 0 : index
    %c0_35 = arith.constant 0 : index
    %c0_36 = arith.constant 0 : index
    %31 = vector.load %arg17[%c0_34, %c0_35, %c0_36] : memref<1x1x128xf32, #tpu.memory_space<vmem>>, vector<1x1x128xf32>
    %32 = vector.shape_cast %31 : vector<1x1x128xf32> to vector<1x128xf32>
    %c0_37 = arith.constant 0 : index
    %c0_38 = arith.constant 0 : index
    %33 = vector.load %arg23[%c0_37, %c0_38] : memref<48x128xf32, #tpu.memory_space<vmem>>, vector<48x128xf32>
    %cst_39 = arith.constant dense<0.000000e+00> : vector<48xf32>
    %34 = vector.multi_reduction <add>, %33, %cst_39 [1] : vector<48x128xf32> to vector<48xf32>
    %35 = vector.shape_cast %34 : vector<48xf32> to vector<48x1xf32>
    %cst_40 = arith.constant 1.280000e+02 : f32
    %36 = vector.broadcast %cst_40 : f32 to vector<48x1xf32>
    %37 = arith.divf %35, %36 : vector<48x1xf32>
    %38 = vector.broadcast %37 : vector<48x1xf32> to vector<48x128xf32>
    %39 = arith.subf %33, %38 : vector<48x128xf32>
    %40 = arith.mulf %39, %39 : vector<48x128xf32>
    %cst_41 = arith.constant dense<0.000000e+00> : vector<48xf32>
    %41 = vector.multi_reduction <add>, %40, %cst_41 [1] : vector<48x128xf32> to vector<48xf32>
    %42 = vector.shape_cast %41 : vector<48xf32> to vector<48x1xf32>
    %cst_42 = arith.constant 1.280000e+02 : f32
    %43 = vector.broadcast %cst_42 : f32 to vector<48x1xf32>
    %44 = arith.divf %42, %43 : vector<48x1xf32>
    %45 = vector.broadcast %37 : vector<48x1xf32> to vector<48x128xf32>
    %46 = arith.subf %33, %45 : vector<48x128xf32>
    %cst_43 = arith.constant 9.99999974E-6 : f32
    %47 = vector.broadcast %cst_43 : f32 to vector<48x1xf32>
    %48 = arith.addf %44, %47 : vector<48x1xf32>
    %49 = math.rsqrt %48 : vector<48x1xf32>
    %50 = vector.broadcast %49 : vector<48x1xf32> to vector<48x128xf32>
    %51 = arith.mulf %46, %50 : vector<48x128xf32>
    %52 = vector.broadcast %10 : vector<1x128xf32> to vector<48x128xf32>
    %53 = arith.mulf %51, %52 : vector<48x128xf32>
    %54 = vector.broadcast %12 : vector<1x128xf32> to vector<48x128xf32>
    %55 = arith.addf %53, %54 : vector<48x128xf32>
    %56 = arith.truncf %55 : vector<48x128xf32> to vector<48x128xbf16>
    %cst_44 = arith.constant dense<0.000000e+00> : vector<48x384xf32>
    %57 = tpu.matmul %56, %14, %cst_44 {dimension_numbers = #tpu.dot_dimension_numbers<[1], [0], [0], [1], [0, 0, 1, 1], [], []>} : vector<48x128xbf16>, vector<128x384xbf16>, vector<48x384xf32> -> vector<48x384xf32>
    %58 = vector.broadcast %16 : vector<1x384xf32> to vector<48x384xf32>
    %59 = arith.addf %57, %58 : vector<48x384xf32>
    %60 = vector.extract_strided_slice %59 {offsets = [0, 0], sizes = [24, 384], strides = [1, 1]} : vector<48x384xf32> to vector<24x384xf32>
    %61 = vector.extract_strided_slice %60 {offsets = [0, 0], sizes = [24, 32], strides = [1, 1]} : vector<24x384xf32> to vector<24x32xf32>
    %62 = vector.extract_strided_slice %60 {offsets = [0, 128], sizes = [24, 32], strides = [1, 1]} : vector<24x384xf32> to vector<24x32xf32>
    %63 = vector.extract_strided_slice %60 {offsets = [0, 256], sizes = [24, 32], strides = [1, 1]} : vector<24x384xf32> to vector<24x32xf32>
    %64 = arith.truncf %61 : vector<24x32xf32> to vector<24x32xbf16>
    %65 = arith.truncf %62 : vector<24x32xf32> to vector<24x32xbf16>
    %cst_45 = arith.constant dense<0.000000e+00> : vector<24x24xf32>
    %66 = tpu.matmul %64, %65, %cst_45 {dimension_numbers = #tpu.dot_dimension_numbers<[1], [1], [0], [0], [0, 0, 1, 0], [], []>} : vector<24x32xbf16>, vector<24x32xbf16>, vector<24x24xf32> -> vector<24x24xf32>
    %67 = arith.addf %66, %8 : vector<24x24xf32>
    %cst_46 = arith.constant dense<0xFF800000> : vector<24xf32>
    %68 = vector.multi_reduction <maximumf>, %67, %cst_46 [1] : vector<24x24xf32> to vector<24xf32>
    %69 = vector.shape_cast %68 : vector<24xf32> to vector<24x1xf32>
    %70 = vector.broadcast %69 : vector<24x1xf32> to vector<24x24xf32>
    %71 = arith.subf %67, %70 : vector<24x24xf32>
    %72 = math.exp %71 : vector<24x24xf32>
    %cst_47 = arith.constant dense<0.000000e+00> : vector<24xf32>
    %73 = vector.multi_reduction <add>, %72, %cst_47 [1] : vector<24x24xf32> to vector<24xf32>
    %74 = vector.shape_cast %73 : vector<24xf32> to vector<24x1xf32>
    %75 = tpu.reciprocal %74 {approx = true} : vector<24x1xf32> -> vector<24x1xf32>
    %76 = vector.broadcast %75 : vector<24x1xf32> to vector<24x24xf32>
    %77 = arith.mulf %72, %76 : vector<24x24xf32>
    %78 = arith.truncf %77 : vector<24x24xf32> to vector<24x24xbf16>
    %79 = arith.truncf %63 : vector<24x32xf32> to vector<24x32xbf16>
    %cst_48 = arith.constant dense<0.000000e+00> : vector<24x32xf32>
    %80 = tpu.matmul %78, %79, %cst_48 {dimension_numbers = #tpu.dot_dimension_numbers<[1], [0], [0], [1], [0, 0, 1, 1], [], []>} : vector<24x24xbf16>, vector<24x32xbf16>, vector<24x32xf32> -> vector<24x32xf32>
    %81 = vector.extract_strided_slice %60 {offsets = [0, 32], sizes = [24, 32], strides = [1, 1]} : vector<24x384xf32> to vector<24x32xf32>
    %82 = vector.extract_strided_slice %60 {offsets = [0, 160], sizes = [24, 32], strides = [1, 1]} : vector<24x384xf32> to vector<24x32xf32>
    %83 = vector.extract_strided_slice %60 {offsets = [0, 288], sizes = [24, 32], strides = [1, 1]} : vector<24x384xf32> to vector<24x32xf32>
    %84 = arith.truncf %81 : vector<24x32xf32> to vector<24x32xbf16>
    %85 = arith.truncf %82 : vector<24x32xf32> to vector<24x32xbf16>
    %cst_49 = arith.constant dense<0.000000e+00> : vector<24x24xf32>
    %86 = tpu.matmul %84, %85, %cst_49 {dimension_numbers = #tpu.dot_dimension_numbers<[1], [1], [0], [0], [0, 0, 1, 0], [], []>} : vector<24x32xbf16>, vector<24x32xbf16>, vector<24x24xf32> -> vector<24x24xf32>
    %87 = arith.addf %86, %8 : vector<24x24xf32>
    %cst_50 = arith.constant dense<0xFF800000> : vector<24xf32>
    %88 = vector.multi_reduction <maximumf>, %87, %cst_50 [1] : vector<24x24xf32> to vector<24xf32>
    %89 = vector.shape_cast %88 : vector<24xf32> to vector<24x1xf32>
    %90 = vector.broadcast %89 : vector<24x1xf32> to vector<24x24xf32>
    %91 = arith.subf %87, %90 : vector<24x24xf32>
    %92 = math.exp %91 : vector<24x24xf32>
    %cst_51 = arith.constant dense<0.000000e+00> : vector<24xf32>
    %93 = vector.multi_reduction <add>, %92, %cst_51 [1] : vector<24x24xf32> to vector<24xf32>
    %94 = vector.shape_cast %93 : vector<24xf32> to vector<24x1xf32>
    %95 = tpu.reciprocal %94 {approx = true} : vector<24x1xf32> -> vector<24x1xf32>
    %96 = vector.broadcast %95 : vector<24x1xf32> to vector<24x24xf32>
    %97 = arith.mulf %92, %96 : vector<24x24xf32>
    %98 = arith.truncf %97 : vector<24x24xf32> to vector<24x24xbf16>
    %99 = arith.truncf %83 : vector<24x32xf32> to vector<24x32xbf16>
    %cst_52 = arith.constant dense<0.000000e+00> : vector<24x32xf32>
    %100 = tpu.matmul %98, %99, %cst_52 {dimension_numbers = #tpu.dot_dimension_numbers<[1], [0], [0], [1], [0, 0, 1, 1], [], []>} : vector<24x24xbf16>, vector<24x32xbf16>, vector<24x32xf32> -> vector<24x32xf32>
    %101 = vector.extract_strided_slice %60 {offsets = [0, 64], sizes = [24, 32], strides = [1, 1]} : vector<24x384xf32> to vector<24x32xf32>
    %102 = vector.extract_strided_slice %60 {offsets = [0, 192], sizes = [24, 32], strides = [1, 1]} : vector<24x384xf32> to vector<24x32xf32>
    %103 = vector.extract_strided_slice %60 {offsets = [0, 320], sizes = [24, 32], strides = [1, 1]} : vector<24x384xf32> to vector<24x32xf32>
    %104 = arith.truncf %101 : vector<24x32xf32> to vector<24x32xbf16>
    %105 = arith.truncf %102 : vector<24x32xf32> to vector<24x32xbf16>
    %cst_53 = arith.constant dense<0.000000e+00> : vector<24x24xf32>
    %106 = tpu.matmul %104, %105, %cst_53 {dimension_numbers = #tpu.dot_dimension_numbers<[1], [1], [0], [0], [0, 0, 1, 0], [], []>} : vector<24x32xbf16>, vector<24x32xbf16>, vector<24x24xf32> -> vector<24x24xf32>
    %107 = arith.addf %106, %8 : vector<24x24xf32>
    %cst_54 = arith.constant dense<0xFF800000> : vector<24xf32>
    %108 = vector.multi_reduction <maximumf>, %107, %cst_54 [1] : vector<24x24xf32> to vector<24xf32>
    %109 = vector.shape_cast %108 : vector<24xf32> to vector<24x1xf32>
    %110 = vector.broadcast %109 : vector<24x1xf32> to vector<24x24xf32>
    %111 = arith.subf %107, %110 : vector<24x24xf32>
    %112 = math.exp %111 : vector<24x24xf32>
    %cst_55 = arith.constant dense<0.000000e+00> : vector<24xf32>
    %113 = vector.multi_reduction <add>, %112, %cst_55 [1] : vector<24x24xf32> to vector<24xf32>
    %114 = vector.shape_cast %113 : vector<24xf32> to vector<24x1xf32>
    %115 = tpu.reciprocal %114 {approx = true} : vector<24x1xf32> -> vector<24x1xf32>
    %116 = vector.broadcast %115 : vector<24x1xf32> to vector<24x24xf32>
    %117 = arith.mulf %112, %116 : vector<24x24xf32>
    %118 = arith.truncf %117 : vector<24x24xf32> to vector<24x24xbf16>
    %119 = arith.truncf %103 : vector<24x32xf32> to vector<24x32xbf16>
    %cst_56 = arith.constant dense<0.000000e+00> : vector<24x32xf32>
    %120 = tpu.matmul %118, %119, %cst_56 {dimension_numbers = #tpu.dot_dimension_numbers<[1], [0], [0], [1], [0, 0, 1, 1], [], []>} : vector<24x24xbf16>, vector<24x32xbf16>, vector<24x32xf32> -> vector<24x32xf32>
    %121 = vector.extract_strided_slice %60 {offsets = [0, 96], sizes = [24, 32], strides = [1, 1]} : vector<24x384xf32> to vector<24x32xf32>
    %122 = vector.extract_strided_slice %60 {offsets = [0, 224], sizes = [24, 32], strides = [1, 1]} : vector<24x384xf32> to vector<24x32xf32>
    %123 = vector.extract_strided_slice %60 {offsets = [0, 352], sizes = [24, 32], strides = [1, 1]} : vector<24x384xf32> to vector<24x32xf32>
    %124 = arith.truncf %121 : vector<24x32xf32> to vector<24x32xbf16>
    %125 = arith.truncf %122 : vector<24x32xf32> to vector<24x32xbf16>
    %cst_57 = arith.constant dense<0.000000e+00> : vector<24x24xf32>
    %126 = tpu.matmul %124, %125, %cst_57 {dimension_numbers = #tpu.dot_dimension_numbers<[1], [1], [0], [0], [0, 0, 1, 0], [], []>} : vector<24x32xbf16>, vector<24x32xbf16>, vector<24x24xf32> -> vector<24x24xf32>
    %127 = arith.addf %126, %8 : vector<24x24xf32>
    %cst_58 = arith.constant dense<0xFF800000> : vector<24xf32>
    %128 = vector.multi_reduction <maximumf>, %127, %cst_58 [1] : vector<24x24xf32> to vector<24xf32>
    %129 = vector.shape_cast %128 : vector<24xf32> to vector<24x1xf32>
    %130 = vector.broadcast %129 : vector<24x1xf32> to vector<24x24xf32>
    %131 = arith.subf %127, %130 : vector<24x24xf32>
    %132 = math.exp %131 : vector<24x24xf32>
    %cst_59 = arith.constant dense<0.000000e+00> : vector<24xf32>
    %133 = vector.multi_reduction <add>, %132, %cst_59 [1] : vector<24x24xf32> to vector<24xf32>
    %134 = vector.shape_cast %133 : vector<24xf32> to vector<24x1xf32>
    %135 = tpu.reciprocal %134 {approx = true} : vector<24x1xf32> -> vector<24x1xf32>
    %136 = vector.broadcast %135 : vector<24x1xf32> to vector<24x24xf32>
    %137 = arith.mulf %132, %136 : vector<24x24xf32>
    %138 = arith.truncf %137 : vector<24x24xf32> to vector<24x24xbf16>
    %139 = arith.truncf %123 : vector<24x32xf32> to vector<24x32xbf16>
    %cst_60 = arith.constant dense<0.000000e+00> : vector<24x32xf32>
    %140 = tpu.matmul %138, %139, %cst_60 {dimension_numbers = #tpu.dot_dimension_numbers<[1], [0], [0], [1], [0, 0, 1, 1], [], []>} : vector<24x24xbf16>, vector<24x32xbf16>, vector<24x32xf32> -> vector<24x32xf32>
    %141 = tpu.concatenate %80, %100, %120, %140 in 1 : vector<24x32xf32>, vector<24x32xf32>, vector<24x32xf32>, vector<24x32xf32> -> vector<24x128xf32>
    %142 = vector.extract_strided_slice %59 {offsets = [24, 0], sizes = [24, 384], strides = [1, 1]} : vector<48x384xf32> to vector<24x384xf32>
    %143 = vector.extract_strided_slice %142 {offsets = [0, 0], sizes = [24, 32], strides = [1, 1]} : vector<24x384xf32> to vector<24x32xf32>
    %144 = vector.extract_strided_slice %142 {offsets = [0, 128], sizes = [24, 32], strides = [1, 1]} : vector<24x384xf32> to vector<24x32xf32>
    %145 = vector.extract_strided_slice %142 {offsets = [0, 256], sizes = [24, 32], strides = [1, 1]} : vector<24x384xf32> to vector<24x32xf32>
    %146 = arith.truncf %143 : vector<24x32xf32> to vector<24x32xbf16>
    %147 = arith.truncf %144 : vector<24x32xf32> to vector<24x32xbf16>
    %cst_61 = arith.constant dense<0.000000e+00> : vector<24x24xf32>
    %148 = tpu.matmul %146, %147, %cst_61 {dimension_numbers = #tpu.dot_dimension_numbers<[1], [1], [0], [0], [0, 0, 1, 0], [], []>} : vector<24x32xbf16>, vector<24x32xbf16>, vector<24x24xf32> -> vector<24x24xf32>
    %149 = arith.addf %148, %8 : vector<24x24xf32>
    %cst_62 = arith.constant dense<0xFF800000> : vector<24xf32>
    %150 = vector.multi_reduction <maximumf>, %149, %cst_62 [1] : vector<24x24xf32> to vector<24xf32>
    %151 = vector.shape_cast %150 : vector<24xf32> to vector<24x1xf32>
    %152 = vector.broadcast %151 : vector<24x1xf32> to vector<24x24xf32>
    %153 = arith.subf %149, %152 : vector<24x24xf32>
    %154 = math.exp %153 : vector<24x24xf32>
    %cst_63 = arith.constant dense<0.000000e+00> : vector<24xf32>
    %155 = vector.multi_reduction <add>, %154, %cst_63 [1] : vector<24x24xf32> to vector<24xf32>
    %156 = vector.shape_cast %155 : vector<24xf32> to vector<24x1xf32>
    %157 = tpu.reciprocal %156 {approx = true} : vector<24x1xf32> -> vector<24x1xf32>
    %158 = vector.broadcast %157 : vector<24x1xf32> to vector<24x24xf32>
    %159 = arith.mulf %154, %158 : vector<24x24xf32>
    %160 = arith.truncf %159 : vector<24x24xf32> to vector<24x24xbf16>
    %161 = arith.truncf %145 : vector<24x32xf32> to vector<24x32xbf16>
    %cst_64 = arith.constant dense<0.000000e+00> : vector<24x32xf32>
    %162 = tpu.matmul %160, %161, %cst_64 {dimension_numbers = #tpu.dot_dimension_numbers<[1], [0], [0], [1], [0, 0, 1, 1], [], []>} : vector<24x24xbf16>, vector<24x32xbf16>, vector<24x32xf32> -> vector<24x32xf32>
    %163 = vector.extract_strided_slice %142 {offsets = [0, 32], sizes = [24, 32], strides = [1, 1]} : vector<24x384xf32> to vector<24x32xf32>
    %164 = vector.extract_strided_slice %142 {offsets = [0, 160], sizes = [24, 32], strides = [1, 1]} : vector<24x384xf32> to vector<24x32xf32>
    %165 = vector.extract_strided_slice %142 {offsets = [0, 288], sizes = [24, 32], strides = [1, 1]} : vector<24x384xf32> to vector<24x32xf32>
    %166 = arith.truncf %163 : vector<24x32xf32> to vector<24x32xbf16>
    %167 = arith.truncf %164 : vector<24x32xf32> to vector<24x32xbf16>
    %cst_65 = arith.constant dense<0.000000e+00> : vector<24x24xf32>
    %168 = tpu.matmul %166, %167, %cst_65 {dimension_numbers = #tpu.dot_dimension_numbers<[1], [1], [0], [0], [0, 0, 1, 0], [], []>} : vector<24x32xbf16>, vector<24x32xbf16>, vector<24x24xf32> -> vector<24x24xf32>
    %169 = arith.addf %168, %8 : vector<24x24xf32>
    %cst_66 = arith.constant dense<0xFF800000> : vector<24xf32>
    %170 = vector.multi_reduction <maximumf>, %169, %cst_66 [1] : vector<24x24xf32> to vector<24xf32>
    %171 = vector.shape_cast %170 : vector<24xf32> to vector<24x1xf32>
    %172 = vector.broadcast %171 : vector<24x1xf32> to vector<24x24xf32>
    %173 = arith.subf %169, %172 : vector<24x24xf32>
    %174 = math.exp %173 : vector<24x24xf32>
    %cst_67 = arith.constant dense<0.000000e+00> : vector<24xf32>
    %175 = vector.multi_reduction <add>, %174, %cst_67 [1] : vector<24x24xf32> to vector<24xf32>
    %176 = vector.shape_cast %175 : vector<24xf32> to vector<24x1xf32>
    %177 = tpu.reciprocal %176 {approx = true} : vector<24x1xf32> -> vector<24x1xf32>
    %178 = vector.broadcast %177 : vector<24x1xf32> to vector<24x24xf32>
    %179 = arith.mulf %174, %178 : vector<24x24xf32>
    %180 = arith.truncf %179 : vector<24x24xf32> to vector<24x24xbf16>
    %181 = arith.truncf %165 : vector<24x32xf32> to vector<24x32xbf16>
    %cst_68 = arith.constant dense<0.000000e+00> : vector<24x32xf32>
    %182 = tpu.matmul %180, %181, %cst_68 {dimension_numbers = #tpu.dot_dimension_numbers<[1], [0], [0], [1], [0, 0, 1, 1], [], []>} : vector<24x24xbf16>, vector<24x32xbf16>, vector<24x32xf32> -> vector<24x32xf32>
    %183 = vector.extract_strided_slice %142 {offsets = [0, 64], sizes = [24, 32], strides = [1, 1]} : vector<24x384xf32> to vector<24x32xf32>
    %184 = vector.extract_strided_slice %142 {offsets = [0, 192], sizes = [24, 32], strides = [1, 1]} : vector<24x384xf32> to vector<24x32xf32>
    %185 = vector.extract_strided_slice %142 {offsets = [0, 320], sizes = [24, 32], strides = [1, 1]} : vector<24x384xf32> to vector<24x32xf32>
    %186 = arith.truncf %183 : vector<24x32xf32> to vector<24x32xbf16>
    %187 = arith.truncf %184 : vector<24x32xf32> to vector<24x32xbf16>
    %cst_69 = arith.constant dense<0.000000e+00> : vector<24x24xf32>
    %188 = tpu.matmul %186, %187, %cst_69 {dimension_numbers = #tpu.dot_dimension_numbers<[1], [1], [0], [0], [0, 0, 1, 0], [], []>} : vector<24x32xbf16>, vector<24x32xbf16>, vector<24x24xf32> -> vector<24x24xf32>
    %189 = arith.addf %188, %8 : vector<24x24xf32>
    %cst_70 = arith.constant dense<0xFF800000> : vector<24xf32>
    %190 = vector.multi_reduction <maximumf>, %189, %cst_70 [1] : vector<24x24xf32> to vector<24xf32>
    %191 = vector.shape_cast %190 : vector<24xf32> to vector<24x1xf32>
    %192 = vector.broadcast %191 : vector<24x1xf32> to vector<24x24xf32>
    %193 = arith.subf %189, %192 : vector<24x24xf32>
    %194 = math.exp %193 : vector<24x24xf32>
    %cst_71 = arith.constant dense<0.000000e+00> : vector<24xf32>
    %195 = vector.multi_reduction <add>, %194, %cst_71 [1] : vector<24x24xf32> to vector<24xf32>
    %196 = vector.shape_cast %195 : vector<24xf32> to vector<24x1xf32>
    %197 = tpu.reciprocal %196 {approx = true} : vector<24x1xf32> -> vector<24x1xf32>
    %198 = vector.broadcast %197 : vector<24x1xf32> to vector<24x24xf32>
    %199 = arith.mulf %194, %198 : vector<24x24xf32>
    %200 = arith.truncf %199 : vector<24x24xf32> to vector<24x24xbf16>
    %201 = arith.truncf %185 : vector<24x32xf32> to vector<24x32xbf16>
    %cst_72 = arith.constant dense<0.000000e+00> : vector<24x32xf32>
    %202 = tpu.matmul %200, %201, %cst_72 {dimension_numbers = #tpu.dot_dimension_numbers<[1], [0], [0], [1], [0, 0, 1, 1], [], []>} : vector<24x24xbf16>, vector<24x32xbf16>, vector<24x32xf32> -> vector<24x32xf32>
    %203 = vector.extract_strided_slice %142 {offsets = [0, 96], sizes = [24, 32], strides = [1, 1]} : vector<24x384xf32> to vector<24x32xf32>
    %204 = vector.extract_strided_slice %142 {offsets = [0, 224], sizes = [24, 32], strides = [1, 1]} : vector<24x384xf32> to vector<24x32xf32>
    %205 = vector.extract_strided_slice %142 {offsets = [0, 352], sizes = [24, 32], strides = [1, 1]} : vector<24x384xf32> to vector<24x32xf32>
    %206 = arith.truncf %203 : vector<24x32xf32> to vector<24x32xbf16>
    %207 = arith.truncf %204 : vector<24x32xf32> to vector<24x32xbf16>
    %cst_73 = arith.constant dense<0.000000e+00> : vector<24x24xf32>
    %208 = tpu.matmul %206, %207, %cst_73 {dimension_numbers = #tpu.dot_dimension_numbers<[1], [1], [0], [0], [0, 0, 1, 0], [], []>} : vector<24x32xbf16>, vector<24x32xbf16>, vector<24x24xf32> -> vector<24x24xf32>
    %209 = arith.addf %208, %8 : vector<24x24xf32>
    %cst_74 = arith.constant dense<0xFF800000> : vector<24xf32>
    %210 = vector.multi_reduction <maximumf>, %209, %cst_74 [1] : vector<24x24xf32> to vector<24xf32>
    %211 = vector.shape_cast %210 : vector<24xf32> to vector<24x1xf32>
    %212 = vector.broadcast %211 : vector<24x1xf32> to vector<24x24xf32>
    %213 = arith.subf %209, %212 : vector<24x24xf32>
    %214 = math.exp %213 : vector<24x24xf32>
    %cst_75 = arith.constant dense<0.000000e+00> : vector<24xf32>
    %215 = vector.multi_reduction <add>, %214, %cst_75 [1] : vector<24x24xf32> to vector<24xf32>
    %216 = vector.shape_cast %215 : vector<24xf32> to vector<24x1xf32>
    %217 = tpu.reciprocal %216 {approx = true} : vector<24x1xf32> -> vector<24x1xf32>
    %218 = vector.broadcast %217 : vector<24x1xf32> to vector<24x24xf32>
    %219 = arith.mulf %214, %218 : vector<24x24xf32>
    %220 = arith.truncf %219 : vector<24x24xf32> to vector<24x24xbf16>
    %221 = arith.truncf %205 : vector<24x32xf32> to vector<24x32xbf16>
    %cst_76 = arith.constant dense<0.000000e+00> : vector<24x32xf32>
    %222 = tpu.matmul %220, %221, %cst_76 {dimension_numbers = #tpu.dot_dimension_numbers<[1], [0], [0], [1], [0, 0, 1, 1], [], []>} : vector<24x24xbf16>, vector<24x32xbf16>, vector<24x32xf32> -> vector<24x32xf32>
    %223 = tpu.concatenate %162, %182, %202, %222 in 1 : vector<24x32xf32>, vector<24x32xf32>, vector<24x32xf32>, vector<24x32xf32> -> vector<24x128xf32>
    %224 = tpu.concatenate %141, %223 in 0 : vector<24x128xf32>, vector<24x128xf32> -> vector<48x128xf32>
    %225 = arith.truncf %224 : vector<48x128xf32> to vector<48x128xbf16>
    %cst_77 = arith.constant dense<0.000000e+00> : vector<48x128xf32>
    %226 = tpu.matmul %225, %18, %cst_77 {dimension_numbers = #tpu.dot_dimension_numbers<[1], [0], [0], [1], [0, 0, 1, 1], [], []>} : vector<48x128xbf16>, vector<128x128xbf16>, vector<48x128xf32> -> vector<48x128xf32>
    %227 = arith.addf %33, %226 : vector<48x128xf32>
    %228 = vector.broadcast %20 : vector<1x128xf32> to vector<48x128xf32>
    %229 = arith.addf %227, %228 : vector<48x128xf32>
    %cst_78 = arith.constant dense<0.000000e+00> : vector<48xf32>
    %230 = vector.multi_reduction <add>, %229, %cst_78 [1] : vector<48x128xf32> to vector<48xf32>
    %231 = vector.shape_cast %230 : vector<48xf32> to vector<48x1xf32>
    %cst_79 = arith.constant 1.280000e+02 : f32
    %232 = vector.broadcast %cst_79 : f32 to vector<48x1xf32>
    %233 = arith.divf %231, %232 : vector<48x1xf32>
    %234 = vector.broadcast %233 : vector<48x1xf32> to vector<48x128xf32>
    %235 = arith.subf %229, %234 : vector<48x128xf32>
    %236 = arith.mulf %235, %235 : vector<48x128xf32>
    %cst_80 = arith.constant dense<0.000000e+00> : vector<48xf32>
    %237 = vector.multi_reduction <add>, %236, %cst_80 [1] : vector<48x128xf32> to vector<48xf32>
    %238 = vector.shape_cast %237 : vector<48xf32> to vector<48x1xf32>
    %cst_81 = arith.constant 1.280000e+02 : f32
    %239 = vector.broadcast %cst_81 : f32 to vector<48x1xf32>
    %240 = arith.divf %238, %239 : vector<48x1xf32>
    %241 = vector.broadcast %233 : vector<48x1xf32> to vector<48x128xf32>
    %242 = arith.subf %229, %241 : vector<48x128xf32>
    %cst_82 = arith.constant 9.99999974E-6 : f32
    %243 = vector.broadcast %cst_82 : f32 to vector<48x1xf32>
    %244 = arith.addf %240, %243 : vector<48x1xf32>
    %245 = math.rsqrt %244 : vector<48x1xf32>
    %246 = vector.broadcast %245 : vector<48x1xf32> to vector<48x128xf32>
    %247 = arith.mulf %242, %246 : vector<48x128xf32>
    %248 = vector.broadcast %22 : vector<1x128xf32> to vector<48x128xf32>
    %249 = arith.mulf %247, %248 : vector<48x128xf32>
    %250 = vector.broadcast %24 : vector<1x128xf32> to vector<48x128xf32>
    %251 = arith.addf %249, %250 : vector<48x128xf32>
    %252 = arith.truncf %251 : vector<48x128xf32> to vector<48x128xbf16>
    %cst_83 = arith.constant dense<0.000000e+00> : vector<48x256xf32>
    %253 = tpu.matmul %252, %26, %cst_83 {dimension_numbers = #tpu.dot_dimension_numbers<[1], [0], [0], [1], [0, 0, 1, 1], [], []>} : vector<48x128xbf16>, vector<128x256xbf16>, vector<48x256xf32> -> vector<48x256xf32>
    %254 = vector.broadcast %28 : vector<1x256xf32> to vector<48x256xf32>
    %255 = arith.addf %253, %254 : vector<48x256xf32>
    %cst_84 = arith.constant 1.702000e+00 : f32
    %256 = vector.broadcast %cst_84 : f32 to vector<48x256xf32>
    %257 = arith.mulf %256, %255 : vector<48x256xf32>
    %258 = arith.negf %257 : vector<48x256xf32>
    %259 = math.exp %258 : vector<48x256xf32>
    %cst_85 = arith.constant 1.000000e+00 : f32
    %260 = vector.broadcast %cst_85 : f32 to vector<48x256xf32>
    %261 = arith.addf %260, %259 : vector<48x256xf32>
    %262 = arith.divf %260, %261 : vector<48x256xf32>
    %263 = arith.mulf %255, %262 : vector<48x256xf32>
    %264 = arith.truncf %263 : vector<48x256xf32> to vector<48x256xbf16>
    %cst_86 = arith.constant dense<0.000000e+00> : vector<48x128xf32>
    %265 = tpu.matmul %264, %30, %cst_86 {dimension_numbers = #tpu.dot_dimension_numbers<[1], [0], [0], [1], [0, 0, 1, 1], [], []>} : vector<48x256xbf16>, vector<256x128xbf16>, vector<48x128xf32> -> vector<48x128xf32>
    %266 = arith.addf %229, %265 : vector<48x128xf32>
    %267 = vector.broadcast %32 : vector<1x128xf32> to vector<48x128xf32>
    %268 = arith.addf %266, %267 : vector<48x128xf32>
    %c0_87 = arith.constant 0 : index
    %c0_88 = arith.constant 0 : index
    %269 = vector.load %arg23[%c0_87, %c0_88] : memref<48x128xf32, #tpu.memory_space<vmem>>, vector<48x128xf32>
    tpu.vector_store %arg23[%c0_87, %c0_88], %268 {strides = array<i32>} : memref<48x128xf32, #tpu.memory_space<vmem>>, vector<48x128xf32>,
    %c1_i32 = arith.constant 1 : i32
    %270 = arith.cmpi eq, %arg0, %c1_i32 : i32
    %271 = arith.extui %270 : i1 to i32
    %c0_i32_89 = arith.constant 0 : i32
    %272 = arith.cmpi ne, %271, %c0_i32_89 : i32
    scf.if %272 {
      %c0_90 = arith.constant 0 : index
      %c0_91 = arith.constant 0 : index
      %273 = vector.load %arg18[%c0_90, %c0_91] : memref<1x128xf32, #tpu.memory_space<vmem>>, vector<1x128xf32>
      %c0_92 = arith.constant 0 : index
      %c0_93 = arith.constant 0 : index
      %274 = vector.load %arg19[%c0_92, %c0_93] : memref<1x128xf32, #tpu.memory_space<vmem>>, vector<1x128xf32>
      %c0_94 = arith.constant 0 : index
      %c0_95 = arith.constant 0 : index
      %275 = vector.load %arg20[%c0_94, %c0_95] : memref<128x128xbf16, #tpu.memory_space<vmem>>, vector<128x128xbf16>
      %c0_96 = arith.constant 0 : index
      %c0_97 = arith.constant 0 : index
      %276 = vector.load %arg21[%c0_96, %c0_97] : memref<1x128xf32, #tpu.memory_space<vmem>>, vector<1x128xf32>
      %277 = vector.extract_strided_slice %268 {offsets = [16, 0], sizes = [1, 128], strides = [1, 1]} : vector<48x128xf32> to vector<1x128xf32>
      %278 = vector.extract_strided_slice %268 {offsets = [40, 0], sizes = [1, 128], strides = [1, 1]} : vector<48x128xf32> to vector<1x128xf32>
      %cst_98 = arith.constant 0.000000e+00 : f32
      %279 = vector.broadcast %cst_98 : f32 to vector<6x128xf32>
      %280 = tpu.concatenate %277, %278, %279 in 0 : vector<1x128xf32>, vector<1x128xf32>, vector<6x128xf32> -> vector<8x128xf32>
      %cst_99 = arith.constant dense<0.000000e+00> : vector<8xf32>
      %281 = vector.multi_reduction <add>, %280, %cst_99 [1] : vector<8x128xf32> to vector<8xf32>
      %282 = vector.shape_cast %281 : vector<8xf32> to vector<8x1xf32>
      %cst_100 = arith.constant 1.280000e+02 : f32
      %283 = vector.broadcast %cst_100 : f32 to vector<8x1xf32>
      %284 = arith.divf %282, %283 : vector<8x1xf32>
      %285 = vector.broadcast %284 : vector<8x1xf32> to vector<8x128xf32>
      %286 = arith.subf %280, %285 : vector<8x128xf32>
      %287 = arith.mulf %286, %286 : vector<8x128xf32>
      %cst_101 = arith.constant dense<0.000000e+00> : vector<8xf32>
      %288 = vector.multi_reduction <add>, %287, %cst_101 [1] : vector<8x128xf32> to vector<8xf32>
      %289 = vector.shape_cast %288 : vector<8xf32> to vector<8x1xf32>
      %cst_102 = arith.constant 1.280000e+02 : f32
      %290 = vector.broadcast %cst_102 : f32 to vector<8x1xf32>
      %291 = arith.divf %289, %290 : vector<8x1xf32>
      %292 = vector.broadcast %284 : vector<8x1xf32> to vector<8x128xf32>
      %293 = arith.subf %280, %292 : vector<8x128xf32>
      %cst_103 = arith.constant 9.99999974E-6 : f32
      %294 = vector.broadcast %cst_103 : f32 to vector<8x1xf32>
      %295 = arith.addf %291, %294 : vector<8x1xf32>
      %296 = math.rsqrt %295 : vector<8x1xf32>
      %297 = vector.broadcast %296 : vector<8x1xf32> to vector<8x128xf32>
      %298 = arith.mulf %293, %297 : vector<8x128xf32>
      %299 = vector.broadcast %273 : vector<1x128xf32> to vector<8x128xf32>
      %300 = arith.mulf %298, %299 : vector<8x128xf32>
      %301 = vector.broadcast %274 : vector<1x128xf32> to vector<8x128xf32>
      %302 = arith.addf %300, %301 : vector<8x128xf32>
      %303 = arith.truncf %302 : vector<8x128xf32> to vector<8x128xbf16>
      %cst_104 = arith.constant dense<0.000000e+00> : vector<8x128xf32>
      %304 = tpu.matmul %303, %275, %cst_104 {dimension_numbers = #tpu.dot_dimension_numbers<[1], [0], [0], [1], [0, 0, 1, 1], [], []>} : vector<8x128xbf16>, vector<128x128xbf16>, vector<8x128xf32> -> vector<8x128xf32>
      %305 = vector.broadcast %276 : vector<1x128xf32> to vector<8x128xf32>
      %306 = arith.addf %304, %305 : vector<8x128xf32>
      %c0_105 = arith.constant 0 : index
      %c0_106 = arith.constant 0 : index
      %307 = vector.load %arg22[%c0_105, %c0_106] : memref<8x128xf32, #tpu.memory_space<vmem>>, vector<8x128xf32>
      tpu.vector_store %arg22[%c0_105, %c0_106], %306 {strides = array<i32>} : memref<8x128xf32, #tpu.memory_space<vmem>>, vector<8x128xf32>,
    } else {
    }
    return
  }
  func.func @transform_0(%arg0: i32) -> (i32, i32) {
    %c0_i32 = arith.constant 0 : i32
    %c0_i32_0 = arith.constant 0 : i32
    %c0_i32_1 = arith.constant 0 : i32
    return %c0_i32, %c0_i32_0 : i32, i32
  }
  func.func @transform_1(%arg0: i32) -> (i32, i32) {
    %c0_i32 = arith.constant 0 : i32
    %c0_i32_0 = arith.constant 0 : i32
    %c0_i32_1 = arith.constant 0 : i32
    return %c0_i32, %c0_i32_0 : i32, i32
  }
  func.func @transform_2(%arg0: i32) -> (i32, i32) {
    %c0_i32 = arith.constant 0 : i32
    %c0_i32_0 = arith.constant 0 : i32
    %c0_i32_1 = arith.constant 0 : i32
    return %c0_i32, %c0_i32_0 : i32, i32
  }
  func.func @transform_3(%arg0: i32) -> (i32, i32) {
    %c0_i32 = arith.constant 0 : i32
    %c0_i32_0 = arith.constant 0 : i32
    %c0_i32_1 = arith.constant 0 : i32
    return %c0_i32, %c0_i32_0 : i32, i32
  }
  func.func @transform_4(%arg0: i32) -> (i32, i32) {
    %c0_i32 = arith.constant 0 : i32
    %c0_i32_0 = arith.constant 0 : i32
    %c0_i32_1 = arith.constant 0 : i32
    return %c0_i32, %c0_i32_0 : i32, i32
  }
  func.func @transform_5(%arg0: i32) -> (i32, i32, i32) {
    %c0_i32 = arith.constant 0 : i32
    %c0_i32_0 = arith.constant 0 : i32
    %c0_i32_1 = arith.constant 0 : i32
    return %arg0, %c0_i32, %c0_i32_0 : i32, i32, i32
  }
  func.func @transform_6(%arg0: i32) -> (i32, i32, i32) {
    %c0_i32 = arith.constant 0 : i32
    %c0_i32_0 = arith.constant 0 : i32
    %c0_i32_1 = arith.constant 0 : i32
    return %arg0, %c0_i32, %c0_i32_0 : i32, i32, i32
  }
  func.func @transform_7(%arg0: i32) -> (i32, i32, i32) {
    %c0_i32 = arith.constant 0 : i32
    %c0_i32_0 = arith.constant 0 : i32
    %c0_i32_1 = arith.constant 0 : i32
    return %arg0, %c0_i32, %c0_i32_0 : i32, i32, i32
  }
  func.func @transform_8(%arg0: i32) -> (i32, i32, i32) {
    %c0_i32 = arith.constant 0 : i32
    %c0_i32_0 = arith.constant 0 : i32
    %c0_i32_1 = arith.constant 0 : i32
    return %arg0, %c0_i32, %c0_i32_0 : i32, i32, i32
  }
  func.func @transform_9(%arg0: i32) -> (i32, i32, i32) {
    %c0_i32 = arith.constant 0 : i32
    %c0_i32_0 = arith.constant 0 : i32
    %c0_i32_1 = arith.constant 0 : i32
    return %arg0, %c0_i32, %c0_i32_0 : i32, i32, i32
  }
  func.func @transform_10(%arg0: i32) -> (i32, i32, i32) {
    %c0_i32 = arith.constant 0 : i32
    %c0_i32_0 = arith.constant 0 : i32
    %c0_i32_1 = arith.constant 0 : i32
    return %arg0, %c0_i32, %c0_i32_0 : i32, i32, i32
  }
  func.func @transform_11(%arg0: i32) -> (i32, i32, i32) {
    %c0_i32 = arith.constant 0 : i32
    %c0_i32_0 = arith.constant 0 : i32
    %c0_i32_1 = arith.constant 0 : i32
    return %arg0, %c0_i32, %c0_i32_0 : i32, i32, i32
  }
  func.func @transform_12(%arg0: i32) -> (i32, i32, i32) {
    %c0_i32 = arith.constant 0 : i32
    %c0_i32_0 = arith.constant 0 : i32
    %c0_i32_1 = arith.constant 0 : i32
    return %arg0, %c0_i32, %c0_i32_0 : i32, i32, i32
  }
  func.func @transform_13(%arg0: i32) -> (i32, i32, i32) {
    %c0_i32 = arith.constant 0 : i32
    %c0_i32_0 = arith.constant 0 : i32
    %c0_i32_1 = arith.constant 0 : i32
    return %arg0, %c0_i32, %c0_i32_0 : i32, i32, i32
  }
  func.func @transform_14(%arg0: i32) -> (i32, i32, i32) {
    %c0_i32 = arith.constant 0 : i32
    %c0_i32_0 = arith.constant 0 : i32
    %c0_i32_1 = arith.constant 0 : i32
    return %arg0, %c0_i32, %c0_i32_0 : i32, i32, i32
  }
  func.func @transform_15(%arg0: i32) -> (i32, i32, i32) {
    %c0_i32 = arith.constant 0 : i32
    %c0_i32_0 = arith.constant 0 : i32
    %c0_i32_1 = arith.constant 0 : i32
    return %arg0, %c0_i32, %c0_i32_0 : i32, i32, i32
  }
  func.func @transform_16(%arg0: i32) -> (i32, i32, i32) {
    %c0_i32 = arith.constant 0 : i32
    %c0_i32_0 = arith.constant 0 : i32
    %c0_i32_1 = arith.constant 0 : i32
    return %arg0, %c0_i32, %c0_i32_0 : i32, i32, i32
  }
  func.func @transform_17(%arg0: i32) -> (i32, i32) {
    %c0_i32 = arith.constant 0 : i32
    %c0_i32_0 = arith.constant 0 : i32
    %c0_i32_1 = arith.constant 0 : i32
    return %c0_i32, %c0_i32_0 : i32, i32
  }
  func.func @transform_18(%arg0: i32) -> (i32, i32) {
    %c0_i32 = arith.constant 0 : i32
    %c0_i32_0 = arith.constant 0 : i32
    %c0_i32_1 = arith.constant 0 : i32
    return %c0_i32, %c0_i32_0 : i32, i32
  }
  func.func @transform_19(%arg0: i32) -> (i32, i32) {
    %c0_i32 = arith.constant 0 : i32
    %c0_i32_0 = arith.constant 0 : i32
    %c0_i32_1 = arith.constant 0 : i32
    return %c0_i32, %c0_i32_0 : i32, i32
  }
  func.func @transform_20(%arg0: i32) -> (i32, i32) {
    %c0_i32 = arith.constant 0 : i32
    %c0_i32_0 = arith.constant 0 : i32
    %c0_i32_1 = arith.constant 0 : i32
    return %c0_i32, %c0_i32_0 : i32, i32
  }
  func.func @transform_21(%arg0: i32) -> (i32, i32) {
    %c0_i32 = arith.constant 0 : i32
    %c0_i32_0 = arith.constant 0 : i32
    %c0_i32_1 = arith.constant 0 : i32
    return %c0_i32, %c0_i32_0 : i32, i32
  }
}

module attributes {stable_mosaic.version = 11 : i64} {
  func.func @_text_kernel(%arg0: i32, %arg1: memref<16x128xf32, #tpu.memory_space<vmem>>, %arg2: memref<1x1x128xf32, #tpu.memory_space<vmem>>, %arg3: memref<1x1x128xf32, #tpu.memory_space<vmem>>, %arg4: memref<1x128x384xbf16, #tpu.memory_space<vmem>>, %arg5: memref<1x1x384xf32, #tpu.memory_space<vmem>>, %arg6: memref<1x128x128xbf16, #tpu.memory_space<vmem>>, %arg7: memref<1x1x128xf32, #tpu.memory_space<vmem>>, %arg8: memref<1x1x128xf32, #tpu.memory_space<vmem>>, %arg9: memref<1x1x128xf32, #tpu.memory_space<vmem>>, %arg10: memref<1x128x256xbf16, #tpu.memory_space<vmem>>, %arg11: memref<1x1x256xf32, #tpu.memory_space<vmem>>, %arg12: memref<1x256x128xbf16, #tpu.memory_space<vmem>>, %arg13: memref<1x1x128xf32, #tpu.memory_space<vmem>>, %arg14: memref<1x128xf32, #tpu.memory_space<vmem>>, %arg15: memref<1x128xf32, #tpu.memory_space<vmem>>, %arg16: memref<128x128xbf16, #tpu.memory_space<vmem>>, %arg17: memref<1x128xf32, #tpu.memory_space<vmem>>, %arg18: memref<8x128xf32, #tpu.memory_space<vmem>>, %arg19: memref<16x128xf32, #tpu.memory_space<vmem>>) attributes {dimension_semantics = [#tpu.dimension_semantics<arbitrary>], iteration_bounds = array<i64: 2>, scalar_prefetch = 0 : i64, scratch_operands = 1 : i64, tpu.core_type = #tpu.core_type<tc>, window_params = [{pipeline_mode = #tpu.pipeline_mode<synchronous>, transform_indices = @transform_0, window_bounds = array<i64: 16, 128>}, {transform_indices = @transform_1, window_bounds = array<i64: 1, 1, 128>}, {transform_indices = @transform_2, window_bounds = array<i64: 1, 1, 128>}, {transform_indices = @transform_3, window_bounds = array<i64: 1, 128, 384>}, {transform_indices = @transform_4, window_bounds = array<i64: 1, 1, 384>}, {transform_indices = @transform_5, window_bounds = array<i64: 1, 128, 128>}, {transform_indices = @transform_6, window_bounds = array<i64: 1, 1, 128>}, {transform_indices = @transform_7, window_bounds = array<i64: 1, 1, 128>}, {transform_indices = @transform_8, window_bounds = array<i64: 1, 1, 128>}, {transform_indices = @transform_9, window_bounds = array<i64: 1, 128, 256>}, {transform_indices = @transform_10, window_bounds = array<i64: 1, 1, 256>}, {transform_indices = @transform_11, window_bounds = array<i64: 1, 256, 128>}, {transform_indices = @transform_12, window_bounds = array<i64: 1, 1, 128>}, {pipeline_mode = #tpu.pipeline_mode<synchronous>, transform_indices = @transform_13, window_bounds = array<i64: 1, 128>}, {pipeline_mode = #tpu.pipeline_mode<synchronous>, transform_indices = @transform_14, window_bounds = array<i64: 1, 128>}, {pipeline_mode = #tpu.pipeline_mode<synchronous>, transform_indices = @transform_15, window_bounds = array<i64: 128, 128>}, {pipeline_mode = #tpu.pipeline_mode<synchronous>, transform_indices = @transform_16, window_bounds = array<i64: 1, 128>}, {pipeline_mode = #tpu.pipeline_mode<synchronous>, transform_indices = @transform_17, window_bounds = array<i64: 8, 128>}]} {
    %c0_i32 = arith.constant 0 : i32
    %0 = arith.cmpi eq, %arg0, %c0_i32 : i32
    %1 = arith.extui %0 : i1 to i32
    %c0_i32_0 = arith.constant 0 : i32
    %2 = arith.cmpi ne, %1, %c0_i32_0 : i32
    scf.if %2 {
      %c0_90 = arith.constant 0 : index
      %c0_91 = arith.constant 0 : index
      %264 = vector.load %arg1[%c0_90, %c0_91] : memref<16x128xf32, #tpu.memory_space<vmem>>, vector<16x128xf32>
      %c0_92 = arith.constant 0 : index
      %c0_93 = arith.constant 0 : index
      %265 = vector.load %arg19[%c0_92, %c0_93] : memref<16x128xf32, #tpu.memory_space<vmem>>, vector<16x128xf32>
      tpu.vector_store %arg19[%c0_92, %c0_93], %264 {strides = array<i32>} : memref<16x128xf32, #tpu.memory_space<vmem>>, vector<16x128xf32>,
    } else {
    }
    %c0 = arith.constant 0 : index
    %c0_1 = arith.constant 0 : index
    %c0_2 = arith.constant 0 : index
    %3 = vector.load %arg2[%c0, %c0_1, %c0_2] : memref<1x1x128xf32, #tpu.memory_space<vmem>>, vector<1x1x128xf32>
    %4 = vector.shape_cast %3 : vector<1x1x128xf32> to vector<1x128xf32>
    %c0_3 = arith.constant 0 : index
    %c0_4 = arith.constant 0 : index
    %c0_5 = arith.constant 0 : index
    %5 = vector.load %arg3[%c0_3, %c0_4, %c0_5] : memref<1x1x128xf32, #tpu.memory_space<vmem>>, vector<1x1x128xf32>
    %6 = vector.shape_cast %5 : vector<1x1x128xf32> to vector<1x128xf32>
    %c0_6 = arith.constant 0 : index
    %c0_7 = arith.constant 0 : index
    %c0_8 = arith.constant 0 : index
    %7 = vector.load %arg4[%c0_6, %c0_7, %c0_8] : memref<1x128x384xbf16, #tpu.memory_space<vmem>>, vector<1x128x384xbf16>
    %8 = vector.shape_cast %7 : vector<1x128x384xbf16> to vector<128x384xbf16>
    %c0_9 = arith.constant 0 : index
    %c0_10 = arith.constant 0 : index
    %c0_11 = arith.constant 0 : index
    %9 = vector.load %arg5[%c0_9, %c0_10, %c0_11] : memref<1x1x384xf32, #tpu.memory_space<vmem>>, vector<1x1x384xf32>
    %10 = vector.shape_cast %9 : vector<1x1x384xf32> to vector<1x384xf32>
    %c0_12 = arith.constant 0 : index
    %c0_13 = arith.constant 0 : index
    %c0_14 = arith.constant 0 : index
    %11 = vector.load %arg6[%c0_12, %c0_13, %c0_14] : memref<1x128x128xbf16, #tpu.memory_space<vmem>>, vector<1x128x128xbf16>
    %12 = vector.shape_cast %11 : vector<1x128x128xbf16> to vector<128x128xbf16>
    %c0_15 = arith.constant 0 : index
    %c0_16 = arith.constant 0 : index
    %c0_17 = arith.constant 0 : index
    %13 = vector.load %arg7[%c0_15, %c0_16, %c0_17] : memref<1x1x128xf32, #tpu.memory_space<vmem>>, vector<1x1x128xf32>
    %14 = vector.shape_cast %13 : vector<1x1x128xf32> to vector<1x128xf32>
    %c0_18 = arith.constant 0 : index
    %c0_19 = arith.constant 0 : index
    %c0_20 = arith.constant 0 : index
    %15 = vector.load %arg8[%c0_18, %c0_19, %c0_20] : memref<1x1x128xf32, #tpu.memory_space<vmem>>, vector<1x1x128xf32>
    %16 = vector.shape_cast %15 : vector<1x1x128xf32> to vector<1x128xf32>
    %c0_21 = arith.constant 0 : index
    %c0_22 = arith.constant 0 : index
    %c0_23 = arith.constant 0 : index
    %17 = vector.load %arg9[%c0_21, %c0_22, %c0_23] : memref<1x1x128xf32, #tpu.memory_space<vmem>>, vector<1x1x128xf32>
    %18 = vector.shape_cast %17 : vector<1x1x128xf32> to vector<1x128xf32>
    %c0_24 = arith.constant 0 : index
    %c0_25 = arith.constant 0 : index
    %c0_26 = arith.constant 0 : index
    %19 = vector.load %arg10[%c0_24, %c0_25, %c0_26] : memref<1x128x256xbf16, #tpu.memory_space<vmem>>, vector<1x128x256xbf16>
    %20 = vector.shape_cast %19 : vector<1x128x256xbf16> to vector<128x256xbf16>
    %c0_27 = arith.constant 0 : index
    %c0_28 = arith.constant 0 : index
    %c0_29 = arith.constant 0 : index
    %21 = vector.load %arg11[%c0_27, %c0_28, %c0_29] : memref<1x1x256xf32, #tpu.memory_space<vmem>>, vector<1x1x256xf32>
    %22 = vector.shape_cast %21 : vector<1x1x256xf32> to vector<1x256xf32>
    %c0_30 = arith.constant 0 : index
    %c0_31 = arith.constant 0 : index
    %c0_32 = arith.constant 0 : index
    %23 = vector.load %arg12[%c0_30, %c0_31, %c0_32] : memref<1x256x128xbf16, #tpu.memory_space<vmem>>, vector<1x256x128xbf16>
    %24 = vector.shape_cast %23 : vector<1x256x128xbf16> to vector<256x128xbf16>
    %c0_33 = arith.constant 0 : index
    %c0_34 = arith.constant 0 : index
    %c0_35 = arith.constant 0 : index
    %25 = vector.load %arg13[%c0_33, %c0_34, %c0_35] : memref<1x1x128xf32, #tpu.memory_space<vmem>>, vector<1x1x128xf32>
    %26 = vector.shape_cast %25 : vector<1x1x128xf32> to vector<1x128xf32>
    %c0_36 = arith.constant 0 : index
    %c0_37 = arith.constant 0 : index
    %27 = vector.load %arg19[%c0_36, %c0_37] : memref<16x128xf32, #tpu.memory_space<vmem>>, vector<16x128xf32>
    %cst = arith.constant dense<0.000000e+00> : vector<16xf32>
    %28 = vector.multi_reduction <add>, %27, %cst [1] : vector<16x128xf32> to vector<16xf32>
    %29 = vector.shape_cast %28 : vector<16xf32> to vector<16x1xf32>
    %cst_38 = arith.constant 1.280000e+02 : f32
    %30 = vector.broadcast %cst_38 : f32 to vector<16x1xf32>
    %31 = arith.divf %29, %30 : vector<16x1xf32>
    %32 = vector.broadcast %31 : vector<16x1xf32> to vector<16x128xf32>
    %33 = arith.subf %27, %32 : vector<16x128xf32>
    %34 = arith.mulf %33, %33 : vector<16x128xf32>
    %cst_39 = arith.constant dense<0.000000e+00> : vector<16xf32>
    %35 = vector.multi_reduction <add>, %34, %cst_39 [1] : vector<16x128xf32> to vector<16xf32>
    %36 = vector.shape_cast %35 : vector<16xf32> to vector<16x1xf32>
    %cst_40 = arith.constant 1.280000e+02 : f32
    %37 = vector.broadcast %cst_40 : f32 to vector<16x1xf32>
    %38 = arith.divf %36, %37 : vector<16x1xf32>
    %39 = vector.broadcast %31 : vector<16x1xf32> to vector<16x128xf32>
    %40 = arith.subf %27, %39 : vector<16x128xf32>
    %cst_41 = arith.constant 9.99999974E-6 : f32
    %41 = vector.broadcast %cst_41 : f32 to vector<16x1xf32>
    %42 = arith.addf %38, %41 : vector<16x1xf32>
    %43 = math.rsqrt %42 : vector<16x1xf32>
    %44 = vector.broadcast %43 : vector<16x1xf32> to vector<16x128xf32>
    %45 = arith.mulf %40, %44 : vector<16x128xf32>
    %46 = vector.broadcast %4 : vector<1x128xf32> to vector<16x128xf32>
    %47 = arith.mulf %45, %46 : vector<16x128xf32>
    %48 = vector.broadcast %6 : vector<1x128xf32> to vector<16x128xf32>
    %49 = arith.addf %47, %48 : vector<16x128xf32>
    %50 = arith.truncf %49 : vector<16x128xf32> to vector<16x128xbf16>
    %cst_42 = arith.constant dense<0.000000e+00> : vector<16x384xf32>
    %51 = tpu.matmul %50, %8, %cst_42 {dimension_numbers = #tpu.dot_dimension_numbers<[1], [0], [0], [1], [0, 0, 1, 1], [], []>} : vector<16x128xbf16>, vector<128x384xbf16>, vector<16x384xf32> -> vector<16x384xf32>
    %52 = vector.broadcast %10 : vector<1x384xf32> to vector<16x384xf32>
    %53 = arith.addf %51, %52 : vector<16x384xf32>
    %54 = vector.extract_strided_slice %53 {offsets = [0, 0], sizes = [8, 384], strides = [1, 1]} : vector<16x384xf32> to vector<8x384xf32>
    %55 = vector.extract_strided_slice %54 {offsets = [0, 0], sizes = [8, 32], strides = [1, 1]} : vector<8x384xf32> to vector<8x32xf32>
    %56 = vector.extract_strided_slice %54 {offsets = [0, 128], sizes = [8, 32], strides = [1, 1]} : vector<8x384xf32> to vector<8x32xf32>
    %57 = vector.extract_strided_slice %54 {offsets = [0, 256], sizes = [8, 32], strides = [1, 1]} : vector<8x384xf32> to vector<8x32xf32>
    %58 = arith.truncf %55 : vector<8x32xf32> to vector<8x32xbf16>
    %59 = arith.truncf %56 : vector<8x32xf32> to vector<8x32xbf16>
    %cst_43 = arith.constant dense<0.000000e+00> : vector<8x8xf32>
    %60 = tpu.matmul %58, %59, %cst_43 {dimension_numbers = #tpu.dot_dimension_numbers<[1], [1], [0], [0], [0, 0, 1, 0], [], []>} : vector<8x32xbf16>, vector<8x32xbf16>, vector<8x8xf32> -> vector<8x8xf32>
    %cst_44 = arith.constant dense<0xFF800000> : vector<8xf32>
    %61 = vector.multi_reduction <maximumf>, %60, %cst_44 [1] : vector<8x8xf32> to vector<8xf32>
    %62 = vector.shape_cast %61 : vector<8xf32> to vector<8x1xf32>
    %63 = vector.broadcast %62 : vector<8x1xf32> to vector<8x8xf32>
    %64 = arith.subf %60, %63 : vector<8x8xf32>
    %65 = math.exp %64 : vector<8x8xf32>
    %cst_45 = arith.constant dense<0.000000e+00> : vector<8xf32>
    %66 = vector.multi_reduction <add>, %65, %cst_45 [1] : vector<8x8xf32> to vector<8xf32>
    %67 = vector.shape_cast %66 : vector<8xf32> to vector<8x1xf32>
    %68 = tpu.reciprocal %67 {approx = true} : vector<8x1xf32> -> vector<8x1xf32>
    %69 = vector.broadcast %68 : vector<8x1xf32> to vector<8x8xf32>
    %70 = arith.mulf %65, %69 : vector<8x8xf32>
    %71 = arith.truncf %70 : vector<8x8xf32> to vector<8x8xbf16>
    %72 = arith.truncf %57 : vector<8x32xf32> to vector<8x32xbf16>
    %cst_46 = arith.constant dense<0.000000e+00> : vector<8x32xf32>
    %73 = tpu.matmul %71, %72, %cst_46 {dimension_numbers = #tpu.dot_dimension_numbers<[1], [0], [0], [1], [0, 0, 1, 1], [], []>} : vector<8x8xbf16>, vector<8x32xbf16>, vector<8x32xf32> -> vector<8x32xf32>
    %74 = vector.extract_strided_slice %54 {offsets = [0, 32], sizes = [8, 32], strides = [1, 1]} : vector<8x384xf32> to vector<8x32xf32>
    %75 = vector.extract_strided_slice %54 {offsets = [0, 160], sizes = [8, 32], strides = [1, 1]} : vector<8x384xf32> to vector<8x32xf32>
    %76 = vector.extract_strided_slice %54 {offsets = [0, 288], sizes = [8, 32], strides = [1, 1]} : vector<8x384xf32> to vector<8x32xf32>
    %77 = arith.truncf %74 : vector<8x32xf32> to vector<8x32xbf16>
    %78 = arith.truncf %75 : vector<8x32xf32> to vector<8x32xbf16>
    %cst_47 = arith.constant dense<0.000000e+00> : vector<8x8xf32>
    %79 = tpu.matmul %77, %78, %cst_47 {dimension_numbers = #tpu.dot_dimension_numbers<[1], [1], [0], [0], [0, 0, 1, 0], [], []>} : vector<8x32xbf16>, vector<8x32xbf16>, vector<8x8xf32> -> vector<8x8xf32>
    %cst_48 = arith.constant dense<0xFF800000> : vector<8xf32>
    %80 = vector.multi_reduction <maximumf>, %79, %cst_48 [1] : vector<8x8xf32> to vector<8xf32>
    %81 = vector.shape_cast %80 : vector<8xf32> to vector<8x1xf32>
    %82 = vector.broadcast %81 : vector<8x1xf32> to vector<8x8xf32>
    %83 = arith.subf %79, %82 : vector<8x8xf32>
    %84 = math.exp %83 : vector<8x8xf32>
    %cst_49 = arith.constant dense<0.000000e+00> : vector<8xf32>
    %85 = vector.multi_reduction <add>, %84, %cst_49 [1] : vector<8x8xf32> to vector<8xf32>
    %86 = vector.shape_cast %85 : vector<8xf32> to vector<8x1xf32>
    %87 = tpu.reciprocal %86 {approx = true} : vector<8x1xf32> -> vector<8x1xf32>
    %88 = vector.broadcast %87 : vector<8x1xf32> to vector<8x8xf32>
    %89 = arith.mulf %84, %88 : vector<8x8xf32>
    %90 = arith.truncf %89 : vector<8x8xf32> to vector<8x8xbf16>
    %91 = arith.truncf %76 : vector<8x32xf32> to vector<8x32xbf16>
    %cst_50 = arith.constant dense<0.000000e+00> : vector<8x32xf32>
    %92 = tpu.matmul %90, %91, %cst_50 {dimension_numbers = #tpu.dot_dimension_numbers<[1], [0], [0], [1], [0, 0, 1, 1], [], []>} : vector<8x8xbf16>, vector<8x32xbf16>, vector<8x32xf32> -> vector<8x32xf32>
    %93 = vector.extract_strided_slice %54 {offsets = [0, 64], sizes = [8, 32], strides = [1, 1]} : vector<8x384xf32> to vector<8x32xf32>
    %94 = vector.extract_strided_slice %54 {offsets = [0, 192], sizes = [8, 32], strides = [1, 1]} : vector<8x384xf32> to vector<8x32xf32>
    %95 = vector.extract_strided_slice %54 {offsets = [0, 320], sizes = [8, 32], strides = [1, 1]} : vector<8x384xf32> to vector<8x32xf32>
    %96 = arith.truncf %93 : vector<8x32xf32> to vector<8x32xbf16>
    %97 = arith.truncf %94 : vector<8x32xf32> to vector<8x32xbf16>
    %cst_51 = arith.constant dense<0.000000e+00> : vector<8x8xf32>
    %98 = tpu.matmul %96, %97, %cst_51 {dimension_numbers = #tpu.dot_dimension_numbers<[1], [1], [0], [0], [0, 0, 1, 0], [], []>} : vector<8x32xbf16>, vector<8x32xbf16>, vector<8x8xf32> -> vector<8x8xf32>
    %cst_52 = arith.constant dense<0xFF800000> : vector<8xf32>
    %99 = vector.multi_reduction <maximumf>, %98, %cst_52 [1] : vector<8x8xf32> to vector<8xf32>
    %100 = vector.shape_cast %99 : vector<8xf32> to vector<8x1xf32>
    %101 = vector.broadcast %100 : vector<8x1xf32> to vector<8x8xf32>
    %102 = arith.subf %98, %101 : vector<8x8xf32>
    %103 = math.exp %102 : vector<8x8xf32>
    %cst_53 = arith.constant dense<0.000000e+00> : vector<8xf32>
    %104 = vector.multi_reduction <add>, %103, %cst_53 [1] : vector<8x8xf32> to vector<8xf32>
    %105 = vector.shape_cast %104 : vector<8xf32> to vector<8x1xf32>
    %106 = tpu.reciprocal %105 {approx = true} : vector<8x1xf32> -> vector<8x1xf32>
    %107 = vector.broadcast %106 : vector<8x1xf32> to vector<8x8xf32>
    %108 = arith.mulf %103, %107 : vector<8x8xf32>
    %109 = arith.truncf %108 : vector<8x8xf32> to vector<8x8xbf16>
    %110 = arith.truncf %95 : vector<8x32xf32> to vector<8x32xbf16>
    %cst_54 = arith.constant dense<0.000000e+00> : vector<8x32xf32>
    %111 = tpu.matmul %109, %110, %cst_54 {dimension_numbers = #tpu.dot_dimension_numbers<[1], [0], [0], [1], [0, 0, 1, 1], [], []>} : vector<8x8xbf16>, vector<8x32xbf16>, vector<8x32xf32> -> vector<8x32xf32>
    %112 = vector.extract_strided_slice %54 {offsets = [0, 96], sizes = [8, 32], strides = [1, 1]} : vector<8x384xf32> to vector<8x32xf32>
    %113 = vector.extract_strided_slice %54 {offsets = [0, 224], sizes = [8, 32], strides = [1, 1]} : vector<8x384xf32> to vector<8x32xf32>
    %114 = vector.extract_strided_slice %54 {offsets = [0, 352], sizes = [8, 32], strides = [1, 1]} : vector<8x384xf32> to vector<8x32xf32>
    %115 = arith.truncf %112 : vector<8x32xf32> to vector<8x32xbf16>
    %116 = arith.truncf %113 : vector<8x32xf32> to vector<8x32xbf16>
    %cst_55 = arith.constant dense<0.000000e+00> : vector<8x8xf32>
    %117 = tpu.matmul %115, %116, %cst_55 {dimension_numbers = #tpu.dot_dimension_numbers<[1], [1], [0], [0], [0, 0, 1, 0], [], []>} : vector<8x32xbf16>, vector<8x32xbf16>, vector<8x8xf32> -> vector<8x8xf32>
    %cst_56 = arith.constant dense<0xFF800000> : vector<8xf32>
    %118 = vector.multi_reduction <maximumf>, %117, %cst_56 [1] : vector<8x8xf32> to vector<8xf32>
    %119 = vector.shape_cast %118 : vector<8xf32> to vector<8x1xf32>
    %120 = vector.broadcast %119 : vector<8x1xf32> to vector<8x8xf32>
    %121 = arith.subf %117, %120 : vector<8x8xf32>
    %122 = math.exp %121 : vector<8x8xf32>
    %cst_57 = arith.constant dense<0.000000e+00> : vector<8xf32>
    %123 = vector.multi_reduction <add>, %122, %cst_57 [1] : vector<8x8xf32> to vector<8xf32>
    %124 = vector.shape_cast %123 : vector<8xf32> to vector<8x1xf32>
    %125 = tpu.reciprocal %124 {approx = true} : vector<8x1xf32> -> vector<8x1xf32>
    %126 = vector.broadcast %125 : vector<8x1xf32> to vector<8x8xf32>
    %127 = arith.mulf %122, %126 : vector<8x8xf32>
    %128 = arith.truncf %127 : vector<8x8xf32> to vector<8x8xbf16>
    %129 = arith.truncf %114 : vector<8x32xf32> to vector<8x32xbf16>
    %cst_58 = arith.constant dense<0.000000e+00> : vector<8x32xf32>
    %130 = tpu.matmul %128, %129, %cst_58 {dimension_numbers = #tpu.dot_dimension_numbers<[1], [0], [0], [1], [0, 0, 1, 1], [], []>} : vector<8x8xbf16>, vector<8x32xbf16>, vector<8x32xf32> -> vector<8x32xf32>
    %131 = tpu.concatenate %73, %92, %111, %130 in 1 : vector<8x32xf32>, vector<8x32xf32>, vector<8x32xf32>, vector<8x32xf32> -> vector<8x128xf32>
    %132 = vector.extract_strided_slice %53 {offsets = [8, 0], sizes = [8, 384], strides = [1, 1]} : vector<16x384xf32> to vector<8x384xf32>
    %133 = vector.extract_strided_slice %132 {offsets = [0, 0], sizes = [8, 32], strides = [1, 1]} : vector<8x384xf32> to vector<8x32xf32>
    %134 = vector.extract_strided_slice %132 {offsets = [0, 128], sizes = [8, 32], strides = [1, 1]} : vector<8x384xf32> to vector<8x32xf32>
    %135 = vector.extract_strided_slice %132 {offsets = [0, 256], sizes = [8, 32], strides = [1, 1]} : vector<8x384xf32> to vector<8x32xf32>
    %136 = arith.truncf %133 : vector<8x32xf32> to vector<8x32xbf16>
    %137 = arith.truncf %134 : vector<8x32xf32> to vector<8x32xbf16>
    %cst_59 = arith.constant dense<0.000000e+00> : vector<8x8xf32>
    %138 = tpu.matmul %136, %137, %cst_59 {dimension_numbers = #tpu.dot_dimension_numbers<[1], [1], [0], [0], [0, 0, 1, 0], [], []>} : vector<8x32xbf16>, vector<8x32xbf16>, vector<8x8xf32> -> vector<8x8xf32>
    %cst_60 = arith.constant dense<0xFF800000> : vector<8xf32>
    %139 = vector.multi_reduction <maximumf>, %138, %cst_60 [1] : vector<8x8xf32> to vector<8xf32>
    %140 = vector.shape_cast %139 : vector<8xf32> to vector<8x1xf32>
    %141 = vector.broadcast %140 : vector<8x1xf32> to vector<8x8xf32>
    %142 = arith.subf %138, %141 : vector<8x8xf32>
    %143 = math.exp %142 : vector<8x8xf32>
    %cst_61 = arith.constant dense<0.000000e+00> : vector<8xf32>
    %144 = vector.multi_reduction <add>, %143, %cst_61 [1] : vector<8x8xf32> to vector<8xf32>
    %145 = vector.shape_cast %144 : vector<8xf32> to vector<8x1xf32>
    %146 = tpu.reciprocal %145 {approx = true} : vector<8x1xf32> -> vector<8x1xf32>
    %147 = vector.broadcast %146 : vector<8x1xf32> to vector<8x8xf32>
    %148 = arith.mulf %143, %147 : vector<8x8xf32>
    %149 = arith.truncf %148 : vector<8x8xf32> to vector<8x8xbf16>
    %150 = arith.truncf %135 : vector<8x32xf32> to vector<8x32xbf16>
    %cst_62 = arith.constant dense<0.000000e+00> : vector<8x32xf32>
    %151 = tpu.matmul %149, %150, %cst_62 {dimension_numbers = #tpu.dot_dimension_numbers<[1], [0], [0], [1], [0, 0, 1, 1], [], []>} : vector<8x8xbf16>, vector<8x32xbf16>, vector<8x32xf32> -> vector<8x32xf32>
    %152 = vector.extract_strided_slice %132 {offsets = [0, 32], sizes = [8, 32], strides = [1, 1]} : vector<8x384xf32> to vector<8x32xf32>
    %153 = vector.extract_strided_slice %132 {offsets = [0, 160], sizes = [8, 32], strides = [1, 1]} : vector<8x384xf32> to vector<8x32xf32>
    %154 = vector.extract_strided_slice %132 {offsets = [0, 288], sizes = [8, 32], strides = [1, 1]} : vector<8x384xf32> to vector<8x32xf32>
    %155 = arith.truncf %152 : vector<8x32xf32> to vector<8x32xbf16>
    %156 = arith.truncf %153 : vector<8x32xf32> to vector<8x32xbf16>
    %cst_63 = arith.constant dense<0.000000e+00> : vector<8x8xf32>
    %157 = tpu.matmul %155, %156, %cst_63 {dimension_numbers = #tpu.dot_dimension_numbers<[1], [1], [0], [0], [0, 0, 1, 0], [], []>} : vector<8x32xbf16>, vector<8x32xbf16>, vector<8x8xf32> -> vector<8x8xf32>
    %cst_64 = arith.constant dense<0xFF800000> : vector<8xf32>
    %158 = vector.multi_reduction <maximumf>, %157, %cst_64 [1] : vector<8x8xf32> to vector<8xf32>
    %159 = vector.shape_cast %158 : vector<8xf32> to vector<8x1xf32>
    %160 = vector.broadcast %159 : vector<8x1xf32> to vector<8x8xf32>
    %161 = arith.subf %157, %160 : vector<8x8xf32>
    %162 = math.exp %161 : vector<8x8xf32>
    %cst_65 = arith.constant dense<0.000000e+00> : vector<8xf32>
    %163 = vector.multi_reduction <add>, %162, %cst_65 [1] : vector<8x8xf32> to vector<8xf32>
    %164 = vector.shape_cast %163 : vector<8xf32> to vector<8x1xf32>
    %165 = tpu.reciprocal %164 {approx = true} : vector<8x1xf32> -> vector<8x1xf32>
    %166 = vector.broadcast %165 : vector<8x1xf32> to vector<8x8xf32>
    %167 = arith.mulf %162, %166 : vector<8x8xf32>
    %168 = arith.truncf %167 : vector<8x8xf32> to vector<8x8xbf16>
    %169 = arith.truncf %154 : vector<8x32xf32> to vector<8x32xbf16>
    %cst_66 = arith.constant dense<0.000000e+00> : vector<8x32xf32>
    %170 = tpu.matmul %168, %169, %cst_66 {dimension_numbers = #tpu.dot_dimension_numbers<[1], [0], [0], [1], [0, 0, 1, 1], [], []>} : vector<8x8xbf16>, vector<8x32xbf16>, vector<8x32xf32> -> vector<8x32xf32>
    %171 = vector.extract_strided_slice %132 {offsets = [0, 64], sizes = [8, 32], strides = [1, 1]} : vector<8x384xf32> to vector<8x32xf32>
    %172 = vector.extract_strided_slice %132 {offsets = [0, 192], sizes = [8, 32], strides = [1, 1]} : vector<8x384xf32> to vector<8x32xf32>
    %173 = vector.extract_strided_slice %132 {offsets = [0, 320], sizes = [8, 32], strides = [1, 1]} : vector<8x384xf32> to vector<8x32xf32>
    %174 = arith.truncf %171 : vector<8x32xf32> to vector<8x32xbf16>
    %175 = arith.truncf %172 : vector<8x32xf32> to vector<8x32xbf16>
    %cst_67 = arith.constant dense<0.000000e+00> : vector<8x8xf32>
    %176 = tpu.matmul %174, %175, %cst_67 {dimension_numbers = #tpu.dot_dimension_numbers<[1], [1], [0], [0], [0, 0, 1, 0], [], []>} : vector<8x32xbf16>, vector<8x32xbf16>, vector<8x8xf32> -> vector<8x8xf32>
    %cst_68 = arith.constant dense<0xFF800000> : vector<8xf32>
    %177 = vector.multi_reduction <maximumf>, %176, %cst_68 [1] : vector<8x8xf32> to vector<8xf32>
    %178 = vector.shape_cast %177 : vector<8xf32> to vector<8x1xf32>
    %179 = vector.broadcast %178 : vector<8x1xf32> to vector<8x8xf32>
    %180 = arith.subf %176, %179 : vector<8x8xf32>
    %181 = math.exp %180 : vector<8x8xf32>
    %cst_69 = arith.constant dense<0.000000e+00> : vector<8xf32>
    %182 = vector.multi_reduction <add>, %181, %cst_69 [1] : vector<8x8xf32> to vector<8xf32>
    %183 = vector.shape_cast %182 : vector<8xf32> to vector<8x1xf32>
    %184 = tpu.reciprocal %183 {approx = true} : vector<8x1xf32> -> vector<8x1xf32>
    %185 = vector.broadcast %184 : vector<8x1xf32> to vector<8x8xf32>
    %186 = arith.mulf %181, %185 : vector<8x8xf32>
    %187 = arith.truncf %186 : vector<8x8xf32> to vector<8x8xbf16>
    %188 = arith.truncf %173 : vector<8x32xf32> to vector<8x32xbf16>
    %cst_70 = arith.constant dense<0.000000e+00> : vector<8x32xf32>
    %189 = tpu.matmul %187, %188, %cst_70 {dimension_numbers = #tpu.dot_dimension_numbers<[1], [0], [0], [1], [0, 0, 1, 1], [], []>} : vector<8x8xbf16>, vector<8x32xbf16>, vector<8x32xf32> -> vector<8x32xf32>
    %190 = vector.extract_strided_slice %132 {offsets = [0, 96], sizes = [8, 32], strides = [1, 1]} : vector<8x384xf32> to vector<8x32xf32>
    %191 = vector.extract_strided_slice %132 {offsets = [0, 224], sizes = [8, 32], strides = [1, 1]} : vector<8x384xf32> to vector<8x32xf32>
    %192 = vector.extract_strided_slice %132 {offsets = [0, 352], sizes = [8, 32], strides = [1, 1]} : vector<8x384xf32> to vector<8x32xf32>
    %193 = arith.truncf %190 : vector<8x32xf32> to vector<8x32xbf16>
    %194 = arith.truncf %191 : vector<8x32xf32> to vector<8x32xbf16>
    %cst_71 = arith.constant dense<0.000000e+00> : vector<8x8xf32>
    %195 = tpu.matmul %193, %194, %cst_71 {dimension_numbers = #tpu.dot_dimension_numbers<[1], [1], [0], [0], [0, 0, 1, 0], [], []>} : vector<8x32xbf16>, vector<8x32xbf16>, vector<8x8xf32> -> vector<8x8xf32>
    %cst_72 = arith.constant dense<0xFF800000> : vector<8xf32>
    %196 = vector.multi_reduction <maximumf>, %195, %cst_72 [1] : vector<8x8xf32> to vector<8xf32>
    %197 = vector.shape_cast %196 : vector<8xf32> to vector<8x1xf32>
    %198 = vector.broadcast %197 : vector<8x1xf32> to vector<8x8xf32>
    %199 = arith.subf %195, %198 : vector<8x8xf32>
    %200 = math.exp %199 : vector<8x8xf32>
    %cst_73 = arith.constant dense<0.000000e+00> : vector<8xf32>
    %201 = vector.multi_reduction <add>, %200, %cst_73 [1] : vector<8x8xf32> to vector<8xf32>
    %202 = vector.shape_cast %201 : vector<8xf32> to vector<8x1xf32>
    %203 = tpu.reciprocal %202 {approx = true} : vector<8x1xf32> -> vector<8x1xf32>
    %204 = vector.broadcast %203 : vector<8x1xf32> to vector<8x8xf32>
    %205 = arith.mulf %200, %204 : vector<8x8xf32>
    %206 = arith.truncf %205 : vector<8x8xf32> to vector<8x8xbf16>
    %207 = arith.truncf %192 : vector<8x32xf32> to vector<8x32xbf16>
    %cst_74 = arith.constant dense<0.000000e+00> : vector<8x32xf32>
    %208 = tpu.matmul %206, %207, %cst_74 {dimension_numbers = #tpu.dot_dimension_numbers<[1], [0], [0], [1], [0, 0, 1, 1], [], []>} : vector<8x8xbf16>, vector<8x32xbf16>, vector<8x32xf32> -> vector<8x32xf32>
    %209 = tpu.concatenate %151, %170, %189, %208 in 1 : vector<8x32xf32>, vector<8x32xf32>, vector<8x32xf32>, vector<8x32xf32> -> vector<8x128xf32>
    %210 = tpu.concatenate %131, %209 in 0 : vector<8x128xf32>, vector<8x128xf32> -> vector<16x128xf32>
    %211 = arith.truncf %210 : vector<16x128xf32> to vector<16x128xbf16>
    %cst_75 = arith.constant dense<0.000000e+00> : vector<16x128xf32>
    %212 = tpu.matmul %211, %12, %cst_75 {dimension_numbers = #tpu.dot_dimension_numbers<[1], [0], [0], [1], [0, 0, 1, 1], [], []>} : vector<16x128xbf16>, vector<128x128xbf16>, vector<16x128xf32> -> vector<16x128xf32>
    %213 = arith.addf %27, %212 : vector<16x128xf32>
    %214 = vector.broadcast %14 : vector<1x128xf32> to vector<16x128xf32>
    %215 = arith.addf %213, %214 : vector<16x128xf32>
    %cst_76 = arith.constant dense<0.000000e+00> : vector<16xf32>
    %216 = vector.multi_reduction <add>, %215, %cst_76 [1] : vector<16x128xf32> to vector<16xf32>
    %217 = vector.shape_cast %216 : vector<16xf32> to vector<16x1xf32>
    %cst_77 = arith.constant 1.280000e+02 : f32
    %218 = vector.broadcast %cst_77 : f32 to vector<16x1xf32>
    %219 = arith.divf %217, %218 : vector<16x1xf32>
    %220 = vector.broadcast %219 : vector<16x1xf32> to vector<16x128xf32>
    %221 = arith.subf %215, %220 : vector<16x128xf32>
    %222 = arith.mulf %221, %221 : vector<16x128xf32>
    %cst_78 = arith.constant dense<0.000000e+00> : vector<16xf32>
    %223 = vector.multi_reduction <add>, %222, %cst_78 [1] : vector<16x128xf32> to vector<16xf32>
    %224 = vector.shape_cast %223 : vector<16xf32> to vector<16x1xf32>
    %cst_79 = arith.constant 1.280000e+02 : f32
    %225 = vector.broadcast %cst_79 : f32 to vector<16x1xf32>
    %226 = arith.divf %224, %225 : vector<16x1xf32>
    %227 = vector.broadcast %219 : vector<16x1xf32> to vector<16x128xf32>
    %228 = arith.subf %215, %227 : vector<16x128xf32>
    %cst_80 = arith.constant 9.99999974E-6 : f32
    %229 = vector.broadcast %cst_80 : f32 to vector<16x1xf32>
    %230 = arith.addf %226, %229 : vector<16x1xf32>
    %231 = math.rsqrt %230 : vector<16x1xf32>
    %232 = vector.broadcast %231 : vector<16x1xf32> to vector<16x128xf32>
    %233 = arith.mulf %228, %232 : vector<16x128xf32>
    %234 = vector.broadcast %16 : vector<1x128xf32> to vector<16x128xf32>
    %235 = arith.mulf %233, %234 : vector<16x128xf32>
    %236 = vector.broadcast %18 : vector<1x128xf32> to vector<16x128xf32>
    %237 = arith.addf %235, %236 : vector<16x128xf32>
    %238 = arith.truncf %237 : vector<16x128xf32> to vector<16x128xbf16>
    %cst_81 = arith.constant dense<0.000000e+00> : vector<16x256xf32>
    %239 = tpu.matmul %238, %20, %cst_81 {dimension_numbers = #tpu.dot_dimension_numbers<[1], [0], [0], [1], [0, 0, 1, 1], [], []>} : vector<16x128xbf16>, vector<128x256xbf16>, vector<16x256xf32> -> vector<16x256xf32>
    %240 = vector.broadcast %22 : vector<1x256xf32> to vector<16x256xf32>
    %241 = arith.addf %239, %240 : vector<16x256xf32>
    %242 = arith.mulf %241, %241 : vector<16x256xf32>
    %243 = arith.mulf %241, %242 : vector<16x256xf32>
    %cst_82 = arith.constant 4.471500e-02 : f32
    %244 = vector.broadcast %cst_82 : f32 to vector<16x256xf32>
    %245 = arith.mulf %244, %243 : vector<16x256xf32>
    %246 = arith.addf %241, %245 : vector<16x256xf32>
    %cst_83 = arith.constant 0.797884583 : f32
    %247 = vector.broadcast %cst_83 : f32 to vector<16x256xf32>
    %248 = arith.mulf %247, %246 : vector<16x256xf32>
    %249 = math.tanh %248 : vector<16x256xf32>
    %cst_84 = arith.constant 1.000000e+00 : f32
    %250 = vector.broadcast %cst_84 : f32 to vector<16x256xf32>
    %251 = arith.addf %250, %249 : vector<16x256xf32>
    %cst_85 = arith.constant 5.000000e-01 : f32
    %252 = vector.broadcast %cst_85 : f32 to vector<16x256xf32>
    %253 = arith.mulf %252, %251 : vector<16x256xf32>
    %254 = arith.mulf %241, %253 : vector<16x256xf32>
    %255 = arith.truncf %254 : vector<16x256xf32> to vector<16x256xbf16>
    %cst_86 = arith.constant dense<0.000000e+00> : vector<16x128xf32>
    %256 = tpu.matmul %255, %24, %cst_86 {dimension_numbers = #tpu.dot_dimension_numbers<[1], [0], [0], [1], [0, 0, 1, 1], [], []>} : vector<16x256xbf16>, vector<256x128xbf16>, vector<16x128xf32> -> vector<16x128xf32>
    %257 = arith.addf %215, %256 : vector<16x128xf32>
    %258 = vector.broadcast %26 : vector<1x128xf32> to vector<16x128xf32>
    %259 = arith.addf %257, %258 : vector<16x128xf32>
    %c0_87 = arith.constant 0 : index
    %c0_88 = arith.constant 0 : index
    %260 = vector.load %arg19[%c0_87, %c0_88] : memref<16x128xf32, #tpu.memory_space<vmem>>, vector<16x128xf32>
    tpu.vector_store %arg19[%c0_87, %c0_88], %259 {strides = array<i32>} : memref<16x128xf32, #tpu.memory_space<vmem>>, vector<16x128xf32>,
    %c1_i32 = arith.constant 1 : i32
    %261 = arith.cmpi eq, %arg0, %c1_i32 : i32
    %262 = arith.extui %261 : i1 to i32
    %c0_i32_89 = arith.constant 0 : i32
    %263 = arith.cmpi ne, %262, %c0_i32_89 : i32
    scf.if %263 {
      %c0_90 = arith.constant 0 : index
      %c0_91 = arith.constant 0 : index
      %264 = vector.load %arg14[%c0_90, %c0_91] : memref<1x128xf32, #tpu.memory_space<vmem>>, vector<1x128xf32>
      %c0_92 = arith.constant 0 : index
      %c0_93 = arith.constant 0 : index
      %265 = vector.load %arg15[%c0_92, %c0_93] : memref<1x128xf32, #tpu.memory_space<vmem>>, vector<1x128xf32>
      %c0_94 = arith.constant 0 : index
      %c0_95 = arith.constant 0 : index
      %266 = vector.load %arg16[%c0_94, %c0_95] : memref<128x128xbf16, #tpu.memory_space<vmem>>, vector<128x128xbf16>
      %c0_96 = arith.constant 0 : index
      %c0_97 = arith.constant 0 : index
      %267 = vector.load %arg17[%c0_96, %c0_97] : memref<1x128xf32, #tpu.memory_space<vmem>>, vector<1x128xf32>
      %268 = vector.extract_strided_slice %259 {offsets = [0, 0], sizes = [1, 128], strides = [1, 1]} : vector<16x128xf32> to vector<1x128xf32>
      %269 = vector.extract_strided_slice %259 {offsets = [8, 0], sizes = [1, 128], strides = [1, 1]} : vector<16x128xf32> to vector<1x128xf32>
      %cst_98 = arith.constant 0.000000e+00 : f32
      %270 = vector.broadcast %cst_98 : f32 to vector<6x128xf32>
      %271 = tpu.concatenate %268, %269, %270 in 0 : vector<1x128xf32>, vector<1x128xf32>, vector<6x128xf32> -> vector<8x128xf32>
      %cst_99 = arith.constant dense<0.000000e+00> : vector<8xf32>
      %272 = vector.multi_reduction <add>, %271, %cst_99 [1] : vector<8x128xf32> to vector<8xf32>
      %273 = vector.shape_cast %272 : vector<8xf32> to vector<8x1xf32>
      %cst_100 = arith.constant 1.280000e+02 : f32
      %274 = vector.broadcast %cst_100 : f32 to vector<8x1xf32>
      %275 = arith.divf %273, %274 : vector<8x1xf32>
      %276 = vector.broadcast %275 : vector<8x1xf32> to vector<8x128xf32>
      %277 = arith.subf %271, %276 : vector<8x128xf32>
      %278 = arith.mulf %277, %277 : vector<8x128xf32>
      %cst_101 = arith.constant dense<0.000000e+00> : vector<8xf32>
      %279 = vector.multi_reduction <add>, %278, %cst_101 [1] : vector<8x128xf32> to vector<8xf32>
      %280 = vector.shape_cast %279 : vector<8xf32> to vector<8x1xf32>
      %cst_102 = arith.constant 1.280000e+02 : f32
      %281 = vector.broadcast %cst_102 : f32 to vector<8x1xf32>
      %282 = arith.divf %280, %281 : vector<8x1xf32>
      %283 = vector.broadcast %275 : vector<8x1xf32> to vector<8x128xf32>
      %284 = arith.subf %271, %283 : vector<8x128xf32>
      %cst_103 = arith.constant 9.99999974E-6 : f32
      %285 = vector.broadcast %cst_103 : f32 to vector<8x1xf32>
      %286 = arith.addf %282, %285 : vector<8x1xf32>
      %287 = math.rsqrt %286 : vector<8x1xf32>
      %288 = vector.broadcast %287 : vector<8x1xf32> to vector<8x128xf32>
      %289 = arith.mulf %284, %288 : vector<8x128xf32>
      %290 = vector.broadcast %264 : vector<1x128xf32> to vector<8x128xf32>
      %291 = arith.mulf %289, %290 : vector<8x128xf32>
      %292 = vector.broadcast %265 : vector<1x128xf32> to vector<8x128xf32>
      %293 = arith.addf %291, %292 : vector<8x128xf32>
      %294 = arith.truncf %293 : vector<8x128xf32> to vector<8x128xbf16>
      %cst_104 = arith.constant dense<0.000000e+00> : vector<8x128xf32>
      %295 = tpu.matmul %294, %266, %cst_104 {dimension_numbers = #tpu.dot_dimension_numbers<[1], [0], [0], [1], [0, 0, 1, 1], [], []>} : vector<8x128xbf16>, vector<128x128xbf16>, vector<8x128xf32> -> vector<8x128xf32>
      %296 = vector.broadcast %267 : vector<1x128xf32> to vector<8x128xf32>
      %297 = arith.addf %295, %296 : vector<8x128xf32>
      %c0_105 = arith.constant 0 : index
      %c0_106 = arith.constant 0 : index
      %298 = vector.load %arg18[%c0_105, %c0_106] : memref<8x128xf32, #tpu.memory_space<vmem>>, vector<8x128xf32>
      tpu.vector_store %arg18[%c0_105, %c0_106], %297 {strides = array<i32>} : memref<8x128xf32, #tpu.memory_space<vmem>>, vector<8x128xf32>,
    } else {
    }
    return
  }
  func.func @transform_0(%arg0: i32) -> (i32, i32) {
    %c0_i32 = arith.constant 0 : i32
    %c0_i32_0 = arith.constant 0 : i32
    %c0_i32_1 = arith.constant 0 : i32
    return %c0_i32, %c0_i32_0 : i32, i32
  }
  func.func @transform_1(%arg0: i32) -> (i32, i32, i32) {
    %c0_i32 = arith.constant 0 : i32
    %c0_i32_0 = arith.constant 0 : i32
    %c0_i32_1 = arith.constant 0 : i32
    return %arg0, %c0_i32, %c0_i32_0 : i32, i32, i32
  }
  func.func @transform_2(%arg0: i32) -> (i32, i32, i32) {
    %c0_i32 = arith.constant 0 : i32
    %c0_i32_0 = arith.constant 0 : i32
    %c0_i32_1 = arith.constant 0 : i32
    return %arg0, %c0_i32, %c0_i32_0 : i32, i32, i32
  }
  func.func @transform_3(%arg0: i32) -> (i32, i32, i32) {
    %c0_i32 = arith.constant 0 : i32
    %c0_i32_0 = arith.constant 0 : i32
    %c0_i32_1 = arith.constant 0 : i32
    return %arg0, %c0_i32, %c0_i32_0 : i32, i32, i32
  }
  func.func @transform_4(%arg0: i32) -> (i32, i32, i32) {
    %c0_i32 = arith.constant 0 : i32
    %c0_i32_0 = arith.constant 0 : i32
    %c0_i32_1 = arith.constant 0 : i32
    return %arg0, %c0_i32, %c0_i32_0 : i32, i32, i32
  }
  func.func @transform_5(%arg0: i32) -> (i32, i32, i32) {
    %c0_i32 = arith.constant 0 : i32
    %c0_i32_0 = arith.constant 0 : i32
    %c0_i32_1 = arith.constant 0 : i32
    return %arg0, %c0_i32, %c0_i32_0 : i32, i32, i32
  }
  func.func @transform_6(%arg0: i32) -> (i32, i32, i32) {
    %c0_i32 = arith.constant 0 : i32
    %c0_i32_0 = arith.constant 0 : i32
    %c0_i32_1 = arith.constant 0 : i32
    return %arg0, %c0_i32, %c0_i32_0 : i32, i32, i32
  }
  func.func @transform_7(%arg0: i32) -> (i32, i32, i32) {
    %c0_i32 = arith.constant 0 : i32
    %c0_i32_0 = arith.constant 0 : i32
    %c0_i32_1 = arith.constant 0 : i32
    return %arg0, %c0_i32, %c0_i32_0 : i32, i32, i32
  }
  func.func @transform_8(%arg0: i32) -> (i32, i32, i32) {
    %c0_i32 = arith.constant 0 : i32
    %c0_i32_0 = arith.constant 0 : i32
    %c0_i32_1 = arith.constant 0 : i32
    return %arg0, %c0_i32, %c0_i32_0 : i32, i32, i32
  }
  func.func @transform_9(%arg0: i32) -> (i32, i32, i32) {
    %c0_i32 = arith.constant 0 : i32
    %c0_i32_0 = arith.constant 0 : i32
    %c0_i32_1 = arith.constant 0 : i32
    return %arg0, %c0_i32, %c0_i32_0 : i32, i32, i32
  }
  func.func @transform_10(%arg0: i32) -> (i32, i32, i32) {
    %c0_i32 = arith.constant 0 : i32
    %c0_i32_0 = arith.constant 0 : i32
    %c0_i32_1 = arith.constant 0 : i32
    return %arg0, %c0_i32, %c0_i32_0 : i32, i32, i32
  }
  func.func @transform_11(%arg0: i32) -> (i32, i32, i32) {
    %c0_i32 = arith.constant 0 : i32
    %c0_i32_0 = arith.constant 0 : i32
    %c0_i32_1 = arith.constant 0 : i32
    return %arg0, %c0_i32, %c0_i32_0 : i32, i32, i32
  }
  func.func @transform_12(%arg0: i32) -> (i32, i32, i32) {
    %c0_i32 = arith.constant 0 : i32
    %c0_i32_0 = arith.constant 0 : i32
    %c0_i32_1 = arith.constant 0 : i32
    return %arg0, %c0_i32, %c0_i32_0 : i32, i32, i32
  }
  func.func @transform_13(%arg0: i32) -> (i32, i32) {
    %c0_i32 = arith.constant 0 : i32
    %c0_i32_0 = arith.constant 0 : i32
    %c0_i32_1 = arith.constant 0 : i32
    return %c0_i32, %c0_i32_0 : i32, i32
  }
  func.func @transform_14(%arg0: i32) -> (i32, i32) {
    %c0_i32 = arith.constant 0 : i32
    %c0_i32_0 = arith.constant 0 : i32
    %c0_i32_1 = arith.constant 0 : i32
    return %c0_i32, %c0_i32_0 : i32, i32
  }
  func.func @transform_15(%arg0: i32) -> (i32, i32) {
    %c0_i32 = arith.constant 0 : i32
    %c0_i32_0 = arith.constant 0 : i32
    %c0_i32_1 = arith.constant 0 : i32
    return %c0_i32, %c0_i32_0 : i32, i32
  }
  func.func @transform_16(%arg0: i32) -> (i32, i32) {
    %c0_i32 = arith.constant 0 : i32
    %c0_i32_0 = arith.constant 0 : i32
    %c0_i32_1 = arith.constant 0 : i32
    return %c0_i32, %c0_i32_0 : i32, i32
  }
  func.func @transform_17(%arg0: i32) -> (i32, i32) {
    %c0_i32 = arith.constant 0 : i32
    %c0_i32_0 = arith.constant 0 : i32
    %c0_i32_1 = arith.constant 0 : i32
    return %c0_i32, %c0_i32_0 : i32, i32
  }
}

</mosaic_0001>

<bundles_post_ra>
// kernel: _lambda_.3
= control target key start
LH: loop header
LB: loop body
LE: loop exit
PB: predicated region body
PF: predicated region fallthrough
CT: control target
= control target key end

     0   :  { %s4137_s0 = inlined_call_operand.vmem [shape: f32[16,128], index: 0, kind: input, shape index: {}]   ;;  %s4138_s1 = inlined_call_operand.hbm [shape: f32[2,1,128], index: 1, kind: input, shape index: {}]   ;;  %s4139_s2 = inlined_call_operand.hbm [shape: f32[2,1,128], index: 2, kind: input, shape index: {}]   ;;  %s4140_s3 = inlined_call_operand.vmem [shape: bf16[2,128,384], index: 3, kind: input, shape index: {}]   ;;  %s4141_s4 = inlined_call_operand.vmem [shape: f32[2,1,384], index: 4, kind: input, shape index: {}]   ;;  %s4142_s5 = inlined_call_operand.vmem [shape: bf16[2,128,128], index: 5, kind: input, shape index: {}]   ;;  %s4143_s6 = inlined_call_operand.hbm [shape: f32[2,1,128], index: 6, kind: input, shape index: {}]   ;;  %s4144_s7 = inlined_call_operand.hbm [shape: f32[2,1,128], index: 7, kind: input, shape index: {}]   ;;  %s4145_s8 = inlined_call_operand.hbm [shape: f32[2,1,128], index: 8, kind: input, shape index: {}]   ;;  %s4146_s9 = inlined_call_operand.vmem [shape: bf16[2,128,256], index: 9, kind: input, shape index: {}]   ;;  %s4147_s10 = inlined_call_operand.vmem [shape: f32[2,1,256], index: 10, kind: input, shape index: {}]   ;;  %s4148_s11 = inlined_call_operand.hbm [shape: bf16[2,256,128], index: 11, kind: input, shape index: {}]   ;;  %s4149_s12 = inlined_call_operand.hbm [shape: f32[2,1,128], index: 12, kind: input, shape index: {}]   ;;  %s4150_s13 = inlined_call_operand.hbm [shape: f32[1,128], index: 13, kind: input, shape index: {}]   ;;  %s4151_s14 = inlined_call_operand.hbm [shape: f32[1,128], index: 14, kind: input, shape index: {}]   ;;  %s4152_s15 = inlined_call_operand.vmem [shape: bf16[128,128], index: 15, kind: input, shape index: {}]   ;;  %s4153_s16 = inlined_call_operand.hbm [shape: f32[1,128], index: 16, kind: input, shape index: {}]   ;;  %s4154_s17 = inlined_call_operand.vmem [shape: f32[8,128], index: 17, kind: output, shape index: {}]  }
   0x1   :  { %4163 = sst [smem:[#allocation28_spill]] %s4137_s0 }
   0x2   :  { %4164 = sst [smem:[#allocation29_spill]] %s4138_s1 }
   0x3   :  { %4165 = sst [smem:[#allocation30_spill]] %s4139_s2 }
   0x4   :  { %4166 = sst [smem:[#allocation31_spill]] %s4140_s3 }
   0x5   :  { %4167 = sst [smem:[#allocation32_spill]] %s4141_s4 }
   0x6   :  { %4168 = sst [smem:[#allocation33_spill]] %s4142_s5 }
   0x7   :  { %4169 = sst [smem:[#allocation34_spill]] %s4143_s6 }
   0x8   :  { %4170 = sst [smem:[#allocation35_spill]] %s4144_s7 }
   0x9   :  { %4171 = sst [smem:[#allocation36_spill]] %s4145_s8 }
   0xa   :  { %4172 = sst [smem:[#allocation37_spill]] %s4146_s9 }
   0xb   :  { %4173 = sst [smem:[#allocation38_spill]] %s4147_s10 }
   0xc   :  { %4174 = sst [smem:[#allocation39_spill]] %s4150_s13 }
   0xd   :  { %4175 = sst [smem:[#allocation40_spill]] %s4152_s15 }
   0xe   :  { %4176 = sst [smem:[#allocation41_spill]] %s4154_s17 }
   0xf   :  { %22 = vsyncpa [#allocation4], 0 }
  0x10   :  { %24 = vsyncpa [#allocation4 + $0x1], 0 }
  0x11   :  { %25 = vsyncpa [#allocation6], 0 }
  0x12   :  { %27 = vsyncpa [#allocation6 + $0x1], 0 }
  0x13   :  { %28 = vsyncpa [#allocation9], 0 }
  0x14   :  { %30 = vsyncpa [#allocation9 + $0x1], 0 }
  0x15   :  { %31 = vsyncpa [#allocation12], 0 }
  0x16   :  { %33 = vsyncpa [#allocation12 + $0x1], 0 }
  0x17   :  { %34 = vsyncpa [#allocation15], 0 }
  0x18   :  { %35 = vsyncpa [#allocation18], 0  ;;  %s3532_s24 = smov 0   ;;  %s3534_s25 = smov 0  }
  0x19   :  { %s3536_s26 = smov 0   ;;  %s3538_s27 = smov 0  }
  0x1a LB: > { %4177 = sst [smem:[#allocation25_spill]] %s3427_s26  ;;  %s3551_s28 = sadd.s32 4294967295, %s3431_s27   ;;  %s3431_s27 = sphi %s3538_s27, %s4208_s27   ;;  %s3427_s26 = sphi %s3536_s26, %s4210_s26   ;;  %s3423_s25 = sphi %s3534_s25, %s4212_s25   ;;  %s3419_s24 = sphi %s3532_s24, %s4211_s24  }
  0x1b   : > { %s3554_s29 = sadd.s32 1, %s3431_s27   ;;  %s69_s30 = sadd.s32 1, %s3427_s26 }
  0x1c   : > { %4178 = sst [smem:[#allocation26_spill]] %s3554_s29  ;;  %s66_s0 = ssub.s32 %s3431_s27, %s3554_s29 }
  0x1d   : > { %p67_p0 = scmp.eq.s32.totalorder %s66_s0, 0  ;;  %p76_p1 = scmp.ne.s32.totalorder %s3427_s26, %s3423_s25 }
  0x1e   : > { %p77_p2 = scmp.eq.s32.totalorder %s3431_s27, 0  ;;  %p82_p3 = scmp.ne.s32.totalorder %s3423_s25, %s3419_s24 }
  0x1f   : > { %s3564_s18 = scalar_select %p67_p0, %s3427_s26, %s69_s30  }
  0x20   : > { %p3566_p4 = por %p77_p2, %p76_p1  ;;  %p83_p5 = scmp.eq.s32.totalorder %s3551_s28, 0 }
  0x21   : > { %4179 = sst [smem:[#allocation27_spill]] %s3564_s18  ;;  %p2491_p6 = scmp.ge.s32.totalorder %s3431_s27, 1 }
  0x22   : > { %p484_p7 = scmp.lt.s32.totalorder %s3431_s27, 3  ;;  %p3575_p8 = por %p83_p5, %p82_p3 }
  0x23   : > { %p2492_p9 = scmp.ne.s32.totalorder %s3551_s28, 0  ;;  %s4183_s13 = sld [smem:[#allocation39_spill]] }
  0x24   : > { %p3580_p10 = pnand %p2491_p6, %p484_p7  ;;  %s3433_s24 = smov [#allocation14]  }
  0x25   : > { %s501_s0 = sshll.u32 %s3433_s24, 4  ;;  %p2956_p13 = scmp.lt.s32.totalorder %s3431_s27, 2  ;;  %s502_s0 = int_to_ptr.vmem [resolvable:$true] %s501_s0 }
  0x26   : > { %p2921_p11 = pneg %p3580_p10  ;;  %s3597_s18 = sand.u32 1, %s3427_s26  }
  0x27   : > { %s3600_s29 = sand.u32 1, %s3431_s27   ;;  %p3604_p0 = pnand %p2956_p13, %p3566_p4 }
  0x28   : > { %p3591_p12 = pnand %p2921_p11, %p83_p5  ;;  %s4186_s2 = sld [smem:[#allocation30_spill]] }
  0x29   : > { %s499_s23 = sshll.u32 %s4183_s13, 4  ;;  %s559_s15 = scalar_lea.vmem [#allocation5], %s3597_s18  ;;  %s500_s23 = int_to_ptr.hbm [resolvable:$true] %s499_s23 }
  0x2a   : > { %2924 = dma.hbm_to_vmem [thread:$0]  (!%p3591_p12), %s500_s23, 16, %s502_s0, [#allocation15]  }
  0x2b   : > { %s566_s26 = sshll.u32 %s559_s15, 4  ;;  %s4161_s10 = scalar_lea.sflag [#allocation6], %s3600_s29  ;;  %s567_s26 = int_to_ptr.vmem [resolvable:$true] %s566_s26 }
  0x2c   : > { %p3618_p2 = pneg %p3604_p0 }
  0x2e   : > { %s562_s13 = scalar_lea.hbm %s4186_s2, %s3431_s27  ;;  %s3114_s15 = scalar_lea.hbm %s4186_s2, 2 }
  0x2f   : > { %s564_s17 = sshll.u32 %s562_s13, 4  ;;  %s565_s17 = int_to_ptr.hbm [resolvable:$true] %s564_s17 }
  0x30   : > { %s3107_s9 = sshra.s32 %s565_s17, 4  ;;  %s3108_s9 = int_to_ptr.hbm [resolvable:$true] %s3107_s9 }
  0x31   : > { %s3109_s19 = scalar_lea.hbm %s3108_s9, 1  ;;  %p3115_p6 = scmp.lt.s32.totalorder %s3108_s9, %s4186_s2 }
  0x32   : > { %p3110_p1 = scmp.ne.s32.totalorder %s3108_s9, %s3109_s19  ;;  %p3116_p7 = scmp.lt.s32.totalorder %s3114_s15, %s3109_s19 }
  0x34   : > { %p3112_p3 = pnand %p3618_p2, %p3110_p1  ;;  %p3117_p11 = por %p3116_p7, %p3115_p6 }
  0x36   : > { %p3113_p4 = pneg %p3112_p3 }
  0x38   : > { %p3118_p13 = pnand %p3117_p11, %p3113_p4 }
  0x3a   : > { %3121 = shalt.err (!%p3118_p13)
}
  0x3b   : > { %2937 = dma.hbm_to_vmem [thread:$0]  (!%p3604_p0), %s565_s17, 16, %s567_s26, %s4161_s10  }
  0x3c   : > { %s4188_s7 = sld [smem:[#allocation35_spill]]  ;;  %s616_s0 = scalar_lea.vmem [#allocation8], %s3597_s18 }
  0x3d   : > { %s623_s9 = sshll.u32 %s616_s0, 4  ;;  %s4162_s19 = scalar_lea.sflag [#allocation9], %s3600_s29  ;;  %s624_s9 = int_to_ptr.vmem [resolvable:$true] %s623_s9 }
  0x42   : > { %s619_s13 = scalar_lea.hbm %s4188_s7, %s3431_s27  ;;  %s3144_s17 = scalar_lea.hbm %s4188_s7, 2 }
  0x43   : > { %s621_s3 = sshll.u32 %s619_s13, 4  ;;  %s622_s3 = int_to_ptr.hbm [resolvable:$true] %s621_s3 }
  0x44   : > { %s3137_s15 = sshra.s32 %s622_s3, 4  ;;  %s3138_s15 = int_to_ptr.hbm [resolvable:$true] %s3137_s15 }
  0x45   : > { %s3139_s22 = scalar_lea.hbm %s3138_s15, 1  ;;  %p3145_p6 = scmp.lt.s32.totalorder %s3138_s15, %s4188_s7 }
  0x46   : > { %p3140_p1 = scmp.ne.s32.totalorder %s3138_s15, %s3139_s22  ;;  %p3146_p7 = scmp.lt.s32.totalorder %s3144_s17, %s3139_s22 }
  0x48   : > { %p3142_p3 = pnand %p3140_p1, %p3618_p2  ;;  %p3147_p11 = por %p3146_p7, %p3145_p6 }
  0x4a   : > { %p3143_p4 = pneg %p3142_p3 }
  0x4c   : > { %p3148_p13 = pnand %p3147_p11, %p3143_p4 }
  0x4e   : > { %3151 = shalt.err (!%p3148_p13)
}
  0x4f   : > { %2943 = dma.hbm_to_vmem [thread:$0]  (!%p3604_p0), %s622_s3, 16, %s624_s9, %s4162_s19  }
  0x50   : > { %s2496_s23 = sshll.u32 %s3597_s18, 7  ;;  %s2818_s2 = sshll.u32 %s3431_s27, 7 }
  0x51   : > { %s671_s0 = scalar_lea.hbm %s4148_s11, %s2818_s2  ;;  %s666_s22 = scalar_lea.vmem [#allocation11], %s2496_s23 }
  0x52   : > { %s672_s15 = sshll.u32 %s671_s0, 4  ;;  %s674_s17 = sshll.u32 %s666_s22, 4  ;;  %s673_s15 = int_to_ptr.hbm [resolvable:$true] %s672_s15  ;;  %s675_s17 = int_to_ptr.vmem [resolvable:$true] %s674_s17 }
  0x53   : > { %s663_s26 = scalar_lea.sflag [#allocation12], %s3600_s29  ;;  %s3167_s24 = sshra.s32 %s673_s15, 4  ;;  %s3168_s24 = int_to_ptr.hbm [resolvable:$true] %s3167_s24 }
  0x54   : > { %s3169_s10 = scalar_lea.hbm %s3168_s24, 128  ;;  %s3174_s19 = scalar_lea.hbm %s4148_s11, 256 }
  0x55   : > { %p3170_p1 = scmp.ne.s32.totalorder %s3168_s24, %s3169_s10  ;;  %p3175_p6 = scmp.lt.s32.totalorder %s3168_s24, %s4148_s11 }
  0x56   : > { %p3176_p7 = scmp.lt.s32.totalorder %s3174_s19, %s3169_s10 }
  0x57   : > { %p3172_p3 = pnand %p3170_p1, %p3618_p2 }
  0x58   : > { %p3177_p11 = por %p3176_p7, %p3175_p6 }
  0x59   : > { %p3173_p4 = pneg %p3172_p3 }
  0x5b   : > { %p3178_p13 = pnand %p3177_p11, %p3173_p4 }
  0x5d   : > { %3181 = shalt.err (!%p3178_p13)
}
  0x5e   : > { %s3434_s23 = smov 64   ;;  %s3435_s2 = smov 4  }
  0x5f   : > { %2949 = dma.hbm_to_vmem [thread:$0]  (!%p3604_p0), %s673_s15, 2048, %s675_s17, %s663_s26, %s3434_s23, %s3434_s23, %s3435_s2  }
  0x60   : > { %s511_s7 = sshll.u32 %s4151_s14, 4  ;;  %s3436_s10 = smov [#allocation16]   ;;  %s512_s7 = int_to_ptr.hbm [resolvable:$true] %s511_s7 }
  0x61   : > { %s513_s19 = sshll.u32 %s3436_s10, 4  ;;  %s526_s3 = sshll.u32 %s4153_s16, 4  ;;  %s514_s19 = int_to_ptr.vmem [resolvable:$true] %s513_s19  ;;  %s527_s3 = int_to_ptr.hbm [resolvable:$true] %s526_s3 }
  0x62   : > { %2927 = dma.hbm_to_vmem [thread:$0]  (!%p3591_p12), %s512_s7, 16, %s514_s19, [#allocation15]  }
  0x63   : > { %s3437_s9 = smov [#allocation17]   ;;  %s4189_s23 = sld [smem:[#allocation29_spill]] }
  0x64   : > { %s528_s5 = sshll.u32 %s3437_s9, 4  ;;  %s542_s13 = scalar_lea.vmem [#allocation3], %s3597_s18  ;;  %s529_s5 = int_to_ptr.vmem [resolvable:$true] %s528_s5 }
  0x65   : > { %2930 = dma.hbm_to_vmem [thread:$0]  (!%p3591_p12), %s527_s3, 16, %s529_s5, [#allocation18]  }
  0x66   : > { %s549_s0 = sshll.u32 %s542_s13, 4  ;;  %s540_s22 = scalar_lea.sflag [#allocation4], %s3597_s18  ;;  %s550_s0 = int_to_ptr.vmem [resolvable:$true] %s549_s0 }
  0x69   : > { %s545_s2 = scalar_lea.hbm %s4189_s23, %s3431_s27  ;;  %s3264_s3 = scalar_lea.hbm %s4189_s23, 2 }
  0x6a   : > { %s547_s10 = sshll.u32 %s545_s2, 4  ;;  %s548_s10 = int_to_ptr.hbm [resolvable:$true] %s547_s10 }
  0x6b   : > { %s3257_s24 = sshra.s32 %s548_s10, 4  ;;  %s3258_s24 = int_to_ptr.hbm [resolvable:$true] %s3257_s24 }
  0x6c   : > { %s3259_s7 = scalar_lea.hbm %s3258_s24, 1  ;;  %p3265_p12 = scmp.lt.s32.totalorder %s3258_s24, %s4189_s23 }
  0x6d   : > { %p3260_p1 = scmp.ne.s32.totalorder %s3258_s24, %s3259_s7  ;;  %p3266_p6 = scmp.lt.s32.totalorder %s3264_s3, %s3259_s7 }
  0x6f   : > { %p3262_p3 = pnand %p3260_p1, %p3618_p2  ;;  %p3267_p7 = por %p3266_p6, %p3265_p12 }
  0x71   : > { %p3263_p4 = pneg %p3262_p3 }
  0x73   : > { %p3268_p11 = pnand %p3267_p7, %p3263_p4 }
  0x75   : > { %3271 = shalt.err (!%p3268_p11)
}
  0x76   : > { %2934 = dma.hbm_to_vmem [thread:$0]  (!%p3604_p0), %s548_s10, 16, %s550_s0, %s540_s22  }
  0x77   : > { %s4190_s6 = sld [smem:[#allocation34_spill]]  ;;  %s599_s13 = scalar_lea.vmem [#allocation7], %s3597_s18 }
  0x78   : > { %s606_s19 = sshll.u32 %s599_s13, 4  ;;  %s607_s19 = int_to_ptr.vmem [resolvable:$true] %s606_s19 }
  0x7d   : > { %s602_s2 = scalar_lea.hbm %s4190_s6, %s3431_s27  ;;  %s3294_s0 = scalar_lea.hbm %s4190_s6, 2 }
  0x7e   : > { %s604_s30 = sshll.u32 %s602_s2, 4  ;;  %s605_s30 = int_to_ptr.hbm [resolvable:$true] %s604_s30 }
  0x7f   : > { %s3287_s24 = sshra.s32 %s605_s30, 4  ;;  %s3288_s24 = int_to_ptr.hbm [resolvable:$true] %s3287_s24 }
  0x80   : > { %s3289_s7 = scalar_lea.hbm %s3288_s24, 1  ;;  %p3295_p4 = scmp.lt.s32.totalorder %s3288_s24, %s4190_s6 }
  0x81   : > { %p3290_p13 = scmp.ne.s32.totalorder %s3288_s24, %s3289_s7  ;;  %p3296_p12 = scmp.lt.s32.totalorder %s3294_s0, %s3289_s7 }
  0x83   : > { %p3292_p1 = pnand %p3290_p13, %p3618_p2  ;;  %p3297_p6 = por %p3296_p12, %p3295_p4 }
  0x85   : > { %p3293_p3 = pneg %p3292_p1 }
  0x87   : > { %p3298_p7 = pnand %p3297_p6, %p3293_p3 }
  0x89   : > { %3301 = shalt.err (!%p3298_p7)
}
  0x8a   : > { %s4191_s5 = scalar_lea.sflag [#allocation6], %s3600_s29  ;;  %s4192_s8 = sld [smem:[#allocation36_spill]] }
  0x8b   : > { %2940 = dma.hbm_to_vmem [thread:$0]  (!%p3604_p0), %s605_s30, 16, %s607_s19, %s4191_s5  }
  0x8c   : > { %s633_s13 = scalar_lea.vmem [#allocation10], %s3597_s18 }
  0x8d   : > { %s640_s3 = sshll.u32 %s633_s13, 4  ;;  %s641_s3 = int_to_ptr.vmem [resolvable:$true] %s640_s3 }
  0x90   : > { %s636_s2 = scalar_lea.hbm %s4192_s8, %s3431_s27  ;;  %s3324_s19 = scalar_lea.hbm %s4192_s8, 2 }
  0x91   : > { %s638_s9 = sshll.u32 %s636_s2, 4  ;;  %s639_s9 = int_to_ptr.hbm [resolvable:$true] %s638_s9 }
  0x92   : > { %s3317_s24 = sshra.s32 %s639_s9, 4  ;;  %s3318_s24 = int_to_ptr.hbm [resolvable:$true] %s3317_s24 }
  0x93   : > { %s3319_s7 = scalar_lea.hbm %s3318_s24, 1  ;;  %p3325_p3 = scmp.lt.s32.totalorder %s3318_s24, %s4192_s8 }
  0x94   : > { %p3320_p11 = scmp.ne.s32.totalorder %s3318_s24, %s3319_s7  ;;  %p3326_p4 = scmp.lt.s32.totalorder %s3324_s19, %s3319_s7 }
  0x96   : > { %p3322_p13 = pnand %p3320_p11, %p3618_p2  ;;  %p3327_p12 = por %p3326_p4, %p3325_p3 }
  0x98   : > { %p3323_p1 = pneg %p3322_p13 }
  0x9a   : > { %p3328_p6 = pnand %p3327_p12, %p3323_p1 }
  0x9c   : > { %3331 = shalt.err (!%p3328_p6)
}
  0x9d   : > { %s4193_s5 = scalar_lea.sflag [#allocation9], %s3600_s29  ;;  %s690_s2 = scalar_lea.hbm %s4149_s12, %s3431_s27 }
  0x9e   : > { %2946 = dma.hbm_to_vmem [thread:$0]  (!%p3604_p0), %s639_s9, 16, %s641_s3, %s4193_s5  }
  0x9f   : > { %s687_s13 = scalar_lea.vmem [#allocation13], %s3597_s18  ;;  %s692_s10 = sshll.u32 %s690_s2, 4  ;;  %s693_s10 = int_to_ptr.hbm [resolvable:$true] %s692_s10 }
  0xa0   : > { %s694_s0 = sshll.u32 %s687_s13, 4  ;;  %s3347_s24 = sshra.s32 %s693_s10, 4  ;;  %s695_s0 = int_to_ptr.vmem [resolvable:$true] %s694_s0  ;;  %s3348_s24 = int_to_ptr.hbm [resolvable:$true] %s3347_s24 }
  0xa1   : > { %s3349_s7 = scalar_lea.hbm %s3348_s24, 1  ;;  %s3354_s3 = scalar_lea.hbm %s4149_s12, 2 }
  0xa2   : > { %p3350_p7 = scmp.ne.s32.totalorder %s3348_s24, %s3349_s7  ;;  %p3355_p1 = scmp.lt.s32.totalorder %s3348_s24, %s4149_s12 }
  0xa3   : > { %p3356_p3 = scmp.lt.s32.totalorder %s3354_s3, %s3349_s7 }
  0xa4   : > { %p3352_p11 = pnand %p3350_p7, %p3618_p2 }
  0xa5   : > { %p3357_p4 = por %p3356_p3, %p3355_p1 }
  0xa6   : > { %p3353_p13 = pneg %p3352_p11 }
  0xa8   : > { %p3358_p12 = pnand %p3357_p4, %p3353_p13 }
  0xaa   : > { %3361 = shalt.err (!%p3358_p12)
}
  0xab   : > { %2952 = dma.hbm_to_vmem [thread:$0]  (!%p3604_p0), %s693_s10, 16, %s695_s0, %s663_s26  }
  0xac   : > { %703 = sbr.rel (%p3580_p10) target bundleno = 2925 (0xb6d), region = 88  ;;  %s3750_s4 = sand.u32 (!%p3580_p10), 1, %s3423_s25  }
  0xad   : > { %s706_s27 = scalar_lea.sflag (!%p3580_p10), [#allocation4], %s3750_s4 }
  0xb1   : > { %3394 = dma.done.wait (%p3575_p8), %s706_s27, 16  }
  0xb2   : > { %3396 = vsyncadd (%p3575_p8), %s706_s27, 4294967280  ;;  %s714_s29 = sand.u32 1, %s3551_s28  }
  0xb3   : > { %s715_s21 = scalar_lea.sflag [#allocation6], %s714_s29 }
  0xb4   : > { %3398 = dma.done.wait (%p3575_p8), %s715_s21, 32  }
  0xb5   : > { %3400 = vsyncadd (%p3575_p8), %s715_s21, 4294967264  ;;  %s733_s5 = scalar_lea.sflag [#allocation9], %s714_s29 }
  0xb6   : > { %3402 = dma.done.wait (%p3575_p8), %s733_s5, 32  }
  0xb7   : > { %3404 = vsyncadd (%p3575_p8), %s733_s5, 4294967264  ;;  %s2500_s17 = sshll.u32 %s3750_s4, 7  ;;  %s751_s13 = scalar_lea.sflag [#allocation12], %s714_s29 }
  0xb8   : > { %s3772_s0 = scalar_lea.vmem [#allocation11], %s2500_s17 }
  0xb9   : > { %3406 = dma.done.wait (%p3575_p8), %s751_s13, 2064  }
  0xba   : > { %3408 = vsyncadd (%p3575_p8), %s751_s13, 4294965232 }
  0xbb   : > { %3410 = dma.done.wait (%p83_p5), [#allocation15], 32  }
  0xbc   : > { %3412 = vsyncadd (%p83_p5), [#allocation15], 4294967264 }
  0xbd   : > { %3414 = dma.done.wait (%p83_p5), [#allocation18], 16  }
  0xbe   : > { %3416 = vsyncadd (%p83_p5), [#allocation18], 4294967280  ;;  %p872_p10 = scmp.lt.s32.totalorder %s3551_s28, 1  ;;  %s4194_s9 = sld [smem:[#allocation33_spill]] }
  0xbf   : > { %s4195_s21 = sld [smem:[#allocation31_spill]] }
  0xc0   : > { %s873_s24 = scalar_select %p872_p10, %s3551_s28, 1 }
  0xc1   : > { %s4196_s2 = sld [smem:[#allocation32_spill]] }
  0xc2   : > { %s2893_s1 = smul.u32 192, %s873_s24  ;;  %s2819_s7 = sshll.u32 %s873_s24, 6 }
  0xc3   : > { %s2894_s19 = smul.u32 3, %s873_s24  ;;  %s2820_s17 = sshll.u32 %s873_s24, 7 }
  0xc4   : > { %s3792_s22 = scalar_lea.vmem %s4194_s9, %s2819_s7  ;;  %s4197_s18 = sld [smem:[#allocation37_spill]] }
  0xc5   : > { %s3797_s5 = scalar_lea.vmem %s4195_s21, %s2893_s1  ;;  %s2509_s8 = sshll.u32 %s873_s24, 1 }
  0xc6   : > { %s4198_s3 = sld [smem:[#allocation38_spill]] }
  0xc7   : > { %s3802_s15 = scalar_lea.vmem %s4196_s2, %s2894_s19  ;;  %s4199_s29 = sld [smem:[#allocation28_spill]] (!%p2492_p9) }
  0xc8   : > { %899 = sbr.rel (%p2492_p9) target bundleno = 208 (0xd0), region = 132 }
  0xca   : > { %s3807_s6 = scalar_lea.vmem %s4197_s18, %s2820_s17 }
  0xcc   : > { %s3812_s9 = scalar_lea.vmem %s4198_s3, %s2509_s8 }
  0xcd   : > { %v900_v0 = vld [vmem:[%s4199_s29] sm:$0xff]  ;;  %v901_v1 = vld [vmem:[%s4199_s29 + $0x8] sm:$0xff] }
  0xce   : > { %902 = vst [vmem:[#allocation2] sm:$0xff] %v900_v0 }
  0xcf   : > { %903 = vst [vmem:[#allocation2 + $0x8] sm:$0xff] %v901_v1 }
  0xd0 PF: > { %v3438_v4 = vmov 128.0   ;;  %v2597_v19 = vld [vmem:[%s3797_s5 + $0xa8] sm:$0xf]  ;;  %v2843_v20 = vld [vmem:[%s3797_s5 + $0xb0] sm:$0xf0]  ;;  %s4200_s8 = scalar_lea.vmem [#allocation3], %s3750_s4 }
  0xd1   : > { %3022 = vrcp.f32 %v3438_v4  ;;  %v2842_v21 = vld [vmem:[%s3797_s5 + $0xac] sm:$0xf]  ;;  %v2598_v22 = vor.u32 %v2843_v20, %v2597_v19  ;;  %v2599_v23 = vld [vmem:[%s3797_s5 + $0xb4] sm:$0xf0]  ;;  %v2605_v24 = vld [vmem:[%s3797_s5 + $0xb0] sm:$0xf] }
  0xd2   : > { %v2844_v25 = vld [vmem:[%s3797_s5 + $0xb8] sm:$0xf0]  ;;  %v2602_v26 = vor.u32 %v2842_v21, %v2599_v23  ;;  %v2585_v28 = vld [vmem:[%s3797_s5 + $0x90] sm:$0xf]  ;;  %v2839_v30 = vld [vmem:[%s3797_s5 + $0x94] sm:$0xf] }
  0xd3   : > { %v2606_v27 = vor.u32 %v2844_v25, %v2605_v24  ;;  %1203 = vmatpush.bf16.msra.mxu0 %v2598_v22  ;;  %v2840_v29 = vld [vmem:[%s3797_s5 + $0x98] sm:$0xf0]  ;;  %v2587_v32 = vld [vmem:[%s3797_s5 + $0x9c] sm:$0xf0]  ;;  %v2593_v33 = vld [vmem:[%s3797_s5 + $0x98] sm:$0xf] }
  0xd4   : > { %1217 = vmatpush.bf16.msra.mxu1 %v2602_v26  ;;  %v2586_v31 = vor.u32 %v2840_v29, %v2585_v28  ;;  %v2841_v34 = vld [vmem:[%s3797_s5 + $0xa0] sm:$0xf0]  ;;  %v2590_v35 = vor.u32 %v2839_v30, %v2587_v32  ;;  %v2573_v37 = vld [vmem:[%s3797_s5 + $0x78] sm:$0xf]  ;;  %v2836_v39 = vld [vmem:[%s3797_s5 + $0x7c] sm:$0xf] }
  0xd5   : > { %v3822_v2 = vld [vmem:[#allocation2] sm:$0xff]  ;;  %1231 = vmatpush.bf16.msra.mxu2 %v2606_v27  ;;  %v2594_v36 = vor.u32 %v2841_v34, %v2593_v33  ;;  %v2575_v41 = vld [vmem:[%s3797_s5 + $0x84] sm:$0xf0]  ;;  %v2838_v43 = vld [vmem:[%s3797_s5 + $0x88] sm:$0xf0]  ;;  %s4201_s18 = scalar_lea.vmem [#allocation5], %s3750_s4 }
  0xd6   : > { %1010 = vadd.xlane.f32.xlu0 %v3822_v2  ;;  %v3825_v3 = vld [vmem:[#allocation2 + $0x8] sm:$0xff]  ;;  %v2837_v38 = vld [vmem:[%s3797_s5 + $0x80] sm:$0xf0]  ;;  %v2581_v42 = vld [vmem:[%s3797_s5 + $0x80] sm:$0xf]  ;;  %v2578_v44 = vor.u32 %v2836_v39, %v2575_v41  ;;  %vm1247_vm7 = vcmask 261120  }
  0xd7   : > { %v3023_v5 = vpop.eup %3022  ;;  %1204 = vmatpush.bf16.msra.mxu0 %v2586_v31  ;;  %v2574_v40 = vor.u32 %v2837_v38, %v2573_v37  ;;  %v2582_v45 = vor.u32 %v2838_v43, %v2581_v42  ;;  %v2561_v46 = vld [vmem:[%s3797_s5 + $0x60] sm:$0xf]  ;;  %v2834_v47 = vld [vmem:[%s3797_s5 + $0x68] sm:$0xf0]  ;;  %v2833_v48 = vld [vmem:[%s3797_s5 + $0x64] sm:$0xf] }
  0xd8   : > { %v1015_v6 = vmul.f32 128.0, %v3023_v5  ;;  %vm1019_vm0 = vweird.f32 %v3023_v5  ;;  %1218 = vmatpush.bf16.msra.mxu1 %v2590_v35  ;;  %v2562_v49 = vor.u32 %v2834_v47, %v2561_v46  ;;  %v2563_v50 = vld [vmem:[%s3797_s5 + $0x6c] sm:$0xf0]  ;;  %v2569_v51 = vld [vmem:[%s3797_s5 + $0x68] sm:$0xf]  ;;  %s3439_s20 = smov 96  }
  0xd9   : > { %1232 = vmatpush.bf16.msra.mxu2 %v2594_v36  ;;  %v2835_v52 = vld [vmem:[%s3797_s5 + $0x70] sm:$0xf0]  ;;  %v2566_v53 = vor.u32 %v2833_v48, %v2563_v50  ;;  %v2549_v55 = vld [vmem:[%s3797_s5 + $0x48] sm:$0xf]  ;;  %v2830_v57 = vld [vmem:[%s3797_s5 + $0x4c] sm:$0xf] }
  0xda   : > { %v1016_v7 = vsub.f32 1.0, %v1015_v6  ;;  %v2570_v54 = vor.u32 %v2835_v52, %v2569_v51  ;;  %v2831_v56 = vld [vmem:[%s3797_s5 + $0x50] sm:$0xf0]  ;;  %v2551_v59 = vld [vmem:[%s3797_s5 + $0x54] sm:$0xf0]  ;;  %vm1284_vm8 = vcmask 1043456  }
  0xdb   : > { %1205 = vmatpush.bf16.msra.mxu0 %v2574_v40  ;;  %v2550_v58 = vor.u32 %v2831_v56, %v2549_v55  ;;  %v2557_v60 = vld [vmem:[%s3797_s5 + $0x50] sm:$0xf]  ;;  %v2832_v61 = vld [vmem:[%s3797_s5 + $0x58] sm:$0xf0]  ;;  %v2554_v62 = vor.u32 %v2830_v57, %v2551_v59  ;;  %v2827_v4 = vld [vmem:[%s3797_s5 + $0x34] sm:$0xf] }
  0xdc   : > { %v1017_v8 = vmul.f32 %v3023_v5, %v1016_v7  ;;  %1219 = vmatpush.bf16.msra.mxu1 %v2578_v44  ;;  %v2558_v63 = vor.u32 %v2832_v61, %v2557_v60  ;;  %v2537_v0 = vld [vmem:[%s3797_s5 + $0x30] sm:$0xf]  ;;  %v2828_v1 = vld [vmem:[%s3797_s5 + $0x38] sm:$0xf0]  ;;  %v2539_v6 = vld [vmem:[%s3797_s5 + $0x3c] sm:$0xf0] }
  0xdd   : > { %1233 = vmatpush.bf16.msra.mxu2 %v2582_v45  ;;  %v2545_v7 = vld [vmem:[%s3797_s5 + $0x38] sm:$0xf]  ;;  %v2533_v19 = vld [vmem:[%s3797_s5 + $0x20] sm:$0xf]  ;;  %v2826_v20 = vld [vmem:[%s3797_s5 + $0x28] sm:$0xf0] }
  0xde   : > { %1012 = vadd.xlane.f32.xlu0 %v3825_v3  ;;  %v1018_v9 = vadd.f32 %v3023_v5, %v1017_v8  ;;  %v2829_v8 = vld [vmem:[%s3797_s5 + $0x40] sm:$0xf0]  ;;  %v2534_v22 = vor.u32 %v2826_v20, %v2533_v19  ;;  %v2513_v23 = vld [vmem:[%s3797_s5] sm:$0xf]  ;;  %v2822_v24 = vld [vmem:[%s3797_s5 + $0x8] sm:$0xf0] }
  0xdf   : > { %1206 = vmatpush.bf16.msra.mxu0 %v2562_v49  ;;  %v2821_v25 = vld [vmem:[%s3797_s5 + $0x4] sm:$0xf]  ;;  %v2514_v27 = vor.u32 %v2822_v24, %v2513_v23  ;;  %v2515_v28 = vld [vmem:[%s3797_s5 + $0xc] sm:$0xf0]  ;;  %v2521_v29 = vld [vmem:[%s3797_s5 + $0x8] sm:$0xf] }
  0xe0   : > { %v3828_v10 = vsel %vm1019_vm0, %v3023_v5, %v1018_v9  ;;  %1220 = vmatpush.bf16.msra.mxu1 %v2566_v53  ;;  %v2538_v5 = vor.u32 %v2828_v1, %v2537_v0  ;;  %v2542_v9 = vor.u32 %v2827_v4, %v2539_v6  ;;  %v2823_v30 = vld [vmem:[%s3797_s5 + $0x10] sm:$0xf0]  ;;  %v2518_v32 = vor.u32 %v2821_v25, %v2515_v28  ;;  %v3016_v51 = vld [vmem:[%s4200_s8] ss:$0 sm:$0xff]  ;;  %s3440_s26 = smov 32   ;;  %s4202_s24 = scalar_lea.vmem [#allocation7], %s3750_s4 }
  0xe1   : > { %1234 = vmatpush.bf16.msra.mxu2 %v2570_v54  ;;  %v2522_v33 = vor.u32 %v2823_v30, %v2521_v29  ;;  %v3017_v56 = vld [vmem:[%s4201_s18] ss:$0 sm:$0xff]  ;;  %vm1267_vm9 = vcmask 64512   ;;  %vm1485_vm10 = vcmask 523264   ;;  %vm1487_vm11 = vcmask 785408   ;;  %s4204_s19 = scalar_lea.vmem [#allocation10], %s3750_s4 }
  0xe2   : > { %p2783_p5 = scmp.ne.s32.totalorder %s3551_s28, 1 }
  0xe3   : > { %1207 = vmatpush.bf16.msra.mxu0 %v2550_v58  ;;  %s4206_s21 = sld [smem:[#allocation40_spill]] (!%p2783_p5) }
  0xe4   : > { %1221 = vmatpush.bf16.msra.mxu1 %v2554_v62 }
  0xe5   : > { %1235 = vmatpush.bf16.msra.mxu2 %v2558_v63 }
  0xe7   : > { %1208 = vmatpush.bf16.msra.mxu0 %v2538_v5 }
  0xe8   : > { %1222 = vmatpush.bf16.msra.mxu1 %v2542_v9 }
 0x149   : > { %v1011_v11 = vpop.xlane.xlu0 %1010 }
 0x14a   : > { %v1021_v12 = vmul.f32 %v3828_v10, %v1011_v11  ;;  %v2546_v11 = vor.u32 %v2829_v8, %v2545_v7 }
 0x14c   : > { %v3832_v13 = vsub.f32 %v3822_v2, %v1021_v12  ;;  %1236 = vmatpush.bf16.msra.mxu2 %v2546_v11  ;;  %v2525_v12 = vld [vmem:[%s3797_s5 + $0x18] sm:$0xf] }
 0x14e   : > { %v1025_v14 = vmul.f32 %v3832_v13, %v3832_v13 }
 0x150   : > { %1027 = vadd.xlane.f32.xlu1 %v1025_v14  ;;  %v2825_v14 = vld [vmem:[%s3797_s5 + $0x20] sm:$0xf0]  ;;  %1237 = vmatpush.bf16.msra.mxu2 %v2534_v22 }
 0x151   : > { %v1013_v15 = vpop.xlane.xlu0 %1012 }
 0x152   : > { %v1022_v16 = vmul.f32 %v3828_v10, %v1013_v15  ;;  %v2824_v15 = vld [vmem:[%s3797_s5 + $0x1c] sm:$0xf] }
 0x154   : > { %v3838_v17 = vsub.f32 %v3825_v3, %v1022_v16  ;;  %v2526_v16 = vor.u32 %v2825_v14, %v2525_v12  ;;  %1238 = vmatpush.bf16.msra.mxu2 %v2522_v33 }
 0x156   : > { %v1026_v18 = vmul.f32 %v3838_v17, %v3838_v17  ;;  %1209 = vmatpush.bf16.msra.mxu0 %v2526_v16 }
 0x158   : > { %1029 = vadd.xlane.f32.xlu1 %v1026_v18  ;;  %v2527_v18 = vld [vmem:[%s3797_s5 + $0x24] sm:$0xf0] }
 0x159   : > { %v2530_v21 = vor.u32 %v2824_v15, %v2527_v18 }
 0x15a   : > { %1210 = vmatpush.bf16.msra.mxu0 %v2514_v27 }
 0x15b   : > { %1223 = vmatpush.bf16.msra.mxu1 %v2530_v21 }
 0x15f   : > { %1224 = vmatpush.bf16.msra.mxu1 %v2518_v32 }
 0x1c3   : > { %v1028_v26 = vpop.xlane.xlu1 %1027 }
 0x1c4   : > { %v1031_v31 = vmul.f32 %v1028_v26, %v3828_v10 }
 0x1c6   : > { %v1033_v34 = vadd.f32 1e-05, %v1031_v31 }
 0x1c8   : > { %3024 = vrsqrt.f32 %v1033_v34  ;;  %vm1041_vm2 = vweird.f32 %v1033_v34 }
 0x1cb   : > { %v1030_v35 = vpop.xlane.xlu1 %1029 }
 0x1cc   : > { %v1032_v36 = vmul.f32 %v1030_v35, %v3828_v10 }
 0x1ce   : > { %v3025_v37 = vpop.eup %3024  ;;  %v1034_v38 = vadd.f32 1e-05, %v1032_v36 }
 0x1cf   : > { %v1036_v39 = vmul.f32 %v3025_v37, %v1033_v34  ;;  %vm1042_vm1 = vweird.f32 %v3025_v37 }
 0x1d0   : > { %3026 = vrsqrt.f32 %v1034_v38  ;;  %vm1043_vm3 = vmor %vm1041_vm2, %vm1042_vm1  ;;  %vm1051_vm5 = vweird.f32 %v1034_v38 }
 0x1d1   : > { %v1037_v40 = vmul.f32 %v3025_v37, %v1036_v39 }
 0x1d3   : > { %v1038_v41 = vmul.f32 0.5, %v1037_v40 }
 0x1d5   : > { %v1039_v42 = vsub.f32 1.5, %v1038_v41 }
 0x1d6   : > { %v3027_v43 = vpop.eup %3026 }
 0x1d7   : > { %v1040_v44 = vmul.f32 %v3025_v37, %v1039_v42  ;;  %v1046_v45 = vmul.f32 %v3027_v43, %v1034_v38  ;;  %vm1052_vm4 = vweird.f32 %v3027_v43 }
 0x1d8   : > { %vm1053_vm6 = vmor %vm1051_vm5, %vm1052_vm4 }
 0x1d9   : > { %v1047_v46 = vmul.f32 %v3027_v43, %v1046_v45  ;;  %v1044_v47 = vsel %vm1043_vm3, %v3025_v37, %v1040_v44 }
 0x1da   : > { %v1055_v50 = vmul.f32 %v1044_v47, %v3832_v13  ;;  %v3899_v13 = vld [vmem:[%s3802_s15] sm:$0x7]  ;;  %s3441_s15 = smov 64  }
 0x1db   : > { %v1048_v48 = vmul.f32 0.5, %v1047_v46  ;;  %v1069_v61 = vperm.slane %v3899_v13, 0  ;;  %v1070_v62 = vperm.slane %v3899_v13, 1  ;;  %v1071_v6 = vperm.slane %v3899_v13, 2 }
 0x1dc   : > { %v1060_v55 = vmul.f32 %v3016_v51, %v1055_v50 }
 0x1dd   : > { %v1049_v49 = vsub.f32 1.5, %v1048_v48 }
 0x1de   : > { %v1065_v58 = vadd.f32 %v3017_v56, %v1060_v55 }
 0x1df   : > { %v1050_v52 = vmul.f32 %v3027_v43, %v1049_v49 }
 0x1e1   : > { %v1054_v53 = vsel %vm1053_vm6, %v3027_v43, %v1050_v52 }
 0x1e2   : > { %v1056_v54 = vmul.f32 %v1054_v53, %v3838_v17 }
 0x1e4   : > { %v1061_v57 = vmul.f32 %v3016_v51, %v1056_v54 }
 0x1e6   : > { %v1066_v59 = vadd.f32 %v3017_v56, %v1061_v57 }
 0x1e8   : > { %v1067_v60 = vpack.c.bf16 %v1066_v59, %v1065_v58 }
 0x1ea   : > { %1211 = vmatmul.bf16.vlgmr.msra.gmra.mxu0 %v1067_v60  ;;  %1225 = vmatmul.bf16.vlgmr.msra.gmra.mxu1 %v1067_v60 }
 0x1eb   : > { %1239 = vmatmul.bf16.vlgmr.msra.gmra.mxu2 %v1067_v60 }
 0x267   : > { %v1212_v63 = vpop.f32.mrf.mxu0  ;;  %v1226_v0 = vpop.f32.mrf.mxu1 }
 0x268   : > { %v1213_v1 = vadd.f32 %v1212_v63, %v1069_v61  ;;  %v1227_v17 = vadd.f32 %v1226_v0, %v1070_v62 }
 0x26a   : > { %v1245_v4 = vpack.c.bf16 %v1213_v1, %v1213_v1  ;;  %v1246_v5 = vpack.c.bf16 %v1227_v17, %v1227_v17 }
 0x26c   : > { %1305 = vrot.lane.b32.xlu0 %v1246_v5, %s3439_s20  ;;  %1302 = vrot.lane.b32.xlu1 %v1245_v4, %s3439_s20  ;;  %v1252_v7 = vsel %vm1247_vm7, %v1246_v5, 0 }
 0x26d   : > { %1261 = vmatpush.bf16.xpose.msra.mxu3 %v1252_v7 }
 0x26e   : > { %v1240_v8 = vpop.f32.mrf.mxu2 }
 0x26f   : > { %v1241_v9 = vadd.f32 %v1240_v8, %v1071_v6  ;;  %v1228_v11 = vpop.f32.mrf.mxu1  ;;  %v1214_v18 = vpop.f32.mrf.mxu0 }
 0x270   : > { %v1229_v12 = vadd.f32 %v1228_v11, %v1070_v62  ;;  %v1215_v20 = vadd.f32 %v1214_v18, %v1069_v61 }
 0x271   : > { %v3909_v14 = vpack.c.bf16 %v1241_v9, %v1241_v9 }
 0x272   : > { %v1490_v15 = vpack.c.bf16 %v1229_v12, %v1229_v12  ;;  %v1489_v21 = vpack.c.bf16 %v1215_v20, %v1215_v20 }
 0x273   : > { %v1286_v16 = vsel %vm1284_vm8, %v3909_v14, 0 }
 0x274   : > { %1418 = vrot.lane.b32.xlu0 %v1246_v5, %s3440_s26  ;;  %v1495_v19 = vsel %vm1247_vm7, %v1490_v15, 0  ;;  %1416 = vrot.lane.b32.xlu1 %v1245_v4, %s3440_s26 }
 0x275   : > { %1295 = vmatpush.bf16.msrb.mxu3 %v1286_v16  ;;  %1504 = vmatpush.bf16.xpose.msrb.mxu1 %v1495_v19 }
 0x276   : > { %2607 = vmatmul.msk.bf16.vlgmr.msra.gmra.mxu3 %vm1247_vm7, %v1245_v4  ;;  %v3945_v55 = vpop.f32.mrf.mxu2 }
 0x27c   : > { %1546 = vrot.lane.b32.xlu0 %v1490_v15, %s3439_s20  ;;  %2615 = vmatmul.msk.bf16.vlgmr.msrb.gmra.mxu1 %vm1247_vm7, %v1489_v21 }
 0x27d   : > { %1603 = vrot.lane.b32.xlu1 %v1490_v15, %s3441_s15 }
 0x284   : > { %1659 = vrot.lane.b32.xlu0 %v1490_v15, %s3440_s26 }
 0x285   : > { %1657 = vrot.lane.b32.xlu1 %v1489_v21, %s3440_s26 }
 0x2de   : > { %v1306_v22 = vpop.permute.xlu0 %1305  ;;  %v1303_v23 = vpop.permute.xlu1 %1302 }
 0x2df   : > { %v1311_v24 = vsel %vm1247_vm7, %v1306_v22, 0 }
 0x2e0   : > { %1320 = vmatpush.bf16.xpose.msra.mxu3 %v1311_v24 }
 0x2e6   : > { %v1417_v25 = vpop.permute.xlu1 %1416  ;;  %v1419_v45 = vpop.permute.xlu0 %1418 }
 0x2e7   : > { %v1424_v47 = vsel %vm1247_vm7, %v1419_v45, 0  ;;  %v1243_v45 = vadd.f32 %v3945_v55, %v1071_v6 }
 0x2ee   : > { %v1547_v50 = vpop.permute.xlu0 %1546 }
 0x2ef   : > { %v1604_v26 = vpop.permute.xlu1 %1603  ;;  %v1552_v51 = vsel %vm1247_vm7, %v1547_v50, 0 }
 0x2f0   : > { %v1609_v27 = vsel %vm1247_vm7, %v1604_v26, 0 }
 0x2f1   : > { %1618 = vmatpush.bf16.xpose.msra.mxu1 %v1609_v27 }
 0x2f6   : > { %v1660_v52 = vpop.permute.xlu0 %1659 }
 0x2f7   : > { %v1665_v53 = vsel %vm1247_vm7, %v1660_v52, 0  ;;  %v1658_v54 = vpop.permute.xlu1 %1657 }
 0x2f9   : > { %v1263_v28 = vpop.f32.mrf.mxu3  ;;  %v3925_v30 = vpop.f32.mrf.mxu1 }
 0x2fa   : > { %v1268_v29 = vsel %vm1267_vm9, %v1263_v28, -inf  ;;  %v1510_v31 = vsel %vm1267_vm9, %v3925_v30, -inf }
 0x2fb   : > { %1269 = vmax.xlane.f32.xlu2 %v1268_v29  ;;  %1511 = vmax.xlane.f32.xlu0 %v1510_v31 }
 0x301   : > { %v1265_v32 = vpop.f32.mrf.mxu3  ;;  %v1508_v33 = vpop.f32.mrf.mxu1 }
 0x313   : > { %1362 = vrot.lane.b32.xlu2 %v1246_v5, %s3441_s15 }
 0x36e   : > { %v1270_v34 = vpop.xlane.xlu2 %1269  ;;  %v1512_v16 = vpop.xlane.xlu0 %1511 }
 0x36f   : > { %v1271_v35 = vsub.f32 %v1263_v28, %v1270_v34  ;;  %v1513_v18 = vsub.f32 %v3925_v30, %v1512_v16 }
 0x371   : > { %v1272_v36 = vmul.f32 1.442695, %v1271_v35  ;;  %v1514_v19 = vmul.f32 1.442695, %v1513_v18 }
 0x373   : > { %3028 = vpow2.f32 %v1272_v36 }
 0x376   : > { %v1363_v37 = vpop.permute.xlu2 %1362 }
 0x377   : > { %v1368_v38 = vsel %vm1247_vm7, %v1363_v37, 0 }
 0x378   : > { %1377 = vmatpush.bf16.xpose.msrb.mxu2 %v1368_v38 }
 0x379   : > { %v3029_v39 = vpop.eup %3028 }
 0x37a   : > { %v1274_v40 = vsel %vm1267_vm9, %v3029_v39, 0.0 }
 0x37b   : > { %1275 = vadd.xlane.f32.xlu2 %v1274_v40 }
 0x393   : > { %1360 = vrot.lane.b32.xlu2 %v1245_v4, %s3441_s15 }
 0x39b   : > { %1543 = vrot.lane.b32.xlu2 %v1489_v21, %s3439_s20 }
 0x3a3   : > { %1601 = vrot.lane.b32.xlu2 %v1489_v21, %s3441_s15 }
 0x3ee   : > { %v1276_v41 = vpop.xlane.xlu2 %1275 }
 0x3ef   : > { %3030 = vrcp.f32 %v1276_v41 }
 0x3f0   : > { %3032 = vpow2.f32 %v1514_v19 }
 0x3f5   : > { %v3031_v42 = vpop.eup %3030 }
 0x3f6   : > { %v1278_v43 = vmul.f32 %v3031_v42, %v3029_v39  ;;  %v1361_v44 = vpop.permute.xlu2 %1360  ;;  %v3962_v20 = vpop.eup %3032 }
 0x3f7   : > { %2611 = vmatmul.msk.bf16.vlgmr.msrb.gmra.mxu2 %vm1247_vm7, %v1361_v44  ;;  %v1516_v21 = vsel %vm1267_vm9, %v3962_v20, 0.0 }
 0x3f8   : > { %v1279_v46 = vpack.c.bf16 %v1278_v43, %v1278_v43 }
 0x3fa   : > { %2608 = vmatmul.msk.bf16.vlgmr.msrb.gmra.mxu3 %vm1267_vm9, %v1279_v46 }
 0x3fb   : > { %1433 = vmatpush.bf16.xpose.msrb.mxu3 %v1424_v47 }
 0x3fe   : > { %v1544_v48 = vpop.permute.xlu2 %1543 }
 0x406   : > { %v1602_v49 = vpop.permute.xlu2 %1601 }
 0x407   : > { %2619 = vmatmul.msk.bf16.vlgmr.msra.gmra.mxu1 %vm1247_vm7, %v1602_v49 }
 0x40a   : > { %2609 = vmatmul.msk.bf16.vlgmr.msra.gmra.mxu3 %vm1247_vm7, %v1303_v23 }
 0x40b   : > { %1561 = vmatpush.bf16.xpose.msra.mxu3 %v1552_v51 }
 0x41a   : > { %2613 = vmatmul.msk.bf16.vlgmr.msrb.gmra.mxu3 %vm1247_vm7, %v1417_v25 }
 0x41b   : > { %1674 = vmatpush.bf16.xpose.msrb.mxu3 %v1665_v53 }
 0x42a   : > { %2617 = vmatmul.msk.bf16.vlgmr.msra.gmra.mxu3 %vm1247_vm7, %v1544_v48 }
 0x43a   : > { %2621 = vmatmul.msk.bf16.vlgmr.msrb.gmra.mxu3 %vm1247_vm7, %v1658_v54 }
 0x47a   : > { %v1379_v56 = vpop.f32.mrf.mxu2 }
 0x47b   : > { %v1383_v57 = vsel %vm1267_vm9, %v1379_v56, -inf }
 0x47c   : > { %1384 = vmax.xlane.f32.xlu2 %v1383_v57 }
 0x47d   : > { %v3948_v58 = vpop.f32.mrf.mxu3 }
 0x482   : > { %v1381_v59 = vpop.f32.mrf.mxu2 }
 0x484   : > { %v3950_v60 = vpop.f32.mrf.mxu1 }
 0x485   : > { %v1299_v61 = vpop.f32.mrf.mxu3  ;;  %v1624_v62 = vsel %vm1267_vm9, %v3950_v60, -inf }
 0x486   : > { %1625 = vmax.xlane.f32.xlu1 %v1624_v62 }
 0x48c   : > { %v1622_v63 = vpop.f32.mrf.mxu1 }
 0x48d   : > { %v1322_v0 = vpop.f32.mrf.mxu3 }
 0x48e   : > { %v1326_v1 = vsel %vm1267_vm9, %v1322_v0, -inf }
 0x48f   : > { %1327 = vmax.xlane.f32.xlu0 %v1326_v1 }
 0x495   : > { %v1324_v17 = vpop.f32.mrf.mxu3 }
 0x49d   : > { %v1435_v4 = vpop.f32.mrf.mxu3 }
 0x49e   : > { %v1439_v5 = vsel %vm1267_vm9, %v1435_v4, -inf }
 0x49f   : > { %1440 = vmax.xlane.f32.xlu1 %v1439_v5 }
 0x4a5   : > { %v1437_v7 = vpop.f32.mrf.mxu3 }
 0x4ad   : > { %v1563_v8 = vpop.f32.mrf.mxu3 }
 0x4ae   : > { %v1567_v9 = vsel %vm1267_vm9, %v1563_v8, -inf }
 0x4af   : > { %1568 = vmax.xlane.f32.xlu2 %v1567_v9 }
 0x4b5   : > { %v1565_v11 = vpop.f32.mrf.mxu3 }
 0x4b8   : > { %1339 = vrot.lane.b32.xlu1 %v3909_v14, %s3439_s20 }
 0x4bd   : > { %v1676_v12 = vpop.f32.mrf.mxu3 }
 0x4be   : > { %v1680_v29 = vsel %vm1267_vm9, %v1676_v12, -inf }
 0x4c5   : > { %v1678_v15 = vpop.f32.mrf.mxu3 }
 0x4c7   : > { %1451 = vrot.lane.b32.xlu2 %v3909_v14, %s3440_s26 }
 0x4e2   : > { %1517 = vadd.xlane.f32.xlu1 %v1516_v21 }
 0x4ef   : > { %v1385_v22 = vpop.xlane.xlu2 %1384 }
 0x4f0   : > { %v1386_v23 = vsub.f32 %v1379_v56, %v1385_v22 }
 0x4f2   : > { %v1387_v24 = vmul.f32 1.442695, %v1386_v23 }
 0x4f4   : > { %3034 = vpow2.f32 %v1387_v24 }
 0x4f9   : > { %v1626_v31 = vpop.xlane.xlu1 %1625 }
 0x4fa   : > { %v3035_v25 = vpop.eup %3034  ;;  %v1627_v49 = vsub.f32 %v3950_v60, %v1626_v31 }
 0x4fb   : > { %v1389_v26 = vsel %vm1267_vm9, %v3035_v25, 0.0 }
 0x4fc   : > { %1390 = vadd.xlane.f32.xlu0 %v1389_v26  ;;  %v1628_v50 = vmul.f32 1.442695, %v1627_v49 }
 0x502   : > { %v1328_v27 = vpop.xlane.xlu0 %1327 }
 0x503   : > { %v1329_v28 = vsub.f32 %v1322_v0, %v1328_v27 }
 0x504   : > { %1681 = vmax.xlane.f32.xlu0 %v1680_v29 }
 0x505   : > { %v1330_v30 = vmul.f32 1.442695, %v1329_v28 }
 0x507   : > { %3036 = vpow2.f32 %v1330_v30 }
 0x50d   : > { %v3037_v32 = vpop.eup %3036 }
 0x50e   : > { %v1332_v33 = vsel %vm1267_vm9, %v3037_v32, 0.0 }
 0x50f   : > { %1333 = vadd.xlane.f32.xlu2 %v1332_v33 }
 0x512   : > { %v1441_v34 = vpop.xlane.xlu1 %1440 }
 0x513   : > { %v1442_v35 = vsub.f32 %v1435_v4, %v1441_v34 }
 0x515   : > { %v1443_v36 = vmul.f32 1.442695, %v1442_v35 }
 0x517   : > { %3038 = vpow2.f32 %v1443_v36 }
 0x518   : > { %1395 = vrot.lane.b32.xlu0 %v3909_v14, %s3441_s15  ;;  %v1522_v14 = vpack.c.bf16 %v1243_v45, %v1243_v45 }
 0x51a   : > { %v1527_v1 = vsel %vm1284_vm8, %v1522_v14, 0 }
 0x51d   : > { %v3039_v37 = vpop.eup %3038 }
 0x51e   : > { %v1445_v38 = vsel %vm1267_vm9, %v3039_v37, 0.0 }
 0x51f   : > { %1446 = vadd.xlane.f32.xlu2 %v1445_v38 }
 0x522   : > { %v1569_v39 = vpop.xlane.xlu2 %1568 }
 0x523   : > { %v1570_v44 = vsub.f32 %v1563_v8, %v1569_v39 }
 0x525   : > { %v1571_v46 = vmul.f32 1.442695, %v1570_v44 }
 0x527   : > { %3040 = vpow2.f32 %v1571_v46 }
 0x528   : > { %3042 = vpow2.f32 %v1628_v50 }
 0x52a   : > { %v1340_v40 = vpop.permute.xlu1 %1339  ;;  %v1452_v41 = vpop.permute.xlu2 %1451 }
 0x52b   : > { %v1457_v42 = vsel %vm1284_vm8, %v1452_v41, 0  ;;  %v1345_v43 = vsel %vm1284_vm8, %v1340_v40, 0 }
 0x52c   : > { %1354 = vmatpush.bf16.msrb.mxu0 %v1345_v43 }
 0x52d   : > { %v3041_v47 = vpop.eup %3040 }
 0x52e   : > { %v1573_v48 = vsel %vm1267_vm9, %v3041_v47, 0.0  ;;  %v3043_v51 = vpop.eup %3042 }
 0x52f   : > { %v1630_v13 = vsel %vm1267_vm9, %v3043_v51, 0.0 }
 0x530   : > { %1466 = vmatpush.bf16.msra.mxu0 %v1457_v42 }
 0x537   : > { %1580 = vrot.lane.b32.xlu2 %v1522_v14, %s3439_s20 }
 0x542   : > { %1574 = vadd.xlane.f32.xlu0 %v1573_v48 }
 0x555   : > { %v1518_v4 = vpop.xlane.xlu1 %1517 }
 0x556   : > { %1636 = vrot.lane.b32.xlu0 %v1522_v14, %s3441_s15 }
 0x560   : > { %1631 = vadd.xlane.f32.xlu2 %v1630_v13  ;;  %v2852_v13 = vld [vmem:[%s3792_s22 + $0x38] sm:$0xff] }
 0x561   : > { %1777 = vmatpush.bf16.msrb.mxu1 %v2852_v13  ;;  %v2681_v13 = vld [vmem:[%s3807_s6 + $0x30] sm:$0xf] }
 0x56f   : > { %v1391_v6 = vpop.xlane.xlu0 %1390 }
 0x577   : > { %v1682_v52 = vpop.xlane.xlu0 %1681 }
 0x578   : > { %v1683_v53 = vsub.f32 %v1676_v12, %v1682_v52  ;;  %v2850_v52 = vld [vmem:[%s3792_s22 + $0x28] sm:$0xff] }
 0x57a   : > { %v1684_v54 = vmul.f32 1.442695, %v1683_v53  ;;  %v2849_v53 = vld [vmem:[%s3792_s22 + $0x20] sm:$0xff] }
 0x57c   : > { %3044 = vpow2.f32 %v1684_v54  ;;  %v2848_v54 = vld [vmem:[%s3792_s22 + $0x18] sm:$0xff] }
 0x57d   : > { %3046 = vrcp.f32 %v1391_v6  ;;  %v2851_v6 = vld [vmem:[%s3792_s22 + $0x30] sm:$0xff] }
 0x57e   : > { %1778 = vmatpush.bf16.msrb.mxu1 %v2851_v6  ;;  %v2860_v6 = vld [vmem:[%s3807_s6 + $0x34] sm:$0xf0] }
 0x582   : > { %v3045_v55 = vpop.eup %3044  ;;  %v1334_v56 = vpop.xlane.xlu2 %1333  ;;  %1779 = vmatpush.bf16.msrb.mxu1 %v2850_v52  ;;  %v2859_v52 = vld [vmem:[%s3807_s6 + $0x34] sm:$0xf] }
 0x583   : > { %3048 = vrcp.f32 %v1334_v56  ;;  %v1686_v57 = vsel %vm1267_vm9, %v3045_v55, 0.0  ;;  %v3047_v59 = vpop.eup %3046  ;;  %v2846_v56 = vld [vmem:[%s3792_s22 + $0x8] sm:$0xff] }
 0x584   : > { %1687 = vadd.xlane.f32.xlu1 %v1686_v57  ;;  %v1393_v61 = vmul.f32 %v3047_v59, %v3035_v25  ;;  %3050 = vrcp.f32 %v1518_v4  ;;  %v2845_v57 = vld [vmem:[%s3792_s22] sm:$0xff] }
 0x586   : > { %v1394_v5 = vpack.c.bf16 %v1393_v61, %v1393_v61  ;;  %1780 = vmatpush.bf16.msrb.mxu1 %v2849_v53  ;;  %v2682_v53 = vor.u32 %v2860_v6, %v2681_v13  ;;  %v2872_v13 = vld [vmem:[%s3772_s0 + $0x18] sm:$0xff] }
 0x587   : > { %v2880_v6 = vld [vmem:[%s3772_s0 + $0x58] sm:$0xff] }
 0x589   : > { %v3049_v60 = vpop.eup %3048 }
 0x58a   : > { %v1336_v62 = vmul.f32 %v3049_v60, %v3037_v32  ;;  %v1396_v63 = vpop.permute.xlu0 %1395  ;;  %v3051_v8 = vpop.eup %3050  ;;  %1781 = vmatpush.bf16.msrb.mxu1 %v2848_v54  ;;  %v2683_v54 = vld [vmem:[%s3807_s6 + $0x38] sm:$0xf0] }
 0x58b   : > { %v1401_v0 = vsel %vm1284_vm8, %v1396_v63, 0  ;;  %v1520_v11 = vmul.f32 %v3051_v8, %v3962_v20 }
 0x58c   : > { %1410 = vmatpush.bf16.msra.mxu2 %v1401_v0  ;;  %v1337_v17 = vpack.c.bf16 %v1336_v62, %v1336_v62 }
 0x58d   : > { %v1521_v19 = vpack.c.bf16 %v1520_v11, %v1520_v11 }
 0x58e   : > { %2610 = vmatmul.msk.bf16.vlgmr.msrb.gmra.mxu0 %vm1267_vm9, %v1337_v17 }
 0x58f   : > { %2612 = vmatmul.msk.bf16.vlgmr.msra.gmra.mxu2 %vm1267_vm9, %v1394_v5 }
 0x590   : > { %1536 = vmatpush.bf16.msrb.mxu2 %v1527_v1 }
 0x592   : > { %v1447_v7 = vpop.xlane.xlu2 %1446 }
 0x593   : > { %3052 = vrcp.f32 %v1447_v7 }
 0x599   : > { %v3053_v9 = vpop.eup %3052 }
 0x59a   : > { %v1449_v12 = vmul.f32 %v3053_v9, %v3039_v37  ;;  %v1581_v15 = vpop.permute.xlu2 %1580 }
 0x59b   : > { %v1586_v16 = vsel %vm1284_vm8, %v1581_v15, 0 }
 0x59c   : > { %v1450_v18 = vpack.c.bf16 %v1449_v12, %v1449_v12  ;;  %1595 = vmatpush.bf16.msrb.mxu0 %v1586_v16  ;;  %v3018_v16 = vld [vmem:[%s4202_s24] ss:$0 sm:$0xff] }
 0x59d   : > { %1692 = vrot.lane.b32.xlu1 %v1522_v14, %s3440_s26 }
 0x59e   : > { %2614 = vmatmul.msk.bf16.vlgmr.msra.gmra.mxu0 %vm1267_vm9, %v1450_v18 }
 0x59f   : > { %2616 = vmatmul.msk.bf16.vlgmr.msrb.gmra.mxu2 %vm1267_vm9, %v1521_v19 }
 0x5b5   : > { %v1575_v21 = vpop.xlane.xlu0 %1574 }
 0x5b6   : > { %3054 = vrcp.f32 %v1575_v21 }
 0x5bc   : > { %v3055_v22 = vpop.eup %3054 }
 0x5bd   : > { %v1577_v23 = vmul.f32 %v3055_v22, %v3041_v47 }
 0x5bf   : > { %v1578_v24 = vpack.c.bf16 %v1577_v23, %v1577_v23 }
 0x5c1   : > { %2618 = vmatmul.msk.bf16.vlgmr.msrb.gmra.mxu0 %vm1267_vm9, %v1578_v24 }
 0x5c8   : > { %v1637_v20 = vpop.permute.xlu0 %1636 }
 0x5c9   : > { %v1642_v25 = vsel %vm1284_vm8, %v1637_v20, 0 }
 0x5ca   : > { %1651 = vmatpush.bf16.msra.mxu2 %v1642_v25 }
 0x5d3   : > { %v1632_v26 = vpop.xlane.xlu2 %1631 }
 0x5d4   : > { %3056 = vrcp.f32 %v1632_v26 }
 0x5da   : > { %v3057_v27 = vpop.eup %3056 }
 0x5db   : > { %v1634_v28 = vmul.f32 %v3057_v27, %v3043_v51 }
 0x5dd   : > { %v1635_v29 = vpack.c.bf16 %v1634_v28, %v1634_v28 }
 0x5df   : > { %2620 = vmatmul.msk.bf16.vlgmr.msra.gmra.mxu2 %vm1267_vm9, %v1635_v29  ;;  %v2713_v29 = vld [vmem:[%s3807_s6 + $0x70] sm:$0xf] }
 0x5f7   : > { %v1688_v30 = vpop.xlane.xlu1 %1687 }
 0x5f8   : > { %3058 = vrcp.f32 %v1688_v30  ;;  %v2868_v30 = vld [vmem:[%s3807_s6 + $0x74] sm:$0xf0] }
 0x5fe   : > { %v3059_v31 = vpop.eup %3058 }
 0x5ff   : > { %v1690_v33 = vmul.f32 %v3059_v31, %v3045_v55  ;;  %v2847_v55 = vld [vmem:[%s3792_s22 + $0x10] sm:$0xff] }
 0x600   : > { %1782 = vmatpush.bf16.msrb.mxu1 %v2847_v55  ;;  %v2867_v31 = vld [vmem:[%s3807_s6 + $0x74] sm:$0xf]  ;;  %v2686_v55 = vor.u32 %v2859_v52, %v2683_v54  ;;  %v2871_v52 = vld [vmem:[%s3772_s0 + $0x10] sm:$0xff]  ;;  %v974_v54 = vld [vmem:[%s3812_s9] sm:$0x3] }
 0x601   : > { %v1691_v36 = vpack.c.bf16 %v1690_v33, %v1690_v33  ;;  %v2715_v33 = vld [vmem:[%s3807_s6 + $0x78] sm:$0xf0] }
 0x604   : > { %1783 = vmatpush.bf16.msrb.mxu1 %v2846_v56  ;;  %v2673_v56 = vld [vmem:[%s3807_s6 + $0x20] sm:$0xf] }
 0x608   : > { %1784 = vmatpush.bf16.msrb.mxu1 %v2845_v57  ;;  %v2858_v57 = vld [vmem:[%s3807_s6 + $0x24] sm:$0xf0] }
 0x60b   : > { %v1356_v32 = vpop.f32.mrf.mxu0 }
 0x60f   : > { %v1693_v34 = vpop.permute.xlu1 %1692 }
 0x610   : > { %v1698_v35 = vsel %vm1284_vm8, %v1693_v34, 0  ;;  %v2718_v34 = vor.u32 %v2867_v31, %v2715_v33 }
 0x611   : > { %1707 = vmatpush.bf16.msra.mxu0 %v1698_v35  ;;  %v2705_v35 = vld [vmem:[%s3807_s6 + $0x60] sm:$0xf] }
 0x612   : > { %v1412_v37 = vpop.f32.mrf.mxu2  ;;  %1948 = vmatpush.bf16.msra.mxu3 %v2718_v34 }
 0x613   : > { %v1358_v38 = vpop.f32.mrf.mxu0 }
 0x614   : > { %2622 = vmatmul.msk.bf16.vlgmr.msra.gmra.mxu0 %vm1267_vm9, %v1691_v36  ;;  %v2866_v36 = vld [vmem:[%s3807_s6 + $0x64] sm:$0xf0] }
 0x615   : > { %v2706_v38 = vor.u32 %v2866_v36, %v2705_v35 }
 0x61a   : > { %v1414_v39 = vpop.f32.mrf.mxu2 }
 0x61b   : > { %v1468_v40 = vpop.f32.mrf.mxu0  ;;  %v2707_v39 = vld [vmem:[%s3807_s6 + $0x68] sm:$0xf0] }
 0x622   : > { %v1538_v41 = vpop.f32.mrf.mxu2 }
 0x623   : > { %v1470_v42 = vpop.f32.mrf.mxu0 }
 0x624   : > { %v2864_v42 = vld [vmem:[%s3807_s6 + $0x54] sm:$0xf0] }
 0x62a   : > { %v1540_v43 = vpop.f32.mrf.mxu2 }
 0x62b   : > { %v2863_v43 = vld [vmem:[%s3807_s6 + $0x54] sm:$0xf] }
 0x63e   : > { %v1597_v44 = vpop.f32.mrf.mxu0 }
 0x63f   : > { %v3001_v45 = vpack.i.bf16 %v1597_v44, %v1356_v32  ;;  %v2714_v32 = vor.u32 %v2868_v30, %v2713_v29 }
 0x641   : > { %3002 = vrot.lane.b32.xlu2 %v3001_v45, %s3440_s26  ;;  %1934 = vmatpush.bf16.msrb.mxu2 %v2714_v32  ;;  %v2699_v45 = vld [vmem:[%s3807_s6 + $0x58] sm:$0xf0] }
 0x645   : > { %1935 = vmatpush.bf16.msrb.mxu2 %v2706_v38 }
 0x646   : > { %v1599_v46 = vpop.f32.mrf.mxu0 }
 0x647   : > { %v2702_v46 = vor.u32 %v2863_v43, %v2699_v45 }
 0x662   : > { %v1653_v14 = vpop.f32.mrf.mxu2 }
 0x663   : > { %v3006_v47 = vpack.i.bf16 %v1653_v14, %v1412_v37  ;;  %v2865_v37 = vld [vmem:[%s3807_s6 + $0x64] sm:$0xf]  ;;  %v2689_v14 = vld [vmem:[%s3807_s6 + $0x40] sm:$0xf] }
 0x665   : > { %3007 = vrot.lane.b32.xlu0 %v3006_v47, %s3441_s15  ;;  %v2862_v47 = vld [vmem:[%s3807_s6 + $0x44] sm:$0xf0]  ;;  %s4207_s15 = sld [smem:[#allocation41_spill]] (!%p2783_p5) }
 0x66a   : > { %v1655_v48 = vpop.f32.mrf.mxu2 }
 0x66b   : > { %v2861_v48 = vld [vmem:[%s3807_s6 + $0x44] sm:$0xf] }
 0x691   : > { %v1709_v49 = vpop.f32.mrf.mxu0 }
 0x692   : > { %v3011_v50 = vpack.i.bf16 %v1709_v49, %v1468_v40  ;;  %v2710_v40 = vor.u32 %v2865_v37, %v2707_v39  ;;  %v2690_v49 = vor.u32 %v2862_v47, %v2689_v14  ;;  %v2884_v14 = vld [vmem:[%s3772_s0 + $0x78] sm:$0xff]  ;;  %v2883_v47 = vld [vmem:[%s3772_s0 + $0x70] sm:$0xff] }
 0x693   : > { %2110 = vmatpush.bf16.msra.mxu1 %v2884_v14 }
 0x694   : > { %3012 = vrot.lane.b32.xlu1 %v3011_v50, %s3439_s20  ;;  %1949 = vmatpush.bf16.msra.mxu3 %v2710_v40  ;;  %v2691_v50 = vld [vmem:[%s3807_s6 + $0x48] sm:$0xf0] }
 0x697   : > { %2111 = vmatpush.bf16.msra.mxu1 %v2883_v47 }
 0x698   : > { %1950 = vmatpush.bf16.msra.mxu3 %v2702_v46  ;;  %v2876_v46 = vld [vmem:[%s3772_s0 + $0x38] sm:$0xff] }
 0x699   : > { %v1711_v51 = vpop.f32.mrf.mxu0  ;;  %2096 = vmatpush.bf16.msrb.mxu0 %v2876_v46 }
 0x69a   : > { %v2694_v51 = vor.u32 %v2861_v48, %v2691_v50  ;;  %v2874_v48 = vld [vmem:[%s3772_s0 + $0x28] sm:$0xff]  ;;  %v2873_v50 = vld [vmem:[%s3772_s0 + $0x20] sm:$0xff] }
 0x69b   : > { %v3003_v59 = vpop.permute.xlu2 %3002 }
 0x69c   : > { %v3005_v61 = vunpack.i.h.bf16 %v3003_v59  ;;  %v3004_v62 = vunpack.i.l.bf16 %v3003_v59  ;;  %1951 = vmatpush.bf16.msra.mxu3 %v2694_v51  ;;  %v2857_v59 = vld [vmem:[%s3807_s6 + $0x24] sm:$0xf]  ;;  %v2881_v51 = vld [vmem:[%s3772_s0 + $0x60] sm:$0xff] }
 0x69e   : > { %v1725_v17 = vsel %vm1247_vm7, %v1538_v41, %v3005_v61  ;;  %v1484_v4 = vsel %vm1247_vm7, %v3948_v58, %v3004_v62  ;;  %v2697_v41 = vld [vmem:[%s3807_s6 + $0x50] sm:$0xf]  ;;  %v2675_v61 = vld [vmem:[%s3807_s6 + $0x28] sm:$0xf0] }
 0x69f   : > { %v2698_v44 = vor.u32 %v2864_v42, %v2697_v41  ;;  %v2678_v62 = vor.u32 %v2857_v59, %v2675_v61  ;;  %v3020_v42 = vld [vmem:[%s4204_s19] ss:$0 sm:$0xff]  ;;  %v1851_v59 = vperm.slane %v974_v54, 1 }
 0x6a0   : > { %1952 = vmatpush.bf16.msra.mxu3 %v2686_v55  ;;  %v2870_v55 = vld [vmem:[%s3772_s0 + $0x8] sm:$0xff] }
 0x6a1   : > { %1936 = vmatpush.bf16.msrb.mxu2 %v2698_v44 }
 0x6a4   : > { %1953 = vmatpush.bf16.msra.mxu3 %v2678_v62  ;;  %v2869_v62 = vld [vmem:[%s3772_s0] sm:$0xff] }
 0x6a5   : > { %1937 = vmatpush.bf16.msrb.mxu2 %v2690_v49  ;;  %v2882_v49 = vld [vmem:[%s3772_s0 + $0x68] sm:$0xff] }
 0x6a6   : > { %2112 = vmatpush.bf16.msra.mxu1 %v2882_v49 }
 0x6a9   : > { %1938 = vmatpush.bf16.msrb.mxu2 %v2682_v53  ;;  %v2879_v53 = vld [vmem:[%s3772_s0 + $0x50] sm:$0xff] }
 0x6aa   : > { %2113 = vmatpush.bf16.msra.mxu1 %v2881_v51 }
 0x6ae   : > { %2114 = vmatpush.bf16.msra.mxu1 %v2880_v6 }
 0x6b2   : > { %2115 = vmatpush.bf16.msra.mxu1 %v2879_v53 }
 0x6d7   : > { %v3008_v60 = vpop.permute.xlu0 %3007 }
 0x6d8   : > { %v3010_v63 = vunpack.i.h.bf16 %v3008_v60  ;;  %v3009_v0 = vunpack.i.l.bf16 %v3008_v60  ;;  %v2674_v60 = vor.u32 %v2858_v57, %v2673_v56  ;;  %v2878_v56 = vld [vmem:[%s3772_s0 + $0x48] sm:$0xff]  ;;  %v1850_v57 = vperm.slane %v974_v54, 0 }
 0x6d9   : > { %2116 = vmatpush.bf16.msra.mxu1 %v2878_v56 }
 0x6da   : > { %v1726_v8 = vsel %vm1485_vm10, %v1725_v17, %v3010_v63  ;;  %v1486_v9 = vsel %vm1485_vm10, %v1484_v4, %v3009_v0  ;;  %1939 = vmatpush.bf16.msrb.mxu2 %v2674_v60  ;;  %v2665_v63 = vld [vmem:[%s3807_s6 + $0x10] sm:$0xf]  ;;  %v2856_v0 = vld [vmem:[%s3807_s6 + $0x14] sm:$0xf0]  ;;  %v2667_v4 = vld [vmem:[%s3807_s6 + $0x18] sm:$0xf0] }
 0x6db   : > { %v2666_v17 = vor.u32 %v2856_v0, %v2665_v63  ;;  %v2877_v63 = vld [vmem:[%s3772_s0 + $0x40] sm:$0xff] }
 0x6dd   : > { %2117 = vmatpush.bf16.msra.mxu1 %v2877_v63 }
 0x6de   : > { %1940 = vmatpush.bf16.msrb.mxu2 %v2666_v17 }
 0x706   : > { %v3013_v1 = vpop.permute.xlu1 %3012 }
 0x707   : > { %v3015_v5 = vunpack.i.h.bf16 %v3013_v1  ;;  %v3014_v7 = vunpack.i.l.bf16 %v3013_v1  ;;  %v2855_v1 = vld [vmem:[%s3807_s6 + $0x14] sm:$0xf] }
 0x709   : > { %v1488_v11 = vsel %vm1487_vm11, %v1486_v9, %v3014_v7  ;;  %v1727_v12 = vsel %vm1487_vm11, %v1726_v8, %v3015_v5  ;;  %v2657_v5 = vld [vmem:[%s3807_s6] sm:$0xf]  ;;  %v2854_v7 = vld [vmem:[%s3807_s6 + $0x4] sm:$0xf0]  ;;  %v2670_v9 = vor.u32 %v2855_v1, %v2667_v4 }
 0x70a   : > { %v1728_v15 = vpack.c.bf16 %v1727_v12, %v1488_v11  ;;  %v2853_v11 = vld [vmem:[%s3807_s6 + $0x4] sm:$0xf]  ;;  %v2659_v12 = vld [vmem:[%s3807_s6 + $0x8] sm:$0xf0]  ;;  %s4203_s6 = scalar_lea.vmem [#allocation8], %s3750_s4 }
 0x70b   : > { %1954 = vmatpush.bf16.msra.mxu3 %v2670_v9  ;;  %v3019_v37 = vld [vmem:[%s4203_s6] ss:$0 sm:$0xff] }
 0x70c   : > { %1785 = vmatmul.bf16.vlgmr.msrb.gmra.mxu1 %v1728_v15 }
 0x789   : > { %v1786_v18 = vpop.f32.mrf.mxu1 }
 0x78a   : > { %v1791_v19 = vadd.f32 %v1786_v18, %v3822_v2  ;;  %v2662_v18 = vor.u32 %v2853_v11, %v2659_v12 }
 0x78c   : > { %v4014_v21 = vadd.f32 %v3018_v16, %v1791_v19  ;;  %1955 = vmatpush.bf16.msra.mxu3 %v2662_v18 }
 0x78e   : > { %1798 = vadd.xlane.f32.xlu0 %v4014_v21 }
 0x791   : > { %v1788_v58 = vpop.f32.mrf.mxu1 }
 0x792   : > { %v1792_v22 = vadd.f32 %v1788_v58, %v3825_v3 }
 0x794   : > { %v4018_v23 = vadd.f32 %v3018_v16, %v1792_v22  ;;  %v2658_v16 = vor.u32 %v2854_v7, %v2657_v5 }
 0x796   : > { %1800 = vadd.xlane.f32.xlu1 %v4018_v23  ;;  %1941 = vmatpush.bf16.msrb.mxu2 %v2658_v16 }
 0x801   : > { %v1799_v24 = vpop.xlane.xlu0 %1798 }
 0x802   : > { %v1802_v20 = vmul.f32 %v1799_v24, %v3828_v10 }
 0x804   : > { %v4023_v2 = vsub.f32 %v4014_v21, %v1802_v20 }
 0x806   : > { %v1806_v25 = vmul.f32 %v4023_v2, %v4023_v2 }
 0x808   : > { %1808 = vadd.xlane.f32.xlu2 %v1806_v25 }
 0x809   : > { %v1801_v26 = vpop.xlane.xlu1 %1800 }
 0x80a   : > { %v1803_v3 = vmul.f32 %v1801_v26, %v3828_v10 }
 0x80c   : > { %v4029_v27 = vsub.f32 %v4018_v23, %v1803_v3 }
 0x80e   : > { %v1807_v28 = vmul.f32 %v4029_v27, %v4029_v27 }
 0x810   : > { %1810 = vadd.xlane.f32.xlu0 %v1807_v28 }
 0x87b   : > { %v1809_v8 = vpop.xlane.xlu2 %1808 }
 0x87c   : > { %v1812_v15 = vmul.f32 %v1809_v8, %v3828_v10 }
 0x87e   : > { %v1814_v19 = vadd.f32 1e-05, %v1812_v15 }
 0x880   : > { %3060 = vrsqrt.f32 %v1814_v19  ;;  %vm1822_vm13 = vweird.f32 %v1814_v19 }
 0x883   : > { %v1811_v58 = vpop.xlane.xlu0 %1810 }
 0x884   : > { %v1813_v22 = vmul.f32 %v1811_v58, %v3828_v10 }
 0x886   : > { %v3061_v24 = vpop.eup %3060  ;;  %v1815_v20 = vadd.f32 1e-05, %v1813_v22 }
 0x887   : > { %v1817_v25 = vmul.f32 %v3061_v24, %v1814_v19  ;;  %vm1823_vm12 = vweird.f32 %v3061_v24 }
 0x888   : > { %3062 = vrsqrt.f32 %v1815_v20  ;;  %vm1824_vm14 = vmor %vm1822_vm13, %vm1823_vm12  ;;  %vm1832_vm0 = vweird.f32 %v1815_v20 }
 0x889   : > { %v1818_v26 = vmul.f32 %v3061_v24, %v1817_v25 }
 0x88b   : > { %v1819_v3 = vmul.f32 0.5, %v1818_v26 }
 0x88d   : > { %v1820_v28 = vsub.f32 1.5, %v1819_v3 }
 0x88e   : > { %v3063_v29 = vpop.eup %3062 }
 0x88f   : > { %v1821_v30 = vmul.f32 %v3061_v24, %v1820_v28  ;;  %v1827_v31 = vmul.f32 %v3063_v29, %v1815_v20  ;;  %vm1833_vm15 = vweird.f32 %v3063_v29 }
 0x890   : > { %vm1834_vm1 = vmor %vm1832_vm0, %vm1833_vm15 }
 0x891   : > { %v1828_v32 = vmul.f32 %v3063_v29, %v1827_v31  ;;  %v1825_v33 = vsel %vm1824_vm14, %v3061_v24, %v1821_v30 }
 0x892   : > { %v1836_v36 = vmul.f32 %v1825_v33, %v4023_v2 }
 0x893   : > { %v1829_v34 = vmul.f32 0.5, %v1828_v32 }
 0x894   : > { %v1841_v41 = vmul.f32 %v3019_v37, %v1836_v36 }
 0x895   : > { %v1830_v35 = vsub.f32 1.5, %v1829_v34 }
 0x896   : > { %v1846_v44 = vadd.f32 %v3020_v42, %v1841_v41 }
 0x897   : > { %v1831_v38 = vmul.f32 %v3063_v29, %v1830_v35 }
 0x899   : > { %v1835_v39 = vsel %vm1834_vm1, %v3063_v29, %v1831_v38 }
 0x89a   : > { %v1837_v40 = vmul.f32 %v1835_v39, %v4029_v27  ;;  %v2875_v27 = vld [vmem:[%s3772_s0 + $0x30] sm:$0xff]  ;;  %s4205_s0 = scalar_lea.vmem [#allocation13], %s3750_s4 }
 0x89b   : > { %2097 = vmatpush.bf16.msrb.mxu0 %v2875_v27  ;;  %v3021_v51 = vld [vmem:[%s4205_s0] ss:$0 sm:$0xff] }
 0x89c   : > { %v1842_v43 = vmul.f32 %v3019_v37, %v1837_v40 }
 0x89e   : > { %v1847_v45 = vadd.f32 %v3020_v42, %v1842_v43 }
 0x89f   : > { %2098 = vmatpush.bf16.msrb.mxu0 %v2874_v48 }
 0x8a0   : > { %v1848_v2 = vpack.c.bf16 %v1847_v45, %v1846_v44 }
 0x8a2   : > { %1942 = vmatmul.bf16.vlgmr.msrb.gmra.mxu2 %v1848_v2  ;;  %1956 = vmatmul.bf16.vlgmr.msra.gmra.mxu3 %v1848_v2 }
 0x8a3   : > { %2099 = vmatpush.bf16.msrb.mxu0 %v2873_v50 }
 0x8a7   : > { %2100 = vmatpush.bf16.msrb.mxu0 %v2872_v13 }
 0x8ab   : > { %2101 = vmatpush.bf16.msrb.mxu0 %v2871_v52 }
 0x8af   : > { %2102 = vmatpush.bf16.msrb.mxu0 %v2870_v55 }
 0x8b3   : > { %2103 = vmatpush.bf16.msrb.mxu0 %v2869_v62 }
 0x925   : > { %v1943_v60 = vpop.f32.mrf.mxu2  ;;  %v1957_v61 = vpop.f32.mrf.mxu3 }
 0x926   : > { %v1944_v0 = vadd.f32 %v1943_v60, %v1850_v57  ;;  %v1958_v1 = vadd.f32 %v1957_v61, %v1851_v59 }
 0x928   : > { %v1962_v17 = vmul.f32 %v1944_v0, %v1944_v0  ;;  %v1963_v4 = vmul.f32 %v1958_v1, %v1958_v1 }
 0x92a   : > { %v1966_v5 = vmul.f32 %v1962_v17, %v1944_v0  ;;  %v1967_v7 = vmul.f32 %v1963_v4, %v1958_v1 }
 0x92c   : > { %v1970_v8 = vmul.f32 0.044715, %v1966_v5  ;;  %v1971_v9 = vmul.f32 0.044715, %v1967_v7 }
 0x92d   : > { %v1945_v11 = vpop.f32.mrf.mxu2  ;;  %v1959_v12 = vpop.f32.mrf.mxu3 }
 0x92e   : > { %v1974_v15 = vadd.f32 %v1970_v8, %v1944_v0  ;;  %v1975_v16 = vadd.f32 %v1971_v9, %v1958_v1  ;;  %v1946_v18 = vadd.f32 %v1945_v11, %v1850_v57  ;;  %v1960_v19 = vadd.f32 %v1959_v12, %v1851_v59 }
 0x930   : > { %v1978_v58 = vmul.f32 0.7978846, %v1974_v15  ;;  %v1964_v22 = vmul.f32 %v1946_v18, %v1946_v18  ;;  %v1965_v24 = vmul.f32 %v1960_v19, %v1960_v19  ;;  %v1979_v20 = vmul.f32 0.7978846, %v1975_v16 }
 0x932   : > { %v1968_v25 = vmul.f32 %v1964_v22, %v1946_v18  ;;  %v1969_v26 = vmul.f32 %v1965_v24, %v1960_v19  ;;  %3064 = vtanh.f32 %v1978_v58 }
 0x933   : > { %3066 = vtanh.f32 %v1979_v20 }
 0x934   : > { %v1972_v3 = vmul.f32 0.044715, %v1968_v25  ;;  %v1973_v28 = vmul.f32 0.044715, %v1969_v26 }
 0x936   : > { %v1976_v29 = vadd.f32 %v1972_v3, %v1946_v18  ;;  %v1977_v30 = vadd.f32 %v1973_v28, %v1960_v19 }
 0x938   : > { %v1980_v31 = vmul.f32 0.7978846, %v1976_v29  ;;  %v1981_v32 = vmul.f32 0.7978846, %v1977_v30  ;;  %v3065_v33 = vpop.eup %3064 }
 0x939   : > { %v3067_v34 = vpop.eup %3066  ;;  %v1986_v35 = vadd.f32 1.0, %v3065_v33 }
 0x93a   : > { %3068 = vtanh.f32 %v1980_v31  ;;  %v1987_v36 = vadd.f32 1.0, %v3067_v34 }
 0x93b   : > { %3070 = vtanh.f32 %v1981_v32  ;;  %v1990_v39 = vmul.f32 0.5, %v1986_v35 }
 0x93c   : > { %v1991_v41 = vmul.f32 0.5, %v1987_v36 }
 0x93d   : > { %v1994_v45 = vmul.f32 %v1990_v39, %v1944_v0 }
 0x93e   : > { %v1995_v46 = vmul.f32 %v1991_v41, %v1958_v1 }
 0x940   : > { %v3069_v37 = vpop.eup %3068 }
 0x941   : > { %v3071_v38 = vpop.eup %3070  ;;  %v1988_v40 = vadd.f32 1.0, %v3069_v37 }
 0x942   : > { %v1989_v42 = vadd.f32 1.0, %v3071_v38 }
 0x943   : > { %v1992_v43 = vmul.f32 0.5, %v1988_v40 }
 0x944   : > { %v1993_v44 = vmul.f32 0.5, %v1989_v42 }
 0x945   : > { %v1996_v2 = vmul.f32 %v1992_v43, %v1946_v18 }
 0x946   : > { %v1997_v14 = vmul.f32 %v1993_v44, %v1960_v19 }
 0x947   : > { %v1998_v27 = vpack.c.bf16 %v1996_v2, %v1994_v45 }
 0x948   : > { %v1999_v47 = vpack.c.bf16 %v1997_v14, %v1995_v46 }
 0x949   : > { %2104 = vmatmul.bf16.vlgmr.msrb.gmra.mxu0 %v1998_v27 }
 0x94a   : > { %2118 = vmatmul.bf16.vlgmr.msra.gmra.mxu1 %v1999_v47 }
 0x9c6   : > { %v2105_v48 = vpop.f32.mrf.mxu0 }
 0x9c7   : > { %v2119_v49 = vpop.f32.mrf.mxu1 }
 0x9c8   : > { %v2120_v50 = vadd.f32 %v2119_v49, %v2105_v48 }
 0x9ca   : > { %v2124_v13 = vadd.f32 %v2120_v50, %v4014_v21 }
 0x9cc   : > { %v2129_v6 = vadd.f32 %v3021_v51, %v2124_v13 }
 0x9ce   : > { %2131 = vst [vmem:[#allocation2] sm:$0xff] %v2129_v6  ;;  %v2107_v52 = vpop.f32.mrf.mxu0 }
 0x9cf   : > { %v2121_v53 = vpop.f32.mrf.mxu1 }
 0x9d0   : > { %v2122_v54 = vadd.f32 %v2121_v53, %v2107_v52 }
 0x9d2   : > { %v2125_v55 = vadd.f32 %v2122_v54, %v4018_v23  ;;  %2136 = sbr.rel (%p2783_p5) target bundleno = 2925 (0xb6d), region = 136 }
 0x9d4   : > { %v2130_v56 = vadd.f32 %v3021_v51, %v2125_v55 }
 0x9d6   : > { %2132 = vst [vmem:[#allocation2 + $0x8] sm:$0xff] %v2130_v56 }
 0x9d7   : > { %v2157_v57 = vrot.slane %v2130_v56, 7  ;;  %vm2159_vm2 = vcmask 1040384   ;;  %vm2161_vm3 = vcmask 1041408   ;;  %v2892_v23 = vld [vmem:[%s4206_s21 + $0x38] sm:$0xff]  ;;  %v2891_v0 = vld [vmem:[%s4206_s21 + $0x30] sm:$0xff]  ;;  %v2890_v1 = vld [vmem:[%s4206_s21 + $0x28] sm:$0xff] }
 0x9d8   : > { %2243 = vmatpush.bf16.msra.mxu0 %v2892_v23  ;;  %v2889_v17 = vld [vmem:[%s4206_s21 + $0x20] sm:$0xff]  ;;  %v2888_v4 = vld [vmem:[%s4206_s21 + $0x18] sm:$0xff]  ;;  %v2887_v5 = vld [vmem:[%s4206_s21 + $0x10] sm:$0xff] }
 0x9d9   : > { %v2160_v59 = vsel %vm2159_vm2, %v2129_v6, %v2157_v57  ;;  %v2886_v7 = vld [vmem:[%s4206_s21 + $0x8] sm:$0xff]  ;;  %v2885_v8 = vld [vmem:[%s4206_s21] sm:$0xff]  ;;  %v3072_v24 = vld [vmem:[#allocation14] ss:$0 sm:$0xff] }
 0x9da   : > { %v2162_v60 = vsel %vm2161_vm3, %v2160_v59, 0.0  ;;  %v3073_v26 = vld [vmem:[#allocation16] ss:$0 sm:$0xff] }
 0x9db   : > { %2163 = vadd.xlane.f32.xlu0 %v2162_v60 }
 0x9dc   : > { %2244 = vmatpush.bf16.msra.mxu0 %v2891_v0 }
 0x9e0   : > { %2245 = vmatpush.bf16.msra.mxu0 %v2890_v1 }
 0x9e4   : > { %2246 = vmatpush.bf16.msra.mxu0 %v2889_v17 }
 0x9e8   : > { %2247 = vmatpush.bf16.msra.mxu0 %v2888_v4 }
 0x9ec   : > { %2248 = vmatpush.bf16.msra.mxu0 %v2887_v5 }
 0x9f0   : > { %2249 = vmatpush.bf16.msra.mxu0 %v2886_v7 }
 0x9f4   : > { %2250 = vmatpush.bf16.msra.mxu0 %v2885_v8 }
 0xa4e   : > { %v2164_v61 = vpop.xlane.xlu0 %2163 }
 0xa4f   : > { %v2165_v21 = vmul.f32 %v2164_v61, %v3828_v10 }
 0xa51   : > { %v2166_v62 = vsub.f32 %v2162_v60, %v2165_v21 }
 0xa53   : > { %v2167_v63 = vmul.f32 %v2166_v62, %v2166_v62 }
 0xa55   : > { %2168 = vadd.xlane.f32.xlu0 %v2167_v63 }
 0xac8   : > { %v2169_v9 = vpop.xlane.xlu0 %2168 }
 0xac9   : > { %v2170_v11 = vmul.f32 %v2169_v9, %v3828_v10  ;;  %v3074_v10 = vld [vmem:[#allocation17] ss:$0 sm:$0xff] }
 0xacb   : > { %v2171_v12 = vadd.f32 1e-05, %v2170_v11 }
 0xacd   : > { %3075 = vrsqrt.f32 %v2171_v12  ;;  %vm2178_vm5 = vweird.f32 %v2171_v12 }
 0xad3   : > { %v3076_v15 = vpop.eup %3075 }
 0xad4   : > { %v2173_v16 = vmul.f32 %v3076_v15, %v2171_v12  ;;  %vm2179_vm4 = vweird.f32 %v3076_v15 }
 0xad5   : > { %vm2180_vm6 = vmor %vm2178_vm5, %vm2179_vm4 }
 0xad6   : > { %v2174_v18 = vmul.f32 %v3076_v15, %v2173_v16 }
 0xad8   : > { %v2175_v19 = vmul.f32 0.5, %v2174_v18 }
 0xada   : > { %v2176_v58 = vsub.f32 1.5, %v2175_v19 }
 0xadc   : > { %v2177_v22 = vmul.f32 %v3076_v15, %v2176_v58 }
 0xade   : > { %v2181_v20 = vsel %vm2180_vm6, %v3076_v15, %v2177_v22 }
 0xadf   : > { %v2182_v25 = vmul.f32 %v2181_v20, %v2166_v62 }
 0xae1   : > { %v2186_v3 = vmul.f32 %v3072_v24, %v2182_v25 }
 0xae3   : > { %v2190_v28 = vadd.f32 %v3073_v26, %v2186_v3 }
 0xae5   : > { %v2191_v29 = vpack.c.bf16 %v2190_v28, %v2190_v28 }
 0xae7   : > { %2251 = vmatmul.bf16.vlgmr.msra.gmra.mxu0 %v2191_v29 }
 0xb64   : > { %v2252_v30 = vpop.f32.mrf.mxu0 }
 0xb65   : > { %v2253_v31 = vadd.f32 %v3074_v10, %v2252_v30 }
 0xb67   : > { %2256 = vst [vmem:[%s4207_s15] sm:$0xff] %v2253_v31 }
 0xb6c   : > { %v2254_v32 = vpop.f32.mrf.mxu0 }
 0xb6d PF: > { %s4208_s27 = sld [smem:[#allocation26_spill]]  ;;  %s4211_s24 = smov %s3423_s25 }
 0xb6e   : > { %s4209_s6 = sld [smem:[#allocation25_spill]] }
 0xb6f   : > { %s4210_s26 = sld [smem:[#allocation27_spill]] }
 0xb73   : > { %p38_p8 = scmp.ge.s32.totalorder %s4208_s27, 4  }
 0xb74   : > { %s4212_s25 = smov %s4209_s6 }
 0xb75   :  { %40 = sbr.rel (!%p38_p8) target bundleno = 26 (0x1a), region = 231 }
 0xb7a   :  { %2268 = vsyncpa [#allocation4], 1 }
 0xb7b   :  { %2270 = vsyncpa [#allocation4 + $0x1], 1 }
 0xb7c   :  { %2271 = vsyncpa [#allocation6], 1 }
 0xb7d   :  { %2273 = vsyncpa [#allocation6 + $0x1], 1 }
 0xb7e   :  { %2274 = vsyncpa [#allocation9], 1 }
 0xb7f   :  { %2276 = vsyncpa [#allocation9 + $0x1], 1 }
 0xb80   :  { %2277 = vsyncpa [#allocation12], 1 }
 0xb81   :  { %2279 = vsyncpa [#allocation12 + $0x1], 1 }
 0xb82   :  { %2280 = vsyncpa [#allocation15], 1 }
 0xb83   :  { %2281 = vsyncpa [#allocation18], 1 }

// kernel: _lambda_.2
= control target key start
LH: loop header
LB: loop body
LE: loop exit
PB: predicated region body
PF: predicated region fallthrough
CT: control target
= control target key end

     0   :  { %s5997_s0 = inlined_call_operand.vmem [shape: f32[32,48], index: 0, kind: input, shape index: {}]   ;;  %s5998_s1 = inlined_call_operand.hbm [shape: bf16[48,128], index: 1, kind: input, shape index: {}]   ;;  %s5999_s2 = inlined_call_operand.vmem [shape: f32[1,128], index: 2, kind: input, shape index: {}]   ;;  %s6000_s3 = inlined_call_operand.hbm [shape: f32[1,128], index: 3, kind: input, shape index: {}]   ;;  %s6001_s4 = inlined_call_operand.hbm [shape: f32[24,128], index: 4, kind: input, shape index: {}]   ;;  %s6002_s5 = inlined_call_operand.vmem [shape: f32[2,1,128], index: 5, kind: input, shape index: {}]   ;;  %s6003_s6 = inlined_call_operand.vmem [shape: f32[2,1,128], index: 6, kind: input, shape index: {}]   ;;  %s6004_s7 = inlined_call_operand.vmem [shape: bf16[2,128,384], index: 7, kind: input, shape index: {}]   ;;  %s6005_s8 = inlined_call_operand.vmem [shape: f32[2,1,384], index: 8, kind: input, shape index: {}]   ;;  %s6006_s9 = inlined_call_operand.vmem [shape: bf16[2,128,128], index: 9, kind: input, shape index: {}]   ;;  %s6007_s10 = inlined_call_operand.vmem [shape: f32[2,1,128], index: 10, kind: input, shape index: {}]   ;;  %s6008_s11 = inlined_call_operand.hbm [shape: f32[2,1,128], index: 11, kind: input, shape index: {}]   ;;  %s6009_s12 = inlined_call_operand.hbm [shape: f32[2,1,128], index: 12, kind: input, shape index: {}]   ;;  %s6010_s13 = inlined_call_operand.vmem [shape: bf16[2,128,256], index: 13, kind: input, shape index: {}]   ;;  %s6011_s14 = inlined_call_operand.vmem [shape: f32[2,1,256], index: 14, kind: input, shape index: {}]   ;;  %s6012_s15 = inlined_call_operand.vmem [shape: bf16[2,256,128], index: 15, kind: input, shape index: {}]   ;;  %s6013_s16 = inlined_call_operand.hbm [shape: f32[2,1,128], index: 16, kind: input, shape index: {}]   ;;  %s6014_s17 = inlined_call_operand.hbm [shape: f32[1,128], index: 17, kind: input, shape index: {}]   ;;  %s6015_s18 = inlined_call_operand.hbm [shape: f32[1,128], index: 18, kind: input, shape index: {}]   ;;  %s6016_s19 = inlined_call_operand.hbm [shape: bf16[128,128], index: 19, kind: input, shape index: {}]   ;;  %s6017_s20 = inlined_call_operand.vmem [shape: f32[1,128], index: 20, kind: input, shape index: {}]   ;;  %s6018_s21 = inlined_call_operand.vmem [shape: f32[8,128], index: 21, kind: output, shape index: {}]  }
   0x1   :  { %6023 = sst [smem:[#allocation26_spill]] %s5997_s0 }
   0x2   :  { %6024 = sst [smem:[#allocation27_spill]] %s5998_s1 }
   0x3   :  { %6025 = sst [smem:[#allocation28_spill]] %s5999_s2 }
   0x4   :  { %6026 = sst [smem:[#allocation29_spill]] %s6000_s3 }
   0x5   :  { %6027 = sst [smem:[#allocation30_spill]] %s6001_s4 }
   0x6   :  { %6028 = sst [smem:[#allocation31_spill]] %s6002_s5 }
   0x7   :  { %6029 = sst [smem:[#allocation32_spill]] %s6004_s7 }
   0x8   :  { %6030 = sst [smem:[#allocation33_spill]] %s6005_s8 }
   0x9   :  { %6031 = sst [smem:[#allocation34_spill]] %s6007_s10 }
   0xa   :  { %6032 = sst [smem:[#allocation35_spill]] %s6008_s11 }
   0xb   :  { %6033 = sst [smem:[#allocation36_spill]] %s6010_s13 }
   0xc   :  { %6034 = sst [smem:[#allocation37_spill]] %s6011_s14 }
   0xd   :  { %6035 = sst [smem:[#allocation38_spill]] %s6012_s15 }
   0xe   :  { %6036 = sst [smem:[#allocation39_spill]] %s6014_s17 }
   0xf   :  { %6037 = sst [smem:[#allocation40_spill]] %s6015_s18 }
  0x10   :  { %6038 = sst [smem:[#allocation41_spill]] %s6017_s20 }
  0x11   :  { %6039 = sst [smem:[#allocation42_spill]] %s6018_s21 }
  0x12   :  { %26 = vsyncpa [#allocation4], 0 }
  0x13   :  { %27 = vsyncpa [#allocation6], 0 }
  0x14   :  { %28 = vsyncpa [#allocation9], 0 }
  0x15   :  { %30 = vsyncpa [#allocation9 + $0x1], 0 }
  0x16   :  { %31 = vsyncpa [#allocation12], 0 }
  0x17   :  { %33 = vsyncpa [#allocation12 + $0x1], 0 }
  0x18   :  { %34 = vsyncpa [#allocation15], 0  ;;  %s4864_s2 = smov 0   ;;  %s4866_s25 = smov 0  }
  0x19   :  { %s4868_s26 = smov 0   ;;  %s4870_s27 = smov 0  }
  0x1a LB: > { %6040 = sst [smem:[#allocation23_spill]] %s4733_s26  ;;  %s4888_s4 = sadd.s32 4294967295, %s4737_s27   ;;  %s4737_s27 = sphi %s4870_s27, %s6086_s27   ;;  %s4733_s26 = sphi %s4868_s26, %s6088_s26   ;;  %s4729_s25 = sphi %s4866_s25, %s6090_s25   ;;  %s4725_s2 = sphi %s4864_s2, %s6089_s2  }
  0x1b   : > { %s6041_s29 = sld [smem:[#allocation29_spill]]  ;;  %p3597_p0 = scmp.ge.s32.totalorder %s4737_s27, 1 }
  0x1c   : > { %p322_p1 = scmp.eq.s32.totalorder %s4888_s4, 0  ;;  %p567_p2 = scmp.lt.s32.totalorder %s4737_s27, 3 }
  0x1d   : > { %p3598_p3 = scmp.ne.s32.totalorder %s4888_s4, 0  ;;  %s4739_s5 = smov [#allocation5]  }
  0x1e   : > { %p4894_p4 = pnand %p3597_p0, %p567_p2  ;;  %s601_s22 = sshll.u32 %s4739_s5, 4  ;;  %s602_s22 = int_to_ptr.vmem [resolvable:$true] %s601_s22 }
  0x1f   : > { %s6043_s17 = sld [smem:[#allocation39_spill]]  ;;  %s4740_s28 = smov [#allocation13]  }
  0x20   : > { %p4091_p5 = pneg %p4894_p4  ;;  %s6045_s18 = sld [smem:[#allocation40_spill]] }
  0x21   : > { %s599_s0 = sshll.u32 %s6041_s29, 4  ;;  %s627_s29 = sshll.u32 %s4740_s28, 4  ;;  %s600_s0 = int_to_ptr.hbm [resolvable:$true] %s599_s0  ;;  %s628_s29 = int_to_ptr.vmem [resolvable:$true] %s627_s29 }
  0x22   : > { %p4905_p6 = pnand %p4091_p5, %p322_p1  ;;  %s4919_s28 = sadd.s32 1, %s4737_s27  }
  0x23   : > { %6046 = sst [smem:[#allocation24_spill]] %s4919_s28  ;;  %s305_s5 = ssub.s32 %s4737_s27, %s4919_s28 }
  0x24   : > { %4097 = dma.hbm_to_vmem [thread:$0]  (!%p4905_p6), %s600_s0, 16, %s602_s22, [#allocation6]  }
  0x25   : > { %s625_s24 = sshll.u32 %s6043_s17, 4  ;;  %s4741_s17 = smov [#allocation14]   ;;  %s626_s24 = int_to_ptr.hbm [resolvable:$true] %s625_s24 }
  0x26   : > { %s637_s1 = sshll.u32 %s6045_s18, 4  ;;  %s639_s21 = sshll.u32 %s4741_s17, 4  ;;  %s638_s1 = int_to_ptr.hbm [resolvable:$true] %s637_s1  ;;  %s640_s21 = int_to_ptr.vmem [resolvable:$true] %s639_s21 }
  0x27   : > { %4103 = dma.hbm_to_vmem [thread:$0]  (!%p4905_p6), %s626_s24, 16, %s628_s29, [#allocation12]  }
  0x28   : > { %4106 = dma.hbm_to_vmem [thread:$0]  (!%p4905_p6), %s638_s1, 16, %s640_s21, [#allocation15]  }
  0x29   : > { %s308_s23 = sadd.s32 1, %s4733_s26  ;;  %p306_p7 = scmp.eq.s32.totalorder %s305_s5, 0 }
  0x2a   : > { %p315_p8 = scmp.ne.s32.totalorder %s4733_s26, %s4729_s25  ;;  %p316_p9 = scmp.eq.s32.totalorder %s4737_s27, 0 }
  0x2b   : > { %p321_p10 = scmp.ne.s32.totalorder %s4729_s25, %s4725_s2  ;;  %p4126_p13 = scmp.lt.s32.totalorder %s4737_s27, 2 }
  0x2c   : > { %s4930_s0 = scalar_select %p306_p7, %s4733_s26, %s308_s23  }
  0x2d   : > { %p317_p11 = por %p316_p9, %p315_p8  ;;  %p4934_p12 = por %p322_p1, %p321_p10 }
  0x2e   : > { %6047 = sst [smem:[#allocation25_spill]] %s4930_s0  ;;  %s4941_s22 = sand.u32 1, %s4733_s26  }
  0x2f   : > { %s6049_s11 = sld [smem:[#allocation35_spill]]  ;;  %s711_s2 = scalar_lea.vmem [#allocation8], %s4941_s22 }
  0x30   : > { %s718_s18 = sshll.u32 %s711_s2, 4  ;;  %p4948_p0 = pnand %p4126_p13, %p317_p11  ;;  %s719_s18 = int_to_ptr.vmem [resolvable:$true] %s718_s18 }
  0x31   : > { %s6051_s20 = sld [smem:[#allocation27_spill]]  ;;  %s6052_s26 = sand.u32 1, %s4737_s27  }
  0x32   : > { %s4957_s24 = scalar_lea.sflag [#allocation9], %s6052_s26  ;;  %p4507_p5 = pneg %p4948_p0 }
  0x35   : > { %s714_s1 = scalar_lea.hbm %s6049_s11, %s4737_s27  ;;  %s4510_s28 = scalar_lea.hbm %s6049_s11, 2 }
  0x36   : > { %s716_s5 = sshll.u32 %s714_s1, 4  ;;  %s717_s5 = int_to_ptr.hbm [resolvable:$true] %s716_s5 }
  0x37   : > { %s581_s21 = sshll.u32 %s6051_s20, 4  ;;  %s4503_s29 = sshra.s32 %s717_s5, 4  ;;  %s582_s21 = int_to_ptr.hbm [resolvable:$true] %s581_s21  ;;  %s4504_s29 = int_to_ptr.hbm [resolvable:$true] %s4503_s29 }
  0x38   : > { %s4505_s1 = scalar_lea.hbm %s4504_s29, 1  ;;  %p4511_p9 = scmp.lt.s32.totalorder %s4504_s29, %s6049_s11 }
  0x39   : > { %p4506_p2 = scmp.ne.s32.totalorder %s4504_s29, %s4505_s1  ;;  %p4512_p10 = scmp.lt.s32.totalorder %s4510_s28, %s4505_s1 }
  0x3b   : > { %p4508_p7 = pnand %p4507_p5, %p4506_p2  ;;  %p4513_p11 = por %p4512_p10, %p4511_p9 }
  0x3d   : > { %p4509_p8 = pneg %p4508_p7 }
  0x3f   : > { %p4514_p13 = pnand %p4513_p11, %p4509_p8 }
  0x41   : > { %4517 = shalt.err (!%p4514_p13)
}
  0x42   : > { %4113 = dma.hbm_to_vmem [thread:$0]  (!%p4948_p0), %s717_s5, 16, %s719_s18, %s4957_s24  }
  0x43   : > { %s4742_s26 = smov [#allocation3]   ;;  %s4743_s13 = smov 64  }
  0x44   : > { %s583_s14 = sshll.u32 %s4742_s26, 4  ;;  %s4744_s15 = smov 4   ;;  %s584_s14 = int_to_ptr.vmem [resolvable:$true] %s583_s14 }
  0x45   : > { %4094 = dma.hbm_to_vmem [thread:$0]  (!%p4905_p6), %s582_s21, 384, %s584_s14, [#allocation4], %s4743_s13, %s4743_s13, %s4744_s15  }
  0x46   : > { %s6053_s2 = sld [smem:[#allocation30_spill]]  ;;  %s4745_s0 = smov [#allocation7]  }
  0x47   : > { %s612_s20 = sshll.u32 %s4745_s0, 4  ;;  %s648_s5 = sshll.u32 %s6016_s19, 4  ;;  %s613_s20 = int_to_ptr.vmem [resolvable:$true] %s612_s20  ;;  %s649_s5 = int_to_ptr.hbm [resolvable:$true] %s648_s5 }
  0x48   : > { %s4746_s26 = smov 128   ;;  %s4747_s8 = smov 8  }
  0x49   : > { %s4748_s14 = smov [#allocation16]   ;;  %s728_s10 = scalar_lea.vmem [#allocation10], %s4941_s22 }
  0x4a   : > { %s650_s21 = sshll.u32 %s4748_s14, 4  ;;  %s735_s7 = sshll.u32 %s728_s10, 4  ;;  %s651_s21 = int_to_ptr.vmem [resolvable:$true] %s650_s21  ;;  %s736_s7 = int_to_ptr.vmem [resolvable:$true] %s735_s7 }
  0x4b   : > { %4109 = dma.hbm_to_vmem [thread:$0]  (!%p4905_p6), %s649_s5, 1024, %s651_s21, [#allocation15], %s4743_s13, %s4743_s13, %s4744_s15  }
  0x4c   : > { %s610_s28 = sshll.u32 %s6053_s2, 4  ;;  %s731_s2 = scalar_lea.hbm %s6009_s12, %s4737_s27  ;;  %s611_s28 = int_to_ptr.hbm [resolvable:$true] %s610_s28 }
  0x4d   : > { %4100 = dma.hbm_to_vmem [thread:$0]  (!%p4905_p6), %s611_s28, 384, %s613_s20, [#allocation6], %s4746_s26, %s4746_s26, %s4747_s8  }
  0x4e   : > { %s733_s0 = sshll.u32 %s731_s2, 4  ;;  %s4630_s20 = scalar_lea.hbm %s6009_s12, 2  ;;  %s734_s0 = int_to_ptr.hbm [resolvable:$true] %s733_s0 }
  0x4f   : > { %s4623_s11 = sshra.s32 %s734_s0, 4  ;;  %s4624_s11 = int_to_ptr.hbm [resolvable:$true] %s4623_s11 }
  0x50   : > { %s4625_s18 = scalar_lea.hbm %s4624_s11, 1  ;;  %p4631_p6 = scmp.lt.s32.totalorder %s4624_s11, %s6009_s12 }
  0x51   : > { %p4626_p2 = scmp.ne.s32.totalorder %s4624_s11, %s4625_s18  ;;  %p4632_p9 = scmp.lt.s32.totalorder %s4630_s20, %s4625_s18 }
  0x53   : > { %p4628_p7 = pnand %p4626_p2, %p4507_p5  ;;  %p4633_p10 = por %p4632_p9, %p4631_p6 }
  0x55   : > { %p4629_p8 = pneg %p4628_p7 }
  0x57   : > { %p4634_p11 = pnand %p4633_p10, %p4629_p8 }
  0x59   : > { %4637 = shalt.err (!%p4634_p11)
}
  0x5a   : > { %4116 = dma.hbm_to_vmem [thread:$0]  (!%p4948_p0), %s734_s0, 16, %s736_s7, %s4957_s24  }
  0x5b   : > { %s771_s15 = scalar_lea.hbm %s6013_s16, %s4737_s27  ;;  %s768_s14 = scalar_lea.vmem [#allocation11], %s4941_s22 }
  0x5c   : > { %s773_s5 = sshll.u32 %s771_s15, 4  ;;  %s775_s21 = sshll.u32 %s768_s14, 4  ;;  %s774_s5 = int_to_ptr.hbm [resolvable:$true] %s773_s5  ;;  %s776_s21 = int_to_ptr.vmem [resolvable:$true] %s775_s21 }
  0x5d   : > { %s6054_s29 = sand.u32 1, %s4737_s27   ;;  %s4653_s2 = sshra.s32 %s774_s5, 4  ;;  %s4654_s2 = int_to_ptr.hbm [resolvable:$true] %s4653_s2 }
  0x5e   : > { %s766_s1 = scalar_lea.sflag [#allocation12], %s6054_s29  ;;  %s4655_s11 = scalar_lea.hbm %s4654_s2, 1 }
  0x5f   : > { %p4656_p13 = scmp.ne.s32.totalorder %s4654_s2, %s4655_s11  ;;  %s4660_s0 = scalar_lea.hbm %s6013_s16, 2 }
  0x60   : > { %p4661_p8 = scmp.lt.s32.totalorder %s4654_s2, %s6013_s16  ;;  %p4662_p6 = scmp.lt.s32.totalorder %s4660_s0, %s4655_s11 }
  0x61   : > { %p4658_p2 = pnand %p4656_p13, %p4507_p5 }
  0x62   : > { %p4663_p9 = por %p4662_p6, %p4661_p8 }
  0x63   : > { %p4659_p7 = pneg %p4658_p2 }
  0x65   : > { %p4664_p10 = pnand %p4663_p9, %p4659_p7 }
  0x67   : > { %4667 = shalt.err (!%p4664_p10)
}
  0x68   : > { %4119 = dma.hbm_to_vmem [thread:$0]  (!%p4948_p0), %s774_s5, 16, %s776_s21, %s766_s1  }
  0x69   : > { %784 = sbr.rel (%p4894_p4) target bundleno = 2848 (0xb20), region = 104 }
  0x6e   : > { %4700 = dma.done.wait (%p322_p1), [#allocation4], 384  }
  0x6f   : > { %4702 = vsyncadd (%p322_p1), [#allocation4], 4294966912 }
  0x70   : > { %4704 = dma.done.wait (%p322_p1), [#allocation6], 400  }
  0x71   : > { %4706 = vsyncadd (%p322_p1), [#allocation6], 4294966896  ;;  %s801_s27 = sand.u32 1, %s4888_s4   ;;  %s5032_s22 = sand.u32 1, %s4729_s25  }
  0x72   : > { %s802_s30 = scalar_lea.sflag [#allocation9], %s801_s27 }
  0x73   : > { %4708 = dma.done.wait (%p4934_p12), %s802_s30, 32  }
  0x74   : > { %4710 = vsyncadd (%p4934_p12), %s802_s30, 4294967264  ;;  %s820_s20 = scalar_lea.sflag [#allocation12], %s801_s27 }
  0x75   : > { %4712 = dma.done.wait (%p4934_p12), %s820_s20, 16  }
  0x76   : > { %4714 = vsyncadd (%p4934_p12), %s820_s20, 4294967280 }
  0x77   : > { %4716 = dma.done.wait (%p322_p1), [#allocation12], 16  }
  0x78   : > { %4718 = vsyncadd (%p322_p1), [#allocation12], 4294967280 }
  0x79   : > { %4720 = dma.done.wait (%p322_p1), [#allocation15], 1040  }
  0x7a   : > { %4722 = vsyncadd (%p322_p1), [#allocation15], 4294966256  ;;  %p936_p4 = scmp.lt.s32.totalorder %s4888_s4, 1  ;;  %s6056_s8 = sld [smem:[#allocation32_spill]] }
  0x7b   : > { %s6057_s17 = sld [smem:[#allocation34_spill]] }
  0x7c   : > { %s5055_s3 = scalar_select %p936_p4, %s4888_s4, 1 }
  0x7d   : > { %s6058_s14 = sld [smem:[#allocation33_spill]] }
  0x7e   : > { %s4059_s29 = smul.u32 192, %s5055_s3  ;;  %s3970_s1 = sshll.u32 %s5055_s3, 6 }
  0x7f   : > { %s4060_s2 = smul.u32 3, %s5055_s3  ;;  %s5071_s24 = scalar_lea.vmem %s6006_s9, %s3970_s1 }
  0x80   : > { %s5076_s27 = scalar_lea.vmem %s6056_s8, %s4059_s29  ;;  %s3971_s28 = sshll.u32 %s5055_s3, 7 }
  0x81   : > { %s958_s10 = scalar_lea.vmem %s6057_s17, %s5055_s3  ;;  %s6059_s11 = sld [smem:[#allocation36_spill]] }
  0x82   : > { %s3617_s7 = sshll.u32 %s5055_s3, 1  ;;  %s6060_s29 = sld [smem:[#allocation37_spill]] }
  0x83   : > { %s5085_s26 = scalar_lea.vmem %s6058_s14, %s4060_s2  ;;  %s6061_s20 = sld [smem:[#allocation38_spill]] }
  0x84   : > { %s6062_s2 = sld [smem:[#allocation26_spill]] (!%p3598_p3) }
  0x85   : > { %977 = sbr.rel (%p3598_p3) target bundleno = 290 (0x122), region = 144  ;;  %s6064_s8 = sld [smem:[#allocation28_spill]] (!%p3598_p3) }
  0x87   : > { %s5091_s1 = scalar_lea.vmem %s6059_s11, %s3971_s28 }
  0x88   : > { %s5097_s18 = scalar_lea.vmem %s6060_s29, %s3617_s7 }
  0x89   : > { %s5102_s17 = scalar_lea.vmem %s6061_s20, %s3971_s28 }
  0x8a   : > { %v3975_v0 = vld [vmem:[#allocation3 + $0x10] sm:$0xff]  ;;  %v3974_v1 = vld [vmem:[#allocation3 + $0x8] sm:$0xff]  ;;  %v3973_v2 = vld [vmem:[#allocation3] sm:$0xff]  ;;  %s6063_s13 = smov %s6062_s2  ;;  %vm1012_vm0 = vcmask 392192   ;;  %vm1039_vm1 = vcmask 1040384  }
  0x8b   : > { %1024 = vmatpush.bf16.msra.mxu0 %v3975_v0  ;;  %4048 = vmatpush.bf16.msra.mxu1 %v3975_v0  ;;  %v978_v3 = vld [vmem:[%s6062_s2] sm:$0xff]  ;;  %v979_v4 = vld [vmem:[%s6063_s13 + $0x8] sm:$0xff]  ;;  %v980_v5 = vld [vmem:[%s6063_s13 + $0x10] sm:$0xff] }
  0x8c   : > { %v981_v6 = vld [vmem:[%s6063_s13 + $0x18] sm:$0xff]  ;;  %v988_v7 = vpack.c.bf16 %v979_v4, %v978_v3  ;;  %v1038_v9 = vld [vmem:[#allocation5] sm:$0x1]  ;;  %v4180_v13 = vld [vmem:[%s6064_s8] ss:$0 sm:$0xff] }
  0x8d   : > { %v989_v8 = vpack.c.bf16 %v981_v6, %v980_v5  ;;  %v1040_v10 = vsel %vm1039_vm1, %v1038_v9, 0.0  ;;  %v1043_v11 = vld [vmem:[#allocation7 + $0x10] sm:$0xff]  ;;  %v1041_v15 = vld [vmem:[#allocation7] sm:$0xff]  ;;  %v1042_v22 = vld [vmem:[#allocation7 + $0x8] sm:$0xff] }
  0x8e   : > { %v1046_v12 = vadd.f32 %v1043_v11, %v1040_v10 }
  0x8f   : > { %1025 = vmatpush.bf16.msra.mxu0 %v3974_v1  ;;  %4049 = vmatpush.bf16.msra.mxu1 %v3974_v1 }
  0x90   : > { %1051 = vst [vmem:[#allocation2 + $0x8] sm:$0xff] %v1046_v12 }
  0x91   : > { %1054 = vst [vmem:[#allocation2 + $0x20] sm:$0xff] %v1046_v12 }
  0x93   : > { %1026 = vmatpush.bf16.msra.mxu0 %v3973_v2  ;;  %4050 = vmatpush.bf16.msra.mxu1 %v3973_v2 }
  0x96   : > { %3633 = vmatmul.msk.bf16.vlgmr.msra.gmra.mxu0 %vm1012_vm0, %v988_v7  ;;  %3634 = vmatmul.msk.bf16.vlgmr.msra.gmra.mxu1 %vm1012_vm0, %v989_v8 }
 0x113   : > { %v1028_v14 = vpop.f32.mrf.mxu0  ;;  %v1033_v16 = vpop.f32.mrf.mxu1 }
 0x114   : > { %v1029_v17 = vadd.f32 %v4180_v13, %v1028_v14  ;;  %v1034_v18 = vadd.f32 %v4180_v13, %v1033_v16 }
 0x116   : > { %v1044_v19 = vadd.f32 %v1041_v15, %v1029_v17  ;;  %v1047_v20 = vadd.f32 %v1041_v15, %v1034_v18 }
 0x118   : > { %1049 = vst [vmem:[#allocation2 + $0x28] sm:$0xff] %v1044_v19 }
 0x119   : > { %1052 = vst [vmem:[#allocation2] sm:$0xff] %v1047_v20 }
 0x11b   : > { %v1030_v21 = vpop.f32.mrf.mxu0  ;;  %v1035_v23 = vpop.f32.mrf.mxu1 }
 0x11c   : > { %v1031_v24 = vadd.f32 %v4180_v13, %v1030_v21  ;;  %v1036_v25 = vadd.f32 %v4180_v13, %v1035_v23 }
 0x11e   : > { %v1045_v26 = vadd.f32 %v1042_v22, %v1031_v24  ;;  %v1048_v27 = vadd.f32 %v1042_v22, %v1036_v25 }
 0x120   : > { %1050 = vst [vmem:[#allocation2 + $0x10] sm:$0xff] %v1045_v26 }
 0x121   : > { %1053 = vst [vmem:[#allocation2 + $0x18] sm:$0xff] %v1048_v27 }
 0x122 PF: > { %v1165_v28 = vld [vmem:[#allocation2 + $0x8] sm:$0xff]  ;;  %v1166_v30 = vld [vmem:[#allocation2] sm:$0xff]  ;;  %v4749_v32 = vmov 128.0   ;;  %v3998_v58 = vld [vmem:[%s5076_s27 + $0xb0] sm:$0xf0]  ;;  %s6065_s20 = sld [smem:[#allocation31_spill]]  ;;  %s6067_s15 = scalar_lea.vmem %s6003_s6, %s5055_s3 }
 0x123   : > { %v1163_v29 = vld [vmem:[#allocation2 + $0x28] sm:$0xff]  ;;  %1173 = vadd.xlane.f32.xlu1 %v1165_v28  ;;  %4232 = vrcp.f32 %v4749_v32  ;;  %v5139_v53 = vld [vmem:[#allocation2 + $0x20] sm:$0xff]  ;;  %v3723_v61 = vld [vmem:[%s5076_s27 + $0xb4] sm:$0xf0]  ;;  %s4751_s5 = smov 64   ;;  %s4752_s28 = smov 32  }
 0x124   : > { %1169 = vadd.xlane.f32.xlu0 %v1163_v29  ;;  %v3721_v57 = vld [vmem:[%s5076_s27 + $0xa8] sm:$0xf]  ;;  %v3997_v59 = vld [vmem:[%s5076_s27 + $0xac] sm:$0xf]  ;;  %v3729_v62 = vld [vmem:[%s5076_s27 + $0xb0] sm:$0xf] }
 0x125   : > { %v3722_v60 = vor.u32 %v3998_v58, %v3721_v57  ;;  %v3999_v63 = vld [vmem:[%s5076_s27 + $0xb8] sm:$0xf0]  ;;  %v3726_v0 = vor.u32 %v3997_v59, %v3723_v61  ;;  %v3709_v2 = vld [vmem:[%s5076_s27 + $0x90] sm:$0xf]  ;;  %v3994_v4 = vld [vmem:[%s5076_s27 + $0x94] sm:$0xf] }
 0x126   : > { %v3730_v1 = vor.u32 %v3999_v63, %v3729_v62  ;;  %v3995_v3 = vld [vmem:[%s5076_s27 + $0x98] sm:$0xf0]  ;;  %v3711_v6 = vld [vmem:[%s5076_s27 + $0x9c] sm:$0xf0]  ;;  %v3717_v7 = vld [vmem:[%s5076_s27 + $0x98] sm:$0xf] }
 0x127   : > { %v1164_v31 = vld [vmem:[#allocation2 + $0x10] sm:$0xff]  ;;  %1452 = vmatpush.bf16.msra.mxu0 %v3722_v60  ;;  %1476 = vmatpush.bf16.msra.mxu1 %v3726_v0  ;;  %v3710_v5 = vor.u32 %v3995_v3, %v3709_v2  ;;  %v3996_v8 = vld [vmem:[%s5076_s27 + $0xa0] sm:$0xf0]  ;;  %v3714_v9 = vor.u32 %v3994_v4, %v3711_v6  ;;  %v3697_v11 = vld [vmem:[%s5076_s27 + $0x78] sm:$0xf]  ;;  %p3935_p1 = scmp.ne.s32.totalorder %s4888_s4, 1 }
 0x128   : > { %v5146_v56 = vld [vmem:[#allocation2 + $0x18] sm:$0xff]  ;;  %1500 = vmatpush.bf16.msra.mxu2 %v3730_v1  ;;  %4051 = vmatpush.bf16.msra.mxu3 %v3730_v1  ;;  %v3718_v10 = vor.u32 %v3996_v8, %v3717_v7  ;;  %v3992_v12 = vld [vmem:[%s5076_s27 + $0x80] sm:$0xf0]  ;;  %v3699_v15 = vld [vmem:[%s5076_s27 + $0x84] sm:$0xf0]  ;;  %s6066_s23 = scalar_lea.vmem %s6065_s20, %s5055_s3  ;;  %s6069_s3 = scalar_lea.vmem [#allocation8], %s5032_s22 }
 0x129   : > { %v4233_v33 = vpop.eup %4232  ;;  %v3991_v13 = vld [vmem:[%s5076_s27 + $0x7c] sm:$0xf]  ;;  %v3698_v14 = vor.u32 %v3992_v12, %v3697_v11  ;;  %v3705_v16 = vld [vmem:[%s5076_s27 + $0x80] sm:$0xf]  ;;  %v3993_v17 = vld [vmem:[%s5076_s27 + $0x88] sm:$0xf0] }
 0x12a   : > { %v1182_v34 = vmul.f32 128.0, %v4233_v33  ;;  %vm1186_vm2 = vweird.f32 %v4233_v33  ;;  %v3702_v18 = vor.u32 %v3991_v13, %v3699_v15  ;;  %v3706_v19 = vor.u32 %v3993_v17, %v3705_v16  ;;  %v3685_v20 = vld [vmem:[%s5076_s27 + $0x60] sm:$0xf]  ;;  %v3989_v21 = vld [vmem:[%s5076_s27 + $0x68] sm:$0xf0]  ;;  %s6085_s0 = sld [smem:[#allocation42_spill]] (!%p3935_p1) }
 0x12b   : > { %1175 = vadd.xlane.f32.xlu1 %v1166_v30  ;;  %1453 = vmatpush.bf16.msra.mxu0 %v3710_v5  ;;  %v3988_v22 = vld [vmem:[%s5076_s27 + $0x64] sm:$0xf]  ;;  %v3686_v23 = vor.u32 %v3989_v21, %v3685_v20  ;;  %v3687_v24 = vld [vmem:[%s5076_s27 + $0x6c] sm:$0xf0]  ;;  %v3693_v25 = vld [vmem:[%s5076_s27 + $0x68] sm:$0xf] }
 0x12c   : > { %1171 = vadd.xlane.f32.xlu0 %v1164_v31  ;;  %v1183_v35 = vsub.f32 1.0, %v1182_v34  ;;  %1477 = vmatpush.bf16.msra.mxu1 %v3714_v9  ;;  %v3990_v26 = vld [vmem:[%s5076_s27 + $0x70] sm:$0xf0]  ;;  %v3690_v27 = vor.u32 %v3988_v22, %v3687_v24  ;;  %v3681_v34 = vld [vmem:[%s5076_s27 + $0x50] sm:$0xf] }
 0x12d   : > { %1501 = vmatpush.bf16.msra.mxu2 %v3718_v10  ;;  %4052 = vmatpush.bf16.msra.mxu3 %v3718_v10  ;;  %v3651_v58 = vld [vmem:[%s5076_s27 + $0x24] sm:$0xf0]  ;;  %v3657_v59 = vld [vmem:[%s5076_s27 + $0x20] sm:$0xf]  ;;  %v3981_v60 = vld [vmem:[%s5076_s27 + $0x28] sm:$0xf0] }
 0x12e   : > { %v1184_v36 = vmul.f32 %v4233_v33, %v1183_v35  ;;  %v3987_v35 = vld [vmem:[%s5076_s27 + $0x58] sm:$0xf0]  ;;  %v3658_v0 = vor.u32 %v3981_v60, %v3657_v59  ;;  %v3637_v1 = vld [vmem:[%s5076_s27] sm:$0xf]  ;;  %v3977_v2 = vld [vmem:[%s5076_s27 + $0x8] sm:$0xf0] }
 0x12f   : > { %1454 = vmatpush.bf16.msra.mxu0 %v3698_v14  ;;  %v3976_v3 = vld [vmem:[%s5076_s27 + $0x4] sm:$0xf]  ;;  %v3638_v5 = vor.u32 %v3977_v2, %v3637_v1  ;;  %v3639_v6 = vld [vmem:[%s5076_s27 + $0xc] sm:$0xf0]  ;;  %v3645_v7 = vld [vmem:[%s5076_s27 + $0x8] sm:$0xf] }
 0x130   : > { %v1185_v37 = vadd.f32 %v4233_v33, %v1184_v36  ;;  %1478 = vmatpush.bf16.msra.mxu1 %v3702_v18  ;;  %v3978_v8 = vld [vmem:[%s5076_s27 + $0x10] sm:$0xf0]  ;;  %v3642_v9 = vor.u32 %v3976_v3, %v3639_v6 }
 0x131   : > { %1502 = vmatpush.bf16.msra.mxu2 %v3706_v19  ;;  %4053 = vmatpush.bf16.msra.mxu3 %v3706_v19  ;;  %v3646_v10 = vor.u32 %v3978_v8, %v3645_v7 }
 0x132   : > { %v5121_v38 = vsel %vm1186_vm2, %v4233_v33, %v1185_v37  ;;  %v3675_v33 = vld [vmem:[%s5076_s27 + $0x54] sm:$0xf0]  ;;  %v3682_v37 = vor.u32 %v3987_v35, %v3681_v34 }
 0x133   : > { %1455 = vmatpush.bf16.msra.mxu0 %v3686_v23 }
 0x134   : > { %1479 = vmatpush.bf16.msra.mxu1 %v3690_v27 }
 0x196   : > { %v1174_v39 = vpop.xlane.xlu1 %1173 }
 0x197   : > { %v1170_v40 = vpop.xlane.xlu0 %1169  ;;  %v1190_v41 = vmul.f32 %v5121_v38, %v1174_v39  ;;  %v3661_v39 = vld [vmem:[%s5076_s27 + $0x30] sm:$0xf] }
 0x198   : > { %v1188_v42 = vmul.f32 %v5121_v38, %v1170_v40  ;;  %v3983_v40 = vld [vmem:[%s5076_s27 + $0x38] sm:$0xf0] }
 0x199   : > { %v5125_v43 = vsub.f32 %v1165_v28, %v1190_v41  ;;  %v3694_v28 = vor.u32 %v3990_v26, %v3693_v25  ;;  %v3982_v41 = vld [vmem:[%s5076_s27 + $0x34] sm:$0xf] }
 0x19a   : > { %v5127_v44 = vsub.f32 %v1163_v29, %v1188_v42  ;;  %v3673_v29 = vld [vmem:[%s5076_s27 + $0x48] sm:$0xf]  ;;  %v3662_v42 = vor.u32 %v3983_v40, %v3661_v39 }
 0x19b   : > { %v1202_v45 = vmul.f32 %v5125_v43, %v5125_v43  ;;  %1503 = vmatpush.bf16.msra.mxu2 %v3694_v28  ;;  %4054 = vmatpush.bf16.msra.mxu3 %v3694_v28 }
 0x19c   : > { %v1200_v46 = vmul.f32 %v5127_v44, %v5127_v44 }
 0x19d   : > { %1210 = vadd.xlane.f32.xlu0 %v1202_v45  ;;  %v3663_v45 = vld [vmem:[%s5076_s27 + $0x3c] sm:$0xf0] }
 0x19e   : > { %1206 = vadd.xlane.f32.xlu2 %v1200_v46  ;;  %v1176_v47 = vpop.xlane.xlu1 %1175  ;;  %v3669_v46 = vld [vmem:[%s5076_s27 + $0x38] sm:$0xf] }
 0x19f   : > { %v1172_v48 = vpop.xlane.xlu0 %1171  ;;  %v1191_v49 = vmul.f32 %v5121_v38, %v1176_v47  ;;  %1504 = vmatpush.bf16.msra.mxu2 %v3682_v37  ;;  %v3984_v47 = vld [vmem:[%s5076_s27 + $0x40] sm:$0xf0]  ;;  %4055 = vmatpush.bf16.msra.mxu3 %v3682_v37 }
 0x1a0   : > { %v1189_v50 = vmul.f32 %v5121_v38, %v1172_v48  ;;  %v3666_v48 = vor.u32 %v3982_v41, %v3663_v45 }
 0x1a1   : > { %v5135_v51 = vsub.f32 %v1166_v30, %v1191_v49  ;;  %v3986_v30 = vld [vmem:[%s5076_s27 + $0x50] sm:$0xf0]  ;;  %v3670_v49 = vor.u32 %v3984_v47, %v3669_v46 }
 0x1a2   : > { %v5137_v52 = vsub.f32 %v1164_v31, %v1189_v50  ;;  %v3985_v31 = vld [vmem:[%s5076_s27 + $0x4c] sm:$0xf]  ;;  %v3674_v32 = vor.u32 %v3986_v30, %v3673_v29  ;;  %v3649_v50 = vld [vmem:[%s5076_s27 + $0x18] sm:$0xf] }
 0x1a3   : > { %v1203_v54 = vmul.f32 %v5135_v51, %v5135_v51  ;;  %v3678_v36 = vor.u32 %v3985_v31, %v3675_v33  ;;  %1505 = vmatpush.bf16.msra.mxu2 %v3670_v49  ;;  %4056 = vmatpush.bf16.msra.mxu3 %v3670_v49  ;;  %v5223_v49 = vld [vmem:[%s6066_s23] ss:$0 sm:$0xff] }
 0x1a4   : > { %v1201_v55 = vmul.f32 %v5137_v52, %v5137_v52  ;;  %1456 = vmatpush.bf16.msra.mxu0 %v3674_v32 }
 0x1a5   : > { %1212 = vadd.xlane.f32.xlu1 %v1203_v54  ;;  %1179 = vadd.xlane.f32.xlu0 %v5139_v53  ;;  %v3980_v54 = vld [vmem:[%s5076_s27 + $0x20] sm:$0xf0] }
 0x1a6   : > { %1208 = vadd.xlane.f32.xlu2 %v1201_v55  ;;  %1480 = vmatpush.bf16.msra.mxu1 %v3678_v36  ;;  %v3979_v55 = vld [vmem:[%s5076_s27 + $0x1c] sm:$0xf]  ;;  %v3650_v57 = vor.u32 %v3980_v54, %v3649_v50 }
 0x1a7   : > { %v3654_v63 = vor.u32 %v3979_v55, %v3651_v58  ;;  %1506 = vmatpush.bf16.msra.mxu2 %v3658_v0  ;;  %4057 = vmatpush.bf16.msra.mxu3 %v3658_v0 }
 0x1a8   : > { %1457 = vmatpush.bf16.msra.mxu0 %v3662_v42 }
 0x1aa   : > { %1481 = vmatpush.bf16.msra.mxu1 %v3666_v48 }
 0x1ab   : > { %1507 = vmatpush.bf16.msra.mxu2 %v3646_v10  ;;  %4058 = vmatpush.bf16.msra.mxu3 %v3646_v10 }
 0x1ac   : > { %1458 = vmatpush.bf16.msra.mxu0 %v3650_v57 }
 0x1ae   : > { %1177 = vadd.xlane.f32.xlu2 %v5146_v56  ;;  %1482 = vmatpush.bf16.msra.mxu1 %v3654_v63 }
 0x1b0   : > { %1459 = vmatpush.bf16.msra.mxu0 %v3638_v5 }
 0x1b2   : > { %1483 = vmatpush.bf16.msra.mxu1 %v3642_v9 }
 0x210   : > { %v1211_v62 = vpop.xlane.xlu0 %1210 }
 0x211   : > { %v1207_v61 = vpop.xlane.xlu2 %1206  ;;  %v1220_v12 = vmul.f32 %v1211_v62, %v5121_v38 }
 0x212   : > { %v1218_v4 = vmul.f32 %v1207_v61, %v5121_v38 }
 0x213   : > { %v5199_v13 = vadd.f32 1e-05, %v1220_v12 }
 0x214   : > { %v1224_v11 = vadd.f32 1e-05, %v1218_v4 }
 0x215   : > { %vm1256_vm12 = vweird.f32 %v5199_v13 }
 0x216   : > { %4234 = vrsqrt.f32 %v1224_v11  ;;  %vm1236_vm4 = vweird.f32 %v1224_v11 }
 0x217   : > { %4236 = vrsqrt.f32 %v5199_v13 }
 0x218   : > { %v1213_v14 = vpop.xlane.xlu1 %1212  ;;  %v1180_v15 = vpop.xlane.xlu0 %1179 }
 0x219   : > { %v1221_v16 = vmul.f32 %v1213_v14, %v5121_v38  ;;  %v1209_v17 = vpop.xlane.xlu2 %1208  ;;  %v1193_v18 = vmul.f32 %v5121_v38, %v1180_v15 }
 0x21a   : > { %v1219_v19 = vmul.f32 %v1209_v17, %v5121_v38 }
 0x21b   : > { %v1227_v21 = vadd.f32 1e-05, %v1221_v16  ;;  %v5205_v22 = vsub.f32 %v5139_v53, %v1193_v18 }
 0x21c   : > { %v4235_v20 = vpop.eup %4234  ;;  %v1225_v24 = vadd.f32 1e-05, %v1219_v19 }
 0x21d   : > { %v1231_v23 = vmul.f32 %v4235_v20, %v1224_v11  ;;  %4238 = vrsqrt.f32 %v1227_v21  ;;  %v1205_v26 = vmul.f32 %v5205_v22, %v5205_v22  ;;  %v4237_v29 = vpop.eup %4236  ;;  %vm1237_vm3 = vweird.f32 %v4235_v20 }
 0x21e   : > { %4240 = vrsqrt.f32 %v1225_v24  ;;  %v1251_v36 = vmul.f32 %v4237_v29, %v5199_v13  ;;  %vm1238_vm5 = vmor %vm1236_vm4, %vm1237_vm3  ;;  %vm1246_vm7 = vweird.f32 %v1225_v24  ;;  %vm1266_vm9 = vweird.f32 %v1227_v21 }
 0x21f   : > { %v1232_v25 = vmul.f32 %v4235_v20, %v1231_v23  ;;  %1216 = vadd.xlane.f32.xlu2 %v1205_v26  ;;  %vm1257_vm13 = vweird.f32 %v4237_v29 }
 0x220   : > { %v1252_v45 = vmul.f32 %v4237_v29, %v1251_v36  ;;  %vm1258_vm14 = vmor %vm1256_vm12, %vm1257_vm13 }
 0x221   : > { %v1233_v27 = vmul.f32 0.5, %v1232_v25  ;;  %v1178_v28 = vpop.xlane.xlu2 %1177 }
 0x222   : > { %v1192_v31 = vmul.f32 %v5121_v38, %v1178_v28  ;;  %v1253_v50 = vmul.f32 0.5, %v1252_v45 }
 0x223   : > { %v1234_v30 = vsub.f32 1.5, %v1233_v27  ;;  %v4239_v32 = vpop.eup %4238 }
 0x224   : > { %v4241_v53 = vpop.eup %4240  ;;  %v1261_v33 = vmul.f32 %v4239_v32, %v1227_v21  ;;  %v5212_v34 = vsub.f32 %v5146_v56, %v1192_v31  ;;  %v1254_v60 = vsub.f32 1.5, %v1253_v50  ;;  %vm1267_vm10 = vweird.f32 %v4239_v32 }
 0x225   : > { %v1235_v35 = vmul.f32 %v4235_v20, %v1234_v30  ;;  %v1241_v37 = vmul.f32 %v4241_v53, %v1225_v24  ;;  %vm1247_vm6 = vweird.f32 %v4241_v53  ;;  %vm1268_vm11 = vmor %vm1266_vm9, %vm1267_vm10  ;;  %vm1985_vm9 = vcmask 523264  }
 0x226   : > { %v1204_v39 = vmul.f32 %v5212_v34, %v5212_v34  ;;  %v1262_v40 = vmul.f32 %v4239_v32, %v1261_v33  ;;  %vm1248_vm8 = vmor %vm1246_vm7, %vm1247_vm6  ;;  %vm1603_vm6 = vcmask 1043456   ;;  %vm1989_vm10 = vcmask 785408  }
 0x227   : > { %v1242_v41 = vmul.f32 %v4241_v53, %v1241_v37  ;;  %v1239_v42 = vsel %vm1238_vm5, %v4235_v20, %v1235_v35  ;;  %vm1528_vm5 = vcmask 261120  }
 0x228   : > { %1214 = vadd.xlane.f32.xlu1 %v1204_v39  ;;  %v1263_v56 = vmul.f32 0.5, %v1262_v40  ;;  %v1290_v48 = vmul.f32 %v1239_v42, %v5127_v44  ;;  %v5232_v44 = vld [vmem:[%s6067_s15] ss:$0 sm:$0xff] }
 0x229   : > { %v1243_v46 = vmul.f32 0.5, %v1242_v41  ;;  %v1093_v39 = vld [vmem:[%s5085_s26] sm:$0x7]  ;;  %s4750_s26 = smov 96  }
 0x22a   : > { %v1264_v55 = vsub.f32 1.5, %v1263_v56  ;;  %v1299_v59 = vmul.f32 %v5223_v49, %v1290_v48  ;;  %v5253_v41 = vperm.slane %v1093_v39, 0 }
 0x22b   : > { %v1244_v47 = vsub.f32 1.5, %v1243_v46 }
 0x22c   : > { %v1265_v62 = vmul.f32 %v4239_v32, %v1264_v55  ;;  %v1308_v63 = vadd.f32 %v5232_v44, %v1299_v59 }
 0x22d   : > { %v1245_v54 = vmul.f32 %v4241_v53, %v1244_v47 }
 0x22e   : > { %v1269_v2 = vsel %vm1268_vm11, %v4239_v32, %v1265_v62  ;;  %v5268_v62 = vperm.slane %v1093_v39, 2 }
 0x22f   : > { %v1249_v57 = vsel %vm1248_vm8, %v4241_v53, %v1245_v54  ;;  %v1293_v4 = vmul.f32 %v1269_v2, %v5135_v51  ;;  %vm1559_vm8 = vcmask 195584  }
 0x230   : > { %v1291_v58 = vmul.f32 %v1249_v57, %v5137_v52  ;;  %v1255_v52 = vmul.f32 %v4237_v29, %v1254_v60 }
 0x231   : > { %v1302_v6 = vmul.f32 %v5223_v49, %v1293_v4 }
 0x232   : > { %v1300_v61 = vmul.f32 %v5223_v49, %v1291_v58  ;;  %v1259_v3 = vsel %vm1258_vm14, %v4237_v29, %v1255_v52 }
 0x233   : > { %v1292_v5 = vmul.f32 %v1259_v3, %v5125_v43  ;;  %v1311_v8 = vadd.f32 %v5232_v44, %v1302_v6 }
 0x234   : > { %v1309_v0 = vadd.f32 %v5232_v44, %v1300_v61 }
 0x235   : > { %v1301_v7 = vmul.f32 %v5223_v49, %v1292_v5 }
 0x236   : > { %v1314_v1 = vpack.c.bf16 %v1309_v0, %v1308_v63 }
 0x237   : > { %v1310_v9 = vadd.f32 %v5232_v44, %v1301_v7 }
 0x238   : > { %1460 = vmatmul.bf16.vlgmr.msra.gmra.mxu0 %v1314_v1  ;;  %1484 = vmatmul.bf16.vlgmr.msra.gmra.mxu1 %v1314_v1 }
 0x239   : > { %1508 = vmatmul.bf16.vlgmr.msra.gmra.mxu2 %v1314_v1  ;;  %v1315_v10 = vpack.c.bf16 %v1311_v8, %v1310_v9 }
 0x248   : > { %1465 = vmatmul.bf16.gmra.mxu0 %v1315_v10  ;;  %1489 = vmatmul.bf16.gmra.mxu1 %v1315_v10 }
 0x249   : > { %1513 = vmatmul.bf16.gmra.mxu2 %v1315_v10 }
 0x292   : > { %v1217_v11 = vpop.xlane.xlu2 %1216 }
 0x293   : > { %v1223_v12 = vmul.f32 %v1217_v11, %v5121_v38 }
 0x295   : > { %v1229_v13 = vadd.f32 1e-05, %v1223_v12 }
 0x297   : > { %4242 = vrsqrt.f32 %v1229_v13  ;;  %vm1286_vm15 = vweird.f32 %v1229_v13 }
 0x29b   : > { %v1215_v51 = vpop.xlane.xlu1 %1214 }
 0x29c   : > { %v1222_v43 = vmul.f32 %v1215_v51, %v5121_v38 }
 0x29d   : > { %v4243_v14 = vpop.eup %4242 }
 0x29e   : > { %v1228_v15 = vadd.f32 1e-05, %v1222_v43  ;;  %v1281_v16 = vmul.f32 %v4243_v14, %v1229_v13  ;;  %vm1287_vm0 = vweird.f32 %v4243_v14 }
 0x29f   : > { %vm1288_vm1 = vmor %vm1286_vm15, %vm1287_vm0 }
 0x2a0   : > { %4244 = vrsqrt.f32 %v1228_v15  ;;  %v1282_v17 = vmul.f32 %v4243_v14, %v1281_v16  ;;  %vm1276_vm3 = vweird.f32 %v1228_v15 }
 0x2a2   : > { %v1283_v18 = vmul.f32 0.5, %v1282_v17 }
 0x2a4   : > { %v1284_v19 = vsub.f32 1.5, %v1283_v18 }
 0x2a6   : > { %v4245_v20 = vpop.eup %4244  ;;  %v1285_v21 = vmul.f32 %v4243_v14, %v1284_v19 }
 0x2a7   : > { %v1271_v23 = vmul.f32 %v4245_v20, %v1228_v15  ;;  %vm1277_vm2 = vweird.f32 %v4245_v20 }
 0x2a8   : > { %v1289_v25 = vsel %vm1288_vm1, %v4243_v14, %v1285_v21  ;;  %vm1278_vm4 = vmor %vm1276_vm3, %vm1277_vm2 }
 0x2a9   : > { %v1272_v24 = vmul.f32 %v4245_v20, %v1271_v23  ;;  %v1295_v28 = vmul.f32 %v1289_v25, %v5205_v22  ;;  %v5255_v22 = vperm.slane %v1093_v39, 1 }
 0x2ab   : > { %v1273_v26 = vmul.f32 0.5, %v1272_v24  ;;  %v1304_v32 = vmul.f32 %v5223_v49, %v1295_v28 }
 0x2ad   : > { %v1274_v27 = vsub.f32 1.5, %v1273_v26  ;;  %v1313_v37 = vadd.f32 %v5232_v44, %v1304_v32 }
 0x2af   : > { %v1275_v29 = vmul.f32 %v4245_v20, %v1274_v27 }
 0x2b1   : > { %v1279_v30 = vsel %vm1278_vm4, %v4245_v20, %v1275_v29 }
 0x2b2   : > { %v1294_v31 = vmul.f32 %v1279_v30, %v5212_v34 }
 0x2b4   : > { %v1303_v53 = vmul.f32 %v5223_v49, %v1294_v31 }
 0x2b5   : > { %v1461_v33 = vpop.f32.mrf.mxu0  ;;  %v1485_v35 = vpop.f32.mrf.mxu1 }
 0x2b6   : > { %v1312_v36 = vadd.f32 %v5232_v44, %v1303_v53  ;;  %v1462_v46 = vadd.f32 %v1461_v33, %v5253_v41  ;;  %v1486_v56 = vadd.f32 %v1485_v35, %v5255_v22 }
 0x2b8   : > { %v1316_v40 = vpack.c.bf16 %v1313_v37, %v1312_v36 }
 0x2ba   : > { %1470 = vmatmul.bf16.gmra.mxu0 %v1316_v40  ;;  %1494 = vmatmul.bf16.gmra.mxu1 %v1316_v40 }
 0x2bb   : > { %1518 = vmatmul.bf16.vlgmr.msra.gmra.mxu3 %v1316_v40 }
 0x2bc   : > { %v1509_v34 = vpop.f32.mrf.mxu2 }
 0x2bd   : > { %v1463_v42 = vpop.f32.mrf.mxu0  ;;  %v1487_v45 = vpop.f32.mrf.mxu1  ;;  %v1510_v4 = vadd.f32 %v1509_v34, %v5268_v62 }
 0x2be   : > { %v1464_v47 = vadd.f32 %v1463_v42, %v5253_v41  ;;  %v1488_v48 = vadd.f32 %v1487_v45, %v5255_v22 }
 0x2c0   : > { %v1524_v49 = vpack.c.bf16 %v1464_v47, %v1462_v46  ;;  %v1526_v50 = vpack.c.bf16 %v1488_v48, %v1486_v56  ;;  %v1055_v47 = vlaneseq }
 0x2c2   : > { %1633 = vrot.lane.b32.xlu1 %v1526_v50, %s4750_s26  ;;  %1627 = vrot.lane.b32.xlu2 %v1524_v49, %s4750_s26  ;;  %v1536_v2 = vsel %vm1528_vm5, %v1526_v50, 0  ;;  %v1056_v48 = vand.u32 127, %v1055_v47 }
 0x2c4   : > { %v1511_v54 = vpop.f32.mrf.mxu2  ;;  %vm1057_vm7 = vcmp.lt.s32.totalorder %v1056_v48, 17 }
 0x2c5   : > { %v1466_v55 = vpop.f32.mrf.mxu0  ;;  %v1490_v57 = vpop.f32.mrf.mxu1  ;;  %v1512_v1 = vadd.f32 %v1511_v54, %v5268_v62 }
 0x2c6   : > { %v1467_v58 = vadd.f32 %v1466_v55, %v5253_v41  ;;  %v1491_v59 = vadd.f32 %v1490_v57, %v5255_v22 }
 0x2c7   : > { %v5282_v5 = vpack.c.bf16 %v1512_v1, %v1510_v4 }
 0x2c8   : > { %v1525_v44 = vpack.c.bf16 %v1467_v58, %v1467_v58  ;;  %v1527_v60 = vpack.c.bf16 %v1491_v59, %v1491_v59 }
 0x2ca   : > { %1635 = vrot.lane.b32.xlu0 %v1527_v60, %s4750_s26  ;;  %1629 = vrot.lane.b32.xlu1 %v1525_v44, %s4750_s26  ;;  %v1539_v61 = vsel %vm1528_vm5, %v1527_v60, 0 }
 0x2cb   : > { %1740 = vrot.lane.b32.xlu2 %v1526_v50, %s4751_s5  ;;  %1547 = vmatpush.bf16.xpose.msrb.mxu3 %v1539_v61 }
 0x2cc   : > { %v1514_v63 = vpop.f32.mrf.mxu2 }
 0x2cd   : > { %v1515_v0 = vadd.f32 %v1514_v63, %v5268_v62  ;;  %v1468_v6 = vpop.f32.mrf.mxu0  ;;  %v1492_v7 = vpop.f32.mrf.mxu1 }
 0x2ce   : > { %v1469_v10 = vadd.f32 %v1468_v6, %v5253_v41  ;;  %v1493_v11 = vadd.f32 %v1492_v7, %v5255_v22 }
 0x2cf   : > { %v5272_v52 = vpack.c.bf16 %v1515_v0, %v1515_v0 }
 0x2d1   : > { %v1605_v3 = vsel %vm1603_vm6, %v5272_v52, 0 }
 0x2d2   : > { %1742 = vrot.lane.b32.xlu0 %v1527_v60, %s4751_s5  ;;  %1845 = vrot.lane.b32.xlu1 %v1526_v50, %s4752_s28 }
 0x2d3   : > { %1736 = vrot.lane.b32.xlu2 %v1524_v49, %s4751_s5  ;;  %1548 = vmatpush.bf16.xpose.msrb.mxu3 %v1536_v2 }
 0x2d4   : > { %v1516_v63 = vpop.f32.mrf.mxu2 }
 0x2da   : > { %1843 = vrot.lane.b32.xlu1 %v1525_v44, %s4752_s28  ;;  %1841 = vrot.lane.b32.xlu0 %v1524_v49, %s4752_s28 }
 0x2db   : > { %1613 = vmatpush.bf16.msra.mxu3 %v1605_v3  ;;  %1738 = vrot.lane.b32.xlu2 %v1525_v44, %s4751_s5 }
 0x2dc   : > { %3731 = vmatmul.msk.bf16.vlgmr.msrb.gmra.mxu3 %vm1528_vm5, %v1524_v49  ;;  %v4753_v49 = vmov -1e+09  }
 0x2dd   : > { %v5343_v50 = vsel %vm1057_vm7, 0.0, %v4753_v49 }
 0x2df   : > { %1614 = vmatpush.bf16.msra.mxu3 %v5282_v5 }
 0x2e2   : > { %1847 = vrot.lane.b32.xlu0 %v1527_v60, %s4752_s28 }
 0x2ec   : > { %3732 = vmatmul.msk.bf16.gmra.mxu3 %vm1528_vm5, %v1525_v44 }
 0x31c   : > { %v1628_v18 = vpop.permute.xlu2 %1627 }
 0x325   : > { %v1741_v28 = vpop.permute.xlu2 %1740 }
 0x326   : > { %v1751_v31 = vsel %vm1528_vm5, %v1741_v28, 0 }
 0x32d   : > { %v1737_v33 = vpop.permute.xlu2 %1736 }
 0x334   : > { %v1634_v21 = vpop.permute.xlu1 %1633 }
 0x335   : > { %v1644_v26 = vsel %vm1528_vm5, %v1634_v21, 0  ;;  %v1739_v34 = vpop.permute.xlu2 %1738 }
 0x337   : > { %v1471_v8 = vpop.f32.mrf.mxu0  ;;  %v1495_v9 = vpop.f32.mrf.mxu1 }
 0x338   : > { %v1472_v12 = vadd.f32 %v1471_v8, %v5253_v41  ;;  %v1496_v13 = vadd.f32 %v1495_v9, %v5255_v22 }
 0x33a   : > { %v5295_v51 = vpack.c.bf16 %v1472_v12, %v1469_v10  ;;  %v1995_v43 = vpack.c.bf16 %v1496_v13, %v1493_v11 }
 0x33c   : > { %v1636_v14 = vpop.permute.xlu0 %1635  ;;  %2093 = vrot.lane.b32.xlu1 %v5295_v51, %s4750_s26  ;;  %2099 = vrot.lane.b32.xlu2 %v1995_v43, %s4750_s26  ;;  %v1630_v53 = vpop.permute.xlu1 %1629  ;;  %v2004_v39 = vsel %vm1528_vm5, %v1995_v43, 0 }
 0x33d   : > { %v1647_v15 = vsel %vm1528_vm5, %v1636_v14, 0 }
 0x33e   : > { %1655 = vmatpush.bf16.xpose.msrb.mxu0 %v1647_v15  ;;  %v1519_v29 = vpop.f32.mrf.mxu3 }
 0x33f   : > { %v1473_v16 = vpop.f32.mrf.mxu0  ;;  %v1497_v17 = vpop.f32.mrf.mxu1  ;;  %v1520_v0 = vadd.f32 %v1519_v29, %v5268_v62 }
 0x340   : > { %v1474_v19 = vadd.f32 %v1473_v16, %v5253_v41  ;;  %v1498_v20 = vadd.f32 %v1497_v17, %v5255_v22 }
 0x342   : > { %v1994_v23 = vpack.c.bf16 %v1474_v19, %v1474_v19  ;;  %v1996_v24 = vpack.c.bf16 %v1498_v20, %v1498_v20 }
 0x344   : > { %v1743_v25 = vpop.permute.xlu0 %1742  ;;  %2095 = vrot.lane.b32.xlu1 %v1994_v23, %s4750_s26  ;;  %2101 = vrot.lane.b32.xlu0 %v1996_v24, %s4750_s26  ;;  %v2007_v32 = vsel %vm1528_vm5, %v1996_v24, 0  ;;  %v1846_v40 = vpop.permute.xlu1 %1845 }
 0x345   : > { %2206 = vrot.lane.b32.xlu2 %v1995_v43, %s4751_s5  ;;  %v1754_v27 = vsel %vm1528_vm5, %v1743_v25, 0  ;;  %v1856_v41 = vsel %vm1528_vm5, %v1846_v40, 0 }
 0x346   : > { %1656 = vmatpush.bf16.xpose.msrb.mxu0 %v1644_v26  ;;  %1762 = vmatpush.bf16.xpose.msrb.mxu2 %v1754_v27  ;;  %v1521_v37 = vpop.f32.mrf.mxu3 }
 0x347   : > { %v1522_v3 = vadd.f32 %v1521_v37, %v5268_v62 }
 0x349   : > { %v5367_v4 = vpack.c.bf16 %v1522_v3, %v1522_v3 }
 0x34c   : > { %2311 = vrot.lane.b32.xlu1 %v1995_v43, %s4752_s28  ;;  %2208 = vrot.lane.b32.xlu0 %v1996_v24, %s4751_s5  ;;  %v1842_v30 = vpop.permute.xlu0 %1841  ;;  %v1844_v56 = vpop.permute.xlu1 %1843 }
 0x34d   : > { %2202 = vrot.lane.b32.xlu2 %v5295_v51, %s4751_s5  ;;  %3735 = vmatmul.msk.bf16.vlgmr.msrb.gmra.mxu0 %vm1528_vm5, %v1628_v18 }
 0x34e   : > { %1763 = vmatpush.bf16.xpose.msrb.mxu2 %v1751_v31 }
 0x354   : > { %1811 = vrot.lane.b32.xlu1 %v5272_v52, %s4751_s5  ;;  %2307 = vrot.lane.b32.xlu0 %v5295_v51, %s4752_s28  ;;  %v1848_v35 = vpop.permute.xlu0 %1847 }
 0x355   : > { %v1859_v36 = vsel %vm1528_vm5, %v1848_v35, 0  ;;  %1706 = vrot.lane.b32.xlu2 %v5272_v52, %s4750_s26  ;;  %3739 = vmatmul.msk.bf16.vlgmr.msrb.gmra.mxu2 %vm1528_vm5, %v1737_v33 }
 0x356   : > { %2015 = vmatpush.bf16.xpose.msra.mxu2 %v2007_v32  ;;  %1867 = vmatpush.bf16.xpose.msra.mxu0 %v1859_v36 }
 0x35c   : > { %1914 = vrot.lane.b32.xlu1 %v5282_v5, %s4752_s28  ;;  %1704 = vrot.lane.b32.xlu0 %v5282_v5, %s4750_s26 }
 0x35d   : > { %1916 = vrot.lane.b32.xlu2 %v5272_v52, %s4752_s28  ;;  %3736 = vmatmul.msk.bf16.gmra.mxu0 %vm1528_vm5, %v1630_v53  ;;  %v1517_v52 = vadd.f32 %v1516_v63, %v5268_v62 }
 0x35e   : > { %2016 = vmatpush.bf16.xpose.msra.mxu2 %v2004_v39  ;;  %1868 = vmatpush.bf16.xpose.msra.mxu0 %v1856_v41 }
 0x35f   : > { %v1550_v22 = vpop.f32.mrf.mxu3  ;;  %v5362_v2 = vpack.c.bf16 %v1520_v0, %v1517_v52 }
 0x360   : > { %v5351_v57 = vadd.f32 %v1550_v22, %v5343_v50 }
 0x362   : > { %v1560_v44 = vsel %vm1559_vm8, %v5351_v57, -inf }
 0x364   : > { %2309 = vrot.lane.b32.xlu1 %v1994_v23, %s4752_s28  ;;  %1809 = vrot.lane.b32.xlu0 %v5282_v5, %s4751_s5 }
 0x365   : > { %2204 = vrot.lane.b32.xlu2 %v1994_v23, %s4751_s5  ;;  %3740 = vmatmul.msk.bf16.gmra.mxu2 %vm1528_vm5, %v1739_v34 }
 0x367   : > { %v1552_v42 = vpop.f32.mrf.mxu3 }
 0x368   : > { %v5346_v54 = vadd.f32 %v1552_v42, %v5343_v50 }
 0x36a   : > { %v1563_v55 = vsel %vm1559_vm8, %v5346_v54, -inf }
 0x36c   : > { %2313 = vrot.lane.b32.xlu0 %v1996_v24, %s4752_s28 }
 0x36d   : > { %3743 = vmatmul.msk.bf16.vlgmr.msra.gmra.mxu0 %vm1528_vm5, %v1842_v30 }
 0x36f   : > { %v1555_v45 = vpop.f32.mrf.mxu3 }
 0x370   : > { %v5354_v58 = vadd.f32 %v1555_v45, %v5343_v50 }
 0x372   : > { %v1566_v59 = vsel %vm1559_vm8, %v5354_v58, -inf }
 0x375   : > { %3747 = vmatmul.msk.bf16.vlgmr.msra.gmra.mxu2 %vm1528_vm5, %v5295_v51 }
 0x377   : > { %v1557_v46 = vpop.f32.mrf.mxu3 }
 0x37d   : > { %3744 = vmatmul.msk.bf16.gmra.mxu0 %vm1528_vm5, %v1844_v56 }
 0x385   : > { %3748 = vmatmul.msk.bf16.gmra.mxu2 %vm1528_vm5, %v1994_v23 }
 0x38e   : > { %1564 = vmax.xlane.f32.xlu2 %v1563_v55 }
 0x396   : > { %1567 = vmax.xlane.f32.xlu2 %v1566_v59  ;;  %v2100_v60 = vpop.permute.xlu2 %2099  ;;  %1561 = vmax.xlane.f32.xlu0 %v1560_v44 }
 0x397   : > { %v2110_v12 = vsel %vm1528_vm5, %v2100_v60, 0 }
 0x39f   : > { %v2207_v61 = vpop.permute.xlu2 %2206 }
 0x3a0   : > { %v2217_v14 = vsel %vm1528_vm5, %v2207_v61, 0 }
 0x3a7   : > { %v2203_v1 = vpop.permute.xlu2 %2202 }
 0x3aa   : > { %2170 = vrot.lane.b32.xlu0 %v5362_v2, %s4750_s26 }
 0x3ae   : > { %2172 = vrot.lane.b32.xlu2 %v5367_v4, %s4750_s26  ;;  %v2094_v5 = vpop.permute.xlu1 %2093 }
 0x3af   : > { %v1707_v6 = vpop.permute.xlu2 %1706 }
 0x3b0   : > { %v1716_v7 = vsel %vm1603_vm6, %v1707_v6, 0 }
 0x3b1   : > { %1724 = vmatpush.bf16.msrb.mxu1 %v1716_v7 }
 0x3b6   : > { %v2096_v8 = vpop.permute.xlu1 %2095  ;;  %v2102_v9 = vpop.permute.xlu0 %2101 }
 0x3b7   : > { %v2113_v10 = vsel %vm1528_vm5, %v2102_v9, 0  ;;  %v1917_v18 = vpop.permute.xlu2 %1916 }
 0x3b8   : > { %2121 = vmatpush.bf16.xpose.msrb.mxu0 %v2113_v10  ;;  %v1926_v21 = vsel %vm1603_vm6, %v1917_v18, 0 }
 0x3be   : > { %v2312_v11 = vpop.permute.xlu1 %2311  ;;  %v2209_v62 = vpop.permute.xlu0 %2208 }
 0x3bf   : > { %v2220_v13 = vsel %vm1528_vm5, %v2209_v62, 0  ;;  %v2205_v32 = vpop.permute.xlu2 %2204  ;;  %v2322_v22 = vsel %vm1528_vm5, %v2312_v11, 0 }
 0x3c0   : > { %2122 = vmatpush.bf16.xpose.msrb.mxu0 %v2110_v12  ;;  %2228 = vmatpush.bf16.xpose.msrb.mxu2 %v2220_v13 }
 0x3c6   : > { %v1812_v51 = vpop.permute.xlu1 %1811  ;;  %v2308_v43 = vpop.permute.xlu0 %2307 }
 0x3c7   : > { %v1821_v15 = vsel %vm1603_vm6, %v1812_v51, 0  ;;  %3751 = vmatmul.msk.bf16.vlgmr.msrb.gmra.mxu0 %vm1528_vm5, %v2094_v5 }
 0x3c8   : > { %1829 = vmatpush.bf16.msrb.mxu3 %v1821_v15  ;;  %2229 = vmatpush.bf16.xpose.msrb.mxu2 %v2217_v14 }
 0x3ca   : > { %v1658_v16 = vpop.f32.mrf.mxu0 }
 0x3cb   : > { %v5379_v17 = vadd.f32 %v1658_v16, %v5343_v50 }
 0x3cd   : > { %v1667_v19 = vsel %vm1559_vm8, %v5379_v17, -inf }
 0x3ce   : > { %v1705_v20 = vpop.permute.xlu0 %1704  ;;  %1668 = vmax.xlane.f32.xlu1 %v1667_v19  ;;  %v1915_v24 = vpop.permute.xlu1 %1914 }
 0x3cf   : > { %1725 = vmatpush.bf16.msrb.mxu1 %v1705_v20  ;;  %3755 = vmatmul.msk.bf16.vlgmr.msrb.gmra.mxu2 %vm1528_vm5, %v2203_v1 }
 0x3d2   : > { %v1660_v23 = vpop.f32.mrf.mxu0 }
 0x3d3   : > { %1934 = vmatpush.bf16.msra.mxu1 %v1926_v21  ;;  %v5397_v33 = vadd.f32 %v1660_v23, %v5343_v50 }
 0x3d5   : > { %v1670_v41 = vsel %vm1559_vm8, %v5397_v33, -inf }
 0x3d6   : > { %v1810_v25 = vpop.permute.xlu0 %1809  ;;  %v2310_v44 = vpop.permute.xlu1 %2309 }
 0x3d7   : > { %1935 = vmatpush.bf16.msra.mxu1 %v1915_v24  ;;  %1830 = vmatpush.bf16.msrb.mxu3 %v1810_v25 }
 0x3d8   : > { %3752 = vmatmul.msk.bf16.gmra.mxu0 %vm1528_vm5, %v2096_v8  ;;  %v1765_v26 = vpop.f32.mrf.mxu2 }
 0x3d9   : > { %v5387_v27 = vadd.f32 %v1765_v26, %v5343_v50 }
 0x3da   : > { %v1663_v28 = vpop.f32.mrf.mxu0 }
 0x3db   : > { %v5390_v29 = vadd.f32 %v1663_v28, %v5343_v50  ;;  %v1774_v30 = vsel %vm1559_vm8, %v5387_v27, -inf }
 0x3dc   : > { %1775 = vmax.xlane.f32.xlu0 %v1774_v30 }
 0x3dd   : > { %v1673_v31 = vsel %vm1559_vm8, %v5390_v29, -inf }
 0x3de   : > { %v2314_v53 = vpop.permute.xlu0 %2313  ;;  %1674 = vmax.xlane.f32.xlu1 %v1673_v31 }
 0x3df   : > { %v2325_v35 = vsel %vm1528_vm5, %v2314_v53, 0  ;;  %3756 = vmatmul.msk.bf16.gmra.mxu2 %vm1528_vm5, %v2205_v32 }
 0x3e0   : > { %v1767_v36 = vpop.f32.mrf.mxu2  ;;  %2333 = vmatpush.bf16.xpose.msra.mxu0 %v2325_v35 }
 0x3e1   : > { %v5402_v37 = vadd.f32 %v1767_v36, %v5343_v50 }
 0x3e2   : > { %v1665_v39 = vpop.f32.mrf.mxu0 }
 0x3e3   : > { %v1777_v40 = vsel %vm1559_vm8, %v5402_v37, -inf }
 0x3e4   : > { %1778 = vmax.xlane.f32.xlu2 %v1777_v40  ;;  %1671 = vmax.xlane.f32.xlu0 %v1670_v41 }
 0x3e8   : > { %v1770_v34 = vpop.f32.mrf.mxu2  ;;  %2334 = vmatpush.bf16.xpose.msra.mxu0 %v2322_v22 }
 0x3e9   : > { %v5410_v42 = vadd.f32 %v1770_v34, %v5343_v50 }
 0x3ea   : > { %v1870_v45 = vpop.f32.mrf.mxu0 }
 0x3eb   : > { %v1780_v46 = vsel %vm1559_vm8, %v5410_v42, -inf }
 0x3ec   : > { %1781 = vmax.xlane.f32.xlu2 %v1780_v46 }
 0x3ef   : > { %3759 = vmatmul.msk.bf16.vlgmr.msra.gmra.mxu0 %vm1528_vm5, %v2308_v43  ;;  %v5441_v43 = vadd.f32 %v1870_v45, %v5343_v50 }
 0x3f0   : > { %v1772_v56 = vpop.f32.mrf.mxu2 }
 0x3f2   : > { %v1872_v47 = vpop.f32.mrf.mxu0 }
 0x3f3   : > { %v5428_v10 = vadd.f32 %v1872_v47, %v5343_v50 }
 0x3f8   : > { %v2018_v48 = vpop.f32.mrf.mxu2 }
 0x3f9   : > { %v5457_v20 = vadd.f32 %v2018_v48, %v5343_v50 }
 0x3fa   : > { %v1875_v49 = vpop.f32.mrf.mxu0 }
 0x3fb   : > { %v5416_v55 = vadd.f32 %v1875_v49, %v5343_v50  ;;  %v2027_v21 = vsel %vm1559_vm8, %v5457_v20, -inf }
 0x3fd   : > { %v1885_v59 = vsel %vm1559_vm8, %v5416_v55, -inf }
 0x3fe   : > { %1886 = vmax.xlane.f32.xlu2 %v1885_v59 }
 0x3ff   : > { %3760 = vmatmul.msk.bf16.gmra.mxu0 %vm1528_vm5, %v2310_v44 }
 0x400   : > { %v2020_v60 = vpop.f32.mrf.mxu2 }
 0x401   : > { %v1565_v61 = vpop.xlane.xlu2 %1564  ;;  %v5438_v13 = vadd.f32 %v2020_v60, %v5343_v50 }
 0x402   : > { %v1570_v63 = vsub.f32 %v5346_v54, %v1565_v61  ;;  %v1877_v0 = vpop.f32.mrf.mxu0 }
 0x403   : > { %v2030_v14 = vsel %vm1559_vm8, %v5438_v13, -inf }
 0x404   : > { %v1574_v52 = vmul.f32 1.442695, %v1570_v63 }
 0x406   : > { %4246 = vpow2.f32 %v1574_v52 }
 0x408   : > { %v2023_v1 = vpop.f32.mrf.mxu2 }
 0x409   : > { %v1562_v3 = vpop.xlane.xlu0 %1561  ;;  %v1568_v54 = vpop.xlane.xlu2 %1567  ;;  %v5448_v15 = vadd.f32 %v2023_v1, %v5343_v50 }
 0x40a   : > { %v1569_v5 = vsub.f32 %v5351_v57, %v1562_v3  ;;  %v1571_v62 = vsub.f32 %v5354_v58, %v1568_v54  ;;  %v1882_v57 = vsel %vm1559_vm8, %v5428_v10, -inf  ;;  %v1879_v58 = vsel %vm1559_vm8, %v5441_v43, -inf }
 0x40b   : > { %v2033_v18 = vsel %vm1559_vm8, %v5448_v15, -inf }
 0x40c   : > { %v5423_v6 = vpop.eup %4246  ;;  %v1572_v7 = vmul.f32 1.442695, %v1569_v5  ;;  %v1576_v51 = vmul.f32 1.442695, %v1571_v62 }
 0x40d   : > { %v1581_v8 = vsel %vm1559_vm8, %v5423_v6, 0.0 }
 0x40e   : > { %1582 = vadd.xlane.f32.xlu0 %v1581_v8  ;;  %4248 = vpow2.f32 %v1572_v7 }
 0x40f   : > { %4250 = vpow2.f32 %v1576_v51 }
 0x410   : > { %v2025_v9 = vpop.f32.mrf.mxu2 }
 0x411   : > { %v5469_v30 = vpop.permute.xlu2 %2172 }
 0x414   : > { %v5430_v11 = vpop.eup %4248 }
 0x415   : > { %v1578_v12 = vsel %vm1559_vm8, %v5430_v11, 0.0  ;;  %v5450_v16 = vpop.eup %4250 }
 0x416   : > { %1883 = vmax.xlane.f32.xlu0 %v1882_v57  ;;  %1579 = vadd.xlane.f32.xlu1 %v1578_v12  ;;  %v1584_v19 = vsel %vm1559_vm8, %v5450_v16, 0.0 }
 0x41c   : > { %v5478_v41 = vpop.permute.xlu0 %2170 }
 0x41e   : > { %2031 = vmax.xlane.f32.xlu0 %v2030_v14  ;;  %1880 = vmax.xlane.f32.xlu1 %v1879_v58 }
 0x426   : > { %2034 = vmax.xlane.f32.xlu0 %v2033_v18  ;;  %1585 = vadd.xlane.f32.xlu1 %v1584_v19 }
 0x42e   : > { %2028 = vmax.xlane.f32.xlu1 %v2027_v21 }
 0x441   : > { %v1669_v40 = vpop.xlane.xlu1 %1668 }
 0x442   : > { %v1676_v45 = vsub.f32 %v5379_v17, %v1669_v40 }
 0x444   : > { %v2124_v23 = vpop.f32.mrf.mxu0  ;;  %v1679_v49 = vmul.f32 1.442695, %v1676_v45 }
 0x445   : > { %v5462_v24 = vadd.f32 %v2124_v23, %v5343_v50 }
 0x446   : > { %4252 = vpow2.f32 %v1679_v49 }
 0x447   : > { %v2133_v25 = vsel %vm1559_vm8, %v5462_v24, -inf }
 0x448   : > { %2134 = vmax.xlane.f32.xlu1 %v2133_v25 }
 0x44c   : > { %v2126_v26 = vpop.f32.mrf.mxu0  ;;  %v5498_v3 = vpop.eup %4252 }
 0x44d   : > { %v5467_v28 = vadd.f32 %v2126_v26, %v5343_v50  ;;  %v1685_v54 = vsel %vm1559_vm8, %v5498_v3, 0.0 }
 0x44f   : > { %v2136_v31 = vsel %vm1559_vm8, %v5467_v28, -inf  ;;  %v1776_v60 = vpop.xlane.xlu0 %1775 }
 0x450   : > { %2137 = vmax.xlane.f32.xlu2 %v2136_v31  ;;  %v1783_v0 = vsub.f32 %v5387_v27, %v1776_v60 }
 0x451   : > { %v1675_v12 = vpop.xlane.xlu1 %1674 }
 0x452   : > { %v2231_v32 = vpop.f32.mrf.mxu2  ;;  %v1786_v1 = vmul.f32 1.442695, %v1783_v0 }
 0x453   : > { %v5474_v53 = vadd.f32 %v2231_v32, %v5343_v50 }
 0x455   : > { %v2129_v35 = vpop.f32.mrf.mxu0  ;;  %v2240_v36 = vsel %vm1559_vm8, %v5474_v53, -inf }
 0x456   : > { %2241 = vmax.xlane.f32.xlu1 %v2240_v36  ;;  %v5481_v22 = vadd.f32 %v2129_v35, %v5343_v50 }
 0x457   : > { %v1779_v39 = vpop.xlane.xlu2 %1778  ;;  %v1672_v14 = vpop.xlane.xlu0 %1671 }
 0x458   : > { %v2139_v48 = vsel %vm1559_vm8, %v5481_v22, -inf  ;;  %v1784_v8 = vsub.f32 %v5402_v37, %v1779_v39  ;;  %v1678_v37 = vsub.f32 %v5390_v29, %v1675_v12  ;;  %v1677_v21 = vsub.f32 %v5397_v33, %v1672_v14 }
 0x45a   : > { %v2233_v34 = vpop.f32.mrf.mxu2  ;;  %v1788_v57 = vmul.f32 1.442695, %v1784_v8  ;;  %v1683_v25 = vmul.f32 1.442695, %v1678_v37  ;;  %v1681_v31 = vmul.f32 1.442695, %v1677_v21 }
 0x45b   : > { %v5485_v46 = vadd.f32 %v2233_v34, %v5343_v50 }
 0x45d   : > { %v2131_v56 = vpop.f32.mrf.mxu0  ;;  %v2243_v47 = vsel %vm1559_vm8, %v5485_v46, -inf }
 0x45e   : > { %2244 = vmax.xlane.f32.xlu0 %v2243_v47  ;;  %2140 = vmax.xlane.f32.xlu1 %v2139_v48 }
 0x45f   : > { %v1782_v59 = vpop.xlane.xlu2 %1781 }
 0x460   : > { %v1785_v44 = vsub.f32 %v5410_v42, %v1782_v59 }
 0x462   : > { %v1790_v61 = vmul.f32 1.442695, %v1785_v44  ;;  %v2236_v63 = vpop.f32.mrf.mxu2 }
 0x463   : > { %v5493_v17 = vadd.f32 %v2236_v63, %v5343_v50 }
 0x464   : > { %4254 = vpow2.f32 %v1790_v61 }
 0x465   : > { %v2246_v52 = vsel %vm1559_vm8, %v5493_v17, -inf  ;;  %4256 = vpow2.f32 %v1786_v1  ;;  %v2071_v1 = vsel %vm1603_vm6, %v5367_v4, 0 }
 0x466   : > { %2247 = vmax.xlane.f32.xlu1 %v2246_v52  ;;  %4258 = vpow2.f32 %v1788_v57 }
 0x467   : > { %4260 = vpow2.f32 %v1683_v25 }
 0x468   : > { %4262 = vpow2.f32 %v1681_v31 }
 0x46a   : > { %v5500_v5 = vpop.eup %4254  ;;  %v2238_v42 = vpop.f32.mrf.mxu2 }
 0x46b   : > { %v1798_v7 = vsel %vm1559_vm8, %v5500_v5, 0.0  ;;  %v5512_v51 = vpop.eup %4256 }
 0x46c   : > { %v2336_v9 = vpop.f32.mrf.mxu0  ;;  %1799 = vadd.xlane.f32.xlu2 %v1798_v7  ;;  %v1792_v19 = vsel %vm1559_vm8, %v5512_v51, 0.0  ;;  %v5523_v26 = vpop.eup %4258 }
 0x46d   : > { %v5506_v27 = vadd.f32 %v2336_v9, %v5343_v50  ;;  %v1795_v35 = vsel %vm1559_vm8, %v5523_v26, 0.0  ;;  %v5532_v36 = vpop.eup %4260 }
 0x46e   : > { %1686 = vadd.xlane.f32.xlu1 %v1685_v54  ;;  %v5534_v39 = vpop.eup %4262  ;;  %v1691_v34 = vsel %vm1559_vm8, %v5532_v36, 0.0 }
 0x46f   : > { %v2345_v62 = vsel %vm1559_vm8, %v5506_v27, -inf }
 0x470   : > { %2346 = vmax.xlane.f32.xlu0 %v2345_v62 }
 0x471   : > { %v1887_v54 = vpop.xlane.xlu2 %1886 }
 0x472   : > { %v1890_v14 = vsub.f32 %v5416_v55, %v1887_v54 }
 0x474   : > { %v2338_v58 = vpop.f32.mrf.mxu0  ;;  %v1895_v37 = vmul.f32 1.442695, %v1890_v14 }
 0x475   : > { %v5516_v18 = vadd.f32 %v2338_v58, %v5343_v50 }
 0x476   : > { %1793 = vadd.xlane.f32.xlu1 %v1792_v19 }
 0x477   : > { %v2348_v23 = vsel %vm1559_vm8, %v5516_v18, -inf }
 0x478   : > { %2349 = vmax.xlane.f32.xlu0 %v2348_v23 }
 0x47c   : > { %v2341_v29 = vpop.f32.mrf.mxu0 }
 0x47d   : > { %v5526_v32 = vadd.f32 %v2341_v29, %v5343_v50  ;;  %v1688_v50 = vsel %vm1559_vm8, %v5534_v39, 0.0 }
 0x47e   : > { %1796 = vadd.xlane.f32.xlu1 %v1795_v35 }
 0x47f   : > { %v2351_v33 = vsel %vm1559_vm8, %v5526_v32, -inf }
 0x480   : > { %2352 = vmax.xlane.f32.xlu0 %v2351_v33 }
 0x481   : > { %v1583_v45 = vpop.xlane.xlu0 %1582 }
 0x482   : > { %4264 = vrcp.f32 %v1583_v45 }
 0x484   : > { %v2343_v40 = vpop.f32.mrf.mxu0 }
 0x486   : > { %1692 = vadd.xlane.f32.xlu1 %v1691_v34 }
 0x488   : > { %1689 = vadd.xlane.f32.xlu0 %v1688_v50  ;;  %v4265_v47 = vpop.eup %4264 }
 0x489   : > { %v1580_v56 = vpop.xlane.xlu1 %1579  ;;  %v1884_v48 = vpop.xlane.xlu0 %1883  ;;  %v1591_v59 = vmul.f32 %v4265_v47, %v5423_v6 }
 0x48a   : > { %4266 = vrcp.f32 %v1580_v56  ;;  %v1889_v0 = vsub.f32 %v5428_v10, %v1884_v48 }
 0x48c   : > { %v1893_v42 = vmul.f32 1.442695, %v1889_v0 }
 0x490   : > { %v4267_v49 = vpop.eup %4266 }
 0x491   : > { %v1590_v44 = vmul.f32 %v4267_v49, %v5430_v11  ;;  %v1881_v60 = vpop.xlane.xlu1 %1880  ;;  %v2032_v7 = vpop.xlane.xlu0 %2031 }
 0x492   : > { %v1888_v61 = vsub.f32 %v5441_v43, %v1881_v60  ;;  %v2037_v10 = vsub.f32 %v5438_v13, %v2032_v7 }
 0x493   : > { %v1593_v63 = vpack.c.bf16 %v1591_v59, %v1590_v44 }
 0x494   : > { %v1891_v52 = vmul.f32 1.442695, %v1888_v61  ;;  %v2041_v9 = vmul.f32 1.442695, %v2037_v10 }
 0x495   : > { %3733 = vmatmul.msk.bf16.vlgmr.msra.gmra.mxu3 %vm1559_vm8, %v1593_v63 }
 0x496   : > { %4268 = vpow2.f32 %v1891_v52  ;;  %2079 = vmatpush.bf16.msra.mxu3 %v2071_v1 }
 0x499   : > { %v1586_v8 = vpop.xlane.xlu1 %1585  ;;  %v2035_v31 = vpop.xlane.xlu0 %2034 }
 0x49a   : > { %4270 = vrcp.f32 %v1586_v8  ;;  %2080 = vmatpush.bf16.msra.mxu3 %v5362_v2  ;;  %v2038_v35 = vsub.f32 %v5448_v15, %v2035_v31 }
 0x49b   : > { %4272 = vpow2.f32 %v1893_v42 }
 0x49c   : > { %2277 = vrot.lane.b32.xlu0 %v5367_v4, %s4751_s5  ;;  %v5550_v6 = vpop.eup %4268  ;;  %4274 = vpow2.f32 %v2041_v9  ;;  %v2043_v34 = vmul.f32 1.442695, %v2038_v35 }
 0x49d   : > { %v1897_v11 = vsel %vm1559_vm8, %v5550_v6, 0.0  ;;  %4276 = vpow2.f32 %v1895_v37 }
 0x49e   : > { %1898 = vadd.xlane.f32.xlu2 %v1897_v11 }
 0x4a0   : > { %v4271_v43 = vpop.eup %4270 }
 0x4a1   : > { %v1592_v62 = vmul.f32 %v4271_v43, %v5450_v16  ;;  %v5556_v57 = vpop.eup %4272  ;;  %v2029_v16 = vpop.xlane.xlu1 %2028 }
 0x4a2   : > { %v1900_v13 = vsel %vm1559_vm8, %v5556_v57, 0.0  ;;  %v5562_v58 = vpop.eup %4274  ;;  %v2036_v55 = vsub.f32 %v5457_v20, %v2029_v16 }
 0x4a3   : > { %v1594_v12 = vpack.c.bf16 %v1592_v62, %v1592_v62  ;;  %v2048_v19 = vsel %vm1559_vm8, %v5562_v58, 0.0  ;;  %v5566_v21 = vpop.eup %4276 }
 0x4a4   : > { %v1903_v23 = vsel %vm1559_vm8, %v5566_v21, 0.0  ;;  %v2039_v25 = vmul.f32 1.442695, %v2036_v55 }
 0x4a5   : > { %3734 = vmatmul.msk.bf16.gmra.mxu3 %vm1559_vm8, %v1594_v12 }
 0x4a6   : > { %1901 = vadd.xlane.f32.xlu2 %v1900_v13  ;;  %4278 = vpow2.f32 %v2039_v25 }
 0x4ac   : > { %v5573_v45 = vpop.eup %4278 }
 0x4ad   : > { %v2045_v56 = vsel %vm1559_vm8, %v5573_v45, 0.0 }
 0x4ae   : > { %2049 = vadd.xlane.f32.xlu2 %v2048_v19 }
 0x4b6   : > { %1904 = vadd.xlane.f32.xlu2 %v1903_v23 }
 0x4bb   : > { %v2135_v29 = vpop.xlane.xlu1 %2134 }
 0x4bc   : > { %v2142_v33 = vsub.f32 %v5462_v24, %v2135_v29 }
 0x4be   : > { %v2145_v40 = vmul.f32 1.442695, %v2142_v33 }
 0x4c0   : > { %4280 = vpow2.f32 %v2145_v40 }
 0x4c1   : > { %4282 = vpow2.f32 %v2043_v34 }
 0x4c3   : > { %v2138_v50 = vpop.xlane.xlu2 %2137 }
 0x4c4   : > { %v2143_v20 = vsub.f32 %v5467_v28, %v2138_v50 }
 0x4c6   : > { %v5578_v47 = vpop.eup %4280  ;;  %2046 = vadd.xlane.f32.xlu0 %v2045_v56  ;;  %v2147_v48 = vmul.f32 1.442695, %v2143_v20 }
 0x4c7   : > { %v2151_v15 = vsel %vm1559_vm8, %v5578_v47, 0.0  ;;  %v5582_v49 = vpop.eup %4282 }
 0x4c8   : > { %2152 = vadd.xlane.f32.xlu2 %v2151_v15  ;;  %4284 = vpow2.f32 %v2147_v48  ;;  %v2051_v28 = vsel %vm1559_vm8, %v5582_v49, 0.0 }
 0x4c9   : > { %v2242_v24 = vpop.xlane.xlu1 %2241 }
 0x4ca   : > { %v2249_v59 = vsub.f32 %v5474_v53, %v2242_v24 }
 0x4cc   : > { %v2252_v44 = vmul.f32 1.442695, %v2249_v59 }
 0x4ce   : > { %4286 = vpow2.f32 %v2252_v44  ;;  %2052 = vadd.xlane.f32.xlu0 %v2051_v28  ;;  %v5587_v63 = vpop.eup %4284 }
 0x4cf   : > { %v2154_v7 = vsel %vm1559_vm8, %v5587_v63, 0.0 }
 0x4d1   : > { %v2141_v60 = vpop.xlane.xlu1 %2140  ;;  %v2245_v61 = vpop.xlane.xlu0 %2244 }
 0x4d2   : > { %v2250_v0 = vsub.f32 %v5485_v46, %v2245_v61  ;;  %v2144_v42 = vsub.f32 %v5481_v22, %v2141_v60 }
 0x4d4   : > { %v5590_v52 = vpop.eup %4286  ;;  %v2254_v1 = vmul.f32 1.442695, %v2250_v0  ;;  %v2149_v8 = vmul.f32 1.442695, %v2144_v42 }
 0x4d5   : > { %v2258_v53 = vsel %vm1559_vm8, %v5590_v52, 0.0 }
 0x4d6   : > { %2259 = vadd.xlane.f32.xlu2 %v2258_v53  ;;  %2155 = vadd.xlane.f32.xlu0 %v2154_v7  ;;  %4288 = vpow2.f32 %v2254_v1 }
 0x4d7   : > { %4290 = vpow2.f32 %v2149_v8 }
 0x4d9   : > { %v5597_v10 = vpop.xlane.xlu1 %2247 }
 0x4dc   : > { %v5599_v11 = vpop.eup %4288 }
 0x4dd   : > { %v2261_v46 = vsel %vm1559_vm8, %v5599_v11, 0.0  ;;  %v5603_v43 = vpop.eup %4290 }
 0x4de   : > { %2262 = vadd.xlane.f32.xlu1 %v2261_v46  ;;  %v2157_v12 = vsel %vm1559_vm8, %v5603_v43, 0.0 }
 0x4df   : > { %v1800_v33 = vpop.xlane.xlu2 %1799 }
 0x4e1   : > { %v1687_v22 = vpop.xlane.xlu1 %1686 }
 0x4e3   : > { %v2347_v9 = vpop.xlane.xlu0 %2346 }
 0x4e4   : > { %v2354_v54 = vsub.f32 %v5506_v27, %v2347_v9 }
 0x4e6   : > { %v2357_v62 = vmul.f32 1.442695, %v2354_v54  ;;  %2158 = vadd.xlane.f32.xlu1 %v2157_v12 }
 0x4e8   : > { %4292 = vpow2.f32 %v2357_v62 }
 0x4e9   : > { %v1794_v14 = vpop.xlane.xlu1 %1793 }
 0x4ea   : > { %4294 = vrcp.f32 %v1794_v14 }
 0x4eb   : > { %v2350_v13 = vpop.xlane.xlu0 %2349 }
 0x4ec   : > { %v2355_v37 = vsub.f32 %v5516_v18, %v2350_v13 }
 0x4ee   : > { %v5609_v19 = vpop.eup %4292  ;;  %v2359_v16 = vmul.f32 1.442695, %v2355_v37  ;;  %2382 = vrot.lane.b32.xlu2 %v5367_v4, %s4752_s28 }
 0x4ef   : > { %v2363_v27 = vsel %vm1559_vm8, %v5609_v19, 0.0 }
 0x4f0   : > { %4296 = vpow2.f32 %v2359_v16  ;;  %2364 = vadd.xlane.f32.xlu1 %v2363_v27  ;;  %v4295_v25 = vpop.eup %4294 }
 0x4f1   : > { %v1797_v55 = vpop.xlane.xlu1 %1796  ;;  %v1804_v35 = vmul.f32 %v4295_v25, %v5512_v51 }
 0x4f2   : > { %4298 = vrcp.f32 %v1797_v55 }
 0x4f3   : > { %v2353_v23 = vpop.xlane.xlu0 %2352  ;;  %4300 = vrcp.f32 %v1687_v22 }
 0x4f4   : > { %v2356_v24 = vsub.f32 %v5526_v32, %v2353_v23 }
 0x4f6   : > { %v5615_v31 = vpop.eup %4296  ;;  %v2361_v28 = vmul.f32 1.442695, %v2356_v24 }
 0x4f7   : > { %v2366_v18 = vsel %vm1559_vm8, %v5615_v31, 0.0 }
 0x4f8   : > { %v4299_v29 = vpop.eup %4298  ;;  %2367 = vadd.xlane.f32.xlu0 %v2366_v18 }
 0x4f9   : > { %v1805_v4 = vmul.f32 %v4299_v29, %v5523_v26  ;;  %v4301_v50 = vpop.eup %4300  ;;  %v1693_v51 = vpop.xlane.xlu1 %1692  ;;  %v2182_v26 = vsel %vm1603_vm6, %v5469_v30, 0 }
 0x4fa   : > { %v1697_v56 = vmul.f32 %v4301_v50, %v5498_v3 }
 0x4fb   : > { %v1807_v40 = vpack.c.bf16 %v1805_v4, %v1804_v35  ;;  %v1690_v34 = vpop.xlane.xlu0 %1689 }
 0x4fc   : > { %4302 = vrcp.f32 %v1690_v34 }
 0x4fd   : > { %3741 = vmatmul.msk.bf16.vlgmr.msrb.gmra.mxu3 %vm1559_vm8, %v1807_v40  ;;  %4304 = vrcp.f32 %v1800_v33 }
 0x4fe   : > { %4306 = vrcp.f32 %v1693_v51 }
 0x4ff   : > { %4308 = vpow2.f32 %v2361_v28 }
 0x502   : > { %v4303_v20 = vpop.eup %4302 }
 0x503   : > { %v1698_v15 = vmul.f32 %v4303_v20, %v5534_v39  ;;  %v4305_v48 = vpop.eup %4304 }
 0x504   : > { %v1806_v44 = vmul.f32 %v4305_v48, %v5500_v5  ;;  %v4307_v30 = vpop.eup %4306 }
 0x505   : > { %v1700_v59 = vpack.c.bf16 %v1698_v15, %v1697_v56  ;;  %v1699_v5 = vmul.f32 %v4307_v30, %v5532_v36  ;;  %v5637_v61 = vpop.eup %4308  ;;  %v2251_v36 = vsub.f32 %v5493_v17, %v5597_v10 }
 0x506   : > { %v1808_v3 = vpack.c.bf16 %v1806_v44, %v1806_v44 }
 0x507   : > { %3737 = vmatmul.msk.bf16.vlgmr.msrb.gmra.mxu1 %vm1559_vm8, %v1700_v59  ;;  %v1701_v0 = vpack.c.bf16 %v1699_v5, %v1699_v5  ;;  %v2256_v9 = vmul.f32 1.442695, %v2251_v36 }
 0x508   : > { %2190 = vmatpush.bf16.msrb.mxu1 %v2182_v26 }
 0x509   : > { %2275 = vrot.lane.b32.xlu1 %v5362_v2, %s4751_s5 }
 0x50c   : > { %2191 = vmatpush.bf16.msrb.mxu1 %v5478_v41  ;;  %2380 = vrot.lane.b32.xlu0 %v5362_v2, %s4752_s28  ;;  %v2369_v41 = vsel %vm1559_vm8, %v5637_v61, 0.0 }
 0x50d   : > { %3742 = vmatmul.msk.bf16.gmra.mxu3 %vm1559_vm8, %v1808_v3 }
 0x50e   : > { %v2278_v32 = vpop.permute.xlu0 %2277 }
 0x50f   : > { %v2287_v39 = vsel %vm1603_vm6, %v2278_v32, 0 }
 0x510   : > { %2295 = vmatpush.bf16.msrb.mxu3 %v2287_v39 }
 0x511   : > { %v1899_v60 = vpop.xlane.xlu2 %1898 }
 0x512   : > { %4310 = vrcp.f32 %v1899_v60 }
 0x517   : > { %2370 = vadd.xlane.f32.xlu2 %v2369_v41  ;;  %3738 = vmatmul.msk.bf16.gmra.mxu1 %vm1559_vm8, %v1701_v0 }
 0x518   : > { %v5642_v2 = vpop.f32.mrf.mxu3  ;;  %v4311_v42 = vpop.eup %4310 }
 0x519   : > { %v1902_v1 = vpop.xlane.xlu2 %1901  ;;  %v1909_v22 = vmul.f32 %v4311_v42, %v5550_v6 }
 0x51a   : > { %4312 = vrcp.f32 %v1902_v1 }
 0x51b   : > { %4314 = vpow2.f32 %v2256_v9 }
 0x520   : > { %v4313_v53 = vpop.eup %4312  ;;  %v5646_v7 = vpop.f32.mrf.mxu3 }
 0x521   : > { %v1910_v8 = vmul.f32 %v4313_v53, %v5556_v57  ;;  %v2050_v46 = vpop.xlane.xlu2 %2049  ;;  %v5653_v14 = vpop.eup %4314 }
 0x522   : > { %v2264_v10 = vsel %vm1559_vm8, %v5653_v14, 0.0 }
 0x523   : > { %v1912_v54 = vpack.c.bf16 %v1910_v8, %v1909_v22 }
 0x527   : > { %3745 = vmatmul.msk.bf16.vlgmr.msra.gmra.mxu1 %vm1559_vm8, %v1912_v54 }
 0x528   : > { %v5651_v62 = vpop.f32.mrf.mxu3 }
 0x529   : > { %v1905_v12 = vpop.xlane.xlu2 %1904 }
 0x52a   : > { %4316 = vrcp.f32 %v1905_v12 }
 0x52b   : > { %4318 = vrcp.f32 %v2050_v46 }
 0x530   : > { %v4317_v13 = vpop.eup %4316  ;;  %v1623_v17 = vpop.f32.mrf.mxu3 }
 0x531   : > { %v1911_v57 = vmul.f32 %v4317_v13, %v5566_v21  ;;  %v4319_v16 = vpop.eup %4318 }
 0x532   : > { %v2058_v55 = vmul.f32 %v4319_v16, %v5562_v58 }
 0x533   : > { %2265 = vadd.xlane.f32.xlu1 %v2264_v10  ;;  %v1913_v6 = vpack.c.bf16 %v1911_v57, %v1911_v57 }
 0x537   : > { %3746 = vmatmul.msk.bf16.gmra.mxu1 %vm1559_vm8, %v1913_v6 }
 0x539   : > { %v2047_v37 = vpop.xlane.xlu0 %2046 }
 0x53a   : > { %4320 = vrcp.f32 %v2047_v37 }
 0x53b   : > { %v2153_v25 = vpop.xlane.xlu2 %2152 }
 0x540   : > { %v4321_v27 = vpop.eup %4320 }
 0x541   : > { %v2057_v23 = vmul.f32 %v4321_v27, %v5573_v45  ;;  %v2053_v18 = vpop.xlane.xlu0 %2052 }
 0x542   : > { %4322 = vrcp.f32 %v2053_v18 }
 0x543   : > { %v2060_v29 = vpack.c.bf16 %v2058_v55, %v2057_v23  ;;  %4324 = vrcp.f32 %v2153_v25 }
 0x545   : > { %3749 = vmatmul.msk.bf16.vlgmr.msra.gmra.mxu3 %vm1559_vm8, %v2060_v29 }
 0x548   : > { %v4323_v4 = vpop.eup %4322 }
 0x549   : > { %v2260_v21 = vpop.xlane.xlu2 %2259  ;;  %v2156_v35 = vpop.xlane.xlu0 %2155  ;;  %v2059_v40 = vmul.f32 %v4323_v4, %v5582_v49  ;;  %v4007_v4 = vld [vmem:[%s5071_s24 + $0x38] sm:$0xff] }
 0x54a   : > { %4326 = vrcp.f32 %v2156_v35  ;;  %v4325_v33 = vpop.eup %4324  ;;  %2508 = vmatpush.bf16.msra.mxu2 %v4007_v4 }
 0x54b   : > { %v2163_v58 = vmul.f32 %v4325_v33, %v5578_v47  ;;  %v2061_v15 = vpack.c.bf16 %v2059_v40, %v2059_v40  ;;  %v4006_v40 = vld [vmem:[%s5071_s24 + $0x30] sm:$0xff] }
 0x54e   : > { %2509 = vmatpush.bf16.msra.mxu2 %v4006_v40  ;;  %v4402_v40 = vld [vmem:[#allocation2 + $0x28] sm:$0xff] }
 0x550   : > { %v4327_v34 = vpop.eup %4326 }
 0x551   : > { %v2383_v50 = vpop.permute.xlu2 %2382  ;;  %v2164_v45 = vmul.f32 %v4327_v34, %v5587_v63  ;;  %v2263_v56 = vpop.xlane.xlu1 %2262  ;;  %v4005_v34 = vld [vmem:[%s5071_s24 + $0x28] sm:$0xff] }
 0x552   : > { %v2392_v20 = vsel %vm1603_vm6, %v2383_v50, 0  ;;  %2510 = vmatpush.bf16.msra.mxu2 %v4005_v34  ;;  %v4004_v50 = vld [vmem:[%s5071_s24 + $0x20] sm:$0xff] }
 0x553   : > { %2400 = vmatpush.bf16.msra.mxu1 %v2392_v20  ;;  %v2166_v48 = vpack.c.bf16 %v2164_v45, %v2163_v58  ;;  %v4003_v58 = vld [vmem:[%s5071_s24 + $0x18] sm:$0xff]  ;;  %v4002_v45 = vld [vmem:[%s5071_s24 + $0x10] sm:$0xff]  ;;  %v4001_v20 = vld [vmem:[%s5071_s24 + $0x8] sm:$0xff] }
 0x555   : > { %3750 = vmatmul.msk.bf16.gmra.mxu3 %vm1559_vm8, %v2061_v15  ;;  %3753 = vmatmul.msk.bf16.vlgmr.msrb.gmra.mxu1 %vm1559_vm8, %v2166_v48 }
 0x556   : > { %2511 = vmatpush.bf16.msra.mxu2 %v4004_v50 }
 0x559   : > { %v2159_v24 = vpop.xlane.xlu1 %2158 }
 0x55a   : > { %4328 = vrcp.f32 %v2159_v24  ;;  %2512 = vmatpush.bf16.msra.mxu2 %v4003_v58 }
 0x55b   : > { %4330 = vrcp.f32 %v2263_v56 }
 0x55c   : > { %4332 = vrcp.f32 %v2260_v21 }
 0x55e   : > { %2513 = vmatpush.bf16.msra.mxu2 %v4002_v45 }
 0x560   : > { %v4329_v51 = vpop.eup %4328 }
 0x561   : > { %v2165_v49 = vmul.f32 %v4329_v51, %v5603_v43  ;;  %v4331_v26 = vpop.eup %4330  ;;  %v4000_v51 = vld [vmem:[%s5071_s24] sm:$0xff] }
 0x562   : > { %v4333_v44 = vpop.eup %4332  ;;  %v2271_v3 = vmul.f32 %v4331_v26, %v5599_v11  ;;  %2514 = vmatpush.bf16.msra.mxu2 %v4001_v20 }
 0x563   : > { %v2167_v59 = vpack.c.bf16 %v2165_v49, %v2165_v49  ;;  %v2365_v63 = vpop.xlane.xlu1 %2364  ;;  %v2270_v32 = vmul.f32 %v4333_v44, %v5590_v52 }
 0x565   : > { %3754 = vmatmul.msk.bf16.gmra.mxu1 %vm1559_vm8, %v2167_v59  ;;  %v2273_v5 = vpack.c.bf16 %v2271_v3, %v2270_v32 }
 0x566   : > { %2515 = vmatpush.bf16.msra.mxu2 %v4000_v51 }
 0x56b   : > { %v2368_v47 = vpop.xlane.xlu0 %2367 }
 0x56c   : > { %4334 = vrcp.f32 %v2368_v47 }
 0x56d   : > { %4336 = vrcp.f32 %v2365_v63 }
 0x572   : > { %v4335_v28 = vpop.eup %4334 }
 0x573   : > { %v4337_v30 = vpop.eup %4336  ;;  %v2376_v43 = vmul.f32 %v4335_v28, %v5615_v31 }
 0x574   : > { %v2375_v60 = vmul.f32 %v4337_v30, %v5609_v19 }
 0x576   : > { %v2378_v41 = vpack.c.bf16 %v2376_v43, %v2375_v60 }
 0x57b   : > { %v2276_v39 = vpop.permute.xlu1 %2275 }
 0x57c   : > { %2296 = vmatpush.bf16.msrb.mxu3 %v2276_v39 }
 0x57e   : > { %v2381_v0 = vpop.permute.xlu0 %2380 }
 0x57f   : > { %3757 = vmatmul.msk.bf16.vlgmr.msrb.gmra.mxu3 %vm1559_vm8, %v2273_v5  ;;  %2401 = vmatpush.bf16.msra.mxu1 %v2381_v0 }
 0x580   : > { %v1832_v1 = vpop.f32.mrf.mxu3 }
 0x582   : > { %3761 = vmatmul.msk.bf16.vlgmr.msra.gmra.mxu1 %vm1559_vm8, %v2378_v41 }
 0x584   : > { %v1727_v42 = vpop.f32.mrf.mxu1 }
 0x588   : > { %v1834_v11 = vpop.f32.mrf.mxu3 }
 0x589   : > { %v4186_v9 = vpack.i.bf16 %v1834_v11, %v1832_v1 }
 0x58a   : > { %v2371_v53 = vpop.xlane.xlu2 %2370 }
 0x58b   : > { %4338 = vrcp.f32 %v2371_v53 }
 0x58c   : > { %v1729_v52 = vpop.f32.mrf.mxu1 }
 0x58d   : > { %v4181_v36 = vpack.i.bf16 %v1729_v52, %v1727_v42 }
 0x58f   : > { %4182 = vrot.lane.b32.xlu0 %v4181_v36, %s4752_s28 }
 0x590   : > { %v1837_v31 = vpop.f32.mrf.mxu3 }
 0x591   : > { %v4339_v8 = vpop.eup %4338 }
 0x592   : > { %v2377_v19 = vmul.f32 %v4339_v8, %v5637_v61 }
 0x594   : > { %v1732_v46 = vpop.f32.mrf.mxu1  ;;  %v2379_v22 = vpack.c.bf16 %v2377_v19, %v2377_v19 }
 0x596   : > { %3762 = vmatmul.msk.bf16.gmra.mxu1 %vm1559_vm8, %v2379_v22 }
 0x597   : > { %4187 = vrot.lane.b32.xlu0 %v4186_v9, %s4751_s5 }
 0x598   : > { %v1839_v54 = vpop.f32.mrf.mxu3 }
 0x59c   : > { %v1734_v12 = vpop.f32.mrf.mxu1 }
 0x5a4   : > { %v1937_v13 = vpop.f32.mrf.mxu1 }
 0x5a6   : > { %v2266_v17 = vpop.xlane.xlu1 %2265 }
 0x5a7   : > { %4340 = vrcp.f32 %v2266_v17 }
 0x5ac   : > { %v1939_v10 = vpop.f32.mrf.mxu1 }
 0x5ad   : > { %v4341_v57 = vpop.eup %4340  ;;  %v4191_v6 = vpack.i.bf16 %v1939_v10, %v1937_v13 }
 0x5ae   : > { %v2272_v37 = vmul.f32 %v4341_v57, %v5653_v14 }
 0x5af   : > { %4192 = vrot.lane.b32.xlu1 %v4191_v6, %s4750_s26 }
 0x5b0   : > { %v2274_v61 = vpack.c.bf16 %v2272_v37, %v2272_v37 }
 0x5b2   : > { %3758 = vmatmul.msk.bf16.gmra.mxu3 %vm1559_vm8, %v2274_v61 }
 0x5b4   : > { %v1942_v16 = vpop.f32.mrf.mxu1 }
 0x5bc   : > { %v1944_v27 = vpop.f32.mrf.mxu1 }
 0x5c8   : > { %v5683_v55 = vpop.f32.mrf.mxu3 }
 0x5d0   : > { %v5685_v23 = vpop.f32.mrf.mxu3 }
 0x5d2   : > { %v2193_v25 = vpop.f32.mrf.mxu1 }
 0x5d3   : > { %v4196_v18 = vpack.i.bf16 %v2193_v25, %v1732_v46 }
 0x5d5   : > { %4197 = vrot.lane.b32.xlu0 %v4196_v18, %s4752_s28 }
 0x5d8   : > { %v5688_v14 = vpop.f32.mrf.mxu3 }
 0x5da   : > { %v2195_v29 = vpop.f32.mrf.mxu1 }
 0x5e0   : > { %v2089_v21 = vpop.f32.mrf.mxu3 }
 0x5e2   : > { %v2198_v35 = vpop.f32.mrf.mxu1 }
 0x5e3   : > { %v4211_v49 = vpack.i.bf16 %v2198_v35, %v2195_v29 }
 0x5ea   : > { %v2200_v33 = vpop.f32.mrf.mxu1 }
 0x5ff   : > { %v2403_v56 = vpop.f32.mrf.mxu1 }
 0x600   : > { %v4206_v15 = vpack.i.bf16 %v2403_v56, %v1942_v16 }
 0x601   : > { %v4183_v47 = vpop.permute.xlu0 %4182 }
 0x602   : > { %v2298_v48 = vpop.f32.mrf.mxu3  ;;  %4207 = vrot.lane.b32.xlu2 %v4206_v15, %s4750_s26  ;;  %v4185_v3 = vunpack.i.h.bf16 %v4183_v47  ;;  %v4184_v30 = vunpack.i.l.bf16 %v4183_v47 }
 0x603   : > { %v4201_v24 = vpack.i.bf16 %v2298_v48, %v1837_v31 }
 0x604   : > { %v1983_v5 = vsel %vm1528_vm5, %v5646_v7, %v4185_v3  ;;  %v1982_v60 = vsel %vm1528_vm5, %v5642_v2, %v4184_v30  ;;  %v4405_v30 = vld [vmem:[#allocation2] sm:$0xff] }
 0x605   : > { %4202 = vrot.lane.b32.xlu0 %v4201_v24, %s4751_s5 }
 0x607   : > { %v2405_v59 = vpop.f32.mrf.mxu1 }
 0x609   : > { %v4188_v28 = vpop.permute.xlu0 %4187 }
 0x60a   : > { %v4190_v32 = vunpack.i.h.bf16 %v4188_v28  ;;  %v4189_v39 = vunpack.i.l.bf16 %v4188_v28  ;;  %v2300_v36 = vpop.f32.mrf.mxu3 }
 0x60c   : > { %v1986_v1 = vsel %vm1985_vm9, %v1982_v60, %v4189_v39  ;;  %v1987_v42 = vsel %vm1985_vm9, %v1983_v5, %v4190_v32 }
 0x60d   : > { %4212 = vrot.lane.b32.xlu0 %v4211_v49, %s4752_s28 }
 0x613   : > { %v2408_v63 = vpop.f32.mrf.mxu1 }
 0x614   : > { %v4221_v26 = vpack.i.bf16 %v2408_v63, %v2405_v59  ;;  %v4403_v59 = vld [vmem:[#allocation2 + $0x10] sm:$0xff] }
 0x616   : > { %4222 = vrot.lane.b32.xlu0 %v4221_v26, %s4750_s26  ;;  %v4404_v26 = vld [vmem:[#allocation2 + $0x8] sm:$0xff] }
 0x61b   : > { %v2410_v44 = vpop.f32.mrf.mxu1 }
 0x621   : > { %v4193_v43 = vpop.permute.xlu1 %4192 }
 0x622   : > { %v4195_v0 = vunpack.i.h.bf16 %v4193_v43  ;;  %v4194_v41 = vunpack.i.l.bf16 %v4193_v43 }
 0x624   : > { %v1990_v11 = vsel %vm1989_vm10, %v1986_v1, %v4194_v41  ;;  %v1991_v53 = vsel %vm1989_vm10, %v1987_v42, %v4195_v0  ;;  %v4406_v42 = vld [vmem:[#allocation2 + $0x18] sm:$0xff] }
 0x625   : > { %v2457_v52 = vpack.c.bf16 %v1991_v53, %v1990_v11 }
 0x627   : > { %2516 = vmatmul.bf16.vlgmr.msra.gmra.mxu2 %v2457_v52 }
 0x635   : > { %v2303_v31 = vpop.f32.mrf.mxu3 }
 0x636   : > { %v4216_v8 = vpack.i.bf16 %v2303_v31, %v2300_v36 }
 0x638   : > { %4217 = vrot.lane.b32.xlu1 %v4216_v8, %s4751_s5  ;;  %v4407_v8 = vld [vmem:[#allocation2 + $0x20] sm:$0xff] }
 0x63d   : > { %v2305_v7 = vpop.f32.mrf.mxu3 }
 0x647   : > { %v4198_v19 = vpop.permute.xlu0 %4197 }
 0x648   : > { %v4200_v2 = vunpack.i.h.bf16 %v4198_v19  ;;  %v4199_v46 = vunpack.i.l.bf16 %v4198_v19 }
 0x64a   : > { %v2448_v13 = vsel %vm1528_vm5, %v5683_v55, %v4200_v2  ;;  %v1984_v17 = vsel %vm1528_vm5, %v5651_v62, %v4199_v46  ;;  %v4228_v62 = vld [vmem:[%s958_s10] ss:$0 sm:$0xff]  ;;  %s6070_s10 = scalar_lea.vmem [#allocation10], %s5032_s22 }
 0x65c   : > { %v4208_v22 = vpop.permute.xlu2 %4207 }
 0x65d   : > { %v4210_v10 = vunpack.i.h.bf16 %v4208_v22  ;;  %v4209_v57 = vunpack.i.l.bf16 %v4208_v22 }
 0x677   : > { %v4203_v9 = vpop.permute.xlu0 %4202 }
 0x678   : > { %v4205_v54 = vunpack.i.h.bf16 %v4203_v9  ;;  %v4204_v12 = vunpack.i.l.bf16 %v4203_v9 }
 0x67a   : > { %v1988_v6 = vsel %vm1985_vm9, %v1984_v17, %v4204_v12  ;;  %v2451_v37 = vsel %vm1985_vm9, %v2448_v13, %v4205_v54 }
 0x67b   : > { %v1992_v61 = vsel %vm1989_vm10, %v1988_v6, %v4209_v57  ;;  %v2454_v16 = vsel %vm1989_vm10, %v2451_v37, %v4210_v10  ;;  %v3853_v57 = vld [vmem:[%s5091_s1 + $0x70] sm:$0xf]  ;;  %v4023_v6 = vld [vmem:[%s5091_s1 + $0x74] sm:$0xf0]  ;;  %v4022_v37 = vld [vmem:[%s5091_s1 + $0x74] sm:$0xf] }
 0x67c   : > { %v2458_v27 = vpack.c.bf16 %v2454_v16, %v1992_v61  ;;  %v3854_v61 = vor.u32 %v4023_v6, %v3853_v57  ;;  %v3855_v16 = vld [vmem:[%s5091_s1 + $0x78] sm:$0xf0] }
 0x67e   : > { %2521 = vmatmul.bf16.gmra.mxu2 %v2458_v27  ;;  %v3858_v27 = vor.u32 %v4022_v37, %v3855_v16  ;;  %2773 = vmatpush.bf16.msra.mxu3 %v3854_v61 }
 0x67f   : > { %v4213_v25 = vpop.permute.xlu0 %4212 }
 0x680   : > { %v4215_v18 = vunpack.i.h.bf16 %v4213_v25  ;;  %v4214_v29 = vunpack.i.l.bf16 %v4213_v25  ;;  %2797 = vmatpush.bf16.msrb.mxu0 %v3858_v27  ;;  %v3845_v25 = vld [vmem:[%s5091_s1 + $0x60] sm:$0xf] }
 0x682   : > { %v2450_v50 = vsel %vm1528_vm5, %v5688_v14, %v4215_v18  ;;  %v2449_v58 = vsel %vm1528_vm5, %v5685_v23, %v4214_v29  ;;  %v4021_v18 = vld [vmem:[%s5091_s1 + $0x64] sm:$0xf0]  ;;  %v4020_v29 = vld [vmem:[%s5091_s1 + $0x64] sm:$0xf] }
 0x688   : > { %v4223_v21 = vpop.permute.xlu0 %4222 }
 0x689   : > { %v4225_v45 = vunpack.i.h.bf16 %v4223_v21  ;;  %v4224_v20 = vunpack.i.l.bf16 %v4223_v21  ;;  %v3846_v21 = vor.u32 %v4021_v18, %v3845_v25 }
 0x68b   : > { %2774 = vmatpush.bf16.msra.mxu3 %v3846_v21 }
 0x6aa   : > { %v4218_v55 = vpop.permute.xlu1 %4217  ;;  %v2517_v35 = vpop.f32.mrf.mxu2 }
 0x6ab   : > { %v4220_v4 = vunpack.i.h.bf16 %v4218_v55  ;;  %v4219_v33 = vunpack.i.l.bf16 %v4218_v55  ;;  %v2532_v34 = vadd.f32 %v4402_v40, %v2517_v35  ;;  %v3837_v35 = vld [vmem:[%s5091_s1 + $0x50] sm:$0xf] }
 0x6ad   : > { %v5728_v56 = vadd.f32 %v4228_v62, %v2532_v34  ;;  %v2452_v15 = vsel %vm1985_vm9, %v2449_v58, %v4219_v33  ;;  %v2453_v48 = vsel %vm1985_vm9, %v2450_v50, %v4220_v4  ;;  %v4019_v4 = vld [vmem:[%s5091_s1 + $0x54] sm:$0xf0]  ;;  %v4018_v33 = vld [vmem:[%s5091_s1 + $0x54] sm:$0xf]  ;;  %v3839_v50 = vld [vmem:[%s5091_s1 + $0x58] sm:$0xf0] }
 0x6ae   : > { %v2455_v24 = vsel %vm1989_vm10, %v2452_v15, %v4224_v20  ;;  %v2456_v51 = vsel %vm1989_vm10, %v2453_v48, %v4225_v45  ;;  %v3838_v34 = vor.u32 %v4019_v4, %v3837_v35  ;;  %v3842_v58 = vor.u32 %v4018_v33, %v3839_v50  ;;  %v3829_v20 = vld [vmem:[%s5091_s1 + $0x40] sm:$0xf]  ;;  %v4017_v15 = vld [vmem:[%s5091_s1 + $0x44] sm:$0xf0] }
 0x6af   : > { %2547 = vadd.xlane.f32.xlu1 %v5728_v56  ;;  %v2459_v49 = vpack.c.bf16 %v2456_v51, %v2455_v24  ;;  %v3830_v48 = vor.u32 %v4017_v15, %v3829_v20  ;;  %v4016_v24 = vld [vmem:[%s5091_s1 + $0x44] sm:$0xf]  ;;  %v3831_v51 = vld [vmem:[%s5091_s1 + $0x48] sm:$0xf0] }
 0x6b0   : > { %2775 = vmatpush.bf16.msra.mxu3 %v3838_v34 }
 0x6b1   : > { %2526 = vmatmul.bf16.gmra.mxu2 %v2459_v49  ;;  %v3834_v49 = vor.u32 %v4016_v24, %v3831_v51 }
 0x6b2   : > { %v2519_v14 = vpop.f32.mrf.mxu2 }
 0x6b3   : > { %v2533_v47 = vadd.f32 %v4403_v59, %v2519_v14  ;;  %v3821_v59 = vld [vmem:[%s5091_s1 + $0x30] sm:$0xf] }
 0x6b4   : > { %2776 = vmatpush.bf16.msra.mxu3 %v3830_v48  ;;  %v5823_v48 = vld [vmem:[%s6069_s3] ss:$0 sm:$0xff] }
 0x6b5   : > { %v5735_v23 = vadd.f32 %v4228_v62, %v2533_v47  ;;  %v4015_v47 = vld [vmem:[%s5091_s1 + $0x34] sm:$0xf0] }
 0x6b7   : > { %2549 = vadd.xlane.f32.xlu0 %v5735_v23 }
 0x701   : > { %v2522_v63 = vpop.f32.mrf.mxu2 }
 0x702   : > { %v2534_v44 = vadd.f32 %v4404_v26, %v2522_v63  ;;  %v4014_v63 = vld [vmem:[%s5091_s1 + $0x34] sm:$0xf]  ;;  %v3822_v26 = vor.u32 %v4015_v47, %v3821_v59 }
 0x704   : > { %v5738_v28 = vadd.f32 %v4228_v62, %v2534_v44  ;;  %v3823_v44 = vld [vmem:[%s5091_s1 + $0x38] sm:$0xf0]  ;;  %2777 = vmatpush.bf16.msra.mxu3 %v3822_v26 }
 0x706   : > { %2551 = vadd.xlane.f32.xlu2 %v5738_v28 }
 0x709   : > { %v2524_v3 = vpop.f32.mrf.mxu2 }
 0x70a   : > { %v2535_v32 = vadd.f32 %v4405_v30, %v2524_v3  ;;  %v3826_v3 = vor.u32 %v4014_v63, %v3823_v44  ;;  %v3813_v30 = vld [vmem:[%s5091_s1 + $0x20] sm:$0xf] }
 0x70c   : > { %v5741_v39 = vadd.f32 %v4228_v62, %v2535_v32  ;;  %v4013_v32 = vld [vmem:[%s5091_s1 + $0x24] sm:$0xf0] }
 0x70e   : > { %2553 = vadd.xlane.f32.xlu1 %v5741_v39 }
 0x722   : > { %v2548_v43 = vpop.xlane.xlu1 %2547 }
 0x723   : > { %v2559_v5 = vmul.f32 %v2548_v43, %v5121_v38  ;;  %v4012_v43 = vld [vmem:[%s5091_s1 + $0x24] sm:$0xf] }
 0x725   : > { %v5746_v60 = vsub.f32 %v5728_v56, %v2559_v5  ;;  %v3814_v5 = vor.u32 %v4013_v32, %v3813_v30 }
 0x727   : > { %v2571_v0 = vmul.f32 %v5746_v60, %v5746_v60  ;;  %2778 = vmatpush.bf16.msra.mxu3 %v3814_v5 }
 0x729   : > { %2577 = vadd.xlane.f32.xlu1 %v2571_v0  ;;  %v3815_v0 = vld [vmem:[%s5091_s1 + $0x28] sm:$0xf0] }
 0x72a   : > { %v2550_v41 = vpop.xlane.xlu0 %2549 }
 0x72b   : > { %v2560_v53 = vmul.f32 %v2550_v41, %v5121_v38  ;;  %v3818_v41 = vor.u32 %v4012_v43, %v3815_v0 }
 0x72d   : > { %v5755_v36 = vsub.f32 %v5735_v23, %v2560_v53 }
 0x72f   : > { %v2572_v2 = vmul.f32 %v5755_v36, %v5755_v36 }
 0x734   : > { %v2527_v1 = vpop.f32.mrf.mxu2 }
 0x735   : > { %v2536_v11 = vadd.f32 %v4406_v42, %v2527_v1  ;;  %v3805_v1 = vld [vmem:[%s5091_s1 + $0x10] sm:$0xf]  ;;  %v4011_v42 = vld [vmem:[%s5091_s1 + $0x14] sm:$0xf0] }
 0x737   : > { %v5751_v52 = vadd.f32 %v4228_v62, %v2536_v11  ;;  %v4010_v11 = vld [vmem:[%s5091_s1 + $0x14] sm:$0xf] }
 0x739   : > { %2555 = vadd.xlane.f32.xlu0 %v5751_v52 }
 0x73c   : > { %v2529_v31 = vpop.f32.mrf.mxu2 }
 0x73d   : > { %v2537_v7 = vadd.f32 %v4407_v8, %v2529_v31  ;;  %v3806_v31 = vor.u32 %v4011_v42, %v3805_v1  ;;  %v3807_v8 = vld [vmem:[%s5091_s1 + $0x18] sm:$0xf0] }
 0x73f   : > { %v5757_v19 = vadd.f32 %v4228_v62, %v2537_v7  ;;  %v3847_v62 = vld [vmem:[%s5091_s1 + $0x68] sm:$0xf0]  ;;  %v3797_v7 = vld [vmem:[%s5091_s1] sm:$0xf]  ;;  %2779 = vmatpush.bf16.msra.mxu3 %v3806_v31 }
 0x740   : > { %v3850_v55 = vor.u32 %v4020_v29, %v3847_v62 }
 0x741   : > { %2579 = vadd.xlane.f32.xlu0 %v2572_v2  ;;  %2557 = vadd.xlane.f32.xlu2 %v5757_v19 }
 0x742   : > { %2798 = vmatpush.bf16.msrb.mxu0 %v3850_v55 }
 0x746   : > { %2799 = vmatpush.bf16.msrb.mxu0 %v3842_v58 }
 0x74a   : > { %2800 = vmatpush.bf16.msrb.mxu0 %v3834_v49 }
 0x74e   : > { %2801 = vmatpush.bf16.msrb.mxu0 %v3826_v3 }
 0x752   : > { %2802 = vmatpush.bf16.msrb.mxu0 %v3818_v41 }
 0x779   : > { %v2552_v46 = vpop.xlane.xlu2 %2551 }
 0x77a   : > { %v2561_v22 = vmul.f32 %v2552_v46, %v5121_v38 }
 0x77c   : > { %v5764_v9 = vsub.f32 %v5738_v28, %v2561_v22  ;;  %v3810_v22 = vor.u32 %v4010_v11, %v3807_v8 }
 0x77e   : > { %v2573_v54 = vmul.f32 %v5764_v9, %v5764_v9  ;;  %2803 = vmatpush.bf16.msrb.mxu0 %v3810_v22 }
 0x780   : > { %2581 = vadd.xlane.f32.xlu2 %v2573_v54  ;;  %v4009_v54 = vld [vmem:[%s5091_s1 + $0x4] sm:$0xf0] }
 0x781   : > { %v2554_v12 = vpop.xlane.xlu1 %2553 }
 0x782   : > { %v2562_v13 = vmul.f32 %v2554_v12, %v5121_v38  ;;  %v4008_v12 = vld [vmem:[%s5091_s1 + $0x4] sm:$0xf] }
 0x784   : > { %v5770_v17 = vsub.f32 %v5741_v39, %v2562_v13  ;;  %v3799_v13 = vld [vmem:[%s5091_s1 + $0x8] sm:$0xf0]  ;;  %s6083_s1 = scalar_lea.vmem [#allocation11], %s5032_s22 }
 0x785   : > { %v3802_v6 = vor.u32 %v4008_v12, %v3799_v13 }
 0x786   : > { %v2574_v10 = vmul.f32 %v5770_v17, %v5770_v17 }
 0x787   : > { %2804 = vmatpush.bf16.msrb.mxu0 %v3802_v6 }
 0x788   : > { %2583 = vadd.xlane.f32.xlu1 %v2574_v10  ;;  %v3798_v10 = vor.u32 %v4009_v54, %v3797_v7 }
 0x78a   : > { %2780 = vmatpush.bf16.msra.mxu3 %v3798_v10 }
 0x79c   : > { %v2578_v40 = vpop.xlane.xlu1 %2577 }
 0x79d   : > { %v2589_v45 = vmul.f32 %v2578_v40, %v5121_v38 }
 0x79f   : > { %v2595_v14 = vadd.f32 1e-05, %v2589_v45 }
 0x7a1   : > { %4342 = vrsqrt.f32 %v2595_v14  ;;  %vm2607_vm12 = vweird.f32 %v2595_v14 }
 0x7a7   : > { %v4343_v2 = vpop.eup %4342 }
 0x7a8   : > { %v2602_v37 = vmul.f32 %v4343_v2, %v2595_v14  ;;  %vm2608_vm11 = vweird.f32 %v4343_v2  ;;  %v5829_v14 = vld [vmem:[%s6070_s10] ss:$0 sm:$0xff] }
 0x7a9   : > { %vm2609_vm13 = vmor %vm2607_vm12, %vm2608_vm11 }
 0x7aa   : > { %v2603_v16 = vmul.f32 %v4343_v2, %v2602_v37 }
 0x7ac   : > { %v2556_v53 = vpop.xlane.xlu0 %2555  ;;  %v2604_v55 = vmul.f32 0.5, %v2603_v16 }
 0x7ad   : > { %v2563_v46 = vmul.f32 %v2556_v53, %v5121_v38 }
 0x7ae   : > { %v2605_v4 = vsub.f32 1.5, %v2604_v55 }
 0x7af   : > { %v5809_v57 = vsub.f32 %v5751_v52, %v2563_v46 }
 0x7b0   : > { %v2606_v40 = vmul.f32 %v4343_v2, %v2605_v4 }
 0x7b1   : > { %v2575_v61 = vmul.f32 %v5809_v57, %v5809_v57 }
 0x7b2   : > { %v2610_v58 = vsel %vm2609_vm13, %v4343_v2, %v2606_v40 }
 0x7b3   : > { %2585 = vadd.xlane.f32.xlu0 %v2575_v61  ;;  %v2661_v15 = vmul.f32 %v2610_v58, %v5746_v60 }
 0x7b4   : > { %v2580_v27 = vpop.xlane.xlu0 %2579  ;;  %v2558_v25 = vpop.xlane.xlu2 %2557 }
 0x7b5   : > { %v2590_v18 = vmul.f32 %v2580_v27, %v5121_v38  ;;  %v2564_v29 = vmul.f32 %v2558_v25, %v5121_v38  ;;  %v2670_v59 = vmul.f32 %v5823_v48, %v2661_v15  ;;  %v4039_v15 = vld [vmem:[%s5102_s17 + $0x78] sm:$0xff] }
 0x7b6   : > { %3199 = vmatpush.bf16.msrb.mxu2 %v4039_v15 }
 0x7b7   : > { %v2596_v21 = vadd.f32 1e-05, %v2590_v18  ;;  %v5816_v62 = vsub.f32 %v5757_v19, %v2564_v29  ;;  %v2679_v63 = vadd.f32 %v5829_v14, %v2670_v59  ;;  %v4038_v59 = vld [vmem:[%s5102_s17 + $0x70] sm:$0xff] }
 0x7b9   : > { %4344 = vrsqrt.f32 %v2596_v21  ;;  %v2576_v35 = vmul.f32 %v5816_v62, %v5816_v62  ;;  %vm2617_vm15 = vweird.f32 %v2596_v21 }
 0x7ba   : > { %3200 = vmatpush.bf16.msrb.mxu2 %v4038_v59 }
 0x7bb   : > { %2587 = vadd.xlane.f32.xlu2 %v2576_v35 }
 0x7bf   : > { %v4345_v33 = vpop.eup %4344 }
 0x7c0   : > { %v2612_v34 = vmul.f32 %v4345_v33, %v2596_v21  ;;  %vm2618_vm14 = vweird.f32 %v4345_v33 }
 0x7c1   : > { %vm2619_vm0 = vmor %vm2617_vm15, %vm2618_vm14 }
 0x7c2   : > { %v2613_v50 = vmul.f32 %v4345_v33, %v2612_v34 }
 0x7c4   : > { %v2614_v45 = vmul.f32 0.5, %v2613_v50 }
 0x7c6   : > { %v2615_v20 = vsub.f32 1.5, %v2614_v45 }
 0x7c8   : > { %v2616_v24 = vmul.f32 %v4345_v33, %v2615_v20 }
 0x7ca   : > { %v2620_v51 = vsel %vm2619_vm0, %v4345_v33, %v2616_v24 }
 0x7cb   : > { %v2662_v49 = vmul.f32 %v2620_v51, %v5755_v36 }
 0x7cd   : > { %v2671_v47 = vmul.f32 %v5823_v48, %v2662_v49 }
 0x7cf   : > { %v2680_v60 = vadd.f32 %v5829_v14, %v2671_v47 }
 0x7d1   : > { %v2685_v26 = vpack.c.bf16 %v2680_v60, %v2679_v63  ;;  %v4031_v63 = vld [vmem:[%s5102_s17 + $0x38] sm:$0xff] }
 0x7d2   : > { %3175 = vmatpush.bf16.msrb.mxu1 %v4031_v63 }
 0x7d3   : > { %2781 = vmatmul.bf16.vlgmr.msra.gmra.mxu3 %v2685_v26  ;;  %2805 = vmatmul.bf16.vlgmr.msrb.gmra.mxu0 %v2685_v26 }
 0x7f3   : > { %v2582_v44 = vpop.xlane.xlu2 %2581 }
 0x7f4   : > { %v2591_v3 = vmul.f32 %v2582_v44, %v5121_v38  ;;  %v4037_v44 = vld [vmem:[%s5102_s17 + $0x68] sm:$0xff] }
 0x7f5   : > { %3201 = vmatpush.bf16.msrb.mxu2 %v4037_v44 }
 0x7f6   : > { %v2597_v30 = vadd.f32 1e-05, %v2591_v3 }
 0x7f8   : > { %4346 = vrsqrt.f32 %v2597_v30  ;;  %vm2627_vm2 = vweird.f32 %v2597_v30 }
 0x7fb   : > { %v2584_v36 = vpop.xlane.xlu1 %2583 }
 0x7fc   : > { %v2592_v32 = vmul.f32 %v2584_v36, %v5121_v38 }
 0x7fe   : > { %v4347_v43 = vpop.eup %4346  ;;  %v2598_v5 = vadd.f32 1e-05, %v2592_v32  ;;  %v1129_v32 = vld [vmem:[%s5097_s18] sm:$0x3]  ;;  %s6084_s18 = sld [smem:[#allocation41_spill]] (!%p3935_p1) }
 0x7ff   : > { %v2622_v0 = vmul.f32 %v4347_v43, %v2597_v30  ;;  %vm2628_vm1 = vweird.f32 %v4347_v43 }
 0x800   : > { %4348 = vrsqrt.f32 %v2598_v5  ;;  %vm2629_vm3 = vmor %vm2627_vm2, %vm2628_vm1  ;;  %vm2637_vm5 = vweird.f32 %v2598_v5 }
 0x801   : > { %v2623_v41 = vmul.f32 %v4347_v43, %v2622_v0  ;;  %v5858_v0 = vperm.slane %v1129_v32, 1 }
 0x803   : > { %v2624_v1 = vmul.f32 0.5, %v2623_v41 }
 0x805   : > { %v2625_v42 = vsub.f32 1.5, %v2624_v1  ;;  %v4028_v1 = vld [vmem:[%s5102_s17 + $0x20] sm:$0xff] }
 0x806   : > { %v4349_v11 = vpop.eup %4348 }
 0x807   : > { %v2626_v53 = vmul.f32 %v4347_v43, %v2625_v42  ;;  %v2632_v31 = vmul.f32 %v4349_v11, %v2598_v5  ;;  %vm2638_vm4 = vweird.f32 %v4349_v11  ;;  %v4034_v42 = vld [vmem:[%s5102_s17 + $0x50] sm:$0xff] }
 0x808   : > { %vm2639_vm6 = vmor %vm2637_vm5, %vm2638_vm4 }
 0x809   : > { %v2633_v8 = vmul.f32 %v4349_v11, %v2632_v31  ;;  %v2630_v7 = vsel %vm2629_vm3, %v4347_v43, %v2626_v53  ;;  %v4036_v43 = vld [vmem:[%s5102_s17 + $0x60] sm:$0xff]  ;;  %v5867_v53 = vperm.slane %v1129_v32, 0  ;;  %v4027_v31 = vld [vmem:[%s5102_s17 + $0x18] sm:$0xff] }
 0x80a   : > { %v2663_v22 = vmul.f32 %v2630_v7, %v5764_v9  ;;  %3202 = vmatpush.bf16.msrb.mxu2 %v4036_v43 }
 0x80b   : > { %v2634_v2 = vmul.f32 0.5, %v2633_v8 }
 0x80c   : > { %v2672_v10 = vmul.f32 %v5823_v48, %v2663_v22 }
 0x80d   : > { %v2635_v46 = vsub.f32 1.5, %v2634_v2  ;;  %v4033_v2 = vld [vmem:[%s5102_s17 + $0x48] sm:$0xff] }
 0x80e   : > { %v2681_v37 = vadd.f32 %v5829_v14, %v2672_v10  ;;  %v4032_v10 = vld [vmem:[%s5102_s17 + $0x40] sm:$0xff] }
 0x80f   : > { %v2636_v54 = vmul.f32 %v4349_v11, %v2635_v46 }
 0x811   : > { %v2640_v12 = vsel %vm2639_vm6, %v4349_v11, %v2636_v54  ;;  %v4026_v54 = vld [vmem:[%s5102_s17 + $0x10] sm:$0xff] }
 0x812   : > { %v2664_v13 = vmul.f32 %v2640_v12, %v5770_v17 }
 0x814   : > { %v2673_v6 = vmul.f32 %v5823_v48, %v2664_v13 }
 0x816   : > { %v2682_v61 = vadd.f32 %v5829_v14, %v2673_v6 }
 0x818   : > { %v2686_v16 = vpack.c.bf16 %v2682_v61, %v2681_v37  ;;  %v4025_v61 = vld [vmem:[%s5102_s17 + $0x8] sm:$0xff] }
 0x81a   : > { %2786 = vmatmul.bf16.gmra.mxu3 %v2686_v16  ;;  %2810 = vmatmul.bf16.gmra.mxu0 %v2686_v16 }
 0x826   : > { %v2586_v27 = vpop.xlane.xlu0 %2585 }
 0x827   : > { %v2593_v9 = vmul.f32 %v2586_v27, %v5121_v38 }
 0x829   : > { %v2599_v25 = vadd.f32 1e-05, %v2593_v9 }
 0x82b   : > { %4350 = vrsqrt.f32 %v2599_v25  ;;  %vm2647_vm8 = vweird.f32 %v2599_v25 }
 0x82e   : > { %v2588_v18 = vpop.xlane.xlu2 %2587 }
 0x82f   : > { %v2594_v29 = vmul.f32 %v2588_v18, %v5121_v38 }
 0x831   : > { %v4351_v17 = vpop.eup %4350  ;;  %v2600_v21 = vadd.f32 1e-05, %v2594_v29  ;;  %v4024_v29 = vld [vmem:[%s5102_s17] sm:$0xff] }
 0x832   : > { %v2642_v55 = vmul.f32 %v4351_v17, %v2599_v25  ;;  %vm2648_vm7 = vweird.f32 %v4351_v17 }
 0x833   : > { %4352 = vrsqrt.f32 %v2600_v21  ;;  %vm2649_vm9 = vmor %vm2647_vm8, %vm2648_vm7  ;;  %vm2657_vm11 = vweird.f32 %v2600_v21 }
 0x834   : > { %v2643_v35 = vmul.f32 %v4351_v17, %v2642_v55 }
 0x836   : > { %v2644_v4 = vmul.f32 0.5, %v2643_v35 }
 0x838   : > { %v2645_v33 = vsub.f32 1.5, %v2644_v4 }
 0x839   : > { %v4353_v40 = vpop.eup %4352 }
 0x83a   : > { %v2646_v34 = vmul.f32 %v4351_v17, %v2645_v33  ;;  %v2652_v50 = vmul.f32 %v4353_v40, %v2600_v21  ;;  %vm2658_vm10 = vweird.f32 %v4353_v40 }
 0x83b   : > { %vm2659_vm12 = vmor %vm2657_vm11, %vm2658_vm10 }
 0x83c   : > { %v2653_v58 = vmul.f32 %v4353_v40, %v2652_v50  ;;  %v2650_v45 = vsel %vm2649_vm9, %v4351_v17, %v2646_v34 }
 0x83d   : > { %v2665_v51 = vmul.f32 %v2650_v45, %v5809_v57  ;;  %v4030_v57 = vld [vmem:[%s5102_s17 + $0x30] sm:$0xff] }
 0x83e   : > { %v2654_v20 = vmul.f32 0.5, %v2653_v58  ;;  %3176 = vmatpush.bf16.msrb.mxu1 %v4030_v57 }
 0x83f   : > { %v2674_v26 = vmul.f32 %v5823_v48, %v2665_v51 }
 0x840   : > { %v2655_v24 = vsub.f32 1.5, %v2654_v20 }
 0x841   : > { %v2683_v30 = vadd.f32 %v5829_v14, %v2674_v26 }
 0x842   : > { %v2656_v49 = vmul.f32 %v4353_v40, %v2655_v24 }
 0x844   : > { %v2660_v47 = vsel %vm2659_vm12, %v4353_v40, %v2656_v49 }
 0x845   : > { %v2666_v60 = vmul.f32 %v2660_v47, %v5816_v62  ;;  %v4029_v62 = vld [vmem:[%s5102_s17 + $0x28] sm:$0xff] }
 0x846   : > { %3177 = vmatpush.bf16.msrb.mxu1 %v4029_v62 }
 0x847   : > { %v2675_v3 = vmul.f32 %v5823_v48, %v2666_v60  ;;  %v4035_v48 = vld [vmem:[%s5102_s17 + $0x58] sm:$0xff] }
 0x848   : > { %3203 = vmatpush.bf16.msrb.mxu2 %v4035_v48 }
 0x849   : > { %v2684_v36 = vadd.f32 %v5829_v14, %v2675_v3 }
 0x84a   : > { %3178 = vmatpush.bf16.msrb.mxu1 %v4028_v1 }
 0x84b   : > { %v2687_v5 = vpack.c.bf16 %v2684_v36, %v2683_v30 }
 0x84c   : > { %3204 = vmatpush.bf16.msrb.mxu2 %v4034_v42 }
 0x84d   : > { %2791 = vmatmul.bf16.gmra.mxu3 %v2687_v5  ;;  %2815 = vmatmul.bf16.gmra.mxu0 %v2687_v5 }
 0x84e   : > { %3179 = vmatpush.bf16.msrb.mxu1 %v4027_v31 }
 0x850   : > { %v2806_v41 = vpop.f32.mrf.mxu0  ;;  %3205 = vmatpush.bf16.msrb.mxu2 %v4033_v2 }
 0x851   : > { %v5863_v14 = vadd.f32 %v2806_v41, %v5858_v0 }
 0x852   : > { %3180 = vmatpush.bf16.msrb.mxu1 %v4026_v54 }
 0x853   : > { %v3860_v11 = vmul.f32 -1.702, %v5863_v14 }
 0x854   : > { %3206 = vmatpush.bf16.msrb.mxu2 %v4032_v10 }
 0x855   : > { %v2847_v8 = vmul.f32 1.442695, %v3860_v11 }
 0x856   : > { %v2782_v7 = vpop.f32.mrf.mxu3  ;;  %3181 = vmatpush.bf16.msrb.mxu1 %v4025_v61 }
 0x857   : > { %4354 = vpow2.f32 %v2847_v8  ;;  %v5872_v46 = vadd.f32 %v2782_v7, %v5867_v53 }
 0x858   : > { %v2808_v22 = vpop.f32.mrf.mxu0 }
 0x859   : > { %v3859_v12 = vmul.f32 -1.702, %v5872_v46  ;;  %v5877_v13 = vadd.f32 %v2808_v22, %v5858_v0 }
 0x85a   : > { %3182 = vmatpush.bf16.msrb.mxu1 %v4024_v29 }
 0x85b   : > { %v2845_v6 = vmul.f32 1.442695, %v3859_v12  ;;  %v3862_v37 = vmul.f32 -1.702, %v5877_v13 }
 0x85d   : > { %v4355_v16 = vpop.eup %4354  ;;  %4356 = vpow2.f32 %v2845_v6  ;;  %v2851_v27 = vmul.f32 1.442695, %v3862_v37 }
 0x85e   : > { %v2870_v9 = vadd.f32 1.0, %v4355_v16  ;;  %v2784_v25 = vpop.f32.mrf.mxu3 }
 0x85f   : > { %4358 = vpow2.f32 %v2851_v27  ;;  %v5883_v18 = vadd.f32 %v2784_v25, %v5867_v53 }
 0x860   : > { %4360 = vrcp.f32 %v2870_v9  ;;  %v2905_v49 = vand.u32 2147483647, %v2870_v9  ;;  %v2907_v60 = vand.u32 2147483648, %v2870_v9  ;;  %vm2901_vm14 = vweird.f32 %v2870_v9 }
 0x861   : > { %v3861_v17 = vmul.f32 -1.702, %v5883_v18 }
 0x862   : > { %vm2906_vm0 = vcmp.eq.f32.partialorder %v2905_v49, 8.507059e+37  ;;  %v2908_v5 = vor.u32 1.1754944e-38, %v2907_v60 }
 0x863   : > { %v4357_v21 = vpop.eup %4356  ;;  %v2849_v55 = vmul.f32 1.442695, %v3861_v17 }
 0x864   : > { %v2869_v35 = vadd.f32 1.0, %v4357_v21 }
 0x865   : > { %v4359_v4 = vpop.eup %4358  ;;  %4362 = vpow2.f32 %v2849_v55 }
 0x866   : > { %v4361_v33 = vpop.eup %4360  ;;  %4364 = vrcp.f32 %v2869_v35  ;;  %v2872_v34 = vadd.f32 1.0, %v4359_v4  ;;  %vm2886_vm3 = vweird.f32 %v2869_v35  ;;  %v2892_v41 = vand.u32 2147483648, %v2869_v35 }
 0x867   : > { %v2897_v40 = vmul.f32 %v4361_v33, %v2870_v9  ;;  %vm2902_vm13 = vweird.f32 %v4361_v33  ;;  %v2890_v11 = vand.u32 2147483647, %v2869_v35 }
 0x868   : > { %4366 = vrcp.f32 %v2872_v34  ;;  %vm5887_vm15 = vmor %vm2901_vm14, %vm2902_vm13  ;;  %v2937_v57 = vand.u32 2147483648, %v2872_v34  ;;  %v2935_v43 = vand.u32 2147483647, %v2872_v34  ;;  %vm2931_vm4 = vweird.f32 %v2872_v34 }
 0x869   : > { %v2898_v50 = vsub.f32 1.0, %v2897_v40  ;;  %v2893_v61 = vor.u32 1.1754944e-38, %v2892_v41  ;;  %vm2891_vm9 = vcmp.eq.f32.partialorder %v2890_v11, 8.507059e+37 }
 0x86a   : > { %v2938_v31 = vor.u32 1.1754944e-38, %v2937_v57  ;;  %vm2936_vm7 = vcmp.eq.f32.partialorder %v2935_v43, 8.507059e+37 }
 0x86b   : > { %v4363_v58 = vpop.eup %4362  ;;  %v2899_v20 = vmul.f32 %v4361_v33, %v2898_v50 }
 0x86c   : > { %v4365_v45 = vpop.eup %4364  ;;  %v2871_v15 = vadd.f32 1.0, %v4363_v58 }
 0x86d   : > { %v2882_v24 = vmul.f32 %v4365_v45, %v2869_v35  ;;  %v2900_v47 = vadd.f32 %v4361_v33, %v2899_v20  ;;  %vm2887_vm2 = vweird.f32 %v4365_v45 }
 0x86e   : > { %4368 = vrcp.f32 %v2871_v15  ;;  %v4367_v51 = vpop.eup %4366  ;;  %vm5893_vm6 = vmor %vm2886_vm3, %vm2887_vm2  ;;  %v2920_v22 = vand.u32 2147483647, %v2871_v15  ;;  %v2922_v54 = vand.u32 2147483648, %v2871_v15  ;;  %vm2916_vm10 = vweird.f32 %v2871_v15 }
 0x86f   : > { %v2883_v59 = vsub.f32 1.0, %v2882_v24  ;;  %v2927_v63 = vmul.f32 %v4367_v51, %v2872_v34  ;;  %v2904_v36 = vsel %vm5887_vm15, %v4361_v33, %v2900_v47  ;;  %vm2932_vm1 = vweird.f32 %v4367_v51 }
 0x870   : > { %v2909_v42 = vsel %vm2906_vm0, %v2908_v5, %v2904_v36  ;;  %vm2933_vm5 = vmor %vm2931_vm4, %vm2932_vm1  ;;  %v2923_v29 = vor.u32 1.1754944e-38, %v2922_v54  ;;  %vm2921_vm12 = vcmp.eq.f32.partialorder %v2920_v22, 8.507059e+37 }
 0x871   : > { %v2884_v26 = vmul.f32 %v4365_v45, %v2883_v59  ;;  %v2928_v44 = vsub.f32 1.0, %v2927_v63  ;;  %v3062_v37 = vmul.f32 %v2909_v42, %v5863_v14 }
 0x873   : > { %v2929_v32 = vmul.f32 %v4367_v51, %v2928_v44  ;;  %v2885_v62 = vadd.f32 %v4365_v45, %v2884_v26 }
 0x874   : > { %v4369_v30 = vpop.eup %4368 }
 0x875   : > { %v2912_v48 = vmul.f32 %v4369_v30, %v2871_v15  ;;  %v2930_v1 = vadd.f32 %v4367_v51, %v2929_v32  ;;  %v2889_v12 = vsel %vm5893_vm6, %v4365_v45, %v2885_v62  ;;  %vm2917_vm8 = vweird.f32 %v4369_v30 }
 0x876   : > { %v2894_v9 = vsel %vm2891_vm9, %v2893_v61, %v2889_v12  ;;  %vm2918_vm11 = vmor %vm2916_vm10, %vm2917_vm8 }
 0x877   : > { %v2913_v8 = vsub.f32 1.0, %v2912_v48  ;;  %v2934_v2 = vsel %vm2933_vm5, %v4367_v51, %v2930_v1  ;;  %v3061_v55 = vmul.f32 %v2894_v9, %v5872_v46 }
 0x878   : > { %v2939_v10 = vsel %vm2936_vm7, %v2938_v31, %v2934_v2 }
 0x879   : > { %v2914_v6 = vmul.f32 %v4369_v30, %v2913_v8  ;;  %v3064_v16 = vmul.f32 %v2939_v10, %v5877_v13 }
 0x87b   : > { %v2915_v27 = vadd.f32 %v4369_v30, %v2914_v6  ;;  %v3074_v25 = vpack.c.bf16 %v3064_v16, %v3062_v37 }
 0x87d   : > { %v2919_v17 = vsel %vm2918_vm11, %v4369_v30, %v2915_v27  ;;  %3207 = vmatmul.bf16.vlgmr.msrb.gmra.mxu2 %v3074_v25 }
 0x87e   : > { %v2924_v21 = vsel %vm2921_vm12, %v2923_v29, %v2919_v17 }
 0x87f   : > { %v3063_v35 = vmul.f32 %v2924_v21, %v5883_v18 }
 0x881   : > { %v3073_v4 = vpack.c.bf16 %v3063_v35, %v3061_v55 }
 0x883   : > { %3183 = vmatmul.bf16.vlgmr.msrb.gmra.mxu1 %v3073_v4 }
 0x897   : > { %v2811_v14 = vpop.f32.mrf.mxu0 }
 0x898   : > { %v5904_v13 = vadd.f32 %v2811_v14, %v5858_v0 }
 0x89a   : > { %v3864_v33 = vmul.f32 -1.702, %v5904_v13 }
 0x89c   : > { %v2855_v40 = vmul.f32 1.442695, %v3864_v33 }
 0x89d   : > { %v2787_v34 = vpop.f32.mrf.mxu3 }
 0x89e   : > { %4370 = vpow2.f32 %v2855_v40  ;;  %v5908_v50 = vadd.f32 %v2787_v34, %v5867_v53 }
 0x89f   : > { %v2813_v58 = vpop.f32.mrf.mxu0 }
 0x8a0   : > { %v3863_v45 = vmul.f32 -1.702, %v5908_v50  ;;  %v5912_v46 = vadd.f32 %v2813_v58, %v5858_v0 }
 0x8a2   : > { %v2853_v18 = vmul.f32 1.442695, %v3863_v45  ;;  %v3866_v20 = vmul.f32 -1.702, %v5912_v46 }
 0x8a4   : > { %v4371_v15 = vpop.eup %4370  ;;  %4372 = vpow2.f32 %v2853_v18  ;;  %v2859_v24 = vmul.f32 1.442695, %v3866_v20 }
 0x8a5   : > { %v2874_v51 = vadd.f32 1.0, %v4371_v15  ;;  %v2789_v49 = vpop.f32.mrf.mxu3 }
 0x8a6   : > { %4374 = vpow2.f32 %v2859_v24  ;;  %v5916_v59 = vadd.f32 %v2789_v49, %v5867_v53 }
 0x8a7   : > { %4376 = vrcp.f32 %v2874_v51  ;;  %v2965_v1 = vand.u32 2147483647, %v2874_v51  ;;  %v2967_v8 = vand.u32 2147483648, %v2874_v51  ;;  %vm2961_vm14 = vweird.f32 %v2874_v51 }
 0x8a8   : > { %v3865_v47 = vmul.f32 -1.702, %v5916_v59 }
 0x8a9   : > { %vm2966_vm0 = vcmp.eq.f32.partialorder %v2965_v1, 8.507059e+37  ;;  %v2968_v61 = vor.u32 1.1754944e-38, %v2967_v8 }
 0x8aa   : > { %v4373_v63 = vpop.eup %4372  ;;  %v2857_v60 = vmul.f32 1.442695, %v3865_v47 }
 0x8ab   : > { %v2873_v26 = vadd.f32 1.0, %v4373_v63 }
 0x8ac   : > { %v4375_v44 = vpop.eup %4374  ;;  %4378 = vpow2.f32 %v2857_v60 }
 0x8ad   : > { %v4377_v3 = vpop.eup %4376  ;;  %4380 = vrcp.f32 %v2873_v26  ;;  %v2876_v30 = vadd.f32 1.0, %v4375_v44  ;;  %vm2946_vm3 = vweird.f32 %v2873_v26  ;;  %v2952_v9 = vand.u32 2147483648, %v2873_v26 }
 0x8ae   : > { %v2957_v57 = vmul.f32 %v4377_v3, %v2874_v51  ;;  %vm2962_vm13 = vweird.f32 %v4377_v3  ;;  %v2950_v17 = vand.u32 2147483647, %v2873_v26 }
 0x8af   : > { %4382 = vrcp.f32 %v2876_v30  ;;  %vm5919_vm15 = vmor %vm2961_vm14, %vm2962_vm13  ;;  %v2997_v54 = vand.u32 2147483648, %v2876_v30  ;;  %v2995_v37 = vand.u32 2147483647, %v2876_v30  ;;  %vm2991_vm4 = vweird.f32 %v2876_v30 }
 0x8b0   : > { %v2958_v36 = vsub.f32 1.0, %v2957_v57  ;;  %v2953_v18 = vor.u32 1.1754944e-38, %v2952_v9  ;;  %vm2951_vm9 = vcmp.eq.f32.partialorder %v2950_v17, 8.507059e+37 }
 0x8b1   : > { %v2998_v21 = vor.u32 1.1754944e-38, %v2997_v54  ;;  %vm2996_vm7 = vcmp.eq.f32.partialorder %v2995_v37, 8.507059e+37 }
 0x8b2   : > { %v4379_v32 = vpop.eup %4378  ;;  %v2959_v5 = vmul.f32 %v4377_v3, %v2958_v36 }
 0x8b3   : > { %v4381_v43 = vpop.eup %4380  ;;  %v2875_v62 = vadd.f32 1.0, %v4379_v32 }
 0x8b4   : > { %v2942_v48 = vmul.f32 %v4381_v43, %v2873_v26  ;;  %v2960_v11 = vadd.f32 %v4377_v3, %v2959_v5  ;;  %vm2947_vm2 = vweird.f32 %v4381_v43 }
 0x8b5   : > { %4384 = vrcp.f32 %v2875_v62  ;;  %v4383_v41 = vpop.eup %4382  ;;  %vm5925_vm6 = vmor %vm2946_vm3, %vm2947_vm2  ;;  %v2980_v14 = vand.u32 2147483647, %v2875_v62  ;;  %v2982_v33 = vand.u32 2147483648, %v2875_v62  ;;  %vm2976_vm10 = vweird.f32 %v2875_v62 }
 0x8b6   : > { %v2943_v42 = vsub.f32 1.0, %v2942_v48  ;;  %v2987_v31 = vmul.f32 %v4383_v41, %v2876_v30  ;;  %v2964_v10 = vsel %vm5919_vm15, %v4377_v3, %v2960_v11  ;;  %vm2992_vm1 = vweird.f32 %v4383_v41 }
 0x8b7   : > { %v2969_v29 = vsel %vm2966_vm0, %v2968_v61, %v2964_v10  ;;  %vm2993_vm5 = vmor %vm2991_vm4, %vm2992_vm1  ;;  %v2983_v51 = vor.u32 1.1754944e-38, %v2982_v33  ;;  %vm2981_vm12 = vcmp.eq.f32.partialorder %v2980_v14, 8.507059e+37 }
 0x8b8   : > { %v2944_v7 = vmul.f32 %v4381_v43, %v2943_v42  ;;  %v2988_v2 = vsub.f32 1.0, %v2987_v31  ;;  %v3066_v45 = vmul.f32 %v2969_v29, %v5904_v13 }
 0x8ba   : > { %v2989_v6 = vmul.f32 %v4383_v41, %v2988_v2  ;;  %v2945_v16 = vadd.f32 %v4381_v43, %v2944_v7 }
 0x8bb   : > { %v4385_v12 = vpop.eup %4384 }
 0x8bc   : > { %v2972_v27 = vmul.f32 %v4385_v12, %v2875_v62  ;;  %v2990_v25 = vadd.f32 %v4383_v41, %v2989_v6  ;;  %v2949_v40 = vsel %vm5925_vm6, %v4381_v43, %v2945_v16  ;;  %vm2977_vm8 = vweird.f32 %v4385_v12 }
 0x8bd   : > { %v2954_v24 = vsel %vm2951_vm9, %v2953_v18, %v2949_v40  ;;  %vm2978_vm11 = vmor %vm2976_vm10, %vm2977_vm8 }
 0x8be   : > { %v2973_v55 = vsub.f32 1.0, %v2972_v27  ;;  %v2994_v4 = vsel %vm2993_vm5, %v4383_v41, %v2990_v25  ;;  %v3065_v60 = vmul.f32 %v2954_v24, %v5908_v50 }
 0x8bf   : > { %v2999_v34 = vsel %vm2996_vm7, %v2998_v21, %v2994_v4 }
 0x8c0   : > { %v2974_v58 = vmul.f32 %v4385_v12, %v2973_v55  ;;  %v3068_v20 = vmul.f32 %v2999_v34, %v5912_v46 }
 0x8c2   : > { %v2975_v15 = vadd.f32 %v4385_v12, %v2974_v58  ;;  %v3076_v49 = vpack.c.bf16 %v3068_v20, %v3066_v45 }
 0x8c4   : > { %v2979_v47 = vsel %vm2978_vm11, %v4385_v12, %v2975_v15  ;;  %3212 = vmatmul.bf16.gmra.mxu2 %v3076_v49 }
 0x8c5   : > { %v2984_v63 = vsel %vm2981_vm12, %v2983_v51, %v2979_v47 }
 0x8c6   : > { %v3067_v26 = vmul.f32 %v2984_v63, %v5916_v59 }
 0x8c8   : > { %v3075_v44 = vpack.c.bf16 %v3067_v26, %v3065_v60 }
 0x8ca   : > { %v2816_v13 = vpop.f32.mrf.mxu0  ;;  %3188 = vmatmul.bf16.gmra.mxu1 %v3075_v44 }
 0x8cb   : > { %v5936_v46 = vadd.f32 %v2816_v13, %v5858_v0 }
 0x8cd   : > { %v3868_v3 = vmul.f32 -1.702, %v5936_v46 }
 0x8cf   : > { %v2863_v57 = vmul.f32 1.442695, %v3868_v3 }
 0x8d0   : > { %v2792_v30 = vpop.f32.mrf.mxu3 }
 0x8d1   : > { %4386 = vpow2.f32 %v2863_v57  ;;  %v5940_v36 = vadd.f32 %v2792_v30, %v5867_v53 }
 0x8d2   : > { %v2818_v32 = vpop.f32.mrf.mxu0 }
 0x8d3   : > { %v3867_v43 = vmul.f32 -1.702, %v5940_v36  ;;  %v5944_v50 = vadd.f32 %v2818_v32, %v5858_v0 }
 0x8d5   : > { %v2861_v59 = vmul.f32 1.442695, %v3867_v43  ;;  %v3870_v5 = vmul.f32 -1.702, %v5944_v50 }
 0x8d7   : > { %v4387_v62 = vpop.eup %4386  ;;  %4388 = vpow2.f32 %v2861_v59  ;;  %v2867_v48 = vmul.f32 1.442695, %v3870_v5 }
 0x8d8   : > { %v2878_v41 = vadd.f32 1.0, %v4387_v62  ;;  %v2794_v1 = vpop.f32.mrf.mxu3 }
 0x8d9   : > { %4390 = vpow2.f32 %v2867_v48  ;;  %v5948_v42 = vadd.f32 %v2794_v1, %v5867_v53 }
 0x8da   : > { %4392 = vrcp.f32 %v2878_v41  ;;  %v3025_v27 = vand.u32 2147483647, %v2878_v41  ;;  %v3027_v17 = vand.u32 2147483648, %v2878_v41  ;;  %vm3021_vm14 = vweird.f32 %v2878_v41 }
 0x8db   : > { %v3869_v11 = vmul.f32 -1.702, %v5948_v42 }
 0x8dc   : > { %vm3026_vm0 = vcmp.eq.f32.partialorder %v3025_v27, 8.507059e+37  ;;  %v3028_v58 = vor.u32 1.1754944e-38, %v3027_v17 }
 0x8dd   : > { %v4389_v31 = vpop.eup %4388  ;;  %v2865_v8 = vmul.f32 1.442695, %v3869_v11 }
 0x8de   : > { %v2877_v7 = vadd.f32 1.0, %v4389_v31 }
 0x8df   : > { %v4391_v0 = vpop.eup %4390  ;;  %4394 = vpow2.f32 %v2865_v8 }
 0x8e0   : > { %v4393_v2 = vpop.eup %4392  ;;  %4396 = vrcp.f32 %v2877_v7  ;;  %v2880_v54 = vadd.f32 1.0, %v4391_v0  ;;  %vm3006_vm3 = vweird.f32 %v2877_v7  ;;  %v3012_v20 = vand.u32 2147483648, %v2877_v7  ;;  %v4231_v0 = vld [vmem:[%s6083_s1] ss:$0 sm:$0xff] }
 0x8e1   : > { %v3017_v22 = vmul.f32 %v4393_v2, %v2878_v41  ;;  %vm3022_vm13 = vweird.f32 %v4393_v2  ;;  %v3010_v51 = vand.u32 2147483647, %v2877_v7 }
 0x8e2   : > { %4398 = vrcp.f32 %v2880_v54  ;;  %vm5951_vm15 = vmor %vm3021_vm14, %vm3022_vm13  ;;  %v3057_v4 = vand.u32 2147483648, %v2880_v54  ;;  %v3055_v34 = vand.u32 2147483647, %v2880_v54  ;;  %vm3051_vm4 = vweird.f32 %v2880_v54 }
 0x8e3   : > { %v3018_v12 = vsub.f32 1.0, %v3017_v22  ;;  %v3013_v32 = vor.u32 1.1754944e-38, %v3012_v20  ;;  %vm3011_vm9 = vcmp.eq.f32.partialorder %v3010_v51, 8.507059e+37 }
 0x8e4   : > { %v3058_v49 = vor.u32 1.1754944e-38, %v3057_v4  ;;  %vm3056_vm7 = vcmp.eq.f32.partialorder %v3055_v34, 8.507059e+37 }
 0x8e5   : > { %v4395_v10 = vpop.eup %4394  ;;  %v3019_v37 = vmul.f32 %v4393_v2, %v3018_v12 }
 0x8e6   : > { %v4397_v6 = vpop.eup %4396  ;;  %v2879_v61 = vadd.f32 1.0, %v4395_v10 }
 0x8e7   : > { %v3002_v53 = vmul.f32 %v4397_v6, %v2877_v7  ;;  %v3020_v25 = vadd.f32 %v4393_v2, %v3019_v37  ;;  %vm3007_vm2 = vweird.f32 %v4397_v6 }
 0x8e8   : > { %4400 = vrcp.f32 %v2879_v61  ;;  %v4399_v16 = vpop.eup %4398  ;;  %vm5957_vm6 = vmor %vm3006_vm3, %vm3007_vm2  ;;  %v3040_v26 = vand.u32 2147483647, %v2879_v61  ;;  %v3042_v44 = vand.u32 2147483648, %v2879_v61  ;;  %vm3036_vm10 = vweird.f32 %v2879_v61 }
 0x8e9   : > { %v3003_v9 = vsub.f32 1.0, %v3002_v53  ;;  %v3047_v29 = vmul.f32 %v4399_v16, %v2880_v54  ;;  %v3024_v33 = vsel %vm5951_vm15, %v4393_v2, %v3020_v25  ;;  %vm3052_vm1 = vweird.f32 %v4399_v16 }
 0x8ea   : > { %v3029_v24 = vsel %vm3026_vm0, %v3028_v58, %v3024_v33  ;;  %vm3053_vm5 = vmor %vm3051_vm4, %vm3052_vm1  ;;  %v3043_v62 = vor.u32 1.1754944e-38, %v3042_v44  ;;  %vm3041_vm12 = vcmp.eq.f32.partialorder %v3040_v26, 8.507059e+37 }
 0x8eb   : > { %v3004_v21 = vmul.f32 %v4397_v6, %v3003_v9  ;;  %v3048_v55 = vsub.f32 1.0, %v3047_v29  ;;  %v3070_v30 = vmul.f32 %v3029_v24, %v5936_v46 }
 0x8ed   : > { %v3049_v40 = vmul.f32 %v4399_v16, %v3048_v55  ;;  %v3005_v45 = vadd.f32 %v4397_v6, %v3004_v21 }
 0x8ee   : > { %v4401_v14 = vpop.eup %4400 }
 0x8ef   : > { %v3032_v18 = vmul.f32 %v4401_v14, %v2879_v61  ;;  %v3050_v15 = vadd.f32 %v4399_v16, %v3049_v40  ;;  %v3009_v13 = vsel %vm5957_vm6, %v4397_v6, %v3005_v45  ;;  %vm3037_vm8 = vweird.f32 %v4401_v14 }
 0x8f0   : > { %v3014_v5 = vsel %vm3011_vm9, %v3013_v32, %v3009_v13  ;;  %vm3038_vm11 = vmor %vm3036_vm10, %vm3037_vm8 }
 0x8f1   : > { %v3033_v47 = vsub.f32 1.0, %v3032_v18  ;;  %v3054_v60 = vsel %vm3053_vm5, %v4399_v16, %v3050_v15  ;;  %v3069_v11 = vmul.f32 %v3014_v5, %v5940_v36 }
 0x8f2   : > { %v3059_v3 = vsel %vm3056_vm7, %v3058_v49, %v3054_v60 }
 0x8f3   : > { %v3034_v57 = vmul.f32 %v4401_v14, %v3033_v47  ;;  %v3072_v43 = vmul.f32 %v3059_v3, %v5944_v50 }
 0x8f5   : > { %v3035_v59 = vadd.f32 %v4401_v14, %v3034_v57  ;;  %v3078_v48 = vpack.c.bf16 %v3072_v43, %v3070_v30 }
 0x8f7   : > { %v3039_v41 = vsel %vm3038_vm11, %v4401_v14, %v3035_v59  ;;  %3217 = vmatmul.bf16.gmra.mxu2 %v3078_v48 }
 0x8f8   : > { %v3044_v1 = vsel %vm3041_vm12, %v3043_v62, %v3039_v41 }
 0x8f9   : > { %v3071_v31 = vmul.f32 %v3044_v1, %v5948_v42 }
 0x8fb   : > { %v3077_v46 = vpack.c.bf16 %v3071_v31, %v3069_v11 }
 0x8fd   : > { %3193 = vmatmul.bf16.gmra.mxu1 %v3077_v46 }
 0x900   : > { %v3184_v8 = vpop.f32.mrf.mxu1  ;;  %v3208_v50 = vpop.f32.mrf.mxu2 }
 0x901   : > { %v3209_v7 = vadd.f32 %v3208_v50, %v3184_v8 }
 0x903   : > { %v3223_v2 = vadd.f32 %v3209_v7, %v5728_v56 }
 0x905   : > { %v3232_v22 = vadd.f32 %v4231_v0, %v3223_v2 }
 0x907   : > { %3238 = vst [vmem:[#allocation2 + $0x28] sm:$0xff] %v3232_v22 }
 0x908   : > { %v3186_v54 = vpop.f32.mrf.mxu1  ;;  %v3210_v12 = vpop.f32.mrf.mxu2 }
 0x909   : > { %v3211_v10 = vadd.f32 %v3210_v12, %v3186_v54 }
 0x90b   : > { %v3224_v6 = vadd.f32 %v3211_v10, %v5735_v23 }
 0x90d   : > { %v3233_v37 = vadd.f32 %v4231_v0, %v3224_v6 }
 0x90f   : > { %3239 = vst [vmem:[#allocation2 + $0x10] sm:$0xff] %v3233_v37 }
 0x947   : > { %v3189_v36 = vpop.f32.mrf.mxu1  ;;  %v3213_v42 = vpop.f32.mrf.mxu2 }
 0x948   : > { %v3214_v61 = vadd.f32 %v3213_v42, %v3189_v36 }
 0x94a   : > { %v3225_v53 = vadd.f32 %v3214_v61, %v5738_v28 }
 0x94c   : > { %v3234_v16 = vadd.f32 %v4231_v0, %v3225_v53 }
 0x94e   : > { %3240 = vst [vmem:[#allocation2 + $0x8] sm:$0xff] %v3234_v16 }
 0x94f   : > { %v3191_v27 = vpop.f32.mrf.mxu1  ;;  %v3215_v9 = vpop.f32.mrf.mxu2 }
 0x950   : > { %v3216_v25 = vadd.f32 %v3215_v9, %v3191_v27 }
 0x952   : > { %v3226_v56 = vadd.f32 %v3216_v25, %v5741_v39 }
 0x954   : > { %v3235_v29 = vadd.f32 %v4231_v0, %v3226_v56 }
 0x956   : > { %3241 = vst [vmem:[#allocation2] sm:$0xff] %v3235_v29 }
 0x97a   : > { %v3194_v17 = vpop.f32.mrf.mxu1  ;;  %v3218_v21 = vpop.f32.mrf.mxu2 }
 0x97b   : > { %v3219_v55 = vadd.f32 %v3218_v21, %v3194_v17 }
 0x97d   : > { %v3227_v23 = vadd.f32 %v3219_v55, %v5751_v52 }
 0x97f   : > { %v3236_v35 = vadd.f32 %v4231_v0, %v3227_v23 }
 0x981   : > { %3242 = vst [vmem:[#allocation2 + $0x18] sm:$0xff] %v3236_v35 }
 0x982   : > { %v3196_v4 = vpop.f32.mrf.mxu1  ;;  %v3220_v14 = vpop.f32.mrf.mxu2 }
 0x983   : > { %v3221_v33 = vadd.f32 %v3220_v14, %v3196_v4 }
 0x985   : > { %v3228_v28 = vadd.f32 %v3221_v33, %v5757_v19  ;;  %3247 = sbr.rel (%p3935_p1) target bundleno = 2848 (0xb20), region = 148 }
 0x987   : > { %v3237_v40 = vadd.f32 %v4231_v0, %v3228_v28 }
 0x989   : > { %3243 = vst [vmem:[#allocation2 + $0x20] sm:$0xff] %v3237_v40 }
 0x98a   : > { %v3268_v39 = vrot.slane %v3237_v40, 7  ;;  %vm3270_vm13 = vcmask 1040384   ;;  %vm3272_vm14 = vcmask 1041408   ;;  %v4047_v15 = vld [vmem:[#allocation16 + $0x38] sm:$0xff]  ;;  %v4046_v19 = vld [vmem:[#allocation16 + $0x30] sm:$0xff]  ;;  %v4045_v24 = vld [vmem:[#allocation16 + $0x28] sm:$0xff] }
 0x98b   : > { %3354 = vmatpush.bf16.msra.mxu0 %v4047_v15  ;;  %v4044_v51 = vld [vmem:[#allocation16 + $0x20] sm:$0xff]  ;;  %v4043_v49 = vld [vmem:[#allocation16 + $0x18] sm:$0xff]  ;;  %v4042_v47 = vld [vmem:[#allocation16 + $0x10] sm:$0xff] }
 0x98c   : > { %v3271_v34 = vsel %vm3270_vm13, %v3234_v16, %v3268_v39  ;;  %v4041_v63 = vld [vmem:[#allocation16 + $0x8] sm:$0xff]  ;;  %v4040_v60 = vld [vmem:[#allocation16] sm:$0xff]  ;;  %v4408_v5 = vld [vmem:[#allocation13] ss:$0 sm:$0xff] }
 0x98d   : > { %v3273_v58 = vsel %vm3272_vm14, %v3271_v34, 0.0  ;;  %v4409_v41 = vld [vmem:[#allocation14] ss:$0 sm:$0xff] }
 0x98e   : > { %3274 = vadd.xlane.f32.xlu0 %v3273_v58 }
 0x98f   : > { %3355 = vmatpush.bf16.msra.mxu0 %v4046_v19 }
 0x993   : > { %3356 = vmatpush.bf16.msra.mxu0 %v4045_v24 }
 0x997   : > { %3357 = vmatpush.bf16.msra.mxu0 %v4044_v51 }
 0x99b   : > { %3358 = vmatpush.bf16.msra.mxu0 %v4043_v49 }
 0x99f   : > { %3359 = vmatpush.bf16.msra.mxu0 %v4042_v47 }
 0x9a3   : > { %3360 = vmatpush.bf16.msra.mxu0 %v4041_v63 }
 0x9a7   : > { %3361 = vmatpush.bf16.msra.mxu0 %v4040_v60 }
 0xa01   : > { %v3275_v45 = vpop.xlane.xlu0 %3274 }
 0xa02   : > { %v3276_v52 = vmul.f32 %v3275_v45, %v5121_v38 }
 0xa04   : > { %v3277_v18 = vsub.f32 %v3273_v58, %v3276_v52 }
 0xa06   : > { %v3278_v20 = vmul.f32 %v3277_v18, %v3277_v18 }
 0xa08   : > { %3279 = vadd.xlane.f32.xlu0 %v3278_v20 }
 0xa7b   : > { %v3280_v26 = vpop.xlane.xlu0 %3279 }
 0xa7c   : > { %v3281_v44 = vmul.f32 %v3280_v26, %v5121_v38  ;;  %v4410_v38 = vld [vmem:[%s6084_s18] ss:$0 sm:$0xff] }
 0xa7e   : > { %v3282_v13 = vadd.f32 1e-05, %v3281_v44 }
 0xa80   : > { %4411 = vrsqrt.f32 %v3282_v13  ;;  %vm3289_vm0 = vweird.f32 %v3282_v13 }
 0xa86   : > { %v4412_v3 = vpop.eup %4411 }
 0xa87   : > { %v3284_v57 = vmul.f32 %v4412_v3, %v3282_v13  ;;  %vm3290_vm15 = vweird.f32 %v4412_v3 }
 0xa88   : > { %vm3291_vm1 = vmor %vm3289_vm0, %vm3290_vm15 }
 0xa89   : > { %v3285_v30 = vmul.f32 %v4412_v3, %v3284_v57 }
 0xa8b   : > { %v3286_v32 = vmul.f32 0.5, %v3285_v30 }
 0xa8d   : > { %v3287_v43 = vsub.f32 1.5, %v3286_v32 }
 0xa8f   : > { %v3288_v59 = vmul.f32 %v4412_v3, %v3287_v43 }
 0xa91   : > { %v3292_v62 = vsel %vm3291_vm1, %v4412_v3, %v3288_v59 }
 0xa92   : > { %v3293_v48 = vmul.f32 %v3292_v62, %v3277_v18 }
 0xa94   : > { %v3297_v1 = vmul.f32 %v4408_v5, %v3293_v48 }
 0xa96   : > { %v3301_v11 = vadd.f32 %v4409_v41, %v3297_v1 }
 0xa98   : > { %v3302_v31 = vpack.c.bf16 %v3301_v11, %v3301_v11 }
 0xa9a   : > { %3362 = vmatmul.bf16.vlgmr.msra.gmra.mxu0 %v3302_v31 }
 0xb17   : > { %v3363_v46 = vpop.f32.mrf.mxu0 }
 0xb18   : > { %v3364_v8 = vadd.f32 %v4410_v38, %v3363_v46 }
 0xb1a   : > { %3367 = vst [vmem:[%s6085_s0] sm:$0xff] %v3364_v8 }
 0xb1f   : > { %v3365_v50 = vpop.f32.mrf.mxu0 }
 0xb20 PF: > { %s6086_s27 = sld [smem:[#allocation24_spill]]  ;;  %s6089_s2 = smov %s4729_s25 }
 0xb21   : > { %s6087_s29 = sld [smem:[#allocation23_spill]] }
 0xb22   : > { %s6088_s26 = sld [smem:[#allocation25_spill]] }
 0xb26   : > { %p37_p3 = scmp.ge.s32.totalorder %s6086_s27, 4  }
 0xb27   : > { %s6090_s25 = smov %s6087_s29 }
 0xb28   :  { %39 = sbr.rel (!%p37_p3) target bundleno = 26 (0x1a), region = 224 }
 0xb2d   :  { %3379 = vsyncpa [#allocation4], 1 }
 0xb2e   :  { %3381 = vsyncpa [#allocation4 + $0x1], 1 }
 0xb2f   :  { %3382 = vsyncpa [#allocation6], 1 }
 0xb30   :  { %3383 = vsyncpa [#allocation9], 1 }
 0xb31   :  { %3385 = vsyncpa [#allocation9 + $0x1], 1 }
 0xb32   :  { %3386 = vsyncpa [#allocation12], 1 }
 0xb33   :  { %3388 = vsyncpa [#allocation12 + $0x1], 1 }
 0xb34   :  { %3389 = vsyncpa [#allocation15], 1 }

</bundles_post_ra>
